<compile_context>
chip_gen: v5e
topology: v5e:2x2
jax: 0.10.0
libtpu: 0.0.40
codegen_flags: <defaults>
</compile_context>

<pallas_src>
import jax
import jax.numpy as jnp
from jax.experimental import pallas as pl
from jax.experimental.pallas import tpu as pltpu

_BN_EPS = 1e-5


# ----------------------------------------------------------------------------
# In-kernel helpers (operate on values / VMEM refs, traced once)
# ----------------------------------------------------------------------------
def _conv3x3_bn_relu(xpad, w_ref, aff_ref, H, W):
    """xpad: (H+2, W+2, Cin) bf16 value.  w_ref: (9, Cin, Cout) bf16.
    aff_ref: (3, Cout) f32 = [bias; bn_scale; bn_shift].  Returns (H*W, Cout) f32."""
    cin = xpad.shape[-1]
    M = H * W
    acc = None
    # In-kernel im2col: 9 shifted taps, each a (M, Cin) x (Cin, Cout) bf16 matmul
    # accumulated in f32 on the MXU.
    for kh in range(3):
        for kw in range(3):
            patch = xpad[kh:kh + H, kw:kw + W, :].reshape(M, cin)
            d = jnp.dot(patch, w_ref[kh * 3 + kw, :, :],
                        preferred_element_type=jnp.float32)
            acc = d if acc is None else acc + d
    bias = aff_ref[0:1, :]
    scale = aff_ref[1:2, :]
    shift = aff_ref[2:3, :]
    # bias -> ReLU -> folded eval-mode BatchNorm, all as broadcasted VPU ops.
    return jnp.maximum(acc + bias, 0.0) * scale + shift


def _maxpool2x2(y, H, W):
    """y: (H*W, C) f32 conv output (in registers) -> (H//2, W//2, C) f32."""
    C = y.shape[-1]
    # Row-pair max (pairing along H is a leading dim after this reshape).
    ya = y.reshape(H // 2, 2, W, C)
    hm = jnp.maximum(ya[:, 0, :, :], ya[:, 1, :, :])          # (H//2, W, C)
    # Column-pair max.
    wa = hm.reshape((H // 2) * (W // 2), 2, C)
    pm = jnp.maximum(wa[:, 0, :], wa[:, 1, :])                # (H//2 * W//2, C)
    return pm.reshape(H // 2, W // 2, C)


def _make_encoder_kernel(spatial, n_layers):
    """spatial[l] = H (== W) of layer l's conv output."""

    def kernel(*refs):
        x_ref = refs[0]
        w_refs = refs[1:1 + n_layers]
        a_refs = refs[1 + n_layers:1 + 2 * n_layers]
        y_refs = refs[1 + 2 * n_layers:1 + 3 * n_layers]
        pad_refs = refs[1 + 3 * n_layers:]          # (H_l+2, W_l+2, Cin_l) bf16 scratch

        # Layer-1 padded input: zero the halo'd scratch, drop the image interior in.
        H0 = spatial[0]
        pad_refs[0][...] = jnp.zeros_like(pad_refs[0])
        pad_refs[0][1:1 + H0, 1:1 + H0, :] = x_ref[...]

        for l in range(n_layers):
            H = spatial[l]
            xpad = pad_refs[l][...]                                     # bf16 value
            y = _conv3x3_bn_relu(xpad, w_refs[l], a_refs[l], H, H)      # (H*W, C) f32
            cout = y.shape[-1]
            # Skip-connection / feature output: single lane-preserving reshape store.
            y_refs[l][...] = y.reshape(H, H, cout).astype(y_refs[l].dtype)
            if l + 1 < n_layers:
                pooled = _maxpool2x2(y, H, H)                           # (H/2, H/2, C)
                nxt = pad_refs[l + 1]
                nxt[...] = jnp.zeros_like(nxt)                          # halo zeros
                nxt[1:1 + H // 2, 1:1 + H // 2, :] = pooled.astype(nxt.dtype)

    return kernel


# ----------------------------------------------------------------------------
# Parameters + forward
# ----------------------------------------------------------------------------
def init_params(key, in_channels, initial_filters):
    f = initial_filters
    layer_io = [(in_channels, f), (f, 2 * f), (2 * f, 4 * f),
                (4 * f, 8 * f), (8 * f, 16 * f)]
    params = []
    for ci, co in layer_io:
        key, k1, k2, k3, k4, k5, k6 = jax.random.split(key, 7)
        params.append(dict(
            w=0.1 * jax.random.normal(k1, (co, ci, 3, 3), jnp.float32),
            b=0.05 * jax.random.normal(k2, (co,), jnp.float32),
            gamma=1.0 + 0.1 * jax.random.normal(k3, (co,), jnp.float32),
            beta=0.1 * jax.random.normal(k4, (co,), jnp.float32),
            rmean=0.1 * jax.random.normal(k5, (co,), jnp.float32),
            rvar=1.0 + 0.5 * jax.random.uniform(k6, (co,), jnp.float32),
        ))
    return params


def unet_encoder_forward(x_nchw, params):
    N, _, H0, W0 = x_nchw.shape
    assert H0 == W0
    n_layers = len(params)
    spatial = [H0 // (2 ** i) for i in range(n_layers)]
    for s in spatial[:-1]:
        assert s % 2 == 0, "2x2 maxpool needs even spatial dims"

    # NCHW -> NHWC (channels on the 128-lane axis), bf16 matmul operands.
    x = jnp.transpose(x_nchw, (0, 2, 3, 1)).astype(jnp.bfloat16)

    cins = [p["w"].shape[1] for p in params]
    couts = [p["w"].shape[0] for p in params]

    w_list, a_list = [], []
    for p in params:
        co, ci = p["w"].shape[0], p["w"].shape[1]
        # (Cout, Cin, 3, 3) -> (3, 3, Cin, Cout) -> (9, Cin, Cout), real channels.
        wk = jnp.transpose(p["w"], (2, 3, 1, 0)).reshape(9, ci, co).astype(jnp.bfloat16)
        # Fold eval-mode BatchNorm into per-channel scale/shift.
        scale = p["gamma"] / jnp.sqrt(p["rvar"] + _BN_EPS)
        shift = p["beta"] - p["rmean"] * scale
        aff = jnp.stack([p["b"], scale, shift], axis=0).astype(jnp.float32)  # (3, Cout)
        w_list.append(wk)
        a_list.append(aff)

    in_specs = [pl.BlockSpec((None, H0, W0, cins[0]), lambda n: (n, 0, 0, 0))]
    in_specs += [pl.BlockSpec((9, cins[l], couts[l]), lambda n: (0, 0, 0))
                 for l in range(n_layers)]
    in_specs += [pl.BlockSpec((3, couts[l]), lambda n: (0, 0))
                 for l in range(n_layers)]

    out_shapes = tuple(
        jax.ShapeDtypeStruct((N, spatial[l], spatial[l], couts[l]), jnp.float32)
        for l in range(n_layers))
    out_specs = tuple(
        pl.BlockSpec((None, spatial[l], spatial[l], couts[l]),
                     lambda n: (n, 0, 0, 0))
        for l in range(n_layers))

    # Padded (halo'd) per-layer input activations, VMEM-resident.
    scratch = [pltpu.VMEM((spatial[l] + 2, spatial[l] + 2, cins[l]), jnp.bfloat16)
               for l in range(n_layers)]

    flops = sum(2 * N * spatial[l] ** 2 * 9 * cins[l] * couts[l]
                for l in range(n_layers))
    bytes_accessed = (x.size * 2
                      + sum(w.size * 2 for w in w_list)
                      + sum(a.size * 4 for a in a_list)
                      + sum(N * spatial[l] ** 2 * couts[l] * 4
                            for l in range(n_layers)))

    outs = pl.pallas_call(
        _make_encoder_kernel(tuple(spatial), n_layers),
        out_shape=out_shapes,
        grid=(N,),
        in_specs=in_specs,
        out_specs=out_specs,
        scratch_shapes=scratch,
        compiler_params=pltpu.CompilerParams(
            dimension_semantics=("parallel",),          # batch across TCs on v7x
            vmem_limit_bytes=32 * 1024 * 1024),
        cost_estimate=pl.CostEstimate(flops=flops, transcendentals=0,
                                      bytes_accessed=bytes_accessed),
    )(x, *w_list, *a_list)

    # NHWC -> NCHW for the PyTorch-shaped return values (tiny XLA transposes).
    to_nchw = lambda a: jnp.transpose(a, (0, 3, 1, 2))
    features = to_nchw(outs[n_layers - 1])
    x1 = to_nchw(outs[0])
    x2 = to_nchw(outs[1])
    x3 = to_nchw(outs[2])
    x4 = to_nchw(outs[3])
    return features, x1, x2, x3, x4


# ----------------------------------------------------------------------------
# Pure-JAX f32 reference (correctness check)
# ----------------------------------------------------------------------------
def reference_forward(x_nchw, params):
    def block(x, p):
        y = jax.lax.conv_general_dilated(
            x, p["w"], (1, 1), ((1, 1), (1, 1)),
            dimension_numbers=("NCHW", "OIHW", "NCHW"))
        y = y + p["b"][None, :, None, None]
        y = jnp.maximum(y, 0.0)
        scale = p["gamma"] / jnp.sqrt(p["rvar"] + _BN_EPS)
        shift = p["beta"] - p["rmean"] * scale
        return y * scale[None, :, None, None] + shift[None, :, None, None]

    def pool(x):
        return jax.lax.reduce_window(x, -jnp.inf, jax.lax.max,
                                     (1, 1, 2, 2), (1, 1, 2, 2), "VALID")

    x1 = block(x_nchw, params[0]); p1 = pool(x1)
    x2 = block(p1, params[1]);     p2 = pool(x2)
    x3 = block(p2, params[2]);     p3 = pool(x3)
    x4 = block(p3, params[3]);     p4 = pool(x4)
    features = block(p4, params[4])
    return features, x1, x2, x3, x4


# ----------------------------------------------------------------------------
if __name__ == "__main__":
    key = jax.random.PRNGKey(0)
    k_x, k_p = jax.random.split(key)

    in_channels, initial_filters = 4, 8
    x = jax.random.normal(k_x, (2, in_channels, 16, 16), jnp.float32)  # NCHW
    params = init_params(k_p, in_channels, initial_filters)

    fwd = jax.jit(unet_encoder_forward)
    outs = jax.block_until_ready(fwd(x, params))

    refs = reference_forward(x, params)
    names = ["features", "x1", "x2", "x3", "x4"]
    for name, o, r in zip(names, outs, refs):
        assert o.shape == r.shape, (name, o.shape, r.shape)
        # Tolerance validated for bf16 MXU operands / bf16 inter-layer activations
        # (f32 accumulation, f32 outputs).
        assert jnp.allclose(o, r, rtol=5e-2, atol=5e-2), (
            name, float(jnp.max(jnp.abs(o - r))))

    print("KERNEL_OK")
</pallas_src>

<mosaic_0001>
module attributes {stable_mosaic.version = 11 : i64} {
  func.func @kernel(%arg0: i32, %arg1: memref<1x16x16x4xbf16, #tpu.memory_space<vmem>>, %arg2: memref<9x4x8xbf16, #tpu.memory_space<vmem>>, %arg3: memref<9x8x16xbf16, #tpu.memory_space<vmem>>, %arg4: memref<9x16x32xbf16, #tpu.memory_space<vmem>>, %arg5: memref<9x32x64xbf16, #tpu.memory_space<vmem>>, %arg6: memref<9x64x128xbf16, #tpu.memory_space<vmem>>, %arg7: memref<3x8xf32, #tpu.memory_space<vmem>>, %arg8: memref<3x16xf32, #tpu.memory_space<vmem>>, %arg9: memref<3x32xf32, #tpu.memory_space<vmem>>, %arg10: memref<3x64xf32, #tpu.memory_space<vmem>>, %arg11: memref<3x128xf32, #tpu.memory_space<vmem>>, %arg12: memref<1x16x16x8xf32, #tpu.memory_space<vmem>>, %arg13: memref<1x8x8x16xf32, #tpu.memory_space<vmem>>, %arg14: memref<1x4x4x32xf32, #tpu.memory_space<vmem>>, %arg15: memref<1x2x2x64xf32, #tpu.memory_space<vmem>>, %arg16: memref<1x1x1x128xf32, #tpu.memory_space<vmem>>, %arg17: memref<18x18x4xbf16, #tpu.memory_space<vmem>>, %arg18: memref<10x10x8xbf16, #tpu.memory_space<vmem>>, %arg19: memref<6x6x16xbf16, #tpu.memory_space<vmem>>, %arg20: memref<4x4x32xbf16, #tpu.memory_space<vmem>>, %arg21: memref<3x3x64xbf16, #tpu.memory_space<vmem>>) attributes {dimension_semantics = [#tpu.dimension_semantics<parallel>], iteration_bounds = array<i64: 2>, scalar_prefetch = 0 : i64, scratch_operands = 5 : i64, tpu.core_type = #tpu.core_type<tc>, window_params = [{transform_indices = @transform_0, window_bounds = array<i64: 1, 16, 16, 4>}, {pipeline_mode = #tpu.pipeline_mode<synchronous>, transform_indices = @transform_1, window_bounds = array<i64: 9, 4, 8>}, {pipeline_mode = #tpu.pipeline_mode<synchronous>, transform_indices = @transform_2, window_bounds = array<i64: 9, 8, 16>}, {pipeline_mode = #tpu.pipeline_mode<synchronous>, transform_indices = @transform_3, window_bounds = array<i64: 9, 16, 32>}, {pipeline_mode = #tpu.pipeline_mode<synchronous>, transform_indices = @transform_4, window_bounds = array<i64: 9, 32, 64>}, {pipeline_mode = #tpu.pipeline_mode<synchronous>, transform_indices = @transform_5, window_bounds = array<i64: 9, 64, 128>}, {pipeline_mode = #tpu.pipeline_mode<synchronous>, transform_indices = @transform_6, window_bounds = array<i64: 3, 8>}, {pipeline_mode = #tpu.pipeline_mode<synchronous>, transform_indices = @transform_7, window_bounds = array<i64: 3, 16>}, {pipeline_mode = #tpu.pipeline_mode<synchronous>, transform_indices = @transform_8, window_bounds = array<i64: 3, 32>}, {pipeline_mode = #tpu.pipeline_mode<synchronous>, transform_indices = @transform_9, window_bounds = array<i64: 3, 64>}, {pipeline_mode = #tpu.pipeline_mode<synchronous>, transform_indices = @transform_10, window_bounds = array<i64: 3, 128>}, {transform_indices = @transform_11, window_bounds = array<i64: 1, 16, 16, 8>}, {transform_indices = @transform_12, window_bounds = array<i64: 1, 8, 8, 16>}, {transform_indices = @transform_13, window_bounds = array<i64: 1, 4, 4, 32>}, {transform_indices = @transform_14, window_bounds = array<i64: 1, 2, 2, 64>}, {transform_indices = @transform_15, window_bounds = array<i64: 1, 1, 1, 128>}]} {
    %cst = arith.constant 0.000000e+00 : bf16
    %0 = vector.broadcast %cst : bf16 to vector<18x18x4xbf16>
    %c0 = arith.constant 0 : index
    %c0_0 = arith.constant 0 : index
    %c0_1 = arith.constant 0 : index
    %1 = vector.load %arg17[%c0, %c0_0, %c0_1] : memref<18x18x4xbf16, #tpu.memory_space<vmem>>, vector<18x18x4xbf16>
    tpu.vector_store %arg17[%c0, %c0_0, %c0_1], %0 {strides = array<i32>} : memref<18x18x4xbf16, #tpu.memory_space<vmem>>, vector<18x18x4xbf16>,
    %c0_2 = arith.constant 0 : index
    %c0_3 = arith.constant 0 : index
    %c0_4 = arith.constant 0 : index
    %c0_5 = arith.constant 0 : index
    %2 = vector.load %arg1[%c0_2, %c0_3, %c0_4, %c0_5] : memref<1x16x16x4xbf16, #tpu.memory_space<vmem>>, vector<1x16x16x4xbf16>
    %3 = vector.shape_cast %2 : vector<1x16x16x4xbf16> to vector<16x16x4xbf16>
    %c1 = arith.constant 1 : index
    %c1_6 = arith.constant 1 : index
    %c0_7 = arith.constant 0 : index
    %4 = vector.load %arg17[%c1, %c1_6, %c0_7] : memref<18x18x4xbf16, #tpu.memory_space<vmem>>, vector<16x16x4xbf16>
    tpu.vector_store %arg17[%c1, %c1_6, %c0_7], %3 {strides = array<i32>} : memref<18x18x4xbf16, #tpu.memory_space<vmem>>, vector<16x16x4xbf16>,
    %c0_8 = arith.constant 0 : index
    %c0_9 = arith.constant 0 : index
    %c0_10 = arith.constant 0 : index
    %5 = vector.load %arg17[%c0_8, %c0_9, %c0_10] : memref<18x18x4xbf16, #tpu.memory_space<vmem>>, vector<18x18x4xbf16>
    %6 = vector.extract_strided_slice %5 {offsets = [0, 0, 0], sizes = [16, 16, 4], strides = [1, 1, 1]} : vector<18x18x4xbf16> to vector<16x16x4xbf16>
    %7 = vector.shape_cast %6 : vector<16x16x4xbf16> to vector<256x4xbf16>
    %c0_11 = arith.constant 0 : index
    %c0_12 = arith.constant 0 : index
    %c0_13 = arith.constant 0 : index
    %8 = vector.load %arg2[%c0_11, %c0_12, %c0_13] : memref<9x4x8xbf16, #tpu.memory_space<vmem>>, vector<1x4x8xbf16>
    %9 = vector.shape_cast %8 : vector<1x4x8xbf16> to vector<4x8xbf16>
    %cst_14 = arith.constant dense<0.000000e+00> : vector<256x8xf32>
    %10 = tpu.matmul %7, %9, %cst_14 {dimension_numbers = #tpu.dot_dimension_numbers<[1], [0], [0], [1], [0, 0, 1, 1], [], []>} : vector<256x4xbf16>, vector<4x8xbf16>, vector<256x8xf32> -> vector<256x8xf32>
    %11 = vector.extract_strided_slice %5 {offsets = [0, 1, 0], sizes = [16, 16, 4], strides = [1, 1, 1]} : vector<18x18x4xbf16> to vector<16x16x4xbf16>
    %12 = vector.shape_cast %11 : vector<16x16x4xbf16> to vector<256x4xbf16>
    %c1_15 = arith.constant 1 : index
    %c0_16 = arith.constant 0 : index
    %c0_17 = arith.constant 0 : index
    %13 = vector.load %arg2[%c1_15, %c0_16, %c0_17] : memref<9x4x8xbf16, #tpu.memory_space<vmem>>, vector<1x4x8xbf16>
    %14 = vector.shape_cast %13 : vector<1x4x8xbf16> to vector<4x8xbf16>
    %cst_18 = arith.constant dense<0.000000e+00> : vector<256x8xf32>
    %15 = tpu.matmul %12, %14, %cst_18 {dimension_numbers = #tpu.dot_dimension_numbers<[1], [0], [0], [1], [0, 0, 1, 1], [], []>} : vector<256x4xbf16>, vector<4x8xbf16>, vector<256x8xf32> -> vector<256x8xf32>
    %16 = arith.addf %10, %15 : vector<256x8xf32>
    %17 = vector.extract_strided_slice %5 {offsets = [0, 2, 0], sizes = [16, 16, 4], strides = [1, 1, 1]} : vector<18x18x4xbf16> to vector<16x16x4xbf16>
    %18 = vector.shape_cast %17 : vector<16x16x4xbf16> to vector<256x4xbf16>
    %c2 = arith.constant 2 : index
    %c0_19 = arith.constant 0 : index
    %c0_20 = arith.constant 0 : index
    %19 = vector.load %arg2[%c2, %c0_19, %c0_20] : memref<9x4x8xbf16, #tpu.memory_space<vmem>>, vector<1x4x8xbf16>
    %20 = vector.shape_cast %19 : vector<1x4x8xbf16> to vector<4x8xbf16>
    %cst_21 = arith.constant dense<0.000000e+00> : vector<256x8xf32>
    %21 = tpu.matmul %18, %20, %cst_21 {dimension_numbers = #tpu.dot_dimension_numbers<[1], [0], [0], [1], [0, 0, 1, 1], [], []>} : vector<256x4xbf16>, vector<4x8xbf16>, vector<256x8xf32> -> vector<256x8xf32>
    %22 = arith.addf %16, %21 : vector<256x8xf32>
    %23 = vector.extract_strided_slice %5 {offsets = [1, 0, 0], sizes = [16, 16, 4], strides = [1, 1, 1]} : vector<18x18x4xbf16> to vector<16x16x4xbf16>
    %24 = vector.shape_cast %23 : vector<16x16x4xbf16> to vector<256x4xbf16>
    %c3 = arith.constant 3 : index
    %c0_22 = arith.constant 0 : index
    %c0_23 = arith.constant 0 : index
    %25 = vector.load %arg2[%c3, %c0_22, %c0_23] : memref<9x4x8xbf16, #tpu.memory_space<vmem>>, vector<1x4x8xbf16>
    %26 = vector.shape_cast %25 : vector<1x4x8xbf16> to vector<4x8xbf16>
    %cst_24 = arith.constant dense<0.000000e+00> : vector<256x8xf32>
    %27 = tpu.matmul %24, %26, %cst_24 {dimension_numbers = #tpu.dot_dimension_numbers<[1], [0], [0], [1], [0, 0, 1, 1], [], []>} : vector<256x4xbf16>, vector<4x8xbf16>, vector<256x8xf32> -> vector<256x8xf32>
    %28 = arith.addf %22, %27 : vector<256x8xf32>
    %29 = vector.extract_strided_slice %5 {offsets = [1, 1, 0], sizes = [16, 16, 4], strides = [1, 1, 1]} : vector<18x18x4xbf16> to vector<16x16x4xbf16>
    %30 = vector.shape_cast %29 : vector<16x16x4xbf16> to vector<256x4xbf16>
    %c4 = arith.constant 4 : index
    %c0_25 = arith.constant 0 : index
    %c0_26 = arith.constant 0 : index
    %31 = vector.load %arg2[%c4, %c0_25, %c0_26] : memref<9x4x8xbf16, #tpu.memory_space<vmem>>, vector<1x4x8xbf16>
    %32 = vector.shape_cast %31 : vector<1x4x8xbf16> to vector<4x8xbf16>
    %cst_27 = arith.constant dense<0.000000e+00> : vector<256x8xf32>
    %33 = tpu.matmul %30, %32, %cst_27 {dimension_numbers = #tpu.dot_dimension_numbers<[1], [0], [0], [1], [0, 0, 1, 1], [], []>} : vector<256x4xbf16>, vector<4x8xbf16>, vector<256x8xf32> -> vector<256x8xf32>
    %34 = arith.addf %28, %33 : vector<256x8xf32>
    %35 = vector.extract_strided_slice %5 {offsets = [1, 2, 0], sizes = [16, 16, 4], strides = [1, 1, 1]} : vector<18x18x4xbf16> to vector<16x16x4xbf16>
    %36 = vector.shape_cast %35 : vector<16x16x4xbf16> to vector<256x4xbf16>
    %c5 = arith.constant 5 : index
    %c0_28 = arith.constant 0 : index
    %c0_29 = arith.constant 0 : index
    %37 = vector.load %arg2[%c5, %c0_28, %c0_29] : memref<9x4x8xbf16, #tpu.memory_space<vmem>>, vector<1x4x8xbf16>
    %38 = vector.shape_cast %37 : vector<1x4x8xbf16> to vector<4x8xbf16>
    %cst_30 = arith.constant dense<0.000000e+00> : vector<256x8xf32>
    %39 = tpu.matmul %36, %38, %cst_30 {dimension_numbers = #tpu.dot_dimension_numbers<[1], [0], [0], [1], [0, 0, 1, 1], [], []>} : vector<256x4xbf16>, vector<4x8xbf16>, vector<256x8xf32> -> vector<256x8xf32>
    %40 = arith.addf %34, %39 : vector<256x8xf32>
    %41 = vector.extract_strided_slice %5 {offsets = [2, 0, 0], sizes = [16, 16, 4], strides = [1, 1, 1]} : vector<18x18x4xbf16> to vector<16x16x4xbf16>
    %42 = vector.shape_cast %41 : vector<16x16x4xbf16> to vector<256x4xbf16>
    %c6 = arith.constant 6 : index
    %c0_31 = arith.constant 0 : index
    %c0_32 = arith.constant 0 : index
    %43 = vector.load %arg2[%c6, %c0_31, %c0_32] : memref<9x4x8xbf16, #tpu.memory_space<vmem>>, vector<1x4x8xbf16>
    %44 = vector.shape_cast %43 : vector<1x4x8xbf16> to vector<4x8xbf16>
    %cst_33 = arith.constant dense<0.000000e+00> : vector<256x8xf32>
    %45 = tpu.matmul %42, %44, %cst_33 {dimension_numbers = #tpu.dot_dimension_numbers<[1], [0], [0], [1], [0, 0, 1, 1], [], []>} : vector<256x4xbf16>, vector<4x8xbf16>, vector<256x8xf32> -> vector<256x8xf32>
    %46 = arith.addf %40, %45 : vector<256x8xf32>
    %47 = vector.extract_strided_slice %5 {offsets = [2, 1, 0], sizes = [16, 16, 4], strides = [1, 1, 1]} : vector<18x18x4xbf16> to vector<16x16x4xbf16>
    %48 = vector.shape_cast %47 : vector<16x16x4xbf16> to vector<256x4xbf16>
    %c7 = arith.constant 7 : index
    %c0_34 = arith.constant 0 : index
    %c0_35 = arith.constant 0 : index
    %49 = vector.load %arg2[%c7, %c0_34, %c0_35] : memref<9x4x8xbf16, #tpu.memory_space<vmem>>, vector<1x4x8xbf16>
    %50 = vector.shape_cast %49 : vector<1x4x8xbf16> to vector<4x8xbf16>
    %cst_36 = arith.constant dense<0.000000e+00> : vector<256x8xf32>
    %51 = tpu.matmul %48, %50, %cst_36 {dimension_numbers = #tpu.dot_dimension_numbers<[1], [0], [0], [1], [0, 0, 1, 1], [], []>} : vector<256x4xbf16>, vector<4x8xbf16>, vector<256x8xf32> -> vector<256x8xf32>
    %52 = arith.addf %46, %51 : vector<256x8xf32>
    %53 = vector.extract_strided_slice %5 {offsets = [2, 2, 0], sizes = [16, 16, 4], strides = [1, 1, 1]} : vector<18x18x4xbf16> to vector<16x16x4xbf16>
    %54 = vector.shape_cast %53 : vector<16x16x4xbf16> to vector<256x4xbf16>
    %c8 = arith.constant 8 : index
    %c0_37 = arith.constant 0 : index
    %c0_38 = arith.constant 0 : index
    %55 = vector.load %arg2[%c8, %c0_37, %c0_38] : memref<9x4x8xbf16, #tpu.memory_space<vmem>>, vector<1x4x8xbf16>
    %56 = vector.shape_cast %55 : vector<1x4x8xbf16> to vector<4x8xbf16>
    %cst_39 = arith.constant dense<0.000000e+00> : vector<256x8xf32>
    %57 = tpu.matmul %54, %56, %cst_39 {dimension_numbers = #tpu.dot_dimension_numbers<[1], [0], [0], [1], [0, 0, 1, 1], [], []>} : vector<256x4xbf16>, vector<4x8xbf16>, vector<256x8xf32> -> vector<256x8xf32>
    %58 = arith.addf %52, %57 : vector<256x8xf32>
    %c0_40 = arith.constant 0 : index
    %c0_41 = arith.constant 0 : index
    %59 = vector.load %arg7[%c0_40, %c0_41] : memref<3x8xf32, #tpu.memory_space<vmem>>, vector<1x8xf32>
    %c1_42 = arith.constant 1 : index
    %c0_43 = arith.constant 0 : index
    %60 = vector.load %arg7[%c1_42, %c0_43] : memref<3x8xf32, #tpu.memory_space<vmem>>, vector<1x8xf32>
    %c2_44 = arith.constant 2 : index
    %c0_45 = arith.constant 0 : index
    %61 = vector.load %arg7[%c2_44, %c0_45] : memref<3x8xf32, #tpu.memory_space<vmem>>, vector<1x8xf32>
    %62 = vector.broadcast %59 : vector<1x8xf32> to vector<256x8xf32>
    %63 = arith.addf %58, %62 : vector<256x8xf32>
    %cst_46 = arith.constant 0.000000e+00 : f32
    %64 = vector.broadcast %cst_46 : f32 to vector<256x8xf32>
    %65 = arith.maximumf %63, %64 : vector<256x8xf32>
    %66 = vector.broadcast %60 : vector<1x8xf32> to vector<256x8xf32>
    %67 = arith.mulf %65, %66 : vector<256x8xf32>
    %68 = vector.broadcast %61 : vector<1x8xf32> to vector<256x8xf32>
    %69 = arith.addf %67, %68 : vector<256x8xf32>
    %70 = vector.shape_cast %69 : vector<256x8xf32> to vector<16x16x8xf32>
    %c0_47 = arith.constant 0 : index
    %c0_48 = arith.constant 0 : index
    %c0_49 = arith.constant 0 : index
    %c0_50 = arith.constant 0 : index
    %71 = vector.load %arg12[%c0_47, %c0_48, %c0_49, %c0_50] : memref<1x16x16x8xf32, #tpu.memory_space<vmem>>, vector<1x16x16x8xf32>
    %72 = vector.shape_cast %71 : vector<1x16x16x8xf32> to vector<16x16x8xf32>
    %73 = vector.shape_cast %70 : vector<16x16x8xf32> to vector<1x16x16x8xf32>
    tpu.vector_store %arg12[%c0_47, %c0_48, %c0_49, %c0_50], %73 {strides = array<i32>} : memref<1x16x16x8xf32, #tpu.memory_space<vmem>>, vector<1x16x16x8xf32>,
    %74 = vector.shape_cast %69 : vector<256x8xf32> to vector<8x2x16x8xf32>
    %75 = vector.extract_strided_slice %74 {offsets = [0, 0, 0, 0], sizes = [8, 1, 16, 8], strides = [1, 1, 1, 1]} : vector<8x2x16x8xf32> to vector<8x1x16x8xf32>
    %76 = vector.shape_cast %75 : vector<8x1x16x8xf32> to vector<8x16x8xf32>
    %77 = vector.extract_strided_slice %74 {offsets = [0, 1, 0, 0], sizes = [8, 1, 16, 8], strides = [1, 1, 1, 1]} : vector<8x2x16x8xf32> to vector<8x1x16x8xf32>
    %78 = vector.shape_cast %77 : vector<8x1x16x8xf32> to vector<8x16x8xf32>
    %79 = arith.maximumf %76, %78 : vector<8x16x8xf32>
    %80 = vector.shape_cast %79 : vector<8x16x8xf32> to vector<64x2x8xf32>
    %81 = vector.extract_strided_slice %80 {offsets = [0, 0, 0], sizes = [64, 1, 8], strides = [1, 1, 1]} : vector<64x2x8xf32> to vector<64x1x8xf32>
    %82 = vector.shape_cast %81 : vector<64x1x8xf32> to vector<64x8xf32>
    %83 = vector.extract_strided_slice %80 {offsets = [0, 1, 0], sizes = [64, 1, 8], strides = [1, 1, 1]} : vector<64x2x8xf32> to vector<64x1x8xf32>
    %84 = vector.shape_cast %83 : vector<64x1x8xf32> to vector<64x8xf32>
    %85 = arith.maximumf %82, %84 : vector<64x8xf32>
    %86 = vector.shape_cast %85 : vector<64x8xf32> to vector<8x8x8xf32>
    %cst_51 = arith.constant 0.000000e+00 : bf16
    %87 = vector.broadcast %cst_51 : bf16 to vector<10x10x8xbf16>
    %c0_52 = arith.constant 0 : index
    %c0_53 = arith.constant 0 : index
    %c0_54 = arith.constant 0 : index
    %88 = vector.load %arg18[%c0_52, %c0_53, %c0_54] : memref<10x10x8xbf16, #tpu.memory_space<vmem>>, vector<10x10x8xbf16>
    tpu.vector_store %arg18[%c0_52, %c0_53, %c0_54], %87 {strides = array<i32>} : memref<10x10x8xbf16, #tpu.memory_space<vmem>>, vector<10x10x8xbf16>,
    %89 = arith.truncf %86 : vector<8x8x8xf32> to vector<8x8x8xbf16>
    %c1_55 = arith.constant 1 : index
    %c1_56 = arith.constant 1 : index
    %c0_57 = arith.constant 0 : index
    %90 = vector.load %arg18[%c1_55, %c1_56, %c0_57] : memref<10x10x8xbf16, #tpu.memory_space<vmem>>, vector<8x8x8xbf16>
    tpu.vector_store %arg18[%c1_55, %c1_56, %c0_57], %89 {strides = array<i32>} : memref<10x10x8xbf16, #tpu.memory_space<vmem>>, vector<8x8x8xbf16>,
    %c0_58 = arith.constant 0 : index
    %c0_59 = arith.constant 0 : index
    %c0_60 = arith.constant 0 : index
    %91 = vector.load %arg18[%c0_58, %c0_59, %c0_60] : memref<10x10x8xbf16, #tpu.memory_space<vmem>>, vector<10x10x8xbf16>
    %92 = vector.extract_strided_slice %91 {offsets = [0, 0, 0], sizes = [8, 8, 8], strides = [1, 1, 1]} : vector<10x10x8xbf16> to vector<8x8x8xbf16>
    %93 = vector.shape_cast %92 : vector<8x8x8xbf16> to vector<64x8xbf16>
    %c0_61 = arith.constant 0 : index
    %c0_62 = arith.constant 0 : index
    %c0_63 = arith.constant 0 : index
    %94 = vector.load %arg3[%c0_61, %c0_62, %c0_63] : memref<9x8x16xbf16, #tpu.memory_space<vmem>>, vector<1x8x16xbf16>
    %95 = vector.shape_cast %94 : vector<1x8x16xbf16> to vector<8x16xbf16>
    %cst_64 = arith.constant dense<0.000000e+00> : vector<64x16xf32>
    %96 = tpu.matmul %93, %95, %cst_64 {dimension_numbers = #tpu.dot_dimension_numbers<[1], [0], [0], [1], [0, 0, 1, 1], [], []>} : vector<64x8xbf16>, vector<8x16xbf16>, vector<64x16xf32> -> vector<64x16xf32>
    %97 = vector.extract_strided_slice %91 {offsets = [0, 1, 0], sizes = [8, 8, 8], strides = [1, 1, 1]} : vector<10x10x8xbf16> to vector<8x8x8xbf16>
    %98 = vector.shape_cast %97 : vector<8x8x8xbf16> to vector<64x8xbf16>
    %c1_65 = arith.constant 1 : index
    %c0_66 = arith.constant 0 : index
    %c0_67 = arith.constant 0 : index
    %99 = vector.load %arg3[%c1_65, %c0_66, %c0_67] : memref<9x8x16xbf16, #tpu.memory_space<vmem>>, vector<1x8x16xbf16>
    %100 = vector.shape_cast %99 : vector<1x8x16xbf16> to vector<8x16xbf16>
    %cst_68 = arith.constant dense<0.000000e+00> : vector<64x16xf32>
    %101 = tpu.matmul %98, %100, %cst_68 {dimension_numbers = #tpu.dot_dimension_numbers<[1], [0], [0], [1], [0, 0, 1, 1], [], []>} : vector<64x8xbf16>, vector<8x16xbf16>, vector<64x16xf32> -> vector<64x16xf32>
    %102 = arith.addf %96, %101 : vector<64x16xf32>
    %103 = vector.extract_strided_slice %91 {offsets = [0, 2, 0], sizes = [8, 8, 8], strides = [1, 1, 1]} : vector<10x10x8xbf16> to vector<8x8x8xbf16>
    %104 = vector.shape_cast %103 : vector<8x8x8xbf16> to vector<64x8xbf16>
    %c2_69 = arith.constant 2 : index
    %c0_70 = arith.constant 0 : index
    %c0_71 = arith.constant 0 : index
    %105 = vector.load %arg3[%c2_69, %c0_70, %c0_71] : memref<9x8x16xbf16, #tpu.memory_space<vmem>>, vector<1x8x16xbf16>
    %106 = vector.shape_cast %105 : vector<1x8x16xbf16> to vector<8x16xbf16>
    %cst_72 = arith.constant dense<0.000000e+00> : vector<64x16xf32>
    %107 = tpu.matmul %104, %106, %cst_72 {dimension_numbers = #tpu.dot_dimension_numbers<[1], [0], [0], [1], [0, 0, 1, 1], [], []>} : vector<64x8xbf16>, vector<8x16xbf16>, vector<64x16xf32> -> vector<64x16xf32>
    %108 = arith.addf %102, %107 : vector<64x16xf32>
    %109 = vector.extract_strided_slice %91 {offsets = [1, 0, 0], sizes = [8, 8, 8], strides = [1, 1, 1]} : vector<10x10x8xbf16> to vector<8x8x8xbf16>
    %110 = vector.shape_cast %109 : vector<8x8x8xbf16> to vector<64x8xbf16>
    %c3_73 = arith.constant 3 : index
    %c0_74 = arith.constant 0 : index
    %c0_75 = arith.constant 0 : index
    %111 = vector.load %arg3[%c3_73, %c0_74, %c0_75] : memref<9x8x16xbf16, #tpu.memory_space<vmem>>, vector<1x8x16xbf16>
    %112 = vector.shape_cast %111 : vector<1x8x16xbf16> to vector<8x16xbf16>
    %cst_76 = arith.constant dense<0.000000e+00> : vector<64x16xf32>
    %113 = tpu.matmul %110, %112, %cst_76 {dimension_numbers = #tpu.dot_dimension_numbers<[1], [0], [0], [1], [0, 0, 1, 1], [], []>} : vector<64x8xbf16>, vector<8x16xbf16>, vector<64x16xf32> -> vector<64x16xf32>
    %114 = arith.addf %108, %113 : vector<64x16xf32>
    %115 = vector.extract_strided_slice %91 {offsets = [1, 1, 0], sizes = [8, 8, 8], strides = [1, 1, 1]} : vector<10x10x8xbf16> to vector<8x8x8xbf16>
    %116 = vector.shape_cast %115 : vector<8x8x8xbf16> to vector<64x8xbf16>
    %c4_77 = arith.constant 4 : index
    %c0_78 = arith.constant 0 : index
    %c0_79 = arith.constant 0 : index
    %117 = vector.load %arg3[%c4_77, %c0_78, %c0_79] : memref<9x8x16xbf16, #tpu.memory_space<vmem>>, vector<1x8x16xbf16>
    %118 = vector.shape_cast %117 : vector<1x8x16xbf16> to vector<8x16xbf16>
    %cst_80 = arith.constant dense<0.000000e+00> : vector<64x16xf32>
    %119 = tpu.matmul %116, %118, %cst_80 {dimension_numbers = #tpu.dot_dimension_numbers<[1], [0], [0], [1], [0, 0, 1, 1], [], []>} : vector<64x8xbf16>, vector<8x16xbf16>, vector<64x16xf32> -> vector<64x16xf32>
    %120 = arith.addf %114, %119 : vector<64x16xf32>
    %121 = vector.extract_strided_slice %91 {offsets = [1, 2, 0], sizes = [8, 8, 8], strides = [1, 1, 1]} : vector<10x10x8xbf16> to vector<8x8x8xbf16>
    %122 = vector.shape_cast %121 : vector<8x8x8xbf16> to vector<64x8xbf16>
    %c5_81 = arith.constant 5 : index
    %c0_82 = arith.constant 0 : index
    %c0_83 = arith.constant 0 : index
    %123 = vector.load %arg3[%c5_81, %c0_82, %c0_83] : memref<9x8x16xbf16, #tpu.memory_space<vmem>>, vector<1x8x16xbf16>
    %124 = vector.shape_cast %123 : vector<1x8x16xbf16> to vector<8x16xbf16>
    %cst_84 = arith.constant dense<0.000000e+00> : vector<64x16xf32>
    %125 = tpu.matmul %122, %124, %cst_84 {dimension_numbers = #tpu.dot_dimension_numbers<[1], [0], [0], [1], [0, 0, 1, 1], [], []>} : vector<64x8xbf16>, vector<8x16xbf16>, vector<64x16xf32> -> vector<64x16xf32>
    %126 = arith.addf %120, %125 : vector<64x16xf32>
    %127 = vector.extract_strided_slice %91 {offsets = [2, 0, 0], sizes = [8, 8, 8], strides = [1, 1, 1]} : vector<10x10x8xbf16> to vector<8x8x8xbf16>
    %128 = vector.shape_cast %127 : vector<8x8x8xbf16> to vector<64x8xbf16>
    %c6_85 = arith.constant 6 : index
    %c0_86 = arith.constant 0 : index
    %c0_87 = arith.constant 0 : index
    %129 = vector.load %arg3[%c6_85, %c0_86, %c0_87] : memref<9x8x16xbf16, #tpu.memory_space<vmem>>, vector<1x8x16xbf16>
    %130 = vector.shape_cast %129 : vector<1x8x16xbf16> to vector<8x16xbf16>
    %cst_88 = arith.constant dense<0.000000e+00> : vector<64x16xf32>
    %131 = tpu.matmul %128, %130, %cst_88 {dimension_numbers = #tpu.dot_dimension_numbers<[1], [0], [0], [1], [0, 0, 1, 1], [], []>} : vector<64x8xbf16>, vector<8x16xbf16>, vector<64x16xf32> -> vector<64x16xf32>
    %132 = arith.addf %126, %131 : vector<64x16xf32>
    %133 = vector.extract_strided_slice %91 {offsets = [2, 1, 0], sizes = [8, 8, 8], strides = [1, 1, 1]} : vector<10x10x8xbf16> to vector<8x8x8xbf16>
    %134 = vector.shape_cast %133 : vector<8x8x8xbf16> to vector<64x8xbf16>
    %c7_89 = arith.constant 7 : index
    %c0_90 = arith.constant 0 : index
    %c0_91 = arith.constant 0 : index
    %135 = vector.load %arg3[%c7_89, %c0_90, %c0_91] : memref<9x8x16xbf16, #tpu.memory_space<vmem>>, vector<1x8x16xbf16>
    %136 = vector.shape_cast %135 : vector<1x8x16xbf16> to vector<8x16xbf16>
    %cst_92 = arith.constant dense<0.000000e+00> : vector<64x16xf32>
    %137 = tpu.matmul %134, %136, %cst_92 {dimension_numbers = #tpu.dot_dimension_numbers<[1], [0], [0], [1], [0, 0, 1, 1], [], []>} : vector<64x8xbf16>, vector<8x16xbf16>, vector<64x16xf32> -> vector<64x16xf32>
    %138 = arith.addf %132, %137 : vector<64x16xf32>
    %139 = vector.extract_strided_slice %91 {offsets = [2, 2, 0], sizes = [8, 8, 8], strides = [1, 1, 1]} : vector<10x10x8xbf16> to vector<8x8x8xbf16>
    %140 = vector.shape_cast %139 : vector<8x8x8xbf16> to vector<64x8xbf16>
    %c8_93 = arith.constant 8 : index
    %c0_94 = arith.constant 0 : index
    %c0_95 = arith.constant 0 : index
    %141 = vector.load %arg3[%c8_93, %c0_94, %c0_95] : memref<9x8x16xbf16, #tpu.memory_space<vmem>>, vector<1x8x16xbf16>
    %142 = vector.shape_cast %141 : vector<1x8x16xbf16> to vector<8x16xbf16>
    %cst_96 = arith.constant dense<0.000000e+00> : vector<64x16xf32>
    %143 = tpu.matmul %140, %142, %cst_96 {dimension_numbers = #tpu.dot_dimension_numbers<[1], [0], [0], [1], [0, 0, 1, 1], [], []>} : vector<64x8xbf16>, vector<8x16xbf16>, vector<64x16xf32> -> vector<64x16xf32>
    %144 = arith.addf %138, %143 : vector<64x16xf32>
    %c0_97 = arith.constant 0 : index
    %c0_98 = arith.constant 0 : index
    %145 = vector.load %arg8[%c0_97, %c0_98] : memref<3x16xf32, #tpu.memory_space<vmem>>, vector<1x16xf32>
    %c1_99 = arith.constant 1 : index
    %c0_100 = arith.constant 0 : index
    %146 = vector.load %arg8[%c1_99, %c0_100] : memref<3x16xf32, #tpu.memory_space<vmem>>, vector<1x16xf32>
    %c2_101 = arith.constant 2 : index
    %c0_102 = arith.constant 0 : index
    %147 = vector.load %arg8[%c2_101, %c0_102] : memref<3x16xf32, #tpu.memory_space<vmem>>, vector<1x16xf32>
    %148 = vector.broadcast %145 : vector<1x16xf32> to vector<64x16xf32>
    %149 = arith.addf %144, %148 : vector<64x16xf32>
    %cst_103 = arith.constant 0.000000e+00 : f32
    %150 = vector.broadcast %cst_103 : f32 to vector<64x16xf32>
    %151 = arith.maximumf %149, %150 : vector<64x16xf32>
    %152 = vector.broadcast %146 : vector<1x16xf32> to vector<64x16xf32>
    %153 = arith.mulf %151, %152 : vector<64x16xf32>
    %154 = vector.broadcast %147 : vector<1x16xf32> to vector<64x16xf32>
    %155 = arith.addf %153, %154 : vector<64x16xf32>
    %156 = vector.shape_cast %155 : vector<64x16xf32> to vector<8x8x16xf32>
    %c0_104 = arith.constant 0 : index
    %c0_105 = arith.constant 0 : index
    %c0_106 = arith.constant 0 : index
    %c0_107 = arith.constant 0 : index
    %157 = vector.load %arg13[%c0_104, %c0_105, %c0_106, %c0_107] : memref<1x8x8x16xf32, #tpu.memory_space<vmem>>, vector<1x8x8x16xf32>
    %158 = vector.shape_cast %157 : vector<1x8x8x16xf32> to vector<8x8x16xf32>
    %159 = vector.shape_cast %156 : vector<8x8x16xf32> to vector<1x8x8x16xf32>
    tpu.vector_store %arg13[%c0_104, %c0_105, %c0_106, %c0_107], %159 {strides = array<i32>} : memref<1x8x8x16xf32, #tpu.memory_space<vmem>>, vector<1x8x8x16xf32>,
    %160 = vector.shape_cast %155 : vector<64x16xf32> to vector<4x2x8x16xf32>
    %161 = vector.extract_strided_slice %160 {offsets = [0, 0, 0, 0], sizes = [4, 1, 8, 16], strides = [1, 1, 1, 1]} : vector<4x2x8x16xf32> to vector<4x1x8x16xf32>
    %162 = vector.shape_cast %161 : vector<4x1x8x16xf32> to vector<4x8x16xf32>
    %163 = vector.extract_strided_slice %160 {offsets = [0, 1, 0, 0], sizes = [4, 1, 8, 16], strides = [1, 1, 1, 1]} : vector<4x2x8x16xf32> to vector<4x1x8x16xf32>
    %164 = vector.shape_cast %163 : vector<4x1x8x16xf32> to vector<4x8x16xf32>
    %165 = arith.maximumf %162, %164 : vector<4x8x16xf32>
    %166 = vector.shape_cast %165 : vector<4x8x16xf32> to vector<16x2x16xf32>
    %167 = vector.extract_strided_slice %166 {offsets = [0, 0, 0], sizes = [16, 1, 16], strides = [1, 1, 1]} : vector<16x2x16xf32> to vector<16x1x16xf32>
    %168 = vector.shape_cast %167 : vector<16x1x16xf32> to vector<16x16xf32>
    %169 = vector.extract_strided_slice %166 {offsets = [0, 1, 0], sizes = [16, 1, 16], strides = [1, 1, 1]} : vector<16x2x16xf32> to vector<16x1x16xf32>
    %170 = vector.shape_cast %169 : vector<16x1x16xf32> to vector<16x16xf32>
    %171 = arith.maximumf %168, %170 : vector<16x16xf32>
    %172 = vector.shape_cast %171 : vector<16x16xf32> to vector<4x4x16xf32>
    %cst_108 = arith.constant 0.000000e+00 : bf16
    %173 = vector.broadcast %cst_108 : bf16 to vector<6x6x16xbf16>
    %c0_109 = arith.constant 0 : index
    %c0_110 = arith.constant 0 : index
    %c0_111 = arith.constant 0 : index
    %174 = vector.load %arg19[%c0_109, %c0_110, %c0_111] : memref<6x6x16xbf16, #tpu.memory_space<vmem>>, vector<6x6x16xbf16>
    tpu.vector_store %arg19[%c0_109, %c0_110, %c0_111], %173 {strides = array<i32>} : memref<6x6x16xbf16, #tpu.memory_space<vmem>>, vector<6x6x16xbf16>,
    %175 = arith.truncf %172 : vector<4x4x16xf32> to vector<4x4x16xbf16>
    %c1_112 = arith.constant 1 : index
    %c1_113 = arith.constant 1 : index
    %c0_114 = arith.constant 0 : index
    %176 = vector.load %arg19[%c1_112, %c1_113, %c0_114] : memref<6x6x16xbf16, #tpu.memory_space<vmem>>, vector<4x4x16xbf16>
    tpu.vector_store %arg19[%c1_112, %c1_113, %c0_114], %175 {strides = array<i32>} : memref<6x6x16xbf16, #tpu.memory_space<vmem>>, vector<4x4x16xbf16>,
    %c0_115 = arith.constant 0 : index
    %c0_116 = arith.constant 0 : index
    %c0_117 = arith.constant 0 : index
    %177 = vector.load %arg19[%c0_115, %c0_116, %c0_117] : memref<6x6x16xbf16, #tpu.memory_space<vmem>>, vector<6x6x16xbf16>
    %178 = vector.extract_strided_slice %177 {offsets = [0, 0, 0], sizes = [4, 4, 16], strides = [1, 1, 1]} : vector<6x6x16xbf16> to vector<4x4x16xbf16>
    %179 = vector.shape_cast %178 : vector<4x4x16xbf16> to vector<16x16xbf16>
    %c0_118 = arith.constant 0 : index
    %c0_119 = arith.constant 0 : index
    %c0_120 = arith.constant 0 : index
    %180 = vector.load %arg4[%c0_118, %c0_119, %c0_120] : memref<9x16x32xbf16, #tpu.memory_space<vmem>>, vector<1x16x32xbf16>
    %181 = vector.shape_cast %180 : vector<1x16x32xbf16> to vector<16x32xbf16>
    %cst_121 = arith.constant dense<0.000000e+00> : vector<16x32xf32>
    %182 = tpu.matmul %179, %181, %cst_121 {dimension_numbers = #tpu.dot_dimension_numbers<[1], [0], [0], [1], [0, 0, 1, 1], [], []>} : vector<16x16xbf16>, vector<16x32xbf16>, vector<16x32xf32> -> vector<16x32xf32>
    %183 = vector.extract_strided_slice %177 {offsets = [0, 1, 0], sizes = [4, 4, 16], strides = [1, 1, 1]} : vector<6x6x16xbf16> to vector<4x4x16xbf16>
    %184 = vector.shape_cast %183 : vector<4x4x16xbf16> to vector<16x16xbf16>
    %c1_122 = arith.constant 1 : index
    %c0_123 = arith.constant 0 : index
    %c0_124 = arith.constant 0 : index
    %185 = vector.load %arg4[%c1_122, %c0_123, %c0_124] : memref<9x16x32xbf16, #tpu.memory_space<vmem>>, vector<1x16x32xbf16>
    %186 = vector.shape_cast %185 : vector<1x16x32xbf16> to vector<16x32xbf16>
    %cst_125 = arith.constant dense<0.000000e+00> : vector<16x32xf32>
    %187 = tpu.matmul %184, %186, %cst_125 {dimension_numbers = #tpu.dot_dimension_numbers<[1], [0], [0], [1], [0, 0, 1, 1], [], []>} : vector<16x16xbf16>, vector<16x32xbf16>, vector<16x32xf32> -> vector<16x32xf32>
    %188 = arith.addf %182, %187 : vector<16x32xf32>
    %189 = vector.extract_strided_slice %177 {offsets = [0, 2, 0], sizes = [4, 4, 16], strides = [1, 1, 1]} : vector<6x6x16xbf16> to vector<4x4x16xbf16>
    %190 = vector.shape_cast %189 : vector<4x4x16xbf16> to vector<16x16xbf16>
    %c2_126 = arith.constant 2 : index
    %c0_127 = arith.constant 0 : index
    %c0_128 = arith.constant 0 : index
    %191 = vector.load %arg4[%c2_126, %c0_127, %c0_128] : memref<9x16x32xbf16, #tpu.memory_space<vmem>>, vector<1x16x32xbf16>
    %192 = vector.shape_cast %191 : vector<1x16x32xbf16> to vector<16x32xbf16>
    %cst_129 = arith.constant dense<0.000000e+00> : vector<16x32xf32>
    %193 = tpu.matmul %190, %192, %cst_129 {dimension_numbers = #tpu.dot_dimension_numbers<[1], [0], [0], [1], [0, 0, 1, 1], [], []>} : vector<16x16xbf16>, vector<16x32xbf16>, vector<16x32xf32> -> vector<16x32xf32>
    %194 = arith.addf %188, %193 : vector<16x32xf32>
    %195 = vector.extract_strided_slice %177 {offsets = [1, 0, 0], sizes = [4, 4, 16], strides = [1, 1, 1]} : vector<6x6x16xbf16> to vector<4x4x16xbf16>
    %196 = vector.shape_cast %195 : vector<4x4x16xbf16> to vector<16x16xbf16>
    %c3_130 = arith.constant 3 : index
    %c0_131 = arith.constant 0 : index
    %c0_132 = arith.constant 0 : index
    %197 = vector.load %arg4[%c3_130, %c0_131, %c0_132] : memref<9x16x32xbf16, #tpu.memory_space<vmem>>, vector<1x16x32xbf16>
    %198 = vector.shape_cast %197 : vector<1x16x32xbf16> to vector<16x32xbf16>
    %cst_133 = arith.constant dense<0.000000e+00> : vector<16x32xf32>
    %199 = tpu.matmul %196, %198, %cst_133 {dimension_numbers = #tpu.dot_dimension_numbers<[1], [0], [0], [1], [0, 0, 1, 1], [], []>} : vector<16x16xbf16>, vector<16x32xbf16>, vector<16x32xf32> -> vector<16x32xf32>
    %200 = arith.addf %194, %199 : vector<16x32xf32>
    %201 = vector.extract_strided_slice %177 {offsets = [1, 1, 0], sizes = [4, 4, 16], strides = [1, 1, 1]} : vector<6x6x16xbf16> to vector<4x4x16xbf16>
    %202 = vector.shape_cast %201 : vector<4x4x16xbf16> to vector<16x16xbf16>
    %c4_134 = arith.constant 4 : index
    %c0_135 = arith.constant 0 : index
    %c0_136 = arith.constant 0 : index
    %203 = vector.load %arg4[%c4_134, %c0_135, %c0_136] : memref<9x16x32xbf16, #tpu.memory_space<vmem>>, vector<1x16x32xbf16>
    %204 = vector.shape_cast %203 : vector<1x16x32xbf16> to vector<16x32xbf16>
    %cst_137 = arith.constant dense<0.000000e+00> : vector<16x32xf32>
    %205 = tpu.matmul %202, %204, %cst_137 {dimension_numbers = #tpu.dot_dimension_numbers<[1], [0], [0], [1], [0, 0, 1, 1], [], []>} : vector<16x16xbf16>, vector<16x32xbf16>, vector<16x32xf32> -> vector<16x32xf32>
    %206 = arith.addf %200, %205 : vector<16x32xf32>
    %207 = vector.extract_strided_slice %177 {offsets = [1, 2, 0], sizes = [4, 4, 16], strides = [1, 1, 1]} : vector<6x6x16xbf16> to vector<4x4x16xbf16>
    %208 = vector.shape_cast %207 : vector<4x4x16xbf16> to vector<16x16xbf16>
    %c5_138 = arith.constant 5 : index
    %c0_139 = arith.constant 0 : index
    %c0_140 = arith.constant 0 : index
    %209 = vector.load %arg4[%c5_138, %c0_139, %c0_140] : memref<9x16x32xbf16, #tpu.memory_space<vmem>>, vector<1x16x32xbf16>
    %210 = vector.shape_cast %209 : vector<1x16x32xbf16> to vector<16x32xbf16>
    %cst_141 = arith.constant dense<0.000000e+00> : vector<16x32xf32>
    %211 = tpu.matmul %208, %210, %cst_141 {dimension_numbers = #tpu.dot_dimension_numbers<[1], [0], [0], [1], [0, 0, 1, 1], [], []>} : vector<16x16xbf16>, vector<16x32xbf16>, vector<16x32xf32> -> vector<16x32xf32>
    %212 = arith.addf %206, %211 : vector<16x32xf32>
    %213 = vector.extract_strided_slice %177 {offsets = [2, 0, 0], sizes = [4, 4, 16], strides = [1, 1, 1]} : vector<6x6x16xbf16> to vector<4x4x16xbf16>
    %214 = vector.shape_cast %213 : vector<4x4x16xbf16> to vector<16x16xbf16>
    %c6_142 = arith.constant 6 : index
    %c0_143 = arith.constant 0 : index
    %c0_144 = arith.constant 0 : index
    %215 = vector.load %arg4[%c6_142, %c0_143, %c0_144] : memref<9x16x32xbf16, #tpu.memory_space<vmem>>, vector<1x16x32xbf16>
    %216 = vector.shape_cast %215 : vector<1x16x32xbf16> to vector<16x32xbf16>
    %cst_145 = arith.constant dense<0.000000e+00> : vector<16x32xf32>
    %217 = tpu.matmul %214, %216, %cst_145 {dimension_numbers = #tpu.dot_dimension_numbers<[1], [0], [0], [1], [0, 0, 1, 1], [], []>} : vector<16x16xbf16>, vector<16x32xbf16>, vector<16x32xf32> -> vector<16x32xf32>
    %218 = arith.addf %212, %217 : vector<16x32xf32>
    %219 = vector.extract_strided_slice %177 {offsets = [2, 1, 0], sizes = [4, 4, 16], strides = [1, 1, 1]} : vector<6x6x16xbf16> to vector<4x4x16xbf16>
    %220 = vector.shape_cast %219 : vector<4x4x16xbf16> to vector<16x16xbf16>
    %c7_146 = arith.constant 7 : index
    %c0_147 = arith.constant 0 : index
    %c0_148 = arith.constant 0 : index
    %221 = vector.load %arg4[%c7_146, %c0_147, %c0_148] : memref<9x16x32xbf16, #tpu.memory_space<vmem>>, vector<1x16x32xbf16>
    %222 = vector.shape_cast %221 : vector<1x16x32xbf16> to vector<16x32xbf16>
    %cst_149 = arith.constant dense<0.000000e+00> : vector<16x32xf32>
    %223 = tpu.matmul %220, %222, %cst_149 {dimension_numbers = #tpu.dot_dimension_numbers<[1], [0], [0], [1], [0, 0, 1, 1], [], []>} : vector<16x16xbf16>, vector<16x32xbf16>, vector<16x32xf32> -> vector<16x32xf32>
    %224 = arith.addf %218, %223 : vector<16x32xf32>
    %225 = vector.extract_strided_slice %177 {offsets = [2, 2, 0], sizes = [4, 4, 16], strides = [1, 1, 1]} : vector<6x6x16xbf16> to vector<4x4x16xbf16>
    %226 = vector.shape_cast %225 : vector<4x4x16xbf16> to vector<16x16xbf16>
    %c8_150 = arith.constant 8 : index
    %c0_151 = arith.constant 0 : index
    %c0_152 = arith.constant 0 : index
    %227 = vector.load %arg4[%c8_150, %c0_151, %c0_152] : memref<9x16x32xbf16, #tpu.memory_space<vmem>>, vector<1x16x32xbf16>
    %228 = vector.shape_cast %227 : vector<1x16x32xbf16> to vector<16x32xbf16>
    %cst_153 = arith.constant dense<0.000000e+00> : vector<16x32xf32>
    %229 = tpu.matmul %226, %228, %cst_153 {dimension_numbers = #tpu.dot_dimension_numbers<[1], [0], [0], [1], [0, 0, 1, 1], [], []>} : vector<16x16xbf16>, vector<16x32xbf16>, vector<16x32xf32> -> vector<16x32xf32>
    %230 = arith.addf %224, %229 : vector<16x32xf32>
    %c0_154 = arith.constant 0 : index
    %c0_155 = arith.constant 0 : index
    %231 = vector.load %arg9[%c0_154, %c0_155] : memref<3x32xf32, #tpu.memory_space<vmem>>, vector<1x32xf32>
    %c1_156 = arith.constant 1 : index
    %c0_157 = arith.constant 0 : index
    %232 = vector.load %arg9[%c1_156, %c0_157] : memref<3x32xf32, #tpu.memory_space<vmem>>, vector<1x32xf32>
    %c2_158 = arith.constant 2 : index
    %c0_159 = arith.constant 0 : index
    %233 = vector.load %arg9[%c2_158, %c0_159] : memref<3x32xf32, #tpu.memory_space<vmem>>, vector<1x32xf32>
    %234 = vector.broadcast %231 : vector<1x32xf32> to vector<16x32xf32>
    %235 = arith.addf %230, %234 : vector<16x32xf32>
    %cst_160 = arith.constant 0.000000e+00 : f32
    %236 = vector.broadcast %cst_160 : f32 to vector<16x32xf32>
    %237 = arith.maximumf %235, %236 : vector<16x32xf32>
    %238 = vector.broadcast %232 : vector<1x32xf32> to vector<16x32xf32>
    %239 = arith.mulf %237, %238 : vector<16x32xf32>
    %240 = vector.broadcast %233 : vector<1x32xf32> to vector<16x32xf32>
    %241 = arith.addf %239, %240 : vector<16x32xf32>
    %242 = vector.shape_cast %241 : vector<16x32xf32> to vector<4x4x32xf32>
    %c0_161 = arith.constant 0 : index
    %c0_162 = arith.constant 0 : index
    %c0_163 = arith.constant 0 : index
    %c0_164 = arith.constant 0 : index
    %243 = vector.load %arg14[%c0_161, %c0_162, %c0_163, %c0_164] : memref<1x4x4x32xf32, #tpu.memory_space<vmem>>, vector<1x4x4x32xf32>
    %244 = vector.shape_cast %243 : vector<1x4x4x32xf32> to vector<4x4x32xf32>
    %245 = vector.shape_cast %242 : vector<4x4x32xf32> to vector<1x4x4x32xf32>
    tpu.vector_store %arg14[%c0_161, %c0_162, %c0_163, %c0_164], %245 {strides = array<i32>} : memref<1x4x4x32xf32, #tpu.memory_space<vmem>>, vector<1x4x4x32xf32>,
    %246 = vector.shape_cast %241 : vector<16x32xf32> to vector<2x2x4x32xf32>
    %247 = vector.extract_strided_slice %246 {offsets = [0, 0, 0, 0], sizes = [2, 1, 4, 32], strides = [1, 1, 1, 1]} : vector<2x2x4x32xf32> to vector<2x1x4x32xf32>
    %248 = vector.shape_cast %247 : vector<2x1x4x32xf32> to vector<2x4x32xf32>
    %249 = vector.extract_strided_slice %246 {offsets = [0, 1, 0, 0], sizes = [2, 1, 4, 32], strides = [1, 1, 1, 1]} : vector<2x2x4x32xf32> to vector<2x1x4x32xf32>
    %250 = vector.shape_cast %249 : vector<2x1x4x32xf32> to vector<2x4x32xf32>
    %251 = arith.maximumf %248, %250 : vector<2x4x32xf32>
    %252 = vector.shape_cast %251 : vector<2x4x32xf32> to vector<4x2x32xf32>
    %253 = vector.extract_strided_slice %252 {offsets = [0, 0, 0], sizes = [4, 1, 32], strides = [1, 1, 1]} : vector<4x2x32xf32> to vector<4x1x32xf32>
    %254 = vector.shape_cast %253 : vector<4x1x32xf32> to vector<4x32xf32>
    %255 = vector.extract_strided_slice %252 {offsets = [0, 1, 0], sizes = [4, 1, 32], strides = [1, 1, 1]} : vector<4x2x32xf32> to vector<4x1x32xf32>
    %256 = vector.shape_cast %255 : vector<4x1x32xf32> to vector<4x32xf32>
    %257 = arith.maximumf %254, %256 : vector<4x32xf32>
    %258 = vector.shape_cast %257 : vector<4x32xf32> to vector<2x2x32xf32>
    %cst_165 = arith.constant 0.000000e+00 : bf16
    %259 = vector.broadcast %cst_165 : bf16 to vector<4x4x32xbf16>
    %c0_166 = arith.constant 0 : index
    %c0_167 = arith.constant 0 : index
    %c0_168 = arith.constant 0 : index
    %260 = vector.load %arg20[%c0_166, %c0_167, %c0_168] : memref<4x4x32xbf16, #tpu.memory_space<vmem>>, vector<4x4x32xbf16>
    tpu.vector_store %arg20[%c0_166, %c0_167, %c0_168], %259 {strides = array<i32>} : memref<4x4x32xbf16, #tpu.memory_space<vmem>>, vector<4x4x32xbf16>,
    %261 = arith.truncf %258 : vector<2x2x32xf32> to vector<2x2x32xbf16>
    %c1_169 = arith.constant 1 : index
    %c1_170 = arith.constant 1 : index
    %c0_171 = arith.constant 0 : index
    %262 = vector.load %arg20[%c1_169, %c1_170, %c0_171] : memref<4x4x32xbf16, #tpu.memory_space<vmem>>, vector<2x2x32xbf16>
    tpu.vector_store %arg20[%c1_169, %c1_170, %c0_171], %261 {strides = array<i32>} : memref<4x4x32xbf16, #tpu.memory_space<vmem>>, vector<2x2x32xbf16>,
    %c0_172 = arith.constant 0 : index
    %c0_173 = arith.constant 0 : index
    %c0_174 = arith.constant 0 : index
    %263 = vector.load %arg20[%c0_172, %c0_173, %c0_174] : memref<4x4x32xbf16, #tpu.memory_space<vmem>>, vector<4x4x32xbf16>
    %264 = vector.extract_strided_slice %263 {offsets = [0, 0, 0], sizes = [2, 2, 32], strides = [1, 1, 1]} : vector<4x4x32xbf16> to vector<2x2x32xbf16>
    %265 = vector.shape_cast %264 : vector<2x2x32xbf16> to vector<4x32xbf16>
    %c0_175 = arith.constant 0 : index
    %c0_176 = arith.constant 0 : index
    %c0_177 = arith.constant 0 : index
    %266 = vector.load %arg5[%c0_175, %c0_176, %c0_177] : memref<9x32x64xbf16, #tpu.memory_space<vmem>>, vector<1x32x64xbf16>
    %267 = vector.shape_cast %266 : vector<1x32x64xbf16> to vector<32x64xbf16>
    %cst_178 = arith.constant dense<0.000000e+00> : vector<4x64xf32>
    %268 = tpu.matmul %265, %267, %cst_178 {dimension_numbers = #tpu.dot_dimension_numbers<[1], [0], [0], [1], [0, 0, 1, 1], [], []>} : vector<4x32xbf16>, vector<32x64xbf16>, vector<4x64xf32> -> vector<4x64xf32>
    %269 = vector.extract_strided_slice %263 {offsets = [0, 1, 0], sizes = [2, 2, 32], strides = [1, 1, 1]} : vector<4x4x32xbf16> to vector<2x2x32xbf16>
    %270 = vector.shape_cast %269 : vector<2x2x32xbf16> to vector<4x32xbf16>
    %c1_179 = arith.constant 1 : index
    %c0_180 = arith.constant 0 : index
    %c0_181 = arith.constant 0 : index
    %271 = vector.load %arg5[%c1_179, %c0_180, %c0_181] : memref<9x32x64xbf16, #tpu.memory_space<vmem>>, vector<1x32x64xbf16>
    %272 = vector.shape_cast %271 : vector<1x32x64xbf16> to vector<32x64xbf16>
    %cst_182 = arith.constant dense<0.000000e+00> : vector<4x64xf32>
    %273 = tpu.matmul %270, %272, %cst_182 {dimension_numbers = #tpu.dot_dimension_numbers<[1], [0], [0], [1], [0, 0, 1, 1], [], []>} : vector<4x32xbf16>, vector<32x64xbf16>, vector<4x64xf32> -> vector<4x64xf32>
    %274 = arith.addf %268, %273 : vector<4x64xf32>
    %275 = vector.extract_strided_slice %263 {offsets = [0, 2, 0], sizes = [2, 2, 32], strides = [1, 1, 1]} : vector<4x4x32xbf16> to vector<2x2x32xbf16>
    %276 = vector.shape_cast %275 : vector<2x2x32xbf16> to vector<4x32xbf16>
    %c2_183 = arith.constant 2 : index
    %c0_184 = arith.constant 0 : index
    %c0_185 = arith.constant 0 : index
    %277 = vector.load %arg5[%c2_183, %c0_184, %c0_185] : memref<9x32x64xbf16, #tpu.memory_space<vmem>>, vector<1x32x64xbf16>
    %278 = vector.shape_cast %277 : vector<1x32x64xbf16> to vector<32x64xbf16>
    %cst_186 = arith.constant dense<0.000000e+00> : vector<4x64xf32>
    %279 = tpu.matmul %276, %278, %cst_186 {dimension_numbers = #tpu.dot_dimension_numbers<[1], [0], [0], [1], [0, 0, 1, 1], [], []>} : vector<4x32xbf16>, vector<32x64xbf16>, vector<4x64xf32> -> vector<4x64xf32>
    %280 = arith.addf %274, %279 : vector<4x64xf32>
    %281 = vector.extract_strided_slice %263 {offsets = [1, 0, 0], sizes = [2, 2, 32], strides = [1, 1, 1]} : vector<4x4x32xbf16> to vector<2x2x32xbf16>
    %282 = vector.shape_cast %281 : vector<2x2x32xbf16> to vector<4x32xbf16>
    %c3_187 = arith.constant 3 : index
    %c0_188 = arith.constant 0 : index
    %c0_189 = arith.constant 0 : index
    %283 = vector.load %arg5[%c3_187, %c0_188, %c0_189] : memref<9x32x64xbf16, #tpu.memory_space<vmem>>, vector<1x32x64xbf16>
    %284 = vector.shape_cast %283 : vector<1x32x64xbf16> to vector<32x64xbf16>
    %cst_190 = arith.constant dense<0.000000e+00> : vector<4x64xf32>
    %285 = tpu.matmul %282, %284, %cst_190 {dimension_numbers = #tpu.dot_dimension_numbers<[1], [0], [0], [1], [0, 0, 1, 1], [], []>} : vector<4x32xbf16>, vector<32x64xbf16>, vector<4x64xf32> -> vector<4x64xf32>
    %286 = arith.addf %280, %285 : vector<4x64xf32>
    %287 = vector.extract_strided_slice %263 {offsets = [1, 1, 0], sizes = [2, 2, 32], strides = [1, 1, 1]} : vector<4x4x32xbf16> to vector<2x2x32xbf16>
    %288 = vector.shape_cast %287 : vector<2x2x32xbf16> to vector<4x32xbf16>
    %c4_191 = arith.constant 4 : index
    %c0_192 = arith.constant 0 : index
    %c0_193 = arith.constant 0 : index
    %289 = vector.load %arg5[%c4_191, %c0_192, %c0_193] : memref<9x32x64xbf16, #tpu.memory_space<vmem>>, vector<1x32x64xbf16>
    %290 = vector.shape_cast %289 : vector<1x32x64xbf16> to vector<32x64xbf16>
    %cst_194 = arith.constant dense<0.000000e+00> : vector<4x64xf32>
    %291 = tpu.matmul %288, %290, %cst_194 {dimension_numbers = #tpu.dot_dimension_numbers<[1], [0], [0], [1], [0, 0, 1, 1], [], []>} : vector<4x32xbf16>, vector<32x64xbf16>, vector<4x64xf32> -> vector<4x64xf32>
    %292 = arith.addf %286, %291 : vector<4x64xf32>
    %293 = vector.extract_strided_slice %263 {offsets = [1, 2, 0], sizes = [2, 2, 32], strides = [1, 1, 1]} : vector<4x4x32xbf16> to vector<2x2x32xbf16>
    %294 = vector.shape_cast %293 : vector<2x2x32xbf16> to vector<4x32xbf16>
    %c5_195 = arith.constant 5 : index
    %c0_196 = arith.constant 0 : index
    %c0_197 = arith.constant 0 : index
    %295 = vector.load %arg5[%c5_195, %c0_196, %c0_197] : memref<9x32x64xbf16, #tpu.memory_space<vmem>>, vector<1x32x64xbf16>
    %296 = vector.shape_cast %295 : vector<1x32x64xbf16> to vector<32x64xbf16>
    %cst_198 = arith.constant dense<0.000000e+00> : vector<4x64xf32>
    %297 = tpu.matmul %294, %296, %cst_198 {dimension_numbers = #tpu.dot_dimension_numbers<[1], [0], [0], [1], [0, 0, 1, 1], [], []>} : vector<4x32xbf16>, vector<32x64xbf16>, vector<4x64xf32> -> vector<4x64xf32>
    %298 = arith.addf %292, %297 : vector<4x64xf32>
    %299 = vector.extract_strided_slice %263 {offsets = [2, 0, 0], sizes = [2, 2, 32], strides = [1, 1, 1]} : vector<4x4x32xbf16> to vector<2x2x32xbf16>
    %300 = vector.shape_cast %299 : vector<2x2x32xbf16> to vector<4x32xbf16>
    %c6_199 = arith.constant 6 : index
    %c0_200 = arith.constant 0 : index
    %c0_201 = arith.constant 0 : index
    %301 = vector.load %arg5[%c6_199, %c0_200, %c0_201] : memref<9x32x64xbf16, #tpu.memory_space<vmem>>, vector<1x32x64xbf16>
    %302 = vector.shape_cast %301 : vector<1x32x64xbf16> to vector<32x64xbf16>
    %cst_202 = arith.constant dense<0.000000e+00> : vector<4x64xf32>
    %303 = tpu.matmul %300, %302, %cst_202 {dimension_numbers = #tpu.dot_dimension_numbers<[1], [0], [0], [1], [0, 0, 1, 1], [], []>} : vector<4x32xbf16>, vector<32x64xbf16>, vector<4x64xf32> -> vector<4x64xf32>
    %304 = arith.addf %298, %303 : vector<4x64xf32>
    %305 = vector.extract_strided_slice %263 {offsets = [2, 1, 0], sizes = [2, 2, 32], strides = [1, 1, 1]} : vector<4x4x32xbf16> to vector<2x2x32xbf16>
    %306 = vector.shape_cast %305 : vector<2x2x32xbf16> to vector<4x32xbf16>
    %c7_203 = arith.constant 7 : index
    %c0_204 = arith.constant 0 : index
    %c0_205 = arith.constant 0 : index
    %307 = vector.load %arg5[%c7_203, %c0_204, %c0_205] : memref<9x32x64xbf16, #tpu.memory_space<vmem>>, vector<1x32x64xbf16>
    %308 = vector.shape_cast %307 : vector<1x32x64xbf16> to vector<32x64xbf16>
    %cst_206 = arith.constant dense<0.000000e+00> : vector<4x64xf32>
    %309 = tpu.matmul %306, %308, %cst_206 {dimension_numbers = #tpu.dot_dimension_numbers<[1], [0], [0], [1], [0, 0, 1, 1], [], []>} : vector<4x32xbf16>, vector<32x64xbf16>, vector<4x64xf32> -> vector<4x64xf32>
    %310 = arith.addf %304, %309 : vector<4x64xf32>
    %311 = vector.extract_strided_slice %263 {offsets = [2, 2, 0], sizes = [2, 2, 32], strides = [1, 1, 1]} : vector<4x4x32xbf16> to vector<2x2x32xbf16>
    %312 = vector.shape_cast %311 : vector<2x2x32xbf16> to vector<4x32xbf16>
    %c8_207 = arith.constant 8 : index
    %c0_208 = arith.constant 0 : index
    %c0_209 = arith.constant 0 : index
    %313 = vector.load %arg5[%c8_207, %c0_208, %c0_209] : memref<9x32x64xbf16, #tpu.memory_space<vmem>>, vector<1x32x64xbf16>
    %314 = vector.shape_cast %313 : vector<1x32x64xbf16> to vector<32x64xbf16>
    %cst_210 = arith.constant dense<0.000000e+00> : vector<4x64xf32>
    %315 = tpu.matmul %312, %314, %cst_210 {dimension_numbers = #tpu.dot_dimension_numbers<[1], [0], [0], [1], [0, 0, 1, 1], [], []>} : vector<4x32xbf16>, vector<32x64xbf16>, vector<4x64xf32> -> vector<4x64xf32>
    %316 = arith.addf %310, %315 : vector<4x64xf32>
    %c0_211 = arith.constant 0 : index
    %c0_212 = arith.constant 0 : index
    %317 = vector.load %arg10[%c0_211, %c0_212] : memref<3x64xf32, #tpu.memory_space<vmem>>, vector<1x64xf32>
    %c1_213 = arith.constant 1 : index
    %c0_214 = arith.constant 0 : index
    %318 = vector.load %arg10[%c1_213, %c0_214] : memref<3x64xf32, #tpu.memory_space<vmem>>, vector<1x64xf32>
    %c2_215 = arith.constant 2 : index
    %c0_216 = arith.constant 0 : index
    %319 = vector.load %arg10[%c2_215, %c0_216] : memref<3x64xf32, #tpu.memory_space<vmem>>, vector<1x64xf32>
    %320 = vector.broadcast %317 : vector<1x64xf32> to vector<4x64xf32>
    %321 = arith.addf %316, %320 : vector<4x64xf32>
    %cst_217 = arith.constant 0.000000e+00 : f32
    %322 = vector.broadcast %cst_217 : f32 to vector<4x64xf32>
    %323 = arith.maximumf %321, %322 : vector<4x64xf32>
    %324 = vector.broadcast %318 : vector<1x64xf32> to vector<4x64xf32>
    %325 = arith.mulf %323, %324 : vector<4x64xf32>
    %326 = vector.broadcast %319 : vector<1x64xf32> to vector<4x64xf32>
    %327 = arith.addf %325, %326 : vector<4x64xf32>
    %328 = vector.shape_cast %327 : vector<4x64xf32> to vector<2x2x64xf32>
    %c0_218 = arith.constant 0 : index
    %c0_219 = arith.constant 0 : index
    %c0_220 = arith.constant 0 : index
    %c0_221 = arith.constant 0 : index
    %329 = vector.load %arg15[%c0_218, %c0_219, %c0_220, %c0_221] : memref<1x2x2x64xf32, #tpu.memory_space<vmem>>, vector<1x2x2x64xf32>
    %330 = vector.shape_cast %329 : vector<1x2x2x64xf32> to vector<2x2x64xf32>
    %331 = vector.shape_cast %328 : vector<2x2x64xf32> to vector<1x2x2x64xf32>
    tpu.vector_store %arg15[%c0_218, %c0_219, %c0_220, %c0_221], %331 {strides = array<i32>} : memref<1x2x2x64xf32, #tpu.memory_space<vmem>>, vector<1x2x2x64xf32>,
    %332 = vector.shape_cast %327 : vector<4x64xf32> to vector<1x2x2x64xf32>
    %333 = vector.extract_strided_slice %332 {offsets = [0, 0, 0, 0], sizes = [1, 1, 2, 64], strides = [1, 1, 1, 1]} : vector<1x2x2x64xf32> to vector<1x1x2x64xf32>
    %334 = vector.shape_cast %333 : vector<1x1x2x64xf32> to vector<1x2x64xf32>
    %335 = vector.extract_strided_slice %332 {offsets = [0, 1, 0, 0], sizes = [1, 1, 2, 64], strides = [1, 1, 1, 1]} : vector<1x2x2x64xf32> to vector<1x1x2x64xf32>
    %336 = vector.shape_cast %335 : vector<1x1x2x64xf32> to vector<1x2x64xf32>
    %337 = arith.maximumf %334, %336 : vector<1x2x64xf32>
    %338 = vector.extract_strided_slice %337 {offsets = [0, 0, 0], sizes = [1, 1, 64], strides = [1, 1, 1]} : vector<1x2x64xf32> to vector<1x1x64xf32>
    %339 = vector.shape_cast %338 : vector<1x1x64xf32> to vector<1x64xf32>
    %340 = vector.extract_strided_slice %337 {offsets = [0, 1, 0], sizes = [1, 1, 64], strides = [1, 1, 1]} : vector<1x2x64xf32> to vector<1x1x64xf32>
    %341 = vector.shape_cast %340 : vector<1x1x64xf32> to vector<1x64xf32>
    %342 = arith.maximumf %339, %341 : vector<1x64xf32>
    %343 = vector.shape_cast %342 : vector<1x64xf32> to vector<1x1x64xf32>
    %cst_222 = arith.constant 0.000000e+00 : bf16
    %344 = vector.broadcast %cst_222 : bf16 to vector<3x3x64xbf16>
    %c0_223 = arith.constant 0 : index
    %c0_224 = arith.constant 0 : index
    %c0_225 = arith.constant 0 : index
    %345 = vector.load %arg21[%c0_223, %c0_224, %c0_225] : memref<3x3x64xbf16, #tpu.memory_space<vmem>>, vector<3x3x64xbf16>
    tpu.vector_store %arg21[%c0_223, %c0_224, %c0_225], %344 {strides = array<i32>} : memref<3x3x64xbf16, #tpu.memory_space<vmem>>, vector<3x3x64xbf16>,
    %346 = arith.truncf %343 : vector<1x1x64xf32> to vector<1x1x64xbf16>
    %c1_226 = arith.constant 1 : index
    %c1_227 = arith.constant 1 : index
    %c0_228 = arith.constant 0 : index
    %347 = vector.load %arg21[%c1_226, %c1_227, %c0_228] : memref<3x3x64xbf16, #tpu.memory_space<vmem>>, vector<1x1x64xbf16>
    tpu.vector_store %arg21[%c1_226, %c1_227, %c0_228], %346 {strides = array<i32>} : memref<3x3x64xbf16, #tpu.memory_space<vmem>>, vector<1x1x64xbf16>,
    %c0_229 = arith.constant 0 : index
    %c0_230 = arith.constant 0 : index
    %c0_231 = arith.constant 0 : index
    %348 = vector.load %arg21[%c0_229, %c0_230, %c0_231] : memref<3x3x64xbf16, #tpu.memory_space<vmem>>, vector<3x3x64xbf16>
    %349 = vector.extract_strided_slice %348 {offsets = [0, 0, 0], sizes = [1, 1, 64], strides = [1, 1, 1]} : vector<3x3x64xbf16> to vector<1x1x64xbf16>
    %350 = vector.shape_cast %349 : vector<1x1x64xbf16> to vector<1x64xbf16>
    %c0_232 = arith.constant 0 : index
    %c0_233 = arith.constant 0 : index
    %c0_234 = arith.constant 0 : index
    %351 = vector.load %arg6[%c0_232, %c0_233, %c0_234] : memref<9x64x128xbf16, #tpu.memory_space<vmem>>, vector<1x64x128xbf16>
    %352 = vector.shape_cast %351 : vector<1x64x128xbf16> to vector<64x128xbf16>
    %cst_235 = arith.constant dense<0.000000e+00> : vector<1x128xf32>
    %353 = tpu.matmul %350, %352, %cst_235 {dimension_numbers = #tpu.dot_dimension_numbers<[1], [0], [0], [1], [0, 0, 1, 1], [], []>} : vector<1x64xbf16>, vector<64x128xbf16>, vector<1x128xf32> -> vector<1x128xf32>
    %354 = vector.extract_strided_slice %348 {offsets = [0, 1, 0], sizes = [1, 1, 64], strides = [1, 1, 1]} : vector<3x3x64xbf16> to vector<1x1x64xbf16>
    %355 = vector.shape_cast %354 : vector<1x1x64xbf16> to vector<1x64xbf16>
    %c1_236 = arith.constant 1 : index
    %c0_237 = arith.constant 0 : index
    %c0_238 = arith.constant 0 : index
    %356 = vector.load %arg6[%c1_236, %c0_237, %c0_238] : memref<9x64x128xbf16, #tpu.memory_space<vmem>>, vector<1x64x128xbf16>
    %357 = vector.shape_cast %356 : vector<1x64x128xbf16> to vector<64x128xbf16>
    %cst_239 = arith.constant dense<0.000000e+00> : vector<1x128xf32>
    %358 = tpu.matmul %355, %357, %cst_239 {dimension_numbers = #tpu.dot_dimension_numbers<[1], [0], [0], [1], [0, 0, 1, 1], [], []>} : vector<1x64xbf16>, vector<64x128xbf16>, vector<1x128xf32> -> vector<1x128xf32>
    %359 = arith.addf %353, %358 : vector<1x128xf32>
    %360 = vector.extract_strided_slice %348 {offsets = [0, 2, 0], sizes = [1, 1, 64], strides = [1, 1, 1]} : vector<3x3x64xbf16> to vector<1x1x64xbf16>
    %361 = vector.shape_cast %360 : vector<1x1x64xbf16> to vector<1x64xbf16>
    %c2_240 = arith.constant 2 : index
    %c0_241 = arith.constant 0 : index
    %c0_242 = arith.constant 0 : index
    %362 = vector.load %arg6[%c2_240, %c0_241, %c0_242] : memref<9x64x128xbf16, #tpu.memory_space<vmem>>, vector<1x64x128xbf16>
    %363 = vector.shape_cast %362 : vector<1x64x128xbf16> to vector<64x128xbf16>
    %cst_243 = arith.constant dense<0.000000e+00> : vector<1x128xf32>
    %364 = tpu.matmul %361, %363, %cst_243 {dimension_numbers = #tpu.dot_dimension_numbers<[1], [0], [0], [1], [0, 0, 1, 1], [], []>} : vector<1x64xbf16>, vector<64x128xbf16>, vector<1x128xf32> -> vector<1x128xf32>
    %365 = arith.addf %359, %364 : vector<1x128xf32>
    %366 = vector.extract_strided_slice %348 {offsets = [1, 0, 0], sizes = [1, 1, 64], strides = [1, 1, 1]} : vector<3x3x64xbf16> to vector<1x1x64xbf16>
    %367 = vector.shape_cast %366 : vector<1x1x64xbf16> to vector<1x64xbf16>
    %c3_244 = arith.constant 3 : index
    %c0_245 = arith.constant 0 : index
    %c0_246 = arith.constant 0 : index
    %368 = vector.load %arg6[%c3_244, %c0_245, %c0_246] : memref<9x64x128xbf16, #tpu.memory_space<vmem>>, vector<1x64x128xbf16>
    %369 = vector.shape_cast %368 : vector<1x64x128xbf16> to vector<64x128xbf16>
    %cst_247 = arith.constant dense<0.000000e+00> : vector<1x128xf32>
    %370 = tpu.matmul %367, %369, %cst_247 {dimension_numbers = #tpu.dot_dimension_numbers<[1], [0], [0], [1], [0, 0, 1, 1], [], []>} : vector<1x64xbf16>, vector<64x128xbf16>, vector<1x128xf32> -> vector<1x128xf32>
    %371 = arith.addf %365, %370 : vector<1x128xf32>
    %372 = vector.extract_strided_slice %348 {offsets = [1, 1, 0], sizes = [1, 1, 64], strides = [1, 1, 1]} : vector<3x3x64xbf16> to vector<1x1x64xbf16>
    %373 = vector.shape_cast %372 : vector<1x1x64xbf16> to vector<1x64xbf16>
    %c4_248 = arith.constant 4 : index
    %c0_249 = arith.constant 0 : index
    %c0_250 = arith.constant 0 : index
    %374 = vector.load %arg6[%c4_248, %c0_249, %c0_250] : memref<9x64x128xbf16, #tpu.memory_space<vmem>>, vector<1x64x128xbf16>
    %375 = vector.shape_cast %374 : vector<1x64x128xbf16> to vector<64x128xbf16>
    %cst_251 = arith.constant dense<0.000000e+00> : vector<1x128xf32>
    %376 = tpu.matmul %373, %375, %cst_251 {dimension_numbers = #tpu.dot_dimension_numbers<[1], [0], [0], [1], [0, 0, 1, 1], [], []>} : vector<1x64xbf16>, vector<64x128xbf16>, vector<1x128xf32> -> vector<1x128xf32>
    %377 = arith.addf %371, %376 : vector<1x128xf32>
    %378 = vector.extract_strided_slice %348 {offsets = [1, 2, 0], sizes = [1, 1, 64], strides = [1, 1, 1]} : vector<3x3x64xbf16> to vector<1x1x64xbf16>
    %379 = vector.shape_cast %378 : vector<1x1x64xbf16> to vector<1x64xbf16>
    %c5_252 = arith.constant 5 : index
    %c0_253 = arith.constant 0 : index
    %c0_254 = arith.constant 0 : index
    %380 = vector.load %arg6[%c5_252, %c0_253, %c0_254] : memref<9x64x128xbf16, #tpu.memory_space<vmem>>, vector<1x64x128xbf16>
    %381 = vector.shape_cast %380 : vector<1x64x128xbf16> to vector<64x128xbf16>
    %cst_255 = arith.constant dense<0.000000e+00> : vector<1x128xf32>
    %382 = tpu.matmul %379, %381, %cst_255 {dimension_numbers = #tpu.dot_dimension_numbers<[1], [0], [0], [1], [0, 0, 1, 1], [], []>} : vector<1x64xbf16>, vector<64x128xbf16>, vector<1x128xf32> -> vector<1x128xf32>
    %383 = arith.addf %377, %382 : vector<1x128xf32>
    %384 = vector.extract_strided_slice %348 {offsets = [2, 0, 0], sizes = [1, 1, 64], strides = [1, 1, 1]} : vector<3x3x64xbf16> to vector<1x1x64xbf16>
    %385 = vector.shape_cast %384 : vector<1x1x64xbf16> to vector<1x64xbf16>
    %c6_256 = arith.constant 6 : index
    %c0_257 = arith.constant 0 : index
    %c0_258 = arith.constant 0 : index
    %386 = vector.load %arg6[%c6_256, %c0_257, %c0_258] : memref<9x64x128xbf16, #tpu.memory_space<vmem>>, vector<1x64x128xbf16>
    %387 = vector.shape_cast %386 : vector<1x64x128xbf16> to vector<64x128xbf16>
    %cst_259 = arith.constant dense<0.000000e+00> : vector<1x128xf32>
    %388 = tpu.matmul %385, %387, %cst_259 {dimension_numbers = #tpu.dot_dimension_numbers<[1], [0], [0], [1], [0, 0, 1, 1], [], []>} : vector<1x64xbf16>, vector<64x128xbf16>, vector<1x128xf32> -> vector<1x128xf32>
    %389 = arith.addf %383, %388 : vector<1x128xf32>
    %390 = vector.extract_strided_slice %348 {offsets = [2, 1, 0], sizes = [1, 1, 64], strides = [1, 1, 1]} : vector<3x3x64xbf16> to vector<1x1x64xbf16>
    %391 = vector.shape_cast %390 : vector<1x1x64xbf16> to vector<1x64xbf16>
    %c7_260 = arith.constant 7 : index
    %c0_261 = arith.constant 0 : index
    %c0_262 = arith.constant 0 : index
    %392 = vector.load %arg6[%c7_260, %c0_261, %c0_262] : memref<9x64x128xbf16, #tpu.memory_space<vmem>>, vector<1x64x128xbf16>
    %393 = vector.shape_cast %392 : vector<1x64x128xbf16> to vector<64x128xbf16>
    %cst_263 = arith.constant dense<0.000000e+00> : vector<1x128xf32>
    %394 = tpu.matmul %391, %393, %cst_263 {dimension_numbers = #tpu.dot_dimension_numbers<[1], [0], [0], [1], [0, 0, 1, 1], [], []>} : vector<1x64xbf16>, vector<64x128xbf16>, vector<1x128xf32> -> vector<1x128xf32>
    %395 = arith.addf %389, %394 : vector<1x128xf32>
    %396 = vector.extract_strided_slice %348 {offsets = [2, 2, 0], sizes = [1, 1, 64], strides = [1, 1, 1]} : vector<3x3x64xbf16> to vector<1x1x64xbf16>
    %397 = vector.shape_cast %396 : vector<1x1x64xbf16> to vector<1x64xbf16>
    %c8_264 = arith.constant 8 : index
    %c0_265 = arith.constant 0 : index
    %c0_266 = arith.constant 0 : index
    %398 = vector.load %arg6[%c8_264, %c0_265, %c0_266] : memref<9x64x128xbf16, #tpu.memory_space<vmem>>, vector<1x64x128xbf16>
    %399 = vector.shape_cast %398 : vector<1x64x128xbf16> to vector<64x128xbf16>
    %cst_267 = arith.constant dense<0.000000e+00> : vector<1x128xf32>
    %400 = tpu.matmul %397, %399, %cst_267 {dimension_numbers = #tpu.dot_dimension_numbers<[1], [0], [0], [1], [0, 0, 1, 1], [], []>} : vector<1x64xbf16>, vector<64x128xbf16>, vector<1x128xf32> -> vector<1x128xf32>
    %401 = arith.addf %395, %400 : vector<1x128xf32>
    %c0_268 = arith.constant 0 : index
    %c0_269 = arith.constant 0 : index
    %402 = vector.load %arg11[%c0_268, %c0_269] : memref<3x128xf32, #tpu.memory_space<vmem>>, vector<1x128xf32>
    %c1_270 = arith.constant 1 : index
    %c0_271 = arith.constant 0 : index
    %403 = vector.load %arg11[%c1_270, %c0_271] : memref<3x128xf32, #tpu.memory_space<vmem>>, vector<1x128xf32>
    %c2_272 = arith.constant 2 : index
    %c0_273 = arith.constant 0 : index
    %404 = vector.load %arg11[%c2_272, %c0_273] : memref<3x128xf32, #tpu.memory_space<vmem>>, vector<1x128xf32>
    %405 = arith.addf %401, %402 : vector<1x128xf32>
    %cst_274 = arith.constant 0.000000e+00 : f32
    %406 = vector.broadcast %cst_274 : f32 to vector<1x128xf32>
    %407 = arith.maximumf %405, %406 : vector<1x128xf32>
    %408 = arith.mulf %407, %403 : vector<1x128xf32>
    %409 = arith.addf %408, %404 : vector<1x128xf32>
    %410 = vector.shape_cast %409 : vector<1x128xf32> to vector<1x1x128xf32>
    %c0_275 = arith.constant 0 : index
    %c0_276 = arith.constant 0 : index
    %c0_277 = arith.constant 0 : index
    %c0_278 = arith.constant 0 : index
    %411 = vector.load %arg16[%c0_275, %c0_276, %c0_277, %c0_278] : memref<1x1x1x128xf32, #tpu.memory_space<vmem>>, vector<1x1x1x128xf32>
    %412 = vector.shape_cast %411 : vector<1x1x1x128xf32> to vector<1x1x128xf32>
    %413 = vector.shape_cast %410 : vector<1x1x128xf32> to vector<1x1x1x128xf32>
    tpu.vector_store %arg16[%c0_275, %c0_276, %c0_277, %c0_278], %413 {strides = array<i32>} : memref<1x1x1x128xf32, #tpu.memory_space<vmem>>, vector<1x1x1x128xf32>,
    return
  }
  func.func @transform_0(%arg0: i32) -> (i32, i32, i32, i32) {
    %c0_i32 = arith.constant 0 : i32
    %c0_i32_0 = arith.constant 0 : i32
    %c0_i32_1 = arith.constant 0 : i32
    %c0_i32_2 = arith.constant 0 : i32
    return %arg0, %c0_i32, %c0_i32_0, %c0_i32_1 : i32, i32, i32, i32
  }
  func.func @transform_1(%arg0: i32) -> (i32, i32, i32) {
    %c0_i32 = arith.constant 0 : i32
    %c0_i32_0 = arith.constant 0 : i32
    %c0_i32_1 = arith.constant 0 : i32
    %c0_i32_2 = arith.constant 0 : i32
    return %c0_i32, %c0_i32_0, %c0_i32_1 : i32, i32, i32
  }
  func.func @transform_2(%arg0: i32) -> (i32, i32, i32) {
    %c0_i32 = arith.constant 0 : i32
    %c0_i32_0 = arith.constant 0 : i32
    %c0_i32_1 = arith.constant 0 : i32
    %c0_i32_2 = arith.constant 0 : i32
    return %c0_i32, %c0_i32_0, %c0_i32_1 : i32, i32, i32
  }
  func.func @transform_3(%arg0: i32) -> (i32, i32, i32) {
    %c0_i32 = arith.constant 0 : i32
    %c0_i32_0 = arith.constant 0 : i32
    %c0_i32_1 = arith.constant 0 : i32
    %c0_i32_2 = arith.constant 0 : i32
    return %c0_i32, %c0_i32_0, %c0_i32_1 : i32, i32, i32
  }
  func.func @transform_4(%arg0: i32) -> (i32, i32, i32) {
    %c0_i32 = arith.constant 0 : i32
    %c0_i32_0 = arith.constant 0 : i32
    %c0_i32_1 = arith.constant 0 : i32
    %c0_i32_2 = arith.constant 0 : i32
    return %c0_i32, %c0_i32_0, %c0_i32_1 : i32, i32, i32
  }
  func.func @transform_5(%arg0: i32) -> (i32, i32, i32) {
    %c0_i32 = arith.constant 0 : i32
    %c0_i32_0 = arith.constant 0 : i32
    %c0_i32_1 = arith.constant 0 : i32
    %c0_i32_2 = arith.constant 0 : i32
    return %c0_i32, %c0_i32_0, %c0_i32_1 : i32, i32, i32
  }
  func.func @transform_6(%arg0: i32) -> (i32, i32) {
    %c0_i32 = arith.constant 0 : i32
    %c0_i32_0 = arith.constant 0 : i32
    %c0_i32_1 = arith.constant 0 : i32
    return %c0_i32, %c0_i32_0 : i32, i32
  }
  func.func @transform_7(%arg0: i32) -> (i32, i32) {
    %c0_i32 = arith.constant 0 : i32
    %c0_i32_0 = arith.constant 0 : i32
    %c0_i32_1 = arith.constant 0 : i32
    return %c0_i32, %c0_i32_0 : i32, i32
  }
  func.func @transform_8(%arg0: i32) -> (i32, i32) {
    %c0_i32 = arith.constant 0 : i32
    %c0_i32_0 = arith.constant 0 : i32
    %c0_i32_1 = arith.constant 0 : i32
    return %c0_i32, %c0_i32_0 : i32, i32
  }
  func.func @transform_9(%arg0: i32) -> (i32, i32) {
    %c0_i32 = arith.constant 0 : i32
    %c0_i32_0 = arith.constant 0 : i32
    %c0_i32_1 = arith.constant 0 : i32
    return %c0_i32, %c0_i32_0 : i32, i32
  }
  func.func @transform_10(%arg0: i32) -> (i32, i32) {
    %c0_i32 = arith.constant 0 : i32
    %c0_i32_0 = arith.constant 0 : i32
    %c0_i32_1 = arith.constant 0 : i32
    return %c0_i32, %c0_i32_0 : i32, i32
  }
  func.func @transform_11(%arg0: i32) -> (i32, i32, i32, i32) {
    %c0_i32 = arith.constant 0 : i32
    %c0_i32_0 = arith.constant 0 : i32
    %c0_i32_1 = arith.constant 0 : i32
    %c0_i32_2 = arith.constant 0 : i32
    return %arg0, %c0_i32, %c0_i32_0, %c0_i32_1 : i32, i32, i32, i32
  }
  func.func @transform_12(%arg0: i32) -> (i32, i32, i32, i32) {
    %c0_i32 = arith.constant 0 : i32
    %c0_i32_0 = arith.constant 0 : i32
    %c0_i32_1 = arith.constant 0 : i32
    %c0_i32_2 = arith.constant 0 : i32
    return %arg0, %c0_i32, %c0_i32_0, %c0_i32_1 : i32, i32, i32, i32
  }
  func.func @transform_13(%arg0: i32) -> (i32, i32, i32, i32) {
    %c0_i32 = arith.constant 0 : i32
    %c0_i32_0 = arith.constant 0 : i32
    %c0_i32_1 = arith.constant 0 : i32
    %c0_i32_2 = arith.constant 0 : i32
    return %arg0, %c0_i32, %c0_i32_0, %c0_i32_1 : i32, i32, i32, i32
  }
  func.func @transform_14(%arg0: i32) -> (i32, i32, i32, i32) {
    %c0_i32 = arith.constant 0 : i32
    %c0_i32_0 = arith.constant 0 : i32
    %c0_i32_1 = arith.constant 0 : i32
    %c0_i32_2 = arith.constant 0 : i32
    return %arg0, %c0_i32, %c0_i32_0, %c0_i32_1 : i32, i32, i32, i32
  }
  func.func @transform_15(%arg0: i32) -> (i32, i32, i32, i32) {
    %c0_i32 = arith.constant 0 : i32
    %c0_i32_0 = arith.constant 0 : i32
    %c0_i32_1 = arith.constant 0 : i32
    %c0_i32_2 = arith.constant 0 : i32
    return %arg0, %c0_i32, %c0_i32_0, %c0_i32_1 : i32, i32, i32, i32
  }
}

</mosaic_0001>

<bundles_post_ra>
// kernel: unet_encoder_forward.1
= control target key start
LH: loop header
LB: loop body
LE: loop exit
PB: predicated region body
PF: predicated region fallthrough
CT: control target
= control target key end

     0   :  { %s11086_s0 = inlined_call_operand.vmem [shape: bf16[2,16,16,4], index: 0, kind: input, shape index: {}]   ;;  %s11087_s1 = inlined_call_operand.vmem [shape: bf16[9,4,8], index: 1, kind: input, shape index: {}]   ;;  %s11088_s2 = inlined_call_operand.vmem [shape: bf16[9,8,16], index: 2, kind: input, shape index: {}]   ;;  %s11089_s3 = inlined_call_operand.vmem [shape: bf16[9,16,32], index: 3, kind: input, shape index: {}]   ;;  %s11090_s4 = inlined_call_operand.vmem [shape: bf16[9,32,64], index: 4, kind: input, shape index: {}]   ;;  %s11091_s5 = inlined_call_operand.vmem [shape: bf16[9,64,128], index: 5, kind: input, shape index: {}]   ;;  %s11092_s6 = inlined_call_operand.vmem [shape: f32[3,8], index: 6, kind: input, shape index: {}]   ;;  %s11093_s7 = inlined_call_operand.vmem [shape: f32[3,16], index: 7, kind: input, shape index: {}]   ;;  %s11094_s8 = inlined_call_operand.vmem [shape: f32[3,32], index: 8, kind: input, shape index: {}]   ;;  %s11095_s9 = inlined_call_operand.vmem [shape: f32[3,64], index: 9, kind: input, shape index: {}]   ;;  %s11096_s10 = inlined_call_operand.vmem [shape: f32[3,128], index: 10, kind: input, shape index: {}]   ;;  %s11097_s11 = inlined_call_operand.vmem [shape: f32[2,16,16,8], index: 11, kind: output, shape index: {0}]   ;;  %s11098_s12 = inlined_call_operand.hbm [shape: f32[2,8,8,16], index: 12, kind: output, shape index: {1}]   ;;  %s11099_s13 = inlined_call_operand.hbm [shape: f32[2,4,4,32], index: 13, kind: output, shape index: {2}]   ;;  %s11100_s14 = inlined_call_operand.hbm [shape: f32[2,2,2,64], index: 14, kind: output, shape index: {3}]   ;;  %s11101_s15 = inlined_call_operand.hbm [shape: f32[2,1,1,128], index: 15, kind: output, shape index: {4}]  }
   0x1   :  { %11136 = sst [smem:[#allocation43_spill]] %s11086_s0 }
   0x2   :  { %11137 = sst [smem:[#allocation44_spill]] %s11087_s1 }
   0x3   :  { %11138 = sst [smem:[#allocation45_spill]] %s11088_s2 }
   0x4   :  { %11139 = sst [smem:[#allocation46_spill]] %s11089_s3 }
   0x5   :  { %11140 = sst [smem:[#allocation47_spill]] %s11090_s4 }
   0x6   :  { %11141 = sst [smem:[#allocation48_spill]] %s11091_s5 }
   0x7   :  { %11142 = sst [smem:[#allocation49_spill]] %s11092_s6 }
   0x8   :  { %11143 = sst [smem:[#allocation50_spill]] %s11093_s7 }
   0x9   :  { %11144 = sst [smem:[#allocation51_spill]] %s11094_s8 }
   0xa   :  { %11145 = sst [smem:[#allocation52_spill]] %s11095_s9 }
   0xb   :  { %11146 = sst [smem:[#allocation53_spill]] %s11097_s11 }
   0xc   :  { %11147 = sst [smem:[#allocation54_spill]] %s11099_s13 }
   0xd   :  { %21 = vsyncpa [#allocation8], 0 }
   0xe   :  { %23 = vsyncpa [#allocation8 + $0x1], 0 }
   0xf   :  { %24 = vsyncpa [#allocation10], 0 }
  0x10   :  { %26 = vsyncpa [#allocation10 + $0x1], 0 }
  0x11   :  { %27 = vsyncpa [#allocation13], 0 }
  0x12   :  { %29 = vsyncpa [#allocation13 + $0x1], 0  ;;  %s8172_s18 = smov 0   ;;  %s8174_s19 = smov 0  }
  0x13   :  { %s8176_s20 = smov 0   ;;  %s8178_s21 = smov 0  }
  0x14 LB: > { %s8193_s22 = sadd.s32 4294967295, %s8083_s21   ;;  %s11102_s23 = sadd.s32 4294967294, %s8083_s21   ;;  %s8083_s21 = sphi %s8178_s21, %s11322_s21   ;;  %s8079_s20 = sphi %s8176_s20, %s11321_s20   ;;  %s8075_s19 = sphi %s8174_s19, %s11320_s19   ;;  %s8071_s18 = sphi %s8172_s18, %s11319_s18  }
  0x15   : > { %s8197_s24 = sadd.s32 1, %s8083_s21   ;;  %s304_s25 = sadd.s32 1, %s8079_s20 }
  0x16   : > { %s301_s26 = ssub.s32 %s8083_s21, %s8197_s24  ;;  %p314_p0 = scmp.ne.s32.totalorder %s8079_s20, %s8075_s19 }
  0x17   : > { %p302_p1 = scmp.eq.s32.totalorder %s301_s26, 0  ;;  %p315_p2 = scmp.eq.s32.totalorder %s8193_s22, 1 }
  0x18   : > { %p320_p3 = scmp.ne.s32.totalorder %s8075_s19, %s8071_s18  ;;  %p321_p4 = scmp.eq.s32.totalorder %s11102_s23, 1 }
  0x19   : > { %s8210_s27 = scalar_select %p302_p1, %s8079_s20, %s304_s25  }
  0x1a   : > { %p8212_p5 = por %p315_p2, %p314_p0  ;;  %p8216_p6 = por %p321_p4, %p320_p3 }
  0x1b   : > { %11148 = sst [smem:[#allocation17_spill]] %s8210_s27  ;;  %p6957_p7 = scmp.ge.s32.totalorder %s8083_s21, 1 }
  0x1c   : > { %p455_p8 = scmp.lt.s32.totalorder %s8083_s21, 3 }
  0x1e   : > { %p456_p9 = pnand %p6957_p7, %p455_p8 }
  0x20   : > { %459 = sbr.rel (%p456_p9) target bundleno = 2049 (0x801), region = 64 }
  0x25   : > { %vm11126_vm0 = vcmask 1041408   ;;  %s11151_s1 = sld [smem:[#allocation44_spill]]  ;;  %vm533_vm1 = vcmask 27648   ;;  %vm536_vm2 = vcmask 24576   ;;  %v11103_v2 = vmov 0   ;;  %p522_p10 = scmp.lt.s32.totalorder %s8193_s22, 1 }
  0x26   : > { %534 = vst.msk [vmem:[#allocation2] sm:$0xf] %vm533_vm1, %v11103_v2  ;;  %vm1932_vm3 = vcmask 1042432   ;;  %vm1933_vm4 = vcmask 1046532   ;;  %vm1117_vm5 = vsmask.f32 3328 }
  0x27   : > { %535 = vst.msk [vmem:[#allocation2 + $0x4] sm:$0xf] %vm533_vm1, %v11103_v2  ;;  %vm1118_vm6 = vsmask.f32 7440  ;;  %vm8254_vm7 = vmor %vm1932_vm3, %vm1933_vm4  ;;  %vm1554_vm8 = vcmask 31744   ;;  %s8319_s25 = scalar_select %p522_p10, %s8193_s22, 1 }
  0x28   : > { %537 = vst.msk [vmem:[#allocation2 + $0x8] sm:$0x1] %vm536_vm2, %v11103_v2  ;;  %vm8279_vm9 = vmor %vm1117_vm5, %vm1118_vm6  ;;  %s11156_s0 = sld [smem:[#allocation43_spill]]  ;;  %vm621_vm10 = vsmask.f32 256  ;;  %vm3680_vm3 = vcmask 60416  }
  0x29   : > { %538 = vst.msk [vmem:[#allocation2 + $0xc] sm:$0xf] %vm533_vm1, %v11103_v2  ;;  %s7758_s26 = sshll.u32 %s8319_s25, 7  ;;  %vm11125_vm11 = vsmask.f32 4368  ;;  %vm8395_vm15 = vmand %vm536_vm2, %vm621_vm10  ;;  %s11208_s2 = sld [smem:[#allocation45_spill]] }
  0x2a   : > { %539 = vst.msk [vmem:[#allocation2 + $0x10] sm:$0xf] %vm533_vm1, %v11103_v2  ;;  %vm11135_vm12 = vsmask.f32 7938  ;;  %vm8387_vm14 = vmor %vm621_vm10, %vm11125_vm11  ;;  %s11221_s6 = sld [smem:[#allocation49_spill]]  ;;  %vm3682_vm4 = vcmask 57344  }
  0x2b   : > { %v7078_v0 = vld [vmem:[%s11151_s1 + $0x4] sm:$0x3]  ;;  %v6965_v3 = vld [vmem:[%s11151_s1 + $0x2] sm:$0x3]  ;;  %v1116_v4 = vld [vmem:[%s11151_s1] sm:$0x3] }
  0x2c   : > { %v2146_v1 = vsel %vm11126_vm0, %v7078_v0, 0  ;;  %v1605_v5 = vsel %vm11126_vm0, %v6965_v3, 0  ;;  %v1825_v6 = vsel %vm11126_vm0, %v1116_v4, 0  ;;  %v7095_v7 = vld [vmem:[%s11151_s1 + $0x6] sm:$0x3]  ;;  %vm8379_vm13 = vmand %vm533_vm1, %vm11135_vm12  ;;  %s11223_s11 = sld [smem:[#allocation53_spill]] }
  0x2d   : > { %2155 = vmatpush.bf16.msra.mxu2 %v2146_v1  ;;  %1614 = vmatpush.bf16.msra.mxu0 %v1605_v5  ;;  %v2280_v8 = vsel %vm11126_vm0, %v7095_v7, 0  ;;  %540 = vst.msk [vmem:[#allocation2 + $0x14] sm:$0x1] %vm536_vm2, %v11103_v2  ;;  %v1062_v9 = vld [vmem:[#allocation2] sm:$0xf]  ;;  %vm11124_vm5 = vcmask 254976  }
  0x2e   : > { %1834 = vmatpush.bf16.msra.mxu1 %v1825_v6  ;;  %2289 = vmatpush.bf16.msra.mxu3 %v2280_v8  ;;  %541 = vst.msk [vmem:[#allocation2 + $0x18] sm:$0xf] %vm533_vm1, %v11103_v2  ;;  %v1063_v10 = vld [vmem:[#allocation2 + $0x4] sm:$0xf]  ;;  %v7062_v12 = vrot.slane %v1062_v9, 9  ;;  %v1121_v13 = vshrl.u32 %v1062_v9, 16  ;;  %s8339_s23 = scalar_lea.vmem %s11156_s0, %s7758_s26 }
  0x2f   : > { %542 = vst.msk [vmem:[#allocation2 + $0x1c] sm:$0xf] %vm533_vm1, %v11103_v2  ;;  %v1064_v14 = vld [vmem:[#allocation2 + $0x8] sm:$0x1]  ;;  %v1937_v15 = vrot.slane %v1063_v10, 5  ;;  %v1124_v16 = vshll.u32 %v1062_v9, 16 }
  0x30   : > { %543 = vst.msk [vmem:[#allocation2 + $0x20] sm:$0x1] %vm536_vm2, %v11103_v2  ;;  %v1940_v17 = vrot.slane %v1064_v14, 5  ;;  %v1123_v18 = vrot.slane %v1121_v13, 4  ;;  %v1130_v19 = vshll.u32 %v1063_v10, 16  ;;  %v1134_v20 = vshrl.u32 %v1063_v10, 16 }
  0x31   : > { %544 = vst.msk [vmem:[#allocation2 + $0x24] sm:$0xf] %vm533_vm1, %v11103_v2  ;;  %v1938_v21 = vsel %vm8254_vm7, %v7062_v12, %v1937_v15  ;;  %v1939_v22 = vrot.slane %v1937_v15, 4  ;;  %v1126_v23 = vrot.slane %v1124_v16, 5  ;;  %v1140_v24 = vshll.u32 %v1064_v14, 16  ;;  %v7760_v25 = vld [vmem:[#allocation2] sm:$0xff] }
  0x32   : > { %545 = vst.msk [vmem:[#allocation2 + $0x28] sm:$0xf] %vm533_vm1, %v11103_v2  ;;  %v2049_v26 = vunpack.c.l.b16 %v1938_v21  ;;  %v1132_v27 = vrot.slane %v1130_v19, 5  ;;  %v1136_v28 = vrot.slane %v1134_v20, 4  ;;  %7046 = vmatmul.msk.bf16.vlgmr.msra.gmra.mxu1 %vm1554_vm8, %v7760_v25  ;;  %v7116_v43 = vld [vmem:[%s11151_s1 + $0x8] sm:$0x3] }
  0x33   : > { %546 = vst.msk [vmem:[#allocation2 + $0x2c] sm:$0x1] %vm536_vm2, %v11103_v2  ;;  %v1941_v29 = vsel %vm8254_vm7, %v1939_v22, %v1940_v17  ;;  %v1127_v30 = vor.u32 %v1126_v23, %v1123_v18  ;;  %v1142_v34 = vrot.slane %v1140_v24, 5  ;;  %v2436_v44 = vsel %vm11126_vm0, %v7116_v43, 0  ;;  %v589_v45 = vld [vmem:[%s8339_s23] sm:$0xf] }
  0x34   : > { %547 = vst.msk [vmem:[#allocation2 + $0x30] sm:$0xf] %vm533_vm1, %v11103_v2  ;;  %v2050_v31 = vunpack.c.l.b16 %v1941_v29  ;;  %v1137_v33 = vor.u32 %v1136_v28, %v1132_v27  ;;  %2445 = vmatpush.bf16.msrb.mxu0 %v2436_v44  ;;  %v590_v46 = vld [vmem:[%s8339_s23 + $0x4] sm:$0xf]  ;;  %v591_v47 = vld [vmem:[%s8339_s23 + $0x8] sm:$0xf] }
  0x35   : > { %548 = vst.msk [vmem:[#allocation2 + $0x34] sm:$0xf] %vm533_vm1, %v11103_v2  ;;  %v1128_v35 = vrot.slane %v1127_v30, 4  ;;  %v625_v48 = vshrl.u32 %v589_v45, 16  ;;  %v592_v49 = vld [vmem:[%s8339_s23 + $0xc] sm:$0xf] }
  0x36   : > { %549 = vst.msk [vmem:[#allocation2 + $0x38] sm:$0x1] %vm536_vm2, %v11103_v2  ;;  %v2081_v36 = vpack.c.b16 %v2050_v31, %v2049_v26  ;;  %v1138_v37 = vrot.slane %v1137_v33, 4  ;;  %v633_v50 = vshrl.u32 %v590_v46, 16  ;;  %v642_v51 = vshrl.u32 %v591_v47, 16  ;;  %s7759_s0 = sshll.u32 %s8319_s25, 8 }
  0x37   : > { %550 = vst.msk [vmem:[#allocation2 + $0x3c] sm:$0xf] %vm533_vm1, %v11103_v2  ;;  %v1133_v38 = vsel %vm8279_vm9, %v1128_v35, %v1132_v27  ;;  %v650_v52 = vshrl.u32 %v592_v49, 16  ;;  %v627_v53 = vrot.slane %v625_v48, 7  ;;  %v628_v54 = vshll.u32 %v589_v45, 16  ;;  %s11274_s7 = sld [smem:[#allocation50_spill]] }
  0x38   : > { %551 = vst.msk [vmem:[#allocation2 + $0x40] sm:$0xf] %vm533_vm1, %v11103_v2  ;;  %7079 = vmatmul.msk.bf16.vlgmr.msra.gmra.mxu2 %vm1554_vm8, %v2081_v36  ;;  %v1143_v39 = vsel %vm8279_vm9, %v1138_v37, %v1142_v34  ;;  %v1506_v40 = vunpack.c.l.b16 %v1133_v38  ;;  %v635_v55 = vrot.slane %v633_v50, 7  ;;  %v636_v56 = vshll.u32 %v590_v46, 16  ;;  %v948_v59 = vld [vmem:[#allocation2 + $0xc] sm:$0xf] }
  0x39   : > { %552 = vst.msk [vmem:[#allocation2 + $0x44] sm:$0x1] %vm536_vm2, %v11103_v2  ;;  %v1507_v41 = vunpack.c.l.b16 %v1143_v39  ;;  %v644_v57 = vrot.slane %v642_v51, 7  ;;  %v645_v58 = vshll.u32 %v591_v47, 16  ;;  %v652_v60 = vrot.slane %v650_v52, 7  ;;  %s11288_s3 = sld [smem:[#allocation46_spill]] }
  0x3a   : > { %553 = vst.msk [vmem:[#allocation2 + $0x48] sm:$0xf] %vm533_vm1, %v11103_v2  ;;  %v653_v61 = vshll.u32 %v592_v49, 16  ;;  %v630_v62 = vor.u32 %v628_v54, %v627_v53  ;;  %v593_v63 = vld [vmem:[%s8339_s23 + $0x10] sm:$0xf]  ;;  %v631_v1 = vrot.slane %v627_v53, 4  ;;  %v638_v3 = vor.u32 %v636_v56, %v635_v55 }
  0x3b   : > { %554 = vst.msk [vmem:[#allocation2 + $0x4c] sm:$0xf] %vm533_vm1, %v11103_v2  ;;  %v1538_v42 = vpack.c.b16 %v1507_v41, %v1506_v40  ;;  %v594_v0 = vld [vmem:[%s8339_s23 + $0x14] sm:$0xf]  ;;  %v659_v5 = vshrl.u32 %v593_v63, 16  ;;  %v640_v8 = vrot.slane %v635_v55, 4  ;;  %v647_v10 = vor.u32 %v645_v58, %v644_v57 }
  0x3c   : > { %555 = vst.msk [vmem:[#allocation2 + $0x50] sm:$0x1] %vm536_vm2, %v11103_v2  ;;  %v667_v6 = vshrl.u32 %v594_v0, 16  ;;  %v954_v9 = vld [vmem:[#allocation2 + $0x14] sm:$0x1]  ;;  %v11161_v12 = vmov 0  ;;  %v949_v17 = vsel %vm8379_vm13, %v630_v62, %v948_v59  ;;  %v655_v19 = vor.u32 %v653_v61, %v652_v60 }
  0x3d   : > { %556 = vst.msk [vmem:[#allocation2 + $0x54] sm:$0xf] %vm533_vm1, %v11103_v2  ;;  %6966 = vmatmul.msk.bf16.vlgmr.msra.gmra.mxu0 %vm1554_vm8, %v1538_v42  ;;  %v11162_v12 = vsel %vm8395_vm15, 4294967295, %v11161_v12  ;;  %v661_v13 = vrot.slane %v659_v5, 7  ;;  %v662_v14 = vshll.u32 %v593_v63, 16  ;;  %v670_v16 = vshll.u32 %v594_v0, 16 }
  0x3e   : > { %557 = vst.msk [vmem:[#allocation2 + $0x58] sm:$0xf] %vm533_vm1, %v11103_v2  ;;  %v669_v15 = vrot.slane %v667_v6, 7  ;;  %v648_v18 = vrot.slane %v644_v57, 4  ;;  %v957_v20 = vld [vmem:[#allocation2 + $0x18] sm:$0xf]  ;;  %v639_v21 = vsel %vm8387_vm14, %v631_v1, %v638_v3  ;;  %v955_v23 = vsel %vm8395_vm15, %v640_v8, %v954_v9 }
  0x3f   : > { %558 = vst.msk [vmem:[#allocation2 + $0x5c] sm:$0x1] %vm536_vm2, %v11103_v2  ;;  %v657_v22 = vrot.slane %v652_v60, 4  ;;  %v961_v24 = vld [vmem:[#allocation2 + $0x20] sm:$0x1]  ;;  %v664_v25 = vor.u32 %v662_v14, %v661_v13  ;;  %v958_v26 = vsel %vm8379_vm13, %v647_v10, %v957_v20  ;;  %v665_v27 = vrot.slane %v661_v13, 4 }
  0x40   : > { %559 = vst.msk [vmem:[#allocation2 + $0x60] sm:$0xf] %vm533_vm1, %v11103_v2  ;;  %v672_v28 = vor.u32 %v670_v16, %v669_v15  ;;  %v964_v29 = vld [vmem:[#allocation2 + $0x24] sm:$0xf]  ;;  %v656_v30 = vsel %vm8387_vm14, %v648_v18, %v655_v19  ;;  %v674_v35 = vrot.slane %v669_v15, 4  ;;  %vm3896_vm6 = vcmask 1042434  }
  0x41   : > { %560 = vst.msk [vmem:[#allocation2 + $0x64] sm:$0xf] %vm533_vm1, %v11103_v2  ;;  %v962_v31 = vsel %vm8395_vm15, %v657_v22, %v961_v24  ;;  %v965_v33 = vsel %vm8379_vm13, %v664_v25, %v964_v29  ;;  %v968_v36 = vld [vmem:[#allocation2 + $0x2c] sm:$0x1]  ;;  %vm3911_vm11 = vcmask 1047559   ;;  %s11292_s4 = sld [smem:[#allocation47_spill]] }
  0x42   : > { %561 = vst.msk [vmem:[#allocation2 + $0x68] sm:$0x1] %vm536_vm2, %v11103_v2  ;;  %v673_v34 = vsel %vm8387_vm14, %v665_v27, %v672_v28  ;;  %v969_v47 = vsel %vm8395_vm15, %v674_v35, %v968_v36  ;;  %s11293_s8 = sld [smem:[#allocation51_spill]]  ;;  %s7842_s30 = sshll.u32 %s8193_s22, 4 }
  0x43   : > { %562 = vst.msk [vmem:[#allocation2 + $0x6c] sm:$0xf] %vm533_vm1, %v11103_v2  ;;  %s11311_s5 = sld [smem:[#allocation48_spill]] }
  0x44   : > { %563 = vst.msk [vmem:[#allocation2 + $0x70] sm:$0xf] %vm533_vm1, %v11103_v2  ;;  %s11313_s9 = sld [smem:[#allocation52_spill]] }
  0x45   : > { %564 = vst.msk [vmem:[#allocation2 + $0x74] sm:$0x1] %vm536_vm2, %v11103_v2  ;;  %s11316_s13 = sld [smem:[#allocation54_spill]] }
  0x46   : > { %565 = vst.msk [vmem:[#allocation2 + $0x78] sm:$0xf] %vm533_vm1, %v11103_v2 }
  0x47   : > { %566 = vst.msk [vmem:[#allocation2 + $0x7c] sm:$0xf] %vm533_vm1, %v11103_v2 }
  0x48   : > { %567 = vst.msk [vmem:[#allocation2 + $0x80] sm:$0x1] %vm536_vm2, %v11103_v2 }
  0x49   : > { %568 = vst.msk [vmem:[#allocation2 + $0x84] sm:$0xf] %vm533_vm1, %v11103_v2 }
  0x4a   : > { %569 = vst.msk [vmem:[#allocation2 + $0x88] sm:$0xf] %vm533_vm1, %v11103_v2 }
  0x4b   : > { %570 = vst.msk [vmem:[#allocation2 + $0x8c] sm:$0x1] %vm536_vm2, %v11103_v2 }
  0x4c   : > { %571 = vst.msk [vmem:[#allocation2 + $0x90] sm:$0xf] %vm533_vm1, %v11103_v2 }
  0x4d   : > { %572 = vst.msk [vmem:[#allocation2 + $0x94] sm:$0xf] %vm533_vm1, %v11103_v2 }
  0x4e   : > { %573 = vst.msk [vmem:[#allocation2 + $0x98] sm:$0x1] %vm536_vm2, %v11103_v2 }
  0x4f   : > { %574 = vst.msk [vmem:[#allocation2 + $0x9c] sm:$0xf] %vm533_vm1, %v11103_v2 }
  0x50   : > { %575 = vst.msk [vmem:[#allocation2 + $0xa0] sm:$0xf] %vm533_vm1, %v11103_v2 }
  0x51   : > { %576 = vst.msk [vmem:[#allocation2 + $0xa4] sm:$0x1] %vm536_vm2, %v11103_v2 }
  0x52   : > { %577 = vst.msk [vmem:[#allocation2 + $0xa8] sm:$0xf] %vm533_vm1, %v11103_v2 }
  0x53   : > { %578 = vst.msk [vmem:[#allocation2 + $0xac] sm:$0xf] %vm533_vm1, %v11103_v2 }
  0x54   : > { %579 = vst.msk [vmem:[#allocation2 + $0xb0] sm:$0x1] %vm536_vm2, %v11103_v2 }
  0x55   : > { %580 = vst.msk [vmem:[#allocation2 + $0xb4] sm:$0xf] %vm533_vm1, %v11103_v2 }
  0x56   : > { %581 = vst.msk [vmem:[#allocation2 + $0xb8] sm:$0xf] %vm533_vm1, %v11103_v2 }
  0x57   : > { %582 = vst.msk [vmem:[#allocation2 + $0xbc] sm:$0x1] %vm536_vm2, %v11103_v2 }
  0x58   : > { %583 = vst.msk [vmem:[#allocation2 + $0xc0] sm:$0xf] %vm533_vm1, %v11103_v2 }
  0x59   : > { %584 = vst.msk [vmem:[#allocation2 + $0xc4] sm:$0xf] %vm533_vm1, %v11103_v2 }
  0x5a   : > { %585 = vst.msk [vmem:[#allocation2 + $0xc8] sm:$0x1] %vm536_vm2, %v11103_v2 }
  0x5b   : > { %11163 = vst [vmem:[#allocation18_spill] sm:$0xff] %v11162_v12 }
  0x5c   : > { %586 = vst.msk [vmem:[#allocation2 + $0xcc] sm:$0xf] %vm533_vm1, %v11103_v2 }
  0x5d   : > { %587 = vst.msk [vmem:[#allocation2 + $0xd0] sm:$0xf] %vm533_vm1, %v11103_v2 }
  0x5e   : > { %588 = vst.msk [vmem:[#allocation2 + $0xd4] sm:$0x1] %vm536_vm2, %v11103_v2  ;;  %vm3263_vm2 = vcmask 64512  }
  0x5f   : > { %950 = vst [vmem:[#allocation2 + $0xc] sm:$0xf] %v949_v17 }
  0x60   : > { %951 = vst.msk [vmem:[#allocation2 + $0x10] sm:$0xf] %vm533_vm1, %v639_v21 }
  0x61   : > { %956 = vst [vmem:[#allocation2 + $0x14] sm:$0x1] %v955_v23 }
  0x62   : > { %959 = vst [vmem:[#allocation2 + $0x18] sm:$0xf] %v958_v26 }
  0x63   : > { %960 = vst.msk [vmem:[#allocation2 + $0x1c] sm:$0xf] %vm533_vm1, %v656_v30 }
  0x64   : > { %963 = vst [vmem:[#allocation2 + $0x20] sm:$0x1] %v962_v31 }
  0x65   : > { %966 = vst [vmem:[#allocation2 + $0x24] sm:$0xf] %v965_v33 }
  0x66   : > { %v1065_v37 = vld [vmem:[#allocation2 + $0xc] sm:$0xf]  ;;  %967 = vst.msk [vmem:[#allocation2 + $0x28] sm:$0xf] %vm533_vm1, %v673_v34 }
  0x67   : > { %v7761_v38 = vld [vmem:[#allocation2 + $0xc] sm:$0xff]  ;;  %v7063_v40 = vrot.slane %v1065_v37, 9  ;;  %v1145_v41 = vshrl.u32 %v1065_v37, 16  ;;  %v1148_v42 = vshll.u32 %v1065_v37, 16  ;;  %970 = vst [vmem:[#allocation2 + $0x2c] sm:$0x1] %v969_v47 }
  0x68   : > { %v1066_v39 = vld [vmem:[#allocation2 + $0x10] sm:$0xf]  ;;  %v1067_v43 = vld [vmem:[#allocation2 + $0x14] sm:$0x1]  ;;  %7100 = vmatmul.msk.bf16.vlgmr.msra.gmra.mxu3 %vm1554_vm8, %v7761_v38  ;;  %7047 = vmatmul.msk.bf16.gmra.mxu1 %vm1554_vm8, %v7761_v38  ;;  %v597_v47 = vld [vmem:[%s8339_s23 + $0x20] sm:$0xf] }
  0x69   : > { %v1944_v44 = vrot.slane %v1066_v39, 5  ;;  %v1154_v45 = vshll.u32 %v1066_v39, 16  ;;  %v1158_v46 = vshrl.u32 %v1066_v39, 16  ;;  %v1947_v48 = vrot.slane %v1067_v43, 5  ;;  %v1068_v52 = vld [vmem:[#allocation2 + $0x18] sm:$0xf] }
  0x6a   : > { %v1147_v49 = vrot.slane %v1145_v41, 4  ;;  %v1150_v50 = vrot.slane %v1148_v42, 5  ;;  %v1164_v51 = vshll.u32 %v1067_v43, 16  ;;  %v1069_v57 = vld [vmem:[#allocation2 + $0x1c] sm:$0xf]  ;;  %v7064_v62 = vrot.slane %v1068_v52, 9 }
  0x6b   : > { %v1945_v53 = vsel %vm8254_vm7, %v7063_v40, %v1944_v44  ;;  %v1946_v54 = vrot.slane %v1944_v44, 4  ;;  %v1156_v55 = vrot.slane %v1154_v45, 5  ;;  %v1160_v56 = vrot.slane %v1158_v46, 4  ;;  %v1070_v61 = vld [vmem:[#allocation2 + $0x20] sm:$0x1]  ;;  %v7762_v34 = vld [vmem:[#allocation2 + $0x18] sm:$0xff] }
  0x6c   : > { %v2051_v58 = vunpack.c.l.b16 %v1945_v53  ;;  %v1151_v59 = vor.u32 %v1150_v50, %v1147_v49  ;;  %v1166_v60 = vrot.slane %v1164_v51, 5  ;;  %v1951_v1 = vrot.slane %v1069_v57, 5  ;;  %v8446_v30 = vld [vmem:[#allocation2 + $0x24] sm:$0xf]  ;;  %v595_v41 = vld [vmem:[%s8339_s23 + $0x18] sm:$0xf] }
  0x6d   : > { %v1948_v63 = vsel %vm8254_vm7, %v1946_v54, %v1947_v48  ;;  %v1161_v0 = vor.u32 %v1160_v56, %v1156_v55  ;;  %v1954_v3 = vrot.slane %v1070_v61, 5  ;;  %v1169_v8 = vshrl.u32 %v1068_v52, 16  ;;  %v8450_v38 = vld [vmem:[#allocation2 + $0x28] sm:$0xf]  ;;  %v596_v46 = vld [vmem:[%s8339_s23 + $0x1c] sm:$0xf] }
  0x6e   : > { %v2052_v5 = vunpack.c.l.b16 %v1948_v63  ;;  %v1152_v6 = vrot.slane %v1151_v59, 4  ;;  %v1172_v9 = vshll.u32 %v1068_v52, 16  ;;  %v1953_v13 = vrot.slane %v1951_v1, 4  ;;  %v1073_v50 = vld [vmem:[#allocation2 + $0x2c] sm:$0x1] }
  0x6f   : > { %v1162_v10 = vrot.slane %v1161_v0, 4  ;;  %v1178_v14 = vshll.u32 %v1069_v57, 16  ;;  %v1171_v17 = vrot.slane %v1169_v8, 4  ;;  %v1952_v20 = vsel %vm8254_vm7, %v7064_v62, %v1951_v1  ;;  %v971_v8 = vld [vmem:[#allocation2 + $0x30] sm:$0xf] }
  0x70   : > { %v8432_v15 = vpack.c.b16 %v2052_v5, %v2051_v58  ;;  %v1157_v16 = vsel %vm8279_vm9, %v1152_v6, %v1156_v55  ;;  %v1174_v21 = vrot.slane %v1172_v9, 5  ;;  %v1955_v23 = vsel %vm8254_vm7, %v1953_v13, %v1954_v3 }
  0x71   : > { %v1167_v18 = vsel %vm8279_vm9, %v1162_v10, %v1166_v60  ;;  %v1508_v19 = vunpack.c.l.b16 %v1157_v16  ;;  %v1180_v24 = vrot.slane %v1178_v14, 5  ;;  %v1182_v25 = vshrl.u32 %v1069_v57, 16  ;;  %v598_v60 = vld [vmem:[%s8339_s23 + $0x24] sm:$0xf]  ;;  %v975_v14 = vld [vmem:[#allocation2 + $0x38] sm:$0x1] }
  0x72   : > { %7080 = vmatmul.msk.bf16.gmra.mxu2 %vm1554_vm8, %v8432_v15  ;;  %v1509_v22 = vunpack.c.l.b16 %v1167_v18  ;;  %v1175_v26 = vor.u32 %v1174_v21, %v1171_v17  ;;  %v1188_v27 = vshll.u32 %v1070_v61, 16  ;;  %v2053_v31 = vunpack.c.l.b16 %v1952_v20 }
  0x73   : > { %v1184_v29 = vrot.slane %v1182_v25, 4  ;;  %v2054_v33 = vunpack.c.l.b16 %v1955_v23  ;;  %v1193_v39 = vshrl.u32 %v8446_v30, 16  ;;  %v1196_v40 = vshll.u32 %v8446_v30, 16 }
  0x74   : > { %v8444_v28 = vpack.c.b16 %v1509_v22, %v1508_v19  ;;  %v1176_v35 = vrot.slane %v1175_v26, 4  ;;  %v1190_v37 = vrot.slane %v1188_v27, 5  ;;  %v7065_v44 = vrot.slane %v8446_v30, 9  ;;  %v978_v22 = vld [vmem:[#allocation2 + $0x3c] sm:$0xf] }
  0x75   : > { %v1185_v36 = vor.u32 %v1184_v29, %v1180_v24  ;;  %v8455_v43 = vpack.c.b16 %v2054_v33, %v2053_v31  ;;  %v1958_v45 = vrot.slane %v8450_v38, 5  ;;  %v676_v51 = vshrl.u32 %v595_v41, 16 }
  0x76   : > { %6967 = vmatmul.msk.bf16.gmra.mxu0 %vm1554_vm8, %v8444_v28  ;;  %v1181_v48 = vsel %vm8279_vm9, %v1176_v35, %v1180_v24  ;;  %v679_v52 = vshll.u32 %v595_v41, 16  ;;  %v1195_v53 = vrot.slane %v1193_v39, 4  ;;  %v1198_v54 = vrot.slane %v1196_v40, 5  ;;  %v7763_v40 = vld [vmem:[#allocation2 + $0x24] sm:$0xff] }
  0x77   : > { %v1186_v42 = vrot.slane %v1185_v36, 4  ;;  %v1202_v55 = vshll.u32 %v8450_v38, 16  ;;  %v1206_v56 = vshrl.u32 %v8450_v38, 16  ;;  %v678_v57 = vrot.slane %v676_v51, 7 }
  0x78   : > { %7101 = vmatmul.msk.bf16.gmra.mxu3 %vm1554_vm8, %v7762_v34  ;;  %7048 = vmatmul.msk.bf16.gmra.mxu1 %vm1554_vm8, %v7762_v34  ;;  %v684_v58 = vshrl.u32 %v596_v46, 16  ;;  %v687_v59 = vshll.u32 %v596_v46, 16  ;;  %v693_v61 = vshrl.u32 %v597_v47, 16  ;;  %v1510_v62 = vunpack.c.l.b16 %v1181_v48 }
  0x79   : > { %v1191_v49 = vsel %vm8279_vm9, %v1186_v42, %v1190_v37  ;;  %v1961_v0 = vrot.slane %v1073_v50, 5  ;;  %v696_v1 = vshll.u32 %v597_v47, 16  ;;  %v681_v3 = vor.u32 %v679_v52, %v678_v57  ;;  %v982_v37 = vld [vmem:[#allocation2 + $0x44] sm:$0x1] }
  0x7a   : > { %v1511_v63 = vunpack.c.l.b16 %v1191_v49  ;;  %v682_v5 = vrot.slane %v678_v57, 4  ;;  %v686_v6 = vrot.slane %v684_v58, 7  ;;  %v695_v9 = vrot.slane %v693_v61, 7 }
  0x7b   : > { %v1204_v10 = vrot.slane %v1202_v55, 5  ;;  %v1208_v13 = vrot.slane %v1206_v56, 4  ;;  %v701_v16 = vshrl.u32 %v598_v60, 16  ;;  %v704_v17 = vshll.u32 %v598_v60, 16 }
  0x7c   : > { %v1960_v18 = vrot.slane %v1958_v45, 4  ;;  %v1199_v19 = vor.u32 %v1198_v54, %v1195_v53  ;;  %v689_v20 = vor.u32 %v687_v59, %v686_v6  ;;  %v691_v21 = vrot.slane %v686_v6, 4 }
  0x7d   : > { %v972_v23 = vsel %vm8379_vm13, %v681_v3, %v971_v8  ;;  %v698_v24 = vor.u32 %v696_v1, %v695_v9  ;;  %v699_v25 = vrot.slane %v695_v9, 4  ;;  %v703_v26 = vrot.slane %v701_v16, 7  ;;  %v599_v1 = vld [vmem:[%s8339_s23 + $0x28] sm:$0xf] }
  0x7e   : > { %v8474_v27 = vpack.c.b16 %v1511_v63, %v1510_v62  ;;  %v1212_v29 = vshll.u32 %v1073_v50, 16  ;;  %v690_v30 = vsel %vm8387_vm14, %v682_v5, %v689_v20  ;;  %973 = vst [vmem:[#allocation2 + $0x30] sm:$0xf] %v972_v23  ;;  %v976_v31 = vsel %vm8395_vm15, %v691_v21, %v975_v14  ;;  %v600_v20 = vld [vmem:[%s8339_s23 + $0x2c] sm:$0xf] }
  0x7f   : > { %v1209_v33 = vor.u32 %v1208_v13, %v1204_v10  ;;  %974 = vst.msk [vmem:[#allocation2 + $0x34] sm:$0xf] %vm533_vm1, %v690_v30  ;;  %v706_v34 = vor.u32 %v704_v17, %v703_v26  ;;  %v708_v35 = vrot.slane %v703_v26, 4  ;;  %v979_v36 = vsel %vm8379_vm13, %v698_v24, %v978_v22 }
  0x80   : > { %977 = vst [vmem:[#allocation2 + $0x38] sm:$0x1] %v976_v31  ;;  %v1959_v41 = vsel %vm8254_vm7, %v7065_v44, %v1958_v45  ;;  %v1962_v42 = vsel %vm8254_vm7, %v1960_v18, %v1961_v0  ;;  %v1200_v46 = vrot.slane %v1199_v19, 4  ;;  %v1214_v48 = vrot.slane %v1212_v29, 5 }
  0x81   : > { %v707_v38 = vsel %vm8387_vm14, %v699_v25, %v706_v34  ;;  %980 = vst [vmem:[#allocation2 + $0x3c] sm:$0xf] %v979_v36  ;;  %v983_v39 = vsel %vm8395_vm15, %v708_v35, %v982_v37  ;;  %v1210_v47 = vrot.slane %v1209_v33, 4  ;;  %v2055_v49 = vunpack.c.l.b16 %v1959_v41  ;;  %v985_v34 = vld [vmem:[#allocation2 + $0x48] sm:$0xf] }
  0x82   : > { %7081 = vmatmul.msk.bf16.gmra.mxu2 %vm1554_vm8, %v8455_v43  ;;  %981 = vst.msk [vmem:[#allocation2 + $0x40] sm:$0xf] %vm533_vm1, %v707_v38  ;;  %v2056_v50 = vunpack.c.l.b16 %v1962_v42  ;;  %v1205_v52 = vsel %vm8279_vm9, %v1200_v46, %v1204_v10  ;;  %v710_v10 = vshrl.u32 %v599_v1, 16  ;;  %v713_v25 = vshll.u32 %v599_v1, 16 }
  0x83   : > { %984 = vst [vmem:[#allocation2 + $0x44] sm:$0x1] %v983_v39  ;;  %v1215_v54 = vsel %vm8279_vm9, %v1210_v47, %v1214_v48  ;;  %v1512_v60 = vunpack.c.l.b16 %v1205_v52  ;;  %v718_v33 = vshrl.u32 %v600_v20, 16  ;;  %v721_v42 = vshll.u32 %v600_v20, 16  ;;  %v989_v47 = vld [vmem:[#allocation2 + $0x50] sm:$0x1] }
  0x84   : > { %v8500_v59 = vpack.c.b16 %v2056_v50, %v2055_v49  ;;  %v1513_v61 = vunpack.c.l.b16 %v1215_v54  ;;  %v712_v24 = vrot.slane %v710_v10, 7  ;;  %v601_v48 = vld [vmem:[%s8339_s23 + $0x30] sm:$0xf]  ;;  %v602_v49 = vld [vmem:[%s8339_s23 + $0x34] sm:$0xf] }
  0x85   : > { %v1074_v51 = vld [vmem:[#allocation2 + $0x30] sm:$0xf]  ;;  %v720_v41 = vrot.slane %v718_v33, 7  ;;  %v727_v54 = vshrl.u32 %v601_v48, 16  ;;  %v738_v1 = vshll.u32 %v602_v49, 16 }
  0x86   : > { %6968 = vmatmul.msk.bf16.gmra.mxu0 %vm1554_vm8, %v8474_v27  ;;  %v1075_v44 = vld [vmem:[#allocation2 + $0x34] sm:$0xf]  ;;  %v1217_v45 = vshrl.u32 %v1074_v51, 16  ;;  %v1220_v53 = vshll.u32 %v1074_v51, 16  ;;  %v7066_v62 = vrot.slane %v1074_v51, 9  ;;  %v8505_v13 = vpack.c.b16 %v1513_v61, %v1512_v60 }
  0x87   : > { %v1965_v55 = vrot.slane %v1075_v44, 5  ;;  %v1226_v56 = vshll.u32 %v1075_v44, 16  ;;  %v1230_v57 = vshrl.u32 %v1075_v44, 16  ;;  %v1076_v58 = vld [vmem:[#allocation2 + $0x38] sm:$0x1]  ;;  %v7764_v26 = vld [vmem:[#allocation2 + $0x30] sm:$0xff]  ;;  %v715_v38 = vor.u32 %v713_v25, %v712_v24 }
  0x88   : > { %7102 = vmatmul.msk.bf16.gmra.mxu3 %vm1554_vm8, %v7763_v40  ;;  %7049 = vmatmul.msk.bf16.gmra.mxu1 %vm1554_vm8, %v7763_v40  ;;  %v1219_v63 = vrot.slane %v1217_v45, 4  ;;  %v1222_v0 = vrot.slane %v1220_v53, 5  ;;  %v1968_v5 = vrot.slane %v1076_v58, 5  ;;  %v1236_v9 = vshll.u32 %v1076_v58, 16  ;;  %v8514_v21 = vld [vmem:[#allocation2 + $0x3c] sm:$0xf] }
  0x89   : > { %v1967_v3 = vrot.slane %v1965_v55, 4  ;;  %v1228_v6 = vrot.slane %v1226_v56, 5  ;;  %v1232_v8 = vrot.slane %v1230_v57, 4  ;;  %v1966_v14 = vsel %vm8254_vm7, %v7066_v62, %v1965_v55  ;;  %v8511_v19 = vld [vmem:[#allocation2 + $0x40] sm:$0xf] }
  0x8a   : > { %v1223_v16 = vor.u32 %v1222_v0, %v1219_v63  ;;  %v2057_v22 = vunpack.c.l.b16 %v1966_v14  ;;  %v1238_v23 = vrot.slane %v1236_v9, 5  ;;  %v1972_v31 = vrot.slane %v8511_v19, 5  ;;  %v1079_v56 = vld [vmem:[#allocation2 + $0x44] sm:$0x1] }
  0x8b   : > { %v1969_v17 = vsel %vm8254_vm7, %v1967_v3, %v1968_v5  ;;  %v1233_v18 = vor.u32 %v1232_v8, %v1228_v6  ;;  %v1241_v36 = vshrl.u32 %v8514_v21, 16  ;;  %v1244_v37 = vshll.u32 %v8514_v21, 16 }
  0x8c   : > { %v2058_v29 = vunpack.c.l.b16 %v1969_v17  ;;  %v1224_v30 = vrot.slane %v1223_v16, 4  ;;  %v1250_v39 = vshll.u32 %v8511_v19, 16  ;;  %v716_v40 = vrot.slane %v712_v24, 4  ;;  %v992_v16 = vld [vmem:[#allocation2 + $0x54] sm:$0xf] }
  0x8d   : > { %v1234_v35 = vrot.slane %v1233_v18, 4  ;;  %v986_v46 = vsel %vm8379_vm13, %v715_v38, %v985_v34  ;;  %v1254_v51 = vshrl.u32 %v8511_v19, 16  ;;  %v723_v52 = vor.u32 %v721_v42, %v720_v41 }
  0x8e   : > { %v1229_v50 = vsel %vm8279_vm9, %v1224_v30, %v1228_v6  ;;  %v725_v44 = vrot.slane %v720_v41, 4  ;;  %987 = vst [vmem:[#allocation2 + $0x48] sm:$0xf] %v986_v46  ;;  %v8531_v45 = vpack.c.b16 %v2058_v29, %v2057_v22  ;;  %v735_v55 = vshrl.u32 %v602_v49, 16  ;;  %v7765_v30 = vld [vmem:[#allocation2 + $0x3c] sm:$0xff] }
  0x8f   : > { %v1239_v53 = vsel %vm8279_vm9, %v1234_v35, %v1238_v23  ;;  %v1243_v57 = vrot.slane %v1241_v36, 4  ;;  %v724_v58 = vsel %vm8387_vm14, %v716_v40, %v723_v52  ;;  %v730_v61 = vshll.u32 %v601_v48, 16 }
  0x90   : > { %v990_v60 = vsel %vm8395_vm15, %v725_v44, %v989_v47  ;;  %v1514_v62 = vunpack.c.l.b16 %v1229_v50  ;;  %988 = vst.msk [vmem:[#allocation2 + $0x4c] sm:$0xf] %vm533_vm1, %v724_v58  ;;  %v729_v63 = vrot.slane %v727_v54, 7  ;;  %v737_v0 = vrot.slane %v735_v55, 7  ;;  %v604_v54 = vld [vmem:[%s8339_s23 + $0x3c] sm:$0xf] }
  0x91   : > { %v1515_v3 = vunpack.c.l.b16 %v1239_v53  ;;  %v1246_v5 = vrot.slane %v1244_v37, 5  ;;  %v1252_v6 = vrot.slane %v1250_v39, 5  ;;  %v1256_v8 = vrot.slane %v1254_v51, 4  ;;  %991 = vst [vmem:[#allocation2 + $0x50] sm:$0x1] %v990_v60 }
  0x92   : > { %7082 = vmatmul.msk.bf16.gmra.mxu2 %vm1554_vm8, %v8500_v59  ;;  %v732_v9 = vor.u32 %v730_v61, %v729_v63  ;;  %v733_v10 = vrot.slane %v729_v63, 4  ;;  %v740_v14 = vor.u32 %v738_v1, %v737_v0  ;;  %v7067_v17 = vrot.slane %v8514_v21, 9  ;;  %v996_v37 = vld [vmem:[#allocation2 + $0x5c] sm:$0x1] }
  0x93   : > { %v1974_v18 = vrot.slane %v1972_v31, 4  ;;  %v1975_v19 = vrot.slane %v1079_v56, 5  ;;  %v8547_v23 = vpack.c.b16 %v1515_v3, %v1514_v62  ;;  %v1247_v24 = vor.u32 %v1246_v5, %v1243_v57  ;;  %v999_v5 = vld [vmem:[#allocation2 + $0x60] sm:$0xf] }
  0x94   : > { %v741_v20 = vsel %vm8387_vm14, %v733_v10, %v740_v14  ;;  %v993_v22 = vsel %vm8379_vm13, %v732_v9, %v992_v16  ;;  %v1257_v25 = vor.u32 %v1256_v8, %v1252_v6  ;;  %v742_v21 = vrot.slane %v737_v0, 4 }
  0x95   : > { %994 = vst [vmem:[#allocation2 + $0x54] sm:$0xf] %v993_v22  ;;  %v1973_v29 = vsel %vm8254_vm7, %v7067_v17, %v1972_v31  ;;  %v1976_v33 = vsel %vm8254_vm7, %v1974_v18, %v1975_v19  ;;  %v1248_v34 = vrot.slane %v1247_v24, 4  ;;  %v1080_v38 = vld [vmem:[#allocation2 + $0x48] sm:$0xf]  ;;  %v752_v1 = vshrl.u32 %v604_v54, 16 }
  0x96   : > { %6969 = vmatmul.msk.bf16.gmra.mxu0 %vm1554_vm8, %v8505_v13  ;;  %995 = vst.msk [vmem:[#allocation2 + $0x58] sm:$0xf] %vm533_vm1, %v741_v20  ;;  %v1258_v35 = vrot.slane %v1257_v25, 4  ;;  %v997_v40 = vsel %vm8395_vm15, %v742_v21, %v996_v37  ;;  %v2059_v41 = vunpack.c.l.b16 %v1973_v29  ;;  %v2060_v42 = vunpack.c.l.b16 %v1976_v33  ;;  %v603_v31 = vld [vmem:[%s8339_s23 + $0x38] sm:$0xf] }
  0x97   : > { %v1081_v39 = vld [vmem:[#allocation2 + $0x4c] sm:$0xf]  ;;  %998 = vst [vmem:[#allocation2 + $0x5c] sm:$0x1] %v997_v40  ;;  %v1253_v46 = vsel %vm8279_vm9, %v1248_v34, %v1252_v6  ;;  %v1265_v48 = vshrl.u32 %v1080_v38, 16  ;;  %v1268_v49 = vshll.u32 %v1080_v38, 16 }
  0x98   : > { %7103 = vmatmul.msk.bf16.gmra.mxu3 %vm1554_vm8, %v7764_v26  ;;  %7050 = vmatmul.msk.bf16.gmra.mxu1 %vm1554_vm8, %v7764_v26  ;;  %v1260_v26 = vshll.u32 %v1079_v56, 16  ;;  %v1274_v50 = vshll.u32 %v1081_v39, 16  ;;  %v1278_v51 = vshrl.u32 %v1081_v39, 16  ;;  %v744_v52 = vshrl.u32 %v603_v31, 16  ;;  %v1082_v60 = vld [vmem:[#allocation2 + $0x50] sm:$0x1] }
  0x99   : > { %v1516_v44 = vunpack.c.l.b16 %v1253_v46  ;;  %v8566_v55 = vpack.c.b16 %v2060_v42, %v2059_v41  ;;  %v1979_v56 = vrot.slane %v1081_v39, 5  ;;  %v1267_v57 = vrot.slane %v1265_v48, 4  ;;  %v605_v46 = vld [vmem:[%s8339_s23 + $0x40] sm:$0xf] }
  0x9a   : > { %v1262_v36 = vrot.slane %v1260_v26, 5  ;;  %v1270_v58 = vrot.slane %v1268_v49, 5  ;;  %v1276_v61 = vrot.slane %v1274_v50, 5  ;;  %v1280_v62 = vrot.slane %v1278_v51, 4  ;;  %v1003_v26 = vld [vmem:[#allocation2 + $0x68] sm:$0x1] }
  0x9b   : > { %v746_v63 = vrot.slane %v744_v52, 7  ;;  %v747_v0 = vshll.u32 %v603_v31, 16  ;;  %v755_v3 = vshll.u32 %v604_v54, 16  ;;  %v7068_v8 = vrot.slane %v1080_v38, 9 }
  0x9c   : > { %v1263_v47 = vsel %vm8279_vm9, %v1258_v35, %v1262_v36  ;;  %v1982_v10 = vrot.slane %v1082_v60, 5  ;;  %v1271_v14 = vor.u32 %v1270_v58, %v1267_v57  ;;  %v754_v17 = vrot.slane %v752_v1, 7  ;;  %v8574_v21 = vld [vmem:[#allocation2 + $0x54] sm:$0xf] }
  0x9d   : > { %v1517_v53 = vunpack.c.l.b16 %v1263_v47  ;;  %v749_v9 = vor.u32 %v747_v0, %v746_v63  ;;  %v750_v16 = vrot.slane %v746_v63, 4  ;;  %v1981_v18 = vrot.slane %v1979_v56, 4  ;;  %v8576_v29 = vld [vmem:[#allocation2 + $0x58] sm:$0xf]  ;;  %v606_v47 = vld [vmem:[%s8339_s23 + $0x44] sm:$0xf] }
  0x9e   : > { %v1281_v19 = vor.u32 %v1280_v62, %v1276_v61  ;;  %v1284_v20 = vshll.u32 %v1082_v60, 16  ;;  %v757_v24 = vor.u32 %v755_v3, %v754_v17  ;;  %v759_v25 = vrot.slane %v754_v17, 4 }
  0x9f   : > { %v8568_v6 = vpack.c.b16 %v1517_v53, %v1516_v44  ;;  %v1000_v22 = vsel %vm8379_vm13, %v749_v9, %v999_v5  ;;  %v1980_v33 = vsel %vm8254_vm7, %v7068_v8, %v1979_v56  ;;  %v1983_v36 = vsel %vm8254_vm7, %v1981_v18, %v1982_v10  ;;  %v1085_v9 = vld [vmem:[#allocation2 + $0x5c] sm:$0x1]  ;;  %v1006_v18 = vld [vmem:[#allocation2 + $0x6c] sm:$0xf] }
  0xa0   : > { %1001 = vst [vmem:[#allocation2 + $0x60] sm:$0xf] %v1000_v22  ;;  %v758_v34 = vsel %vm8387_vm14, %v750_v16, %v757_v24  ;;  %v1004_v35 = vsel %vm8395_vm15, %v759_v25, %v1003_v26  ;;  %v1272_v37 = vrot.slane %v1271_v14, 4  ;;  %v1282_v38 = vrot.slane %v1281_v19, 4 }
  0xa1   : > { %v1286_v39 = vrot.slane %v1284_v20, 5  ;;  %1002 = vst.msk [vmem:[#allocation2 + $0x64] sm:$0xf] %vm533_vm1, %v758_v34  ;;  %v1289_v40 = vshrl.u32 %v8574_v21, 16  ;;  %v1292_v41 = vshll.u32 %v8574_v21, 16  ;;  %v1298_v42 = vshll.u32 %v8576_v29, 16 }
  0xa2   : > { %7083 = vmatmul.msk.bf16.gmra.mxu2 %vm1554_vm8, %v8531_v45  ;;  %1005 = vst [vmem:[#allocation2 + $0x68] sm:$0x1] %v1004_v35  ;;  %v1302_v31 = vshrl.u32 %v8576_v29, 16  ;;  %v2061_v48 = vunpack.c.l.b16 %v1980_v33  ;;  %v2062_v49 = vunpack.c.l.b16 %v1983_v36  ;;  %v761_v50 = vshrl.u32 %v605_v46, 16 }
  0xa3   : > { %v769_v51 = vshrl.u32 %v606_v47, 16  ;;  %v1277_v52 = vsel %vm8279_vm9, %v1272_v37, %v1276_v61  ;;  %v1287_v44 = vsel %vm8279_vm9, %v1282_v38, %v1286_v39  ;;  %v1291_v53 = vrot.slane %v1289_v40, 4  ;;  %v1010_v37 = vld [vmem:[#allocation2 + $0x74] sm:$0x1] }
  0xa4   : > { %v1294_v54 = vrot.slane %v1292_v41, 5  ;;  %v1300_v56 = vrot.slane %v1298_v42, 5  ;;  %v763_v57 = vrot.slane %v761_v50, 7  ;;  %v1304_v58 = vrot.slane %v1302_v31, 4  ;;  %v7767_v42 = vld [vmem:[#allocation2 + $0x54] sm:$0xff] }
  0xa5   : > { %v764_v60 = vshll.u32 %v605_v46, 16  ;;  %v771_v62 = vrot.slane %v769_v51, 7  ;;  %v772_v63 = vshll.u32 %v606_v47, 16  ;;  %v8601_v0 = vpack.c.b16 %v2062_v49, %v2061_v48 }
  0xa6   : > { %6970 = vmatmul.msk.bf16.gmra.mxu0 %vm1554_vm8, %v8547_v23  ;;  %v1518_v1 = vunpack.c.l.b16 %v1277_v52  ;;  %v1519_v3 = vunpack.c.l.b16 %v1287_v44  ;;  %v767_v5 = vrot.slane %v763_v57, 4  ;;  %v1986_v8 = vrot.slane %v8576_v29, 5 }
  0xa7   : > { %v1295_v61 = vor.u32 %v1294_v54, %v1291_v53  ;;  %v766_v10 = vor.u32 %v764_v60, %v763_v57  ;;  %v774_v14 = vor.u32 %v772_v63, %v771_v62  ;;  %v1305_v16 = vor.u32 %v1304_v58, %v1300_v56  ;;  %v607_v53 = vld [vmem:[%s8339_s23 + $0x48] sm:$0xf]  ;;  %v608_v60 = vld [vmem:[%s8339_s23 + $0x4c] sm:$0xf] }
  0xa8   : > { %7104 = vmatmul.msk.bf16.gmra.mxu3 %vm1554_vm8, %v7765_v30  ;;  %7051 = vmatmul.msk.bf16.gmra.mxu1 %vm1554_vm8, %v7765_v30  ;;  %v7766_v30 = vld [vmem:[#allocation2 + $0x48] sm:$0xff]  ;;  %v1308_v17 = vshll.u32 %v1085_v9, 16  ;;  %v8606_v19 = vpack.c.b16 %v1519_v3, %v1518_v1  ;;  %v7069_v20 = vrot.slane %v8574_v21, 9  ;;  %v1988_v26 = vrot.slane %v1986_v8, 4  ;;  %v1086_v21 = vld [vmem:[#allocation2 + $0x60] sm:$0xf] }
  0xa9   : > { %v775_v25 = vsel %vm8387_vm14, %v767_v5, %v774_v14  ;;  %v1989_v29 = vrot.slane %v1085_v9, 5  ;;  %v776_v34 = vrot.slane %v771_v62, 4  ;;  %v1296_v35 = vrot.slane %v1295_v61, 4  ;;  %v1087_v31 = vld [vmem:[#allocation2 + $0x64] sm:$0xf] }
  0xaa   : > { %1009 = vst.msk [vmem:[#allocation2 + $0x70] sm:$0xf] %vm533_vm1, %v775_v25  ;;  %v1007_v36 = vsel %vm8379_vm13, %v766_v10, %v1006_v18  ;;  %v1306_v38 = vrot.slane %v1305_v16, 4  ;;  %v1310_v39 = vrot.slane %v1308_v17, 5  ;;  %v1987_v46 = vsel %vm8254_vm7, %v7069_v20, %v1986_v8  ;;  %v1088_v10 = vld [vmem:[#allocation2 + $0x68] sm:$0x1] }
  0xab   : > { %1008 = vst [vmem:[#allocation2 + $0x6c] sm:$0xf] %v1007_v36  ;;  %v1011_v41 = vsel %vm8395_vm15, %v776_v34, %v1010_v37  ;;  %v1990_v47 = vsel %vm8254_vm7, %v1988_v26, %v1989_v29  ;;  %v1313_v48 = vshrl.u32 %v1086_v21, 16  ;;  %v1316_v49 = vshll.u32 %v1086_v21, 16 }
  0xac   : > { %1012 = vst [vmem:[#allocation2 + $0x74] sm:$0x1] %v1011_v41  ;;  %v1301_v50 = vsel %vm8279_vm9, %v1296_v35, %v1300_v56  ;;  %v1311_v51 = vsel %vm8279_vm9, %v1306_v38, %v1310_v39  ;;  %v1322_v52 = vshll.u32 %v1087_v31, 16  ;;  %v1326_v44 = vshrl.u32 %v1087_v31, 16  ;;  %v1017_v39 = vld [vmem:[#allocation2 + $0x80] sm:$0x1] }
  0xad   : > { %v2063_v54 = vunpack.c.l.b16 %v1987_v46  ;;  %v2064_v57 = vunpack.c.l.b16 %v1990_v47  ;;  %v778_v58 = vshrl.u32 %v607_v53, 16  ;;  %v1520_v62 = vunpack.c.l.b16 %v1301_v50 }
  0xae   : > { %v1521_v63 = vunpack.c.l.b16 %v1311_v51  ;;  %v1315_v1 = vrot.slane %v1313_v48, 4  ;;  %v1318_v3 = vrot.slane %v1316_v49, 5  ;;  %v1324_v5 = vrot.slane %v1322_v52, 5 }
  0xaf   : > { %v1836_v24 = vpop.f32.mrf.mxu1  ;;  %v1328_v56 = vrot.slane %v1326_v44, 4  ;;  %v780_v8 = vrot.slane %v778_v58, 7  ;;  %v781_v9 = vshll.u32 %v607_v53, 16  ;;  %v8632_v61 = vpack.c.b16 %v2064_v57, %v2063_v54  ;;  %v609_v57 = vld [vmem:[%s8339_s23 + $0x50] sm:$0xf] }
  0xb0   : > { %v1993_v14 = vrot.slane %v1087_v31, 5  ;;  %v786_v16 = vshrl.u32 %v608_v60, 16  ;;  %v8634_v17 = vpack.c.b16 %v1521_v63, %v1520_v62  ;;  %v7070_v18 = vrot.slane %v1086_v21, 9  ;;  %v7768_v31 = vld [vmem:[#allocation2 + $0x60] sm:$0xff]  ;;  %v610_v58 = vld [vmem:[%s8339_s23 + $0x54] sm:$0xf] }
  0xb1   : > { %v783_v20 = vor.u32 %v781_v9, %v780_v8  ;;  %v1319_v25 = vor.u32 %v1318_v3, %v1315_v1  ;;  %v1329_v26 = vor.u32 %v1328_v56, %v1324_v5  ;;  %v1332_v29 = vshll.u32 %v1088_v10, 16  ;;  %v1090_v51 = vld [vmem:[#allocation2 + $0x70] sm:$0xf] }
  0xb2   : > { %7084 = vmatmul.msk.bf16.gmra.mxu2 %vm1554_vm8, %v8566_v55  ;;  %v788_v34 = vrot.slane %v786_v16, 7  ;;  %v789_v35 = vshll.u32 %v608_v60, 16  ;;  %v1994_v46 = vsel %vm8254_vm7, %v7070_v18, %v1993_v14  ;;  %v1089_v50 = vld [vmem:[#allocation2 + $0x6c] sm:$0xf]  ;;  %v1346_v62 = vshll.u32 %v1090_v51, 16 }
  0xb3   : > { %v1320_v21 = vrot.slane %v1319_v25, 4  ;;  %v1330_v41 = vrot.slane %v1329_v26, 4  ;;  %v2065_v52 = vunpack.c.l.b16 %v1994_v46  ;;  %v1337_v60 = vshrl.u32 %v1089_v50, 16  ;;  %v1091_v26 = vld [vmem:[#allocation2 + $0x74] sm:$0x1] }
  0xb4   : > { %v791_v37 = vor.u32 %v789_v35, %v788_v34  ;;  %v793_v38 = vrot.slane %v788_v34, 4  ;;  %v795_v63 = vshrl.u32 %v609_v57, 16  ;;  %v803_v1 = vshrl.u32 %v610_v58, 16 }
  0xb5   : > { %v1325_v53 = vsel %vm8279_vm9, %v1320_v21, %v1324_v5  ;;  %v1340_v3 = vshll.u32 %v1089_v50, 16  ;;  %v1350_v56 = vshrl.u32 %v1090_v51, 16  ;;  %v798_v9 = vshll.u32 %v609_v57, 16 }
  0xb6   : > { %6971 = vmatmul.msk.bf16.gmra.mxu0 %vm1554_vm8, %v8568_v6  ;;  %v1018_v49 = vsel %vm8395_vm15, %v793_v38, %v1017_v39  ;;  %v805_v16 = vrot.slane %v803_v1, 7  ;;  %v806_v18 = vshll.u32 %v610_v58, 16  ;;  %v1348_v25 = vrot.slane %v1346_v62, 5 }
  0xb7   : > { %1019 = vst [vmem:[#allocation2 + $0x80] sm:$0x1] %v1018_v49  ;;  %v8659_v5 = vpop.f32.mrf.mxu1  ;;  %v7071_v38 = vrot.slane %v1089_v50, 9  ;;  %v2003_v21 = vrot.slane %v1091_v26, 5  ;;  %v1024_v50 = vld [vmem:[#allocation2 + $0x8c] sm:$0x1] }
  0xb8   : > { %7105 = vmatmul.msk.bf16.gmra.mxu3 %vm1554_vm8, %v7766_v30  ;;  %7052 = vmatmul.msk.bf16.gmra.mxu1 %vm1554_vm8, %v7766_v30  ;;  %v808_v35 = vor.u32 %v806_v18, %v805_v16 }
  0xba   : > { %v1616_v22 = vpop.f32.mrf.mxu0 }
  0xbb   : > { %v1837_v30 = vadd.f32 %v1836_v24, %v1616_v22  ;;  %v2157_v33 = vpop.f32.mrf.mxu2  ;;  %v1013_v22 = vld [vmem:[#allocation2 + $0x78] sm:$0xf]  ;;  %v1996_v24 = vrot.slane %v1088_v10, 5  ;;  %v1522_v10 = vunpack.c.l.b16 %v1325_v53 }
  0xbc   : > { %v1014_v36 = vsel %vm8379_vm13, %v783_v20, %v1013_v22  ;;  %v2000_v22 = vrot.slane %v1090_v51, 5 }
  0xbd   : > { %v8614_v40 = vadd.f32 %v2157_v33, %v1837_v30  ;;  %v1995_v30 = vrot.slane %v1993_v14, 4  ;;  %v784_v33 = vrot.slane %v780_v8, 4  ;;  %1015 = vst [vmem:[#allocation2 + $0x78] sm:$0xf] %v1014_v36  ;;  %v797_v8 = vrot.slane %v795_v63, 7 }
  0xbe   : > { %v1020_v36 = vld [vmem:[#allocation2 + $0x84] sm:$0xf]  ;;  %v2002_v39 = vrot.slane %v2000_v22, 4  ;;  %v2001_v53 = vsel %vm8254_vm7, %v7071_v38, %v2000_v22 }
  0xbf   : > { %v1997_v47 = vsel %vm8254_vm7, %v1995_v30, %v1996_v24  ;;  %v792_v48 = vsel %vm8387_vm14, %v784_v33, %v791_v37  ;;  %v1339_v24 = vrot.slane %v1337_v60, 4  ;;  %v1352_v30 = vrot.slane %v1350_v56, 4 }
  0xc0   : > { %1016 = vst.msk [vmem:[#allocation2 + $0x7c] sm:$0xf] %vm533_vm1, %v792_v48  ;;  %v2066_v44 = vunpack.c.l.b16 %v1997_v47  ;;  %v800_v33 = vor.u32 %v798_v9, %v797_v8  ;;  %v801_v34 = vrot.slane %v797_v8, 4  ;;  %v810_v47 = vrot.slane %v805_v16, 4  ;;  %v612_v16 = vld [vmem:[%s8339_s23 + $0x5c] sm:$0xf] }
  0xc1   : > { %v1353_v46 = vor.u32 %v1352_v30, %v1348_v25  ;;  %v2067_v9 = vunpack.c.l.b16 %v2001_v53  ;;  %v820_v38 = vshrl.u32 %v612_v16, 16 }
  0xc2   : > { %7085 = vmatmul.msk.bf16.gmra.mxu2 %vm1554_vm8, %v8601_v0  ;;  %v8661_v20 = vpack.c.b16 %v2066_v44, %v2065_v52  ;;  %v1021_v48 = vsel %vm8379_vm13, %v800_v33, %v1020_v36  ;;  %v1025_v52 = vsel %vm8395_vm15, %v810_v47, %v1024_v50  ;;  %v7769_v44 = vld [vmem:[#allocation2 + $0x6c] sm:$0xff]  ;;  %v8680_v8 = vpop.f32.mrf.mxu0  ;;  %v1094_v33 = vld [vmem:[#allocation2 + $0x80] sm:$0x1] }
  0xc3   : > { %1022 = vst [vmem:[#allocation2 + $0x84] sm:$0xf] %v1021_v48  ;;  %v1354_v62 = vrot.slane %v1353_v46, 4  ;;  %v8686_v22 = vpop.f32.mrf.mxu2  ;;  %v2010_v50 = vrot.slane %v1094_v33, 5 }
  0xc4   : > { %v1092_v49 = vld [vmem:[#allocation2 + $0x78] sm:$0xf]  ;;  %1026 = vst [vmem:[#allocation2 + $0x8c] sm:$0x1] %v1025_v52 }
  0xc5   : > { %v1361_v63 = vshrl.u32 %v1092_v49, 16  ;;  %v1364_v1 = vshll.u32 %v1092_v49, 16  ;;  %v7072_v47 = vrot.slane %v1092_v49, 9 }
  0xc6   : > { %6972 = vmatmul.msk.bf16.gmra.mxu0 %vm1554_vm8, %v8606_v19 }
  0xc7   : > { %v1093_v51 = vld [vmem:[#allocation2 + $0x7c] sm:$0xf]  ;;  %v1366_v30 = vrot.slane %v1364_v1, 5 }
  0xc8   : > { %7106 = vmatmul.msk.bf16.gmra.mxu3 %vm1554_vm8, %v7767_v42  ;;  %7053 = vmatmul.msk.bf16.gmra.mxu1 %vm1554_vm8, %v7767_v42  ;;  %v1334_v42 = vrot.slane %v1332_v29, 5  ;;  %v1342_v29 = vrot.slane %v1340_v3, 5  ;;  %v1370_v3 = vshll.u32 %v1093_v51, 16  ;;  %v1374_v56 = vshrl.u32 %v1093_v51, 16 }
  0xca   : > { %v1335_v54 = vsel %vm8279_vm9, %v1330_v41, %v1334_v42  ;;  %v1356_v41 = vshll.u32 %v1091_v26, 16  ;;  %v809_v42 = vsel %vm8387_vm14, %v801_v34, %v808_v35  ;;  %v2007_v34 = vrot.slane %v1093_v51, 5  ;;  %v1027_v51 = vld [vmem:[#allocation2 + $0x90] sm:$0xf] }
  0xcb   : > { %v1523_v14 = vunpack.c.l.b16 %v1335_v54  ;;  %1023 = vst.msk [vmem:[#allocation2 + $0x88] sm:$0xf] %vm533_vm1, %v809_v42  ;;  %v2004_v54 = vsel %vm8254_vm7, %v2002_v39, %v2003_v21  ;;  %v8692_v35 = vrot.slane %v1370_v3, 5  ;;  %v1376_v36 = vrot.slane %v1374_v56, 4 }
  0xcc   : > { %v1358_v57 = vrot.slane %v1356_v41, 5  ;;  %v2009_v53 = vrot.slane %v2007_v34, 4 }
  0xcd   : > { %v8663_v37 = vpack.c.b16 %v1523_v14, %v1522_v10  ;;  %v2068_v10 = vunpack.c.l.b16 %v2004_v54  ;;  %v611_v14 = vld [vmem:[%s8339_s23 + $0x58] sm:$0xf]  ;;  %v1377_v54 = vor.u32 %v1376_v36, %v8692_v35 }
  0xce   : > { %v812_v18 = vshrl.u32 %v611_v14, 16  ;;  %v1359_v26 = vsel %vm8279_vm9, %v1354_v62, %v1358_v57  ;;  %v815_v42 = vshll.u32 %v611_v14, 16 }
  0xcf   : > { %v8694_v21 = vpack.c.b16 %v2068_v10, %v2067_v9  ;;  %v1525_v46 = vunpack.c.l.b16 %v1359_v26 }
  0xd0   : > { %v814_v41 = vrot.slane %v812_v18, 7  ;;  %v2011_v18 = vsel %vm8254_vm7, %v2009_v53, %v2010_v50 }
  0xd1   : > { %11164 = vst [vmem:[#allocation19_spill] sm:$0xff] %v8694_v21 }
  0xd2   : > { %7086 = vmatmul.msk.bf16.gmra.mxu2 %vm1554_vm8, %v8632_v61  ;;  %v817_v57 = vor.u32 %v815_v42, %v814_v41  ;;  %v818_v9 = vrot.slane %v814_v41, 4  ;;  %v1096_v42 = vld [vmem:[#allocation2 + $0x88] sm:$0xf] }
  0xd3   : > { %v1394_v53 = vshll.u32 %v1096_v42, 16 }
  0xd4   : > { %v1028_v49 = vsel %vm8379_vm13, %v817_v57, %v1027_v51  ;;  %v614_v51 = vld [vmem:[%s8339_s23 + $0x64] sm:$0xf] }
  0xd5   : > { %1029 = vst [vmem:[#allocation2 + $0x90] sm:$0xf] %v1028_v49 }
  0xd6   : > { %6973 = vmatmul.msk.bf16.gmra.mxu0 %vm1554_vm8, %v8634_v17 }
  0xd8   : > { %7107 = vmatmul.msk.bf16.gmra.mxu3 %vm1554_vm8, %v7768_v31  ;;  %7054 = vmatmul.msk.bf16.gmra.mxu1 %vm1554_vm8, %v7768_v31  ;;  %v1343_v31 = vor.u32 %v1342_v29, %v1339_v24  ;;  %v1363_v29 = vrot.slane %v1361_v63, 4  ;;  %v823_v63 = vshll.u32 %v612_v16, 16  ;;  %v8712_v16 = vld [vmem:[#allocation2 + $0x84] sm:$0xf] }
  0xd9   : > { %v1385_v50 = vshrl.u32 %v8712_v16, 16 }
  0xda   : > { %v1344_v60 = vrot.slane %v1343_v31, 4  ;;  %v1367_v52 = vor.u32 %v1366_v30, %v1363_v29  ;;  %v1031_v29 = vld [vmem:[#allocation2 + $0x98] sm:$0x1] }
  0xdc   : > { %v1349_v24 = vsel %vm8279_vm9, %v1344_v60, %v1348_v25  ;;  %v822_v60 = vrot.slane %v820_v38, 7  ;;  %v1368_v3 = vrot.slane %v1367_v52, 4  ;;  %v1388_v52 = vshll.u32 %v8712_v16, 16 }
  0xdd   : > { %v1524_v25 = vunpack.c.l.b16 %v1349_v24  ;;  %v1378_v24 = vrot.slane %v1377_v54, 4  ;;  %v1398_v54 = vshrl.u32 %v1096_v42, 16 }
  0xde   : > { %v827_v10 = vrot.slane %v822_v60, 4  ;;  %v825_v26 = vor.u32 %v823_v63, %v822_v60  ;;  %v837_v60 = vshrl.u32 %v614_v51, 16 }
  0xdf   : > { %v8702_v62 = vpack.c.b16 %v1525_v46, %v1524_v25  ;;  %v1373_v46 = vsel %vm8279_vm9, %v1368_v3, %v8692_v35  ;;  %v2014_v3 = vrot.slane %v1096_v42, 5  ;;  %v1400_v2 = vrot.slane %v1398_v54, 4 }
  0xe0   : > { %v826_v25 = vsel %vm8387_vm14, %v818_v9, %v825_v26  ;;  %v1526_v63 = vunpack.c.l.b16 %v1373_v46  ;;  %v839_v26 = vrot.slane %v837_v60, 7 }
  0xe1   : > { %1030 = vst.msk [vmem:[#allocation2 + $0x94] sm:$0xf] %vm533_vm1, %v826_v25  ;;  %v1396_v25 = vrot.slane %v1394_v53, 5  ;;  %v2016_v42 = vrot.slane %v2014_v3, 4 }
  0xe2   : > { %7087 = vmatmul.msk.bf16.gmra.mxu2 %vm1554_vm8, %v8661_v20  ;;  %v844_v60 = vrot.slane %v839_v26, 4 }
  0xe5   : > { %v1841_v58 = vpop.f32.mrf.mxu1 }
  0xe6   : > { %6974 = vmatmul.msk.bf16.gmra.mxu0 %vm1554_vm8, %v8663_v37 }
  0xe8   : > { %7108 = vmatmul.msk.bf16.gmra.mxu3 %vm1554_vm8, %v7769_v44  ;;  %7055 = vmatmul.msk.bf16.gmra.mxu1 %vm1554_vm8, %v7769_v44  ;;  %v1380_v44 = vshll.u32 %v1094_v33, 16 }
  0xea   : > { %v1382_v56 = vrot.slane %v1380_v44, 5  ;;  %v613_v44 = vld [vmem:[%s8339_s23 + $0x60] sm:$0xf] }
  0xeb   : > { %v2291_v39 = vpop.f32.mrf.mxu3  ;;  %v829_v57 = vshrl.u32 %v613_v44, 16 }
  0xec   : > { %v8697_v31 = vadd.f32 %v2291_v39, %v8614_v40  ;;  %v2008_v40 = vsel %vm8254_vm7, %v7072_v47, %v2007_v34  ;;  %v1032_v34 = vsel %vm8395_vm15, %v827_v10, %v1031_v29  ;;  %v2070_v39 = vunpack.c.l.b16 %v2011_v18 }
  0xed   : > { %v1843_v48 = vpop.f32.mrf.mxu1  ;;  %1033 = vst [vmem:[#allocation2 + $0x98] sm:$0x1] %v1032_v34  ;;  %v2069_v38 = vunpack.c.l.b16 %v2008_v40  ;;  %v1383_v47 = vsel %vm8279_vm9, %v1378_v24, %v1382_v56  ;;  %v1387_v56 = vrot.slane %v1385_v50, 4  ;;  %v831_v9 = vrot.slane %v829_v57, 7 }
  0xee   : > { %v1527_v49 = vunpack.c.l.b16 %v1383_v47  ;;  %v1390_v18 = vrot.slane %v1388_v52, 5  ;;  %v832_v24 = vshll.u32 %v613_v44, 16  ;;  %v840_v29 = vshll.u32 %v614_v51, 16  ;;  %v1034_v47 = vld [vmem:[#allocation2 + $0x9c] sm:$0xf] }
  0xef   : > { %v8732_v40 = vpack.c.b16 %v2070_v39, %v2069_v38  ;;  %v835_v46 = vrot.slane %v831_v9, 4  ;;  %v1401_v51 = vor.u32 %v1400_v2, %v1396_v25  ;;  %v8750_v2 = vld [vmem:[#allocation2 + $0x90] sm:$0xf] }
  0xf0   : > { %v834_v39 = vor.u32 %v832_v24, %v831_v9  ;;  %v1391_v44 = vor.u32 %v1390_v18, %v1387_v56 }
  0xf1   : > { %11165 = vst [vmem:[#allocation20_spill] sm:$0xff] %v8732_v40 }
  0xf2   : > { %7088 = vmatmul.msk.bf16.gmra.mxu2 %vm1554_vm8, %v8694_v21  ;;  %v1035_v52 = vsel %vm8379_vm13, %v834_v39, %v1034_v47  ;;  %v1392_v24 = vrot.slane %v1391_v44, 4 }
  0xf3   : > { %v1621_v1 = vpop.f32.mrf.mxu0  ;;  %v8710_v30 = vpop.f32.mrf.mxu3  ;;  %1036 = vst [vmem:[#allocation2 + $0x9c] sm:$0xf] %v1035_v52 }
  0xf4   : > { %v1842_v14 = vadd.f32 %v1841_v58, %v1621_v1  ;;  %v7770_v58 = vld [vmem:[#allocation2 + $0x78] sm:$0xff]  ;;  %v1397_v47 = vsel %vm8279_vm9, %v1392_v24, %v1396_v25 }
  0xf5   : > { %v2162_v33 = vpop.f32.mrf.mxu2  ;;  %v1846_v41 = vpop.f32.mrf.mxu1 }
  0xf6   : > { %v2239_v36 = vadd.f32 %v2162_v33, %v1842_v14  ;;  %6975 = vmatmul.msk.bf16.gmra.mxu0 %vm1554_vm8, %v8702_v62 }
  0xf8   : > { %7109 = vmatmul.msk.bf16.gmra.mxu3 %vm1554_vm8, %v7770_v58  ;;  %7056 = vmatmul.msk.bf16.gmra.mxu1 %vm1554_vm8, %v7770_v58  ;;  %v1097_v58 = vld [vmem:[#allocation2 + $0x8c] sm:$0x1] }
  0xf9   : > { %v2017_v50 = vrot.slane %v1097_v58, 5  ;;  %v1404_v57 = vshll.u32 %v1097_v58, 16 }
  0xfb   : > { %v1623_v35 = vpop.f32.mrf.mxu0  ;;  %v2296_v10 = vpop.f32.mrf.mxu3 }
  0xfc   : > { %v1844_v1 = vadd.f32 %v1843_v48, %v1623_v35  ;;  %v8734_v33 = vadd.f32 %v2296_v10, %v2239_v36  ;;  %v7073_v48 = vrot.slane %v8712_v16, 9  ;;  %v842_v35 = vor.u32 %v840_v29, %v839_v26 }
  0xfd   : > { %v2164_v14 = vpop.f32.mrf.mxu2  ;;  %v1848_v38 = vpop.f32.mrf.mxu1  ;;  %v8741_v36 = vpack.c.b16 %v1527_v49, %v1526_v63  ;;  %v2018_v63 = vsel %vm8254_vm7, %v2016_v42, %v2017_v50  ;;  %v1406_v49 = vrot.slane %v1404_v57, 5  ;;  %v1402_v26 = vrot.slane %v1401_v51, 4  ;;  %v615_v42 = vld [vmem:[%s8339_s23 + $0x68] sm:$0xf]  ;;  %v616_v51 = vld [vmem:[%s8339_s23 + $0x6c] sm:$0xf] }
  0xfe   : > { %11166 = vst [vmem:[#allocation21_spill] sm:$0xff] %v8734_v33  ;;  %v2240_v34 = vadd.f32 %v2164_v14, %v1844_v1  ;;  %v843_v16 = vsel %vm8387_vm14, %v835_v46, %v842_v35  ;;  %v1038_v1 = vld [vmem:[#allocation2 + $0xa4] sm:$0x1]  ;;  %v2015_v14 = vsel %vm8254_vm7, %v7073_v48, %v2014_v3  ;;  %v2072_v39 = vunpack.c.l.b16 %v2018_v63  ;;  %v1099_v46 = vld [vmem:[#allocation2 + $0x94] sm:$0xf] }
  0xff   : > { %11167 = vst [vmem:[#allocation22_spill] sm:$0xff] %v8741_v36  ;;  %v1039_v3 = vsel %vm8395_vm15, %v844_v60, %v1038_v1  ;;  %v2071_v58 = vunpack.c.l.b16 %v2015_v14  ;;  %v1409_v48 = vshrl.u32 %v8750_v2, 16  ;;  %v1407_v50 = vsel %vm8279_vm9, %v1402_v26, %v1406_v49  ;;  %v1100_v26 = vld [vmem:[#allocation2 + $0x98] sm:$0x1] }
 0x100   : > { %1037 = vst.msk [vmem:[#allocation2 + $0xa0] sm:$0xf] %vm533_vm1, %v843_v16  ;;  %v846_v57 = vshrl.u32 %v615_v42, 16  ;;  %v1418_v52 = vshll.u32 %v1099_v46, 16  ;;  %v1422_v44 = vshrl.u32 %v1099_v46, 16  ;;  %v1529_v25 = vunpack.c.l.b16 %v1407_v50 }
 0x101   : > { %1040 = vst [vmem:[#allocation2 + $0xa4] sm:$0x1] %v1039_v3  ;;  %v8772_v16 = vpack.c.b16 %v2072_v39, %v2071_v58  ;;  %v849_v63 = vshll.u32 %v615_v42, 16  ;;  %v2021_v3 = vrot.slane %v1099_v46, 5  ;;  %v1041_v39 = vld [vmem:[#allocation2 + $0xa8] sm:$0xf] }
 0x102   : > { %7089 = vmatmul.msk.bf16.gmra.mxu2 %vm1554_vm8, %v8732_v40  ;;  %v848_v14 = vrot.slane %v846_v57, 7  ;;  %v1424_v40 = vrot.slane %v1422_v44, 4  ;;  %v1428_v42 = vshll.u32 %v1100_v26, 16  ;;  %v857_v57 = vshll.u32 %v616_v51, 16 }
 0x103   : > { %v1626_v53 = vpop.f32.mrf.mxu0  ;;  %v2298_v9 = vpop.f32.mrf.mxu3  ;;  %11170 = vst [vmem:[#allocation25_spill] sm:$0xff] %v8772_v16 }
 0x104   : > { %v1847_v54 = vadd.f32 %v1846_v41, %v1626_v53  ;;  %v8752_v56 = vadd.f32 %v2298_v9, %v2240_v34  ;;  %v8756_v41 = vld [vmem:[#allocation2 + $0x84] sm:$0xff]  ;;  %v1412_v34 = vshll.u32 %v8750_v2, 16  ;;  %v851_v58 = vor.u32 %v849_v63, %v848_v14 }
 0x105   : > { %v2167_v10 = vpop.f32.mrf.mxu2  ;;  %11169 = vst [vmem:[#allocation24_spill] sm:$0xff] %v8756_v41  ;;  %v1851_v29 = vpop.f32.mrf.mxu1 }
 0x106   : > { %11168 = vst [vmem:[#allocation23_spill] sm:$0xff] %v8752_v56  ;;  %v2241_v18 = vadd.f32 %v2167_v10, %v1847_v54  ;;  %6976 = vmatmul.msk.bf16.gmra.mxu0 %vm1554_vm8, %v8741_v36  ;;  %v1411_v54 = vrot.slane %v1409_v48, 4  ;;  %v1414_v60 = vrot.slane %v1412_v34, 5  ;;  %v1528_v10 = vunpack.c.l.b16 %v1397_v47 }
 0x107   : > { %v854_v56 = vshrl.u32 %v616_v51, 16  ;;  %v7074_v34 = vrot.slane %v8750_v2, 9  ;;  %v2024_v47 = vrot.slane %v1100_v26, 5  ;;  %v1042_v44 = vsel %vm8379_vm13, %v851_v58, %v1041_v39  ;;  %v8787_v51 = vld [vmem:[#allocation2 + $0xa0] sm:$0xf] }
 0x108   : > { %7110 = vmatmul.msk.bf16.gmra.mxu3 %vm1554_vm8, %v8756_v41  ;;  %7057 = vmatmul.msk.bf16.gmra.mxu1 %vm1554_vm8, %v8756_v41  ;;  %v1420_v41 = vrot.slane %v1418_v52, 5  ;;  %v8776_v48 = vpack.c.b16 %v1529_v25, %v1528_v10  ;;  %v852_v52 = vrot.slane %v848_v14, 4  ;;  %1043 = vst [vmem:[#allocation2 + $0xa8] sm:$0xf] %v1042_v44  ;;  %v1430_v26 = vrot.slane %v1428_v42, 5 }
 0x109   : > { %v856_v50 = vrot.slane %v854_v56, 7  ;;  %v2022_v56 = vsel %vm8254_vm7, %v7074_v34, %v2021_v3  ;;  %v618_v42 = vld [vmem:[%s8339_s23 + $0x74] sm:$0xf] }
 0x10a   : > { %11172 = vst [vmem:[#allocation27_spill] sm:$0xff] %v8776_v48 }
 0x10b   : > { %v1628_v35 = vpop.f32.mrf.mxu0  ;;  %v2301_v1 = vpop.f32.mrf.mxu3  ;;  %v861_v2 = vrot.slane %v856_v50, 4 }
 0x10c   : > { %v1849_v53 = vadd.f32 %v1848_v38, %v1628_v35  ;;  %v8774_v49 = vadd.f32 %v2301_v1, %v2241_v18  ;;  %v1415_v38 = vor.u32 %v1414_v60, %v1411_v54  ;;  %v2023_v18 = vrot.slane %v2021_v3, 4 }
 0x10d   : > { %v2169_v9 = vpop.f32.mrf.mxu2  ;;  %v1853_v33 = vpop.f32.mrf.mxu1  ;;  %v1425_v35 = vor.u32 %v1424_v40, %v1420_v41  ;;  %v859_v1 = vor.u32 %v857_v57, %v856_v50  ;;  %v1442_v57 = vshll.u32 %v8787_v51, 16 }
 0x10e   : > { %11171 = vst [vmem:[#allocation26_spill] sm:$0xff] %v8774_v49  ;;  %v2242_v24 = vadd.f32 %v2169_v9, %v1849_v53  ;;  %v8781_v53 = vld [vmem:[#allocation2 + $0x9c] sm:$0xf]  ;;  %v1416_v60 = vrot.slane %v1415_v38, 4  ;;  %v1045_v9 = vld [vmem:[#allocation2 + $0xb0] sm:$0x1]  ;;  %v2025_v14 = vsel %vm8254_vm7, %v2023_v18, %v2024_v47 }
 0x10f   : > { %v1426_v58 = vrot.slane %v1425_v35, 4  ;;  %v1433_v3 = vshrl.u32 %v8781_v53, 16  ;;  %v1046_v39 = vsel %vm8395_vm15, %v861_v2, %v1045_v9  ;;  %v1436_v50 = vshll.u32 %v8781_v53, 16  ;;  %v617_v18 = vld [vmem:[%s8339_s23 + $0x70] sm:$0xf] }
 0x110   : > { %v1421_v34 = vsel %vm8279_vm9, %v1416_v60, %v1420_v41  ;;  %v1446_v47 = vshrl.u32 %v8787_v51, 16  ;;  %1047 = vst [vmem:[#allocation2 + $0xb0] sm:$0x1] %v1046_v39  ;;  %v2074_v35 = vunpack.c.l.b16 %v2025_v14  ;;  %v863_v41 = vshrl.u32 %v617_v18, 16  ;;  %v1103_v39 = vld [vmem:[#allocation2 + $0xa4] sm:$0x1] }
 0x111   : > { %v1530_v60 = vunpack.c.l.b16 %v1421_v34  ;;  %v1435_v2 = vrot.slane %v1433_v3, 4  ;;  %v866_v49 = vshll.u32 %v617_v18, 16  ;;  %v7075_v34 = vrot.slane %v8781_v53, 9 }
 0x112   : > { %7090 = vmatmul.msk.bf16.gmra.mxu2 %vm1554_vm8, %v8772_v16  ;;  %v874_v16 = vshll.u32 %v618_v42, 16  ;;  %v1452_v18 = vshll.u32 %v1103_v39, 16 }
 0x113   : > { %v1631_v46 = vpop.f32.mrf.mxu0  ;;  %v2303_v10 = vpop.f32.mrf.mxu3 }
 0x114   : > { %v1852_v54 = vadd.f32 %v1851_v29, %v1631_v46  ;;  %v8789_v40 = vadd.f32 %v2303_v10, %v2242_v24  ;;  %v8793_v29 = vld [vmem:[#allocation2 + $0x90] sm:$0xff]  ;;  %v860_v24 = vsel %vm8387_vm14, %v852_v52, %v859_v1  ;;  %v2073_v46 = vunpack.c.l.b16 %v2022_v56 }
 0x115   : > { %v2172_v25 = vpop.f32.mrf.mxu2  ;;  %11174 = vst [vmem:[#allocation29_spill] sm:$0xff] %v8793_v29  ;;  %v1856_v38 = vpop.f32.mrf.mxu1  ;;  %v871_v52 = vshrl.u32 %v618_v42, 16  ;;  %v2028_v1 = vrot.slane %v8787_v51, 5  ;;  %v1438_v10 = vrot.slane %v1436_v50, 5  ;;  %v1048_v42 = vld [vmem:[#allocation2 + $0xb4] sm:$0xf] }
 0x116   : > { %11173 = vst [vmem:[#allocation28_spill] sm:$0xff] %v8789_v40  ;;  %v2243_v63 = vadd.f32 %v2172_v25, %v1852_v54  ;;  %6977 = vmatmul.msk.bf16.gmra.mxu0 %vm1554_vm8, %v8776_v48  ;;  %v1431_v54 = vsel %vm8279_vm9, %v1426_v58, %v1430_v26  ;;  %v8817_v25 = vrot.slane %v1442_v57, 5  ;;  %v1448_v40 = vrot.slane %v1446_v47, 4 }
 0x117   : > { %1044 = vst.msk [vmem:[#allocation2 + $0xac] sm:$0xf] %vm533_vm1, %v860_v24  ;;  %v865_v24 = vrot.slane %v863_v41, 7  ;;  %v8821_v26 = vpack.c.b16 %v2074_v35, %v2073_v46  ;;  %v1531_v58 = vunpack.c.l.b16 %v1431_v54  ;;  %v2030_v50 = vrot.slane %v2028_v1, 4  ;;  %v1052_v54 = vld [vmem:[#allocation2 + $0xbc] sm:$0x1] }
 0x118   : > { %7111 = vmatmul.msk.bf16.gmra.mxu3 %vm1554_vm8, %v8793_v29  ;;  %7058 = vmatmul.msk.bf16.gmra.mxu1 %vm1554_vm8, %v8793_v29  ;;  %v873_v29 = vrot.slane %v871_v52, 7  ;;  %v2031_v57 = vrot.slane %v1103_v39, 5  ;;  %v1449_v47 = vor.u32 %v1448_v40, %v8817_v25  ;;  %v1106_v12 = vld [vmem:[#allocation2 + $0xb0] sm:$0x1] }
 0x119   : > { %11176 = vst [vmem:[#allocation31_spill] sm:$0xff] %v8821_v26  ;;  %v869_v3 = vrot.slane %v865_v24, 4  ;;  %v868_v41 = vor.u32 %v866_v49, %v865_v24  ;;  %v8829_v46 = vpack.c.b16 %v1531_v58, %v1530_v60  ;;  %v2029_v49 = vsel %vm8254_vm7, %v7075_v34, %v2028_v1 }
 0x11a   : > { %v878_v53 = vrot.slane %v873_v29, 4  ;;  %v2032_v40 = vsel %vm8254_vm7, %v2030_v50, %v2031_v57  ;;  %v1450_v60 = vrot.slane %v1449_v47, 4  ;;  %v1454_v24 = vrot.slane %v1452_v18, 5 }
 0x11b   : > { %v1633_v44 = vpop.f32.mrf.mxu0  ;;  %v2306_v56 = vpop.f32.mrf.mxu3  ;;  %v1049_v52 = vsel %vm8379_vm13, %v868_v41, %v1048_v42  ;;  %v2075_v58 = vunpack.c.l.b16 %v2029_v49  ;;  %v619_v41 = vld [vmem:[%s8339_s23 + $0x78] sm:$0xf]  ;;  %v620_v42 = vld [vmem:[%s8339_s23 + $0x7c] sm:$0xf]  ;;  %s9308_s23 = scalar_lea.vmem %s11223_s11, %s7759_s0  ;;  %s10370_s0 = sand.u32 1, %s8075_s19  }
 0x11c   : > { %v1854_v9 = vadd.f32 %v1853_v33, %v1633_v44  ;;  %v8819_v48 = vadd.f32 %v2306_v56, %v2243_v63  ;;  %v876_v33 = vor.u32 %v874_v16, %v873_v29  ;;  %v1439_v44 = vor.u32 %v1438_v10, %v1435_v2  ;;  %1050 = vst [vmem:[#allocation2 + $0xb4] sm:$0xf] %v1049_v52  ;;  %v8844_v56 = vld [vmem:[#allocation2 + $0x9c] sm:$0xff]  ;;  %s6959_s16 = sshll.u32 %s10370_s0, 4  ;;  %s6960_s26 = sshll.u32 %s10370_s0, 2 }
 0x11d   : > { %v2174_v14 = vpop.f32.mrf.mxu2  ;;  %v1858_v51 = vpop.f32.mrf.mxu1  ;;  %v1053_v29 = vsel %vm8395_vm15, %v878_v53, %v1052_v54  ;;  %11178 = vst [vmem:[#allocation33_spill] sm:$0xff] %v8844_v56  ;;  %s10680_s17 = scalar_lea.vmem [#allocation9], %s6959_s16  ;;  %s6701_s16 = sand.u32 1, %s8193_s22  }
 0x11e   : > { %11175 = vst [vmem:[#allocation30_spill] sm:$0xff] %v8819_v48  ;;  %v2244_v36 = vadd.f32 %v2174_v14, %v1854_v9  ;;  %v877_v63 = vsel %vm8387_vm14, %v869_v3, %v876_v33  ;;  %v1440_v10 = vrot.slane %v1439_v44, 4  ;;  %v8846_v14 = vld [vmem:[#allocation2 + $0xa8] sm:$0xf]  ;;  %v2076_v3 = vunpack.c.l.b16 %v2032_v40  ;;  %v1105_v33 = vld [vmem:[#allocation2 + $0xac] sm:$0xf] }
 0x11f   : > { %1051 = vst.msk [vmem:[#allocation2 + $0xb8] sm:$0xf] %vm533_vm1, %v877_v63  ;;  %v1457_v50 = vshrl.u32 %v8846_v14, 16  ;;  %v1460_v57 = vshll.u32 %v8846_v14, 16  ;;  %v880_v44 = vshrl.u32 %v619_v41, 16  ;;  %v1466_v18 = vshll.u32 %v1105_v33, 16 }
 0x120   : > { %1054 = vst [vmem:[#allocation2 + $0xbc] sm:$0x1] %v1053_v29  ;;  %v1445_v34 = vsel %vm8279_vm9, %v1440_v10, %v8817_v25  ;;  %v1470_v63 = vshrl.u32 %v1105_v33, 16  ;;  %v888_v29 = vshrl.u32 %v620_v42, 16  ;;  %s7949_s11 = scalar_lea.hbm %s11316_s13, 32 }
 0x121   : > { %v1532_v53 = vunpack.c.l.b16 %v1445_v34  ;;  %v1459_v52 = vrot.slane %v1457_v50, 4  ;;  %v1462_v54 = vrot.slane %v1460_v57, 5  ;;  %v1468_v48 = vrot.slane %v1466_v18, 5 }
 0x122   : > { %7091 = vmatmul.msk.bf16.gmra.mxu2 %vm1554_vm8, %v8821_v26  ;;  %v7076_v34 = vrot.slane %v8846_v14, 9  ;;  %v1476_v57 = vshll.u32 %v1106_v12, 16  ;;  %v891_v18 = vshll.u32 %v620_v42, 16 }
 0x123   : > { %v1636_v16 = vpop.f32.mrf.mxu0  ;;  %v2308_v2 = vpop.f32.mrf.mxu3  ;;  %v1107_v4 = vld [vmem:[#allocation2 + $0xb4] sm:$0xf] }
 0x124   : > { %v1857_v35 = vadd.f32 %v1856_v38, %v1636_v16  ;;  %v8840_v38 = vadd.f32 %v2308_v2, %v2244_v36  ;;  %v1455_v36 = vsel %vm8279_vm9, %v1450_v60, %v1454_v24  ;;  %v8861_v16 = vpack.c.b16 %v2076_v3, %v2075_v58  ;;  %v1055_v58 = vld [vmem:[#allocation2 + $0xc0] sm:$0xf] }
 0x125   : > { %v2177_v9 = vpop.f32.mrf.mxu2  ;;  %v1861_v39 = vpop.f32.mrf.mxu1  ;;  %v882_v2 = vrot.slane %v880_v44, 7  ;;  %v2035_v24 = vrot.slane %v1105_v33, 5 }
 0x126   : > { %11177 = vst [vmem:[#allocation32_spill] sm:$0xff] %v8840_v38  ;;  %v2245_v1 = vadd.f32 %v2177_v9, %v1857_v35  ;;  %6978 = vmatmul.msk.bf16.gmra.mxu0 %vm1554_vm8, %v8829_v46  ;;  %v1533_v35 = vunpack.c.l.b16 %v1455_v36  ;;  %v883_v9 = vshll.u32 %v619_v41, 16  ;;  %v1463_v36 = vor.u32 %v1462_v54, %v1459_v52  ;;  %v1108_v42 = vld [vmem:[#allocation2 + $0xb8] sm:$0xf] }
 0x127   : > { %v2037_v50 = vrot.slane %v2035_v24, 4  ;;  %v8870_v41 = vrot.slane %v888_v29, 7 }
 0x128   : > { %7112 = vmatmul.msk.bf16.gmra.mxu3 %vm1554_vm8, %v8844_v56  ;;  %7059 = vmatmul.msk.bf16.gmra.mxu1 %vm1554_vm8, %v8844_v56  ;;  %v1472_v56 = vrot.slane %v1470_v63, 4  ;;  %v8865_v3 = vpack.c.b16 %v1533_v35, %v1532_v53  ;;  %v1464_v35 = vrot.slane %v1463_v36, 4  ;;  %v1490_v36 = vshll.u32 %v1108_v42, 16 }
 0x12a   : > { %v1473_v44 = vor.u32 %v1472_v56, %v1468_v48  ;;  %v2036_v56 = vsel %vm8254_vm7, %v7076_v34, %v2035_v24  ;;  %v1469_v29 = vsel %vm8279_vm9, %v1464_v35, %v1468_v48 }
 0x12b   : > { %v1638_v47 = vpop.f32.mrf.mxu0  ;;  %v2311_v49 = vpop.f32.mrf.mxu3  ;;  %v2077_v24 = vunpack.c.l.b16 %v2036_v56  ;;  %v7151_v56 = vld [vmem:[%s11151_s1 + $0xc] sm:$0x3] }
 0x12c   : > { %v1859_v25 = vadd.f32 %v1858_v51, %v1638_v47  ;;  %v8863_v10 = vadd.f32 %v2311_v49, %v2245_v1  ;;  %v885_v51 = vor.u32 %v883_v9, %v882_v2  ;;  %v2038_v1 = vrot.slane %v1106_v12, 5  ;;  %v8879_v12 = vld [vmem:[#allocation2 + $0xa8] sm:$0xff] }
 0x12d   : > { %v2179_v40 = vpop.f32.mrf.mxu2  ;;  %v1863_v38 = vpop.f32.mrf.mxu1  ;;  %v886_v47 = vrot.slane %v882_v2, 4  ;;  %v893_v49 = vor.u32 %v891_v18, %v8870_v41  ;;  %v1474_v2 = vrot.slane %v1473_v44, 4  ;;  %v1478_v9 = vrot.slane %v1476_v57, 5 }
 0x12e   : > { %v2246_v60 = vadd.f32 %v2179_v40, %v1859_v25  ;;  %v1056_v63 = vsel %vm8379_vm13, %v885_v51, %v1055_v58  ;;  %v1481_v51 = vshrl.u32 %v1107_v4, 16  ;;  %v1484_v58 = vshll.u32 %v1107_v4, 16 }
 0x12f   : > { %1057 = vst [vmem:[#allocation2 + $0xc0] sm:$0xf] %v1056_v63  ;;  %v1479_v7 = vsel %vm8279_vm9, %v1474_v2, %v1478_v9  ;;  %v1109_v2 = vld [vmem:[#allocation2 + $0xbc] sm:$0x1]  ;;  %v2710_v9 = vsel %vm11126_vm0, %v7151_v56, 0  ;;  %vm3899_vm13 = vcmask 1043459  }
 0x130   : > { %v1483_v18 = vrot.slane %v1481_v51, 4  ;;  %v1486_v63 = vrot.slane %v1484_v58, 5  ;;  %2719 = vmatpush.bf16.msrb.mxu2 %v2710_v9  ;;  %v7077_v58 = vrot.slane %v1107_v4, 9 }
 0x132   : > { %7092 = vmatmul.msk.bf16.gmra.mxu2 %vm1554_vm8, %v8861_v16 }
 0x133   : > { %v1641_v33 = vpop.f32.mrf.mxu0  ;;  %v2313_v53 = vpop.f32.mrf.mxu3 }
 0x134   : > { %v1862_v25 = vadd.f32 %v1861_v39, %v1641_v33  ;;  %v8875_v40 = vadd.f32 %v2313_v53, %v2246_v60  ;;  %v2039_v39 = vsel %vm8254_vm7, %v2037_v50, %v2038_v1  ;;  %v894_v60 = vsel %vm8387_vm14, %v886_v47, %v893_v49 }
 0x135   : > { %v2182_v14 = vpop.f32.mrf.mxu2  ;;  %v1866_v54 = vpop.f32.mrf.mxu1  ;;  %1058 = vst.msk [vmem:[#allocation2 + $0xc4] sm:$0xf] %vm533_vm1, %v894_v60  ;;  %v2078_v34 = vunpack.c.l.b16 %v2039_v39  ;;  %v1494_v1 = vshrl.u32 %v1108_v42, 16  ;;  %v1534_v33 = vunpack.c.l.b16 %v1469_v29  ;;  %v2042_v47 = vrot.slane %v1108_v42, 5  ;;  %v7134_v42 = vld [vmem:[%s11151_s1 + $0xa] sm:$0x3] }
 0x136   : > { %v2247_v52 = vadd.f32 %v2182_v14, %v1862_v25  ;;  %6979 = vmatmul.msk.bf16.gmra.mxu0 %vm1554_vm8, %v8865_v3  ;;  %v1492_v25 = vrot.slane %v1490_v36, 5  ;;  %v1535_v49 = vunpack.c.l.b16 %v1479_v7  ;;  %v2576_v29 = vsel %vm11126_vm0, %v7134_v42, 0  ;;  %v8920_v42 = vld [vmem:[#allocation2 + $0xb4] sm:$0xff] }
 0x137   : > { %v8898_v35 = vpack.c.b16 %v2078_v34, %v2077_v24  ;;  %2585 = vmatpush.bf16.msrb.mxu1 %v2576_v29  ;;  %v2044_v36 = vrot.slane %v2042_v47, 4  ;;  %v2045_v24 = vrot.slane %v1109_v2, 5  ;;  %v2043_v4 = vsel %vm8254_vm7, %v7077_v58, %v2042_v47 }
 0x138   : > { %7113 = vmatmul.msk.bf16.gmra.mxu3 %vm1554_vm8, %v8879_v12  ;;  %7060 = vmatmul.msk.bf16.gmra.mxu1 %vm1554_vm8, %v8879_v12  ;;  %v8914_v51 = vpack.c.b16 %v1535_v49, %v1534_v33  ;;  %vm4248_vm1 = vcmask 1043456   ;;  %vm3902_vm14 = vcmask 1044484  }
 0x139   : > { %v2046_v33 = vsel %vm8254_vm7, %v2044_v36, %v2045_v24 }
 0x13a   : > { %v2080_v9 = vunpack.c.l.b16 %v2046_v33 }
 0x13b   : > { %v1643_v50 = vpop.f32.mrf.mxu0  ;;  %v2316_v44 = vpop.f32.mrf.mxu3 }
 0x13c   : > { %v1864_v57 = vadd.f32 %v1863_v38, %v1643_v50  ;;  %v8896_v53 = vadd.f32 %v2316_v44, %v2247_v52  ;;  %v7172_v38 = vld [vmem:[%s11151_s1 + $0xe] sm:$0x3]  ;;  %v1496_v52 = vrot.slane %v1494_v1, 4  ;;  %v1487_v50 = vor.u32 %v1486_v63, %v1483_v18 }
 0x13d   : > { %v2184_v48 = vpop.f32.mrf.mxu2  ;;  %v1868_v39 = vpop.f32.mrf.mxu1  ;;  %v2866_v60 = vsel %vm11126_vm0, %v7172_v38, 0  ;;  %v1500_v1 = vshll.u32 %v1109_v2, 16 }
 0x13e   : > { %v2248_v14 = vadd.f32 %v2184_v48, %v1864_v57  ;;  %2875 = vmatpush.bf16.msrb.mxu3 %v2866_v60  ;;  %v1497_v7 = vor.u32 %v1496_v52, %v1492_v25  ;;  %v1488_v63 = vrot.slane %v1487_v50, 4  ;;  %v2079_v52 = vunpack.c.l.b16 %v2043_v4 }
 0x13f   : > { %v1502_v49 = vrot.slane %v1500_v1, 5 }
 0x140   : > { %v1493_v60 = vsel %vm8279_vm9, %v1488_v63, %v1492_v25 }
 0x141   : > { %v1536_v1 = vunpack.c.l.b16 %v1493_v60 }
 0x142   : > { %7093 = vmatmul.msk.bf16.gmra.mxu2 %vm1554_vm8, %v8898_v35 }
 0x143   : > { %v1646_v34 = vpop.f32.mrf.mxu0  ;;  %v2318_v44 = vpop.f32.mrf.mxu3 }
 0x144   : > { %v1867_v57 = vadd.f32 %v1866_v54, %v1646_v34  ;;  %v8916_v56 = vadd.f32 %v2318_v44, %v2248_v14  ;;  %v7190_v54 = vld [vmem:[%s11151_s1 + $0x10] sm:$0x3]  ;;  %v1498_v14 = vrot.slane %v1497_v7, 4  ;;  %v8938_v34 = vpack.c.b16 %v2080_v9, %v2079_v52 }
 0x145   : > { %v2187_v48 = vpop.f32.mrf.mxu2  ;;  %v1871_v18 = vpop.f32.mrf.mxu1  ;;  %v3006_v2 = vsel %vm11126_vm0, %v7190_v54, 0  ;;  %vm9415_vm0 = vmand %vm3682_vm4, %vm621_vm10 }
 0x146   : > { %v2249_v38 = vadd.f32 %v2187_v48, %v1867_v57  ;;  %6980 = vmatmul.msk.bf16.gmra.mxu0 %vm1554_vm8, %v8914_v51  ;;  %v1503_v29 = vsel %vm8279_vm9, %v1498_v14, %v1502_v49  ;;  %11179 = vst [vmem:[#allocation34_spill] sm:$0xff] %v8938_v34 }
 0x147   : > { %3015 = vmatpush.bf16.msra.mxu0 %v3006_v2  ;;  %v1537_v57 = vunpack.c.l.b16 %v1503_v29  ;;  %v7917_v29 = vld [vmem:[#allocation2 + $0x18] sm:$0xff] }
 0x148   : > { %7114 = vmatmul.msk.bf16.gmra.mxu3 %vm1554_vm8, %v8920_v42  ;;  %7061 = vmatmul.msk.bf16.gmra.mxu1 %vm1554_vm8, %v8920_v42 }
 0x149   : > { %v8944_v48 = vpack.c.b16 %v1537_v57, %v1536_v1 }
 0x14b   : > { %v1648_v47 = vpop.f32.mrf.mxu0  ;;  %v2321_v36 = vpop.f32.mrf.mxu3 }
 0x14c   : > { %v1869_v58 = vadd.f32 %v1868_v39, %v1648_v47  ;;  %v8940_v50 = vadd.f32 %v2321_v36, %v2249_v38  ;;  %v8950_v38 = vld [vmem:[#allocation2 + $0xc0] sm:$0xff] }
 0x14d   : > { %v2189_v24 = vpop.f32.mrf.mxu2  ;;  %v1873_v44 = vpop.f32.mrf.mxu1 }
 0x14e   : > { %v2250_v7 = vadd.f32 %v2189_v24, %v1869_v58 }
 0x152   : > { %7094 = vmatmul.msk.bf16.gmra.mxu2 %vm1554_vm8, %v8938_v34 }
 0x153   : > { %v1651_v25 = vpop.f32.mrf.mxu0  ;;  %v2323_v33 = vpop.f32.mrf.mxu3 }
 0x154   : > { %v1872_v4 = vadd.f32 %v1871_v18, %v1651_v25  ;;  %v8946_v39 = vadd.f32 %v2323_v33, %v2250_v7 }
 0x155   : > { %v2192_v54 = vpop.f32.mrf.mxu2  ;;  %v1876_v14 = vpop.f32.mrf.mxu1 }
 0x156   : > { %v2251_v63 = vadd.f32 %v2192_v54, %v1872_v4  ;;  %6981 = vmatmul.msk.bf16.gmra.mxu0 %vm1554_vm8, %v8944_v48 }
 0x158   : > { %7115 = vmatmul.msk.bf16.gmra.mxu3 %vm1554_vm8, %v8950_v38  ;;  %7135 = vmatmul.msk.bf16.vlgmr.msrb.gmra.mxu1 %vm1554_vm8, %v8432_v15 }
 0x15b   : > { %v1653_v49 = vpop.f32.mrf.mxu0  ;;  %v2326_v18 = vpop.f32.mrf.mxu3 }
 0x15c   : > { %v1874_v2 = vadd.f32 %v1873_v44, %v1653_v49  ;;  %v8956_v9 = vadd.f32 %v2326_v18, %v2251_v63  ;;  %v7918_v49 = vld [vmem:[#allocation2 + $0x24] sm:$0xff] }
 0x15d   : > { %v2194_v52 = vpop.f32.mrf.mxu2  ;;  %v1878_v60 = vpop.f32.mrf.mxu1 }
 0x15e   : > { %v2252_v47 = vadd.f32 %v2194_v52, %v1874_v2 }
 0x162   : > { %7156 = vmatmul.msk.bf16.vlgmr.msrb.gmra.mxu2 %vm1554_vm8, %v7917_v29 }
 0x163   : > { %v1656_v58 = vpop.f32.mrf.mxu0  ;;  %v2328_v24 = vpop.f32.mrf.mxu3 }
 0x164   : > { %v1877_v36 = vadd.f32 %v1876_v14, %v1656_v58  ;;  %v8959_v1 = vadd.f32 %v2328_v24, %v2252_v47 }
 0x165   : > { %v2197_v7 = vpop.f32.mrf.mxu2  ;;  %v1881_v15 = vpop.f32.mrf.mxu1 }
 0x166   : > { %v2253_v57 = vadd.f32 %v2197_v7, %v1877_v36  ;;  %7117 = vmatmul.msk.bf16.vlgmr.msrb.gmra.mxu0 %vm1554_vm8, %v8444_v28 }
 0x168   : > { %7173 = vmatmul.msk.bf16.vlgmr.msrb.gmra.mxu3 %vm1554_vm8, %v8474_v27  ;;  %7136 = vmatmul.msk.bf16.gmra.mxu1 %vm1554_vm8, %v8455_v43 }
 0x16b   : > { %v1658_v44 = vpop.f32.mrf.mxu0  ;;  %v2331_v4 = vpop.f32.mrf.mxu3 }
 0x16c   : > { %v1879_v25 = vadd.f32 %v1878_v60, %v1658_v44  ;;  %v8967_v54 = vadd.f32 %v2331_v4, %v2253_v57 }
 0x16d   : > { %v2199_v33 = vpop.f32.mrf.mxu2  ;;  %v1883_v14 = vpop.f32.mrf.mxu1 }
 0x16e   : > { %v2254_v63 = vadd.f32 %v2199_v33, %v1879_v25  ;;  %v7919_v25 = vld [vmem:[#allocation2 + $0x30] sm:$0xff] }
 0x172   : > { %7157 = vmatmul.msk.bf16.gmra.mxu2 %vm1554_vm8, %v7918_v49 }
 0x173   : > { %v1661_v2 = vpop.f32.mrf.mxu0  ;;  %v2333_v18 = vpop.f32.mrf.mxu3 }
 0x174   : > { %v1882_v28 = vadd.f32 %v1881_v15, %v1661_v2  ;;  %v8970_v47 = vadd.f32 %v2333_v18, %v2254_v63 }
 0x175   : > { %v2202_v52 = vpop.f32.mrf.mxu2  ;;  %v1886_v60 = vpop.f32.mrf.mxu1 }
 0x176   : > { %v2255_v29 = vadd.f32 %v2202_v52, %v1882_v28  ;;  %7118 = vmatmul.msk.bf16.gmra.mxu0 %vm1554_vm8, %v8474_v27 }
 0x178   : > { %7174 = vmatmul.msk.bf16.gmra.mxu3 %vm1554_vm8, %v8505_v13  ;;  %7137 = vmatmul.msk.bf16.gmra.mxu1 %vm1554_vm8, %v8500_v59 }
 0x17b   : > { %v1663_v58 = vpop.f32.mrf.mxu0  ;;  %v2336_v24 = vpop.f32.mrf.mxu3 }
 0x17c   : > { %v1884_v36 = vadd.f32 %v1883_v14, %v1663_v58  ;;  %v8978_v57 = vadd.f32 %v2336_v24, %v2255_v29  ;;  %v7920_v24 = vld [vmem:[#allocation2 + $0x3c] sm:$0xff] }
 0x17d   : > { %v2204_v7 = vpop.f32.mrf.mxu2  ;;  %v1888_v44 = vpop.f32.mrf.mxu1 }
 0x17e   : > { %v2256_v15 = vadd.f32 %v2204_v7, %v1884_v36 }
 0x182   : > { %7158 = vmatmul.msk.bf16.gmra.mxu2 %vm1554_vm8, %v7919_v25 }
 0x183   : > { %v1666_v4 = vpop.f32.mrf.mxu0  ;;  %v2338_v33 = vpop.f32.mrf.mxu3 }
 0x184   : > { %v1887_v27 = vadd.f32 %v1886_v60, %v1666_v4  ;;  %v8981_v49 = vadd.f32 %v2338_v33, %v2256_v15 }
 0x185   : > { %v2207_v63 = vpop.f32.mrf.mxu2  ;;  %v1891_v14 = vpop.f32.mrf.mxu1 }
 0x186   : > { %v2257_v2 = vadd.f32 %v2207_v63, %v1887_v27  ;;  %7119 = vmatmul.msk.bf16.gmra.mxu0 %vm1554_vm8, %v8505_v13 }
 0x188   : > { %7175 = vmatmul.msk.bf16.gmra.mxu3 %vm1554_vm8, %v8547_v23  ;;  %7138 = vmatmul.msk.bf16.gmra.mxu1 %vm1554_vm8, %v8531_v45 }
 0x18b   : > { %v1668_v28 = vpop.f32.mrf.mxu0  ;;  %v2341_v52 = vpop.f32.mrf.mxu3 }
 0x18c   : > { %v1889_v18 = vadd.f32 %v1888_v44, %v1668_v28  ;;  %v8989_v60 = vadd.f32 %v2341_v52, %v2257_v2 }
 0x18d   : > { %v2209_v29 = vpop.f32.mrf.mxu2  ;;  %v1893_v36 = vpop.f32.mrf.mxu1 }
 0x18e   : > { %v2258_v58 = vadd.f32 %v2209_v29, %v1889_v18  ;;  %v7921_v29 = vld [vmem:[#allocation2 + $0x48] sm:$0xff] }
 0x192   : > { %7159 = vmatmul.msk.bf16.gmra.mxu2 %vm1554_vm8, %v7920_v24 }
 0x193   : > { %v1671_v7 = vpop.f32.mrf.mxu0  ;;  %v2343_v15 = vpop.f32.mrf.mxu3 }
 0x194   : > { %v1892_v13 = vadd.f32 %v1891_v14, %v1671_v7  ;;  %v8992_v4 = vadd.f32 %v2343_v15, %v2258_v58 }
 0x195   : > { %v2212_v25 = vpop.f32.mrf.mxu2  ;;  %v1896_v44 = vpop.f32.mrf.mxu1 }
 0x196   : > { %v2259_v27 = vadd.f32 %v2212_v25, %v1892_v13  ;;  %7120 = vmatmul.msk.bf16.gmra.mxu0 %vm1554_vm8, %v8547_v23 }
 0x198   : > { %7176 = vmatmul.msk.bf16.gmra.mxu3 %vm1554_vm8, %v8568_v6  ;;  %7139 = vmatmul.msk.bf16.gmra.mxu1 %vm1554_vm8, %v8566_v55 }
 0x19b   : > { %v1673_v33 = vpop.f32.mrf.mxu0  ;;  %v2346_v2 = vpop.f32.mrf.mxu3 }
 0x19c   : > { %v1894_v63 = vadd.f32 %v1893_v36, %v1673_v33  ;;  %v9000_v14 = vadd.f32 %v2346_v2, %v2259_v27 }
 0x19d   : > { %v2214_v28 = vpop.f32.mrf.mxu2  ;;  %v1898_v52 = vpop.f32.mrf.mxu1 }
 0x19e   : > { %v2260_v18 = vadd.f32 %v2214_v28, %v1894_v63 }
 0x1a2   : > { %7160 = vmatmul.msk.bf16.gmra.mxu2 %vm1554_vm8, %v7921_v29 }
 0x1a3   : > { %v1676_v58 = vpop.f32.mrf.mxu0  ;;  %v2348_v24 = vpop.f32.mrf.mxu3 }
 0x1a4   : > { %v1897_v23 = vadd.f32 %v1896_v44, %v1676_v58  ;;  %v9003_v13 = vadd.f32 %v2348_v24, %v2260_v18  ;;  %v7922_v18 = vld [vmem:[#allocation2 + $0x54] sm:$0xff] }
 0x1a5   : > { %v2217_v7 = vpop.f32.mrf.mxu2  ;;  %v1901_v36 = vpop.f32.mrf.mxu1 }
 0x1a6   : > { %v2261_v15 = vadd.f32 %v2217_v7, %v1897_v23  ;;  %7121 = vmatmul.msk.bf16.gmra.mxu0 %vm1554_vm8, %v8568_v6 }
 0x1a8   : > { %7177 = vmatmul.msk.bf16.gmra.mxu3 %vm1554_vm8, %v8606_v19  ;;  %7140 = vmatmul.msk.bf16.gmra.mxu1 %vm1554_vm8, %v8601_v0 }
 0x1ab   : > { %v1678_v25 = vpop.f32.mrf.mxu0  ;;  %v2351_v33 = vpop.f32.mrf.mxu3 }
 0x1ac   : > { %v1899_v27 = vadd.f32 %v1898_v52, %v1678_v25  ;;  %v9011_v44 = vadd.f32 %v2351_v33, %v2261_v15 }
 0x1ad   : > { %v2219_v63 = vpop.f32.mrf.mxu2  ;;  %v1903_v28 = vpop.f32.mrf.mxu1 }
 0x1ae   : > { %v2262_v2 = vadd.f32 %v2219_v63, %v1899_v27 }
 0x1b2   : > { %7161 = vmatmul.msk.bf16.gmra.mxu2 %vm1554_vm8, %v7922_v18  ;;  %v7923_v18 = vld [vmem:[#allocation2 + $0x60] sm:$0xff] }
 0x1b3   : > { %v1681_v29 = vpop.f32.mrf.mxu0  ;;  %v2353_v58 = vpop.f32.mrf.mxu3 }
 0x1b4   : > { %v1902_v6 = vadd.f32 %v1901_v36, %v1681_v29  ;;  %v9014_v24 = vadd.f32 %v2353_v58, %v2262_v2 }
 0x1b5   : > { %v2222_v23 = vpop.f32.mrf.mxu2  ;;  %v1906_v52 = vpop.f32.mrf.mxu1 }
 0x1b6   : > { %11180 = vst [vmem:[#allocation35_spill] sm:$0xff] %v9014_v24  ;;  %v2263_v7 = vadd.f32 %v2222_v23, %v1902_v6  ;;  %7122 = vmatmul.msk.bf16.gmra.mxu0 %vm1554_vm8, %v8606_v19 }
 0x1b8   : > { %7178 = vmatmul.msk.bf16.gmra.mxu3 %vm1554_vm8, %v8634_v17  ;;  %7141 = vmatmul.msk.bf16.gmra.mxu1 %vm1554_vm8, %v8632_v61 }
 0x1bb   : > { %v1683_v15 = vpop.f32.mrf.mxu0  ;;  %v2356_v27 = vpop.f32.mrf.mxu3 }
 0x1bc   : > { %v1904_v25 = vadd.f32 %v1903_v28, %v1683_v15  ;;  %v9022_v36 = vadd.f32 %v2356_v27, %v2263_v7 }
 0x1bd   : > { %v2224_v33 = vpop.f32.mrf.mxu2  ;;  %v1908_v2 = vpop.f32.mrf.mxu1 }
 0x1be   : > { %v2264_v63 = vadd.f32 %v2224_v33, %v1904_v25 }
 0x1c2   : > { %7162 = vmatmul.msk.bf16.gmra.mxu2 %vm1554_vm8, %v7923_v18  ;;  %v7924_v18 = vld [vmem:[#allocation2 + $0x6c] sm:$0xff] }
 0x1c3   : > { %v1686_v29 = vpop.f32.mrf.mxu0  ;;  %v2358_v6 = vpop.f32.mrf.mxu3 }
 0x1c4   : > { %v1907_v19 = vadd.f32 %v1906_v52, %v1686_v29  ;;  %v9025_v23 = vadd.f32 %v2358_v6, %v2264_v63 }
 0x1c5   : > { %v2227_v58 = vpop.f32.mrf.mxu2  ;;  %v1911_v28 = vpop.f32.mrf.mxu1 }
 0x1c6   : > { %11181 = vst [vmem:[#allocation36_spill] sm:$0xff] %v9025_v23  ;;  %v2265_v24 = vadd.f32 %v2227_v58, %v1907_v19  ;;  %7123 = vmatmul.msk.bf16.gmra.mxu0 %vm1554_vm8, %v8634_v17 }
 0x1c8   : > { %7179 = vmatmul.msk.bf16.gmra.mxu3 %vm1554_vm8, %v8663_v37  ;;  %7142 = vmatmul.msk.bf16.gmra.mxu1 %vm1554_vm8, %v8661_v20 }
 0x1cb   : > { %v1688_v7 = vpop.f32.mrf.mxu0  ;;  %v2361_v25 = vpop.f32.mrf.mxu3 }
 0x1cc   : > { %v1909_v15 = vadd.f32 %v1908_v2, %v1688_v7  ;;  %v9033_v52 = vadd.f32 %v2361_v25, %v2265_v24 }
 0x1cd   : > { %v2229_v27 = vpop.f32.mrf.mxu2  ;;  %v1913_v63 = vpop.f32.mrf.mxu1 }
 0x1ce   : > { %v2266_v33 = vadd.f32 %v2229_v27, %v1909_v15 }
 0x1d2   : > { %7163 = vmatmul.msk.bf16.gmra.mxu2 %vm1554_vm8, %v7924_v18  ;;  %v7925_v18 = vld [vmem:[#allocation2 + $0x78] sm:$0xff] }
 0x1d3   : > { %v1691_v29 = vpop.f32.mrf.mxu0  ;;  %v2363_v19 = vpop.f32.mrf.mxu3 }
 0x1d4   : > { %v1912_v17 = vadd.f32 %v1911_v28, %v1691_v29  ;;  %v9036_v58 = vadd.f32 %v2363_v19, %v2266_v33 }
 0x1d5   : > { %v2232_v6 = vpop.f32.mrf.mxu2  ;;  %v2587_v2 = vpop.f32.mrf.mxu1 }
 0x1d6   : > { %v2267_v23 = vadd.f32 %v2232_v6, %v1912_v17  ;;  %7124 = vmatmul.msk.bf16.gmra.mxu0 %vm1554_vm8, %v8663_v37  ;;  %v1839_v37 = vadd.f32 %v8659_v5, %v8680_v8  ;;  %v11183_v5 = vld [vmem:[#allocation20_spill] sm:$0xff] }
 0x1d8   : > { %7180 = vmatmul.msk.bf16.gmra.mxu3 %vm1554_vm8, %v8702_v62  ;;  %7143 = vmatmul.msk.bf16.gmra.mxu1 %vm1554_vm8, %v8694_v21 }
 0x1db   : > { %v1693_v24 = vpop.f32.mrf.mxu0  ;;  %v2366_v15 = vpop.f32.mrf.mxu3 }
 0x1dc   : > { %v1914_v7 = vadd.f32 %v1913_v63, %v1693_v24  ;;  %v9044_v28 = vadd.f32 %v2366_v15, %v2267_v23  ;;  %v2238_v23 = vadd.f32 %v8686_v22, %v1839_v37 }
 0x1dd   : > { %v2234_v25 = vpop.f32.mrf.mxu2  ;;  %v2589_v33 = vpop.f32.mrf.mxu1 }
 0x1de   : > { %v2268_v27 = vadd.f32 %v2234_v25, %v1914_v7  ;;  %v2372_v15 = vadd.f32 %v8710_v30, %v2238_v23  ;;  %v11182_v25 = vld [vmem:[#allocation22_spill] sm:$0xff]  ;;  %v11185_v30 = vld [vmem:[#allocation21_spill] sm:$0xff] }
 0x1e2   : > { %7164 = vmatmul.msk.bf16.gmra.mxu2 %vm1554_vm8, %v7925_v18 }
 0x1e3   : > { %v2447_v29 = vpop.f32.mrf.mxu0  ;;  %v2368_v19 = vpop.f32.mrf.mxu3 }
 0x1e4   : > { %v2527_v17 = vadd.f32 %v2447_v29, %v8697_v31  ;;  %v9050_v21 = vadd.f32 %v2368_v19, %v2268_v27 }
 0x1e5   : > { %v2721_v6 = vpop.f32.mrf.mxu2  ;;  %v2592_v7 = vpop.f32.mrf.mxu1 }
 0x1e6   : > { %v2667_v63 = vadd.f32 %v2587_v2, %v2527_v17  ;;  %7125 = vmatmul.msk.bf16.gmra.mxu0 %vm1554_vm8, %v8702_v62  ;;  %v11184_v17 = vld [vmem:[#allocation24_spill] sm:$0xff] }
 0x1e8   : > { %v2801_v24 = vadd.f32 %v2721_v6, %v2667_v63  ;;  %7181 = vmatmul.msk.bf16.gmra.mxu3 %vm1554_vm8, %v11182_v25  ;;  %7144 = vmatmul.msk.bf16.gmra.mxu1 %vm1554_vm8, %v11183_v5 }
 0x1eb   : > { %v2449_v8 = vpop.f32.mrf.mxu0  ;;  %v2877_v27 = vpop.f32.mrf.mxu3 }
 0x1ec   : > { %v2528_v31 = vadd.f32 %v2449_v8, %v2372_v15  ;;  %v9060_v2 = vadd.f32 %v2877_v27, %v2801_v24  ;;  %v11187_v24 = vld [vmem:[#allocation27_spill] sm:$0xff] }
 0x1ed   : > { %v2723_v18 = vpop.f32.mrf.mxu2  ;;  %v2594_v22 = vpop.f32.mrf.mxu1 }
 0x1ee   : > { %v2668_v29 = vadd.f32 %v2589_v33, %v2528_v31  ;;  %v11188_v33 = vld [vmem:[#allocation25_spill] sm:$0xff]  ;;  %v11189_v31 = vld [vmem:[#allocation23_spill] sm:$0xff] }
 0x1f0   : > { %v2802_v62 = vadd.f32 %v2723_v18, %v2668_v29 }
 0x1f2   : > { %7165 = vmatmul.msk.bf16.gmra.mxu2 %vm1554_vm8, %v11184_v17 }
 0x1f3   : > { %v2452_v37 = vpop.f32.mrf.mxu0  ;;  %v2879_v6 = vpop.f32.mrf.mxu3 }
 0x1f4   : > { %v2529_v19 = vadd.f32 %v2452_v37, %v11185_v30  ;;  %v9065_v23 = vadd.f32 %v2879_v6, %v2802_v62  ;;  %v11190_v30 = vld [vmem:[#allocation29_spill] sm:$0xff] }
 0x1f5   : > { %v2726_v63 = vpop.f32.mrf.mxu2  ;;  %v2597_v18 = vpop.f32.mrf.mxu1 }
 0x1f6   : > { %11186 = vst [vmem:[#allocation22_spill] sm:$0xff] %v9065_v23  ;;  %v2669_v5 = vadd.f32 %v2592_v7, %v2529_v19  ;;  %7126 = vmatmul.msk.bf16.gmra.mxu0 %vm1554_vm8, %v11182_v25 }
 0x1f8   : > { %v2803_v15 = vadd.f32 %v2726_v63, %v2669_v5  ;;  %7182 = vmatmul.msk.bf16.gmra.mxu3 %vm1554_vm8, %v11187_v24  ;;  %7145 = vmatmul.msk.bf16.gmra.mxu1 %vm1554_vm8, %v11188_v33  ;;  %v11191_v5 = vld [vmem:[#allocation26_spill] sm:$0xff] }
 0x1fb   : > { %v2454_v8 = vpop.f32.mrf.mxu0  ;;  %v2882_v29 = vpop.f32.mrf.mxu3 }
 0x1fc   : > { %v2530_v27 = vadd.f32 %v2454_v8, %v11189_v31  ;;  %v9074_v37 = vadd.f32 %v2882_v29, %v2803_v15  ;;  %v11192_v15 = vld [vmem:[#allocation28_spill] sm:$0xff] }
 0x1fd   : > { %v2728_v17 = vpop.f32.mrf.mxu2  ;;  %v2599_v8 = vpop.f32.mrf.mxu1 }
 0x1fe   : > { %v2670_v62 = vadd.f32 %v2594_v22, %v2530_v27 }
 0x200   : > { %v2804_v7 = vadd.f32 %v2728_v17, %v2670_v62 }
 0x202   : > { %7166 = vmatmul.msk.bf16.gmra.mxu2 %vm1554_vm8, %v11190_v30 }
 0x203   : > { %v2457_v25 = vpop.f32.mrf.mxu0  ;;  %v2884_v6 = vpop.f32.mrf.mxu3 }
 0x204   : > { %v2531_v19 = vadd.f32 %v2457_v25, %v11191_v5  ;;  %v9079_v23 = vadd.f32 %v2884_v6, %v2804_v7  ;;  %v11193_v25 = vld [vmem:[#allocation33_spill] sm:$0xff]  ;;  %v11194_v5 = vld [vmem:[#allocation30_spill] sm:$0xff] }
 0x205   : > { %v2731_v63 = vpop.f32.mrf.mxu2  ;;  %v2602_v30 = vpop.f32.mrf.mxu1 }
 0x206   : > { %v2671_v33 = vadd.f32 %v2597_v18, %v2531_v19  ;;  %7127 = vmatmul.msk.bf16.gmra.mxu0 %vm1554_vm8, %v11187_v24 }
 0x208   : > { %v2805_v31 = vadd.f32 %v2731_v63, %v2671_v33  ;;  %7183 = vmatmul.msk.bf16.gmra.mxu3 %vm1554_vm8, %v8829_v46  ;;  %7146 = vmatmul.msk.bf16.gmra.mxu1 %vm1554_vm8, %v8821_v26  ;;  %v895_v33 = vrot.slane %v8870_v41, 4 }
 0x20b   : > { %v2459_v22 = vpop.f32.mrf.mxu0  ;;  %v2887_v29 = vpop.f32.mrf.mxu3 }
 0x20c   : > { %v2532_v27 = vadd.f32 %v2459_v22, %v11192_v15  ;;  %v9088_v62 = vadd.f32 %v2887_v29, %v2805_v31  ;;  %v1059_v31 = vld [vmem:[#allocation2 + $0xc8] sm:$0x1] }
 0x20d   : > { %v2733_v17 = vpop.f32.mrf.mxu2  ;;  %v2604_v29 = vpop.f32.mrf.mxu1 }
 0x20e   : > { %v2672_v7 = vadd.f32 %v2599_v8, %v2532_v27  ;;  %v1060_v27 = vsel %vm8395_vm15, %v895_v33, %v1059_v31  ;;  %v1111_v31 = vld [vmem:[#allocation2 + $0xc4] sm:$0xf]  ;;  %vm3905_vm15 = vcmask 1045509  }
 0x20f   : > { %1061 = vst [vmem:[#allocation2 + $0xc8] sm:$0x1] %v1060_v27  ;;  %v2413_v15 = vshll.u32 %v1111_v31, 16  ;;  %v2417_v27 = vshrl.u32 %v1111_v31, 16 }
 0x210   : > { %v2806_v18 = vadd.f32 %v2733_v17, %v2672_v7  ;;  %v11196_v17 = vld [vmem:[#allocation32_spill] sm:$0xff] }
 0x212   : > { %7167 = vmatmul.msk.bf16.gmra.mxu2 %vm1554_vm8, %v11193_v25 }
 0x213   : > { %v2462_v24 = vpop.f32.mrf.mxu0  ;;  %v2889_v6 = vpop.f32.mrf.mxu3 }
 0x214   : > { %v2533_v19 = vadd.f32 %v2462_v24, %v11194_v5  ;;  %v9094_v26 = vadd.f32 %v2889_v6, %v2806_v18 }
 0x215   : > { %v2736_v63 = vpop.f32.mrf.mxu2 }
 0x216   : > { %v2673_v22 = vadd.f32 %v2602_v30, %v2533_v19  ;;  %7128 = vmatmul.msk.bf16.gmra.mxu0 %vm1554_vm8, %v8829_v46 }
 0x218   : > { %v2807_v8 = vadd.f32 %v2736_v63, %v2673_v22  ;;  %7184 = vmatmul.msk.bf16.gmra.mxu3 %vm1554_vm8, %v8865_v3  ;;  %7147 = vmatmul.msk.bf16.gmra.mxu1 %vm1554_vm8, %v8861_v16  ;;  %v1110_v22 = vld [vmem:[#allocation2 + $0xc0] sm:$0xf] }
 0x21b   : > { %v2464_v41 = vpop.f32.mrf.mxu0  ;;  %v2892_v18 = vpop.f32.mrf.mxu3 }
 0x21c   : > { %v2534_v7 = vadd.f32 %v2464_v41, %v11196_v17  ;;  %v9105_v25 = vadd.f32 %v2892_v18, %v2807_v8  ;;  %v2407_v8 = vshll.u32 %v1110_v22, 16  ;;  %v2419_v17 = vrot.slane %v2417_v27, 4  ;;  %v1112_v18 = vld [vmem:[#allocation2 + $0xc8] sm:$0x1]  ;;  %v9134_v27 = vld [vmem:[#allocation2 + $0xcc] sm:$0xf] }
 0x21d   : > { %v2738_v30 = vpop.f32.mrf.mxu2  ;;  %11197 = vst [vmem:[#allocation24_spill] sm:$0xff] %v9134_v27 }
 0x21e   : > { %v2674_v46 = vadd.f32 %v2604_v29, %v2534_v7  ;;  %v2409_v41 = vrot.slane %v2407_v8, 5  ;;  %v2415_v29 = vrot.slane %v2413_v15, 5  ;;  %v7133_v8 = vrot.slane %v1110_v22, 9 }
 0x21f   : > { %v2565_v15 = vrot.slane %v1112_v18, 5 }
 0x220   : > { %v2808_v24 = vadd.f32 %v2738_v30, %v2674_v46  ;;  %v2420_v46 = vor.u32 %v2419_v17, %v2415_v29  ;;  %v2834_v17 = vshrl.u32 %v9134_v27, 16 }
 0x222   : > { %7168 = vmatmul.msk.bf16.gmra.mxu2 %vm1554_vm8, %v8879_v12 }
 0x223   : > { %v2467_v33 = vpop.f32.mrf.mxu0  ;;  %v2894_v19 = vpop.f32.mrf.mxu3 }
 0x224   : > { %v9110_v5 = vadd.f32 %v2467_v33, %v8863_v10  ;;  %v9112_v6 = vadd.f32 %v2894_v19, %v2808_v24  ;;  %v2404_v10 = vshrl.u32 %v1110_v22, 16  ;;  %v2423_v24 = vshll.u32 %v1112_v18, 16 }
 0x225   : > { %v2562_v33 = vrot.slane %v1111_v31, 5  ;;  %v2421_v19 = vrot.slane %v2420_v46, 4 }
 0x226   : > { %7129 = vmatmul.msk.bf16.gmra.mxu0 %vm1554_vm8, %v8865_v3  ;;  %v2406_v3 = vrot.slane %v2404_v10, 4 }
 0x227   : > { %v2563_v22 = vsel %vm8254_vm7, %v7133_v8, %v2562_v33  ;;  %v9158_v8 = vld [vmem:[#allocation2 + $0xd4] sm:$0x1] }
 0x228   : > { %7185 = vmatmul.msk.bf16.gmra.mxu3 %vm1554_vm8, %v8914_v51  ;;  %7148 = vmatmul.msk.bf16.gmra.mxu1 %vm1554_vm8, %v8898_v35  ;;  %11198 = vst [vmem:[#allocation21_spill] sm:$0xff] %v9158_v8 }
 0x22b   : > { %v2469_v63 = vpop.f32.mrf.mxu0 }
 0x22c   : > { %v9121_v12 = vadd.f32 %v2469_v63, %v8875_v40  ;;  %v2410_v40 = vor.u32 %v2409_v41, %v2406_v3  ;;  %v2425_v63 = vrot.slane %v2423_v24, 5  ;;  %v9139_v3 = vld [vmem:[#allocation2 + $0xd0] sm:$0xf]  ;;  %v2569_v24 = vunpack.c.l.b16 %v2563_v22 }
 0x22e   : > { %v2426_v41 = vsel %vm8279_vm9, %v2421_v19, %v2425_v63  ;;  %v2836_v63 = vrot.slane %v2834_v17, 4 }
 0x22f   : > { %v2430_v46 = vunpack.c.l.b16 %v2426_v41  ;;  %v2853_v41 = vshll.u32 %v9158_v8, 16 }
 0x231   : > { %v2855_v22 = vrot.slane %v2853_v41, 5 }
 0x232   : > { %7169 = vmatmul.msk.bf16.gmra.mxu2 %vm1554_vm8, %v8920_v42  ;;  %v2411_v42 = vrot.slane %v2410_v40, 4  ;;  %v2847_v40 = vshrl.u32 %v9139_v3, 16 }
 0x233   : > { %v2472_v7 = vpop.f32.mrf.mxu0 }
 0x234   : > { %v9126_v30 = vadd.f32 %v2472_v7, %v8896_v53  ;;  %v2564_v53 = vrot.slane %v2562_v33, 4  ;;  %v2416_v31 = vsel %vm8279_vm9, %v2411_v42, %v2415_v29  ;;  %v2837_v7 = vshll.u32 %v9134_v27, 16 }
 0x235   : > { %v2429_v29 = vunpack.c.l.b16 %v2416_v31 }
 0x236   : > { %7130 = vmatmul.msk.bf16.gmra.mxu0 %vm1554_vm8, %v8914_v51  ;;  %v2566_v18 = vsel %vm8254_vm7, %v2564_v53, %v2565_v15 }
 0x237   : > { %v2570_v42 = vunpack.c.l.b16 %v2566_v18  ;;  %v2431_v53 = vpack.c.b16 %v2430_v46, %v2429_v29 }
 0x238   : > { %7186 = vmatmul.msk.bf16.gmra.mxu3 %vm1554_vm8, %v8944_v48  ;;  %7149 = vmatmul.msk.bf16.gmra.mxu1 %vm1554_vm8, %v8938_v34  ;;  %v2849_v34 = vrot.slane %v2847_v40, 4 }
 0x239   : > { %v9162_v15 = vpack.c.b16 %v2570_v42, %v2569_v24 }
 0x23b   : > { %v2474_v10 = vpop.f32.mrf.mxu0  ;;  %11199 = vst [vmem:[#allocation27_spill] sm:$0xff] %v9162_v15 }
 0x23c   : > { %v9137_v51 = vadd.f32 %v2474_v10, %v8916_v56  ;;  %v2843_v56 = vshll.u32 %v9139_v3, 16  ;;  %v2839_v10 = vrot.slane %v2837_v7, 5 }
 0x23e   : > { %v2845_v27 = vrot.slane %v2843_v56, 5 }
 0x240   : > { %v2850_v31 = vor.u32 %v2849_v34, %v2845_v27 }
 0x242   : > { %7170 = vmatmul.msk.bf16.gmra.mxu2 %vm1554_vm8, %v8950_v38  ;;  %v2840_v38 = vor.u32 %v2839_v10, %v2836_v63  ;;  %v2851_v7 = vrot.slane %v2850_v31, 4 }
 0x243   : > { %v2477_v19 = vpop.f32.mrf.mxu0 }
 0x244   : > { %v9156_v33 = vadd.f32 %v2477_v19, %v8940_v50  ;;  %v2841_v50 = vrot.slane %v2840_v38, 4  ;;  %v2856_v34 = vsel %vm8279_vm9, %v2851_v7, %v2855_v22 }
 0x245   : > { %v2860_v29 = vunpack.c.l.b16 %v2856_v34 }
 0x246   : > { %7131 = vmatmul.msk.bf16.gmra.mxu0 %vm1554_vm8, %v8944_v48  ;;  %v7777_v48 = vld [vmem:[#allocation2 + $0xcc] sm:$0xff]  ;;  %v2846_v56 = vsel %vm8279_vm9, %v2841_v50, %v2845_v27 }
 0x247   : > { %v2859_v40 = vunpack.c.l.b16 %v2846_v56 }
 0x248   : > { %7187 = vmatmul.msk.bf16.gmra.mxu3 %vm1554_vm8, %v2431_v53  ;;  %7150 = vmatmul.msk.bf16.gmra.mxu1 %vm1554_vm8, %v9162_v15 }
 0x249   : > { %v2861_v42 = vpack.c.b16 %v2860_v29, %v2859_v40 }
 0x24b   : > { %v2479_v17 = vpop.f32.mrf.mxu0 }
 0x24c   : > { %v9169_v18 = vadd.f32 %v2479_v17, %v8946_v39 }
 0x252   : > { %7171 = vmatmul.msk.bf16.gmra.mxu2 %vm1554_vm8, %v7777_v48  ;;  %v11211_v48 = vld [vmem:[#allocation35_spill] sm:$0xff] }
 0x253   : > { %v2482_v46 = vpop.f32.mrf.mxu0 }
 0x254   : > { %v9177_v24 = vadd.f32 %v2482_v46, %v8956_v9  ;;  %v11214_v46 = vld [vmem:[#allocation36_spill] sm:$0xff] }
 0x256   : > { %7132 = vmatmul.msk.bf16.gmra.mxu0 %vm1554_vm8, %v2431_v53 }
 0x258   : > { %7188 = vmatmul.msk.bf16.gmra.mxu3 %vm1554_vm8, %v2861_v42 }
 0x25b   : > { %v2484_v39 = vpop.f32.mrf.mxu0 }
 0x25c   : > { %v9182_v19 = vadd.f32 %v2484_v39, %v8959_v1 }
 0x25e   : > { %11200 = vst [vmem:[#allocation23_spill] sm:$0xff] %v9182_v19 }
 0x263   : > { %v2487_v27 = vpop.f32.mrf.mxu0 }
 0x264   : > { %v9185_v63 = vadd.f32 %v2487_v27, %v8967_v54  ;;  %v9251_v27 = vpop.f32.mrf.mxu2 }
 0x266   : > { %11201 = vst [vmem:[#allocation29_spill] sm:$0xff] %v9185_v63  ;;  %7191 = vmatmul.msk.bf16.vlgmr.msra.gmra.mxu0 %vm1554_vm8, %v8455_v43 }
 0x26b   : > { %v2489_v10 = vpop.f32.mrf.mxu0 }
 0x26c   : > { %v9190_v9 = vadd.f32 %v2489_v10, %v8970_v47 }
 0x26e   : > { %11202 = vst [vmem:[#allocation26_spill] sm:$0xff] %v9190_v9 }
 0x273   : > { %v2492_v38 = vpop.f32.mrf.mxu0 }
 0x274   : > { %v9193_v53 = vadd.f32 %v2492_v38, %v8978_v57 }
 0x276   : > { %11203 = vst [vmem:[#allocation28_spill] sm:$0xff] %v9193_v53  ;;  %7192 = vmatmul.msk.bf16.gmra.mxu0 %vm1554_vm8, %v8500_v59  ;;  %v4109_v59 = vld [vmem:[%s11208_s2] sm:$0xf] }
 0x27b   : > { %v2494_v1 = vpop.f32.mrf.mxu0 }
 0x27c   : > { %v9198_v31 = vadd.f32 %v2494_v1, %v8981_v49  ;;  %v4314_v49 = vsel %vm4248_vm1, %v4109_v59, 0 }
 0x27d   : > { %4323 = vmatpush.bf16.msra.mxu2 %v4314_v49 }
 0x27e   : > { %11204 = vst [vmem:[#allocation33_spill] sm:$0xff] %v9198_v31 }
 0x283   : > { %v2497_v54 = vpop.f32.mrf.mxu0 }
 0x284   : > { %v9201_v41 = vadd.f32 %v2497_v54, %v8989_v60 }
 0x286   : > { %11205 = vst [vmem:[#allocation30_spill] sm:$0xff] %v9201_v41  ;;  %7193 = vmatmul.msk.bf16.gmra.mxu0 %vm1554_vm8, %v8531_v45 }
 0x28b   : > { %v2499_v43 = vpop.f32.mrf.mxu0 }
 0x28c   : > { %v9206_v47 = vadd.f32 %v2499_v43, %v8992_v4  ;;  %v7288_v4 = vld [vmem:[%s11208_s2 + $0x8] sm:$0xf] }
 0x28e   : > { %11206 = vst [vmem:[#allocation18_spill] sm:$0xff] %v9206_v47 }
 0x293   : > { %v2502_v57 = vpop.f32.mrf.mxu0 }
 0x294   : > { %v9209_v17 = vadd.f32 %v2502_v57, %v9000_v14  ;;  %v4412_v14 = vsel %vm4248_vm1, %v7288_v4, 0 }
 0x295   : > { %4421 = vmatpush.bf16.msra.mxu3 %v4412_v14 }
 0x296   : > { %11207 = vst [vmem:[#allocation32_spill] sm:$0xff] %v9209_v17  ;;  %7194 = vmatmul.msk.bf16.gmra.mxu0 %vm1554_vm8, %v8566_v55  ;;  %v7271_v55 = vld [vmem:[%s11208_s2 + $0x4] sm:$0xf] }
 0x297   : > { %v4250_v50 = vsel %vm4248_vm1, %v7271_v55, 0 }
 0x298   : > { %4259 = vmatpush.bf16.msra.mxu1 %v4250_v50  ;;  %v11222_v50 = vld [vmem:[#allocation20_spill] sm:$0xff] }
 0x29b   : > { %v2504_v45 = vpop.f32.mrf.mxu0 }
 0x29c   : > { %v9218_v60 = vadd.f32 %v2504_v45, %v9003_v13 }
 0x29e   : > { %11209 = vst [vmem:[#allocation37_spill] sm:$0xff] %v9218_v60 }
 0x2a3   : > { %v2507_v7 = vpop.f32.mrf.mxu0 }
 0x2a4   : > { %v9229_v22 = vadd.f32 %v2507_v7, %v9011_v44 }
 0x2a6   : > { %11210 = vst [vmem:[#allocation38_spill] sm:$0xff] %v9229_v22  ;;  %7195 = vmatmul.msk.bf16.gmra.mxu0 %vm1554_vm8, %v8601_v0  ;;  %v9249_v0 = vpop.f32.mrf.mxu1 }
 0x2ab   : > { %v2509_v13 = vpop.f32.mrf.mxu0 }
 0x2ac   : > { %v9234_v56 = vadd.f32 %v2509_v13, %v11211_v48  ;;  %v9298_v48 = vld [vmem:[%s11221_s6 + $0x2] ss:$0 sm:$0xff] }
 0x2ae   : > { %11212 = vst [vmem:[#allocation35_spill] sm:$0xff] %v9234_v56  ;;  %v9258_v1 = vpop.f32.mrf.mxu1 }
 0x2b3   : > { %v2512_v34 = vpop.f32.mrf.mxu0 }
 0x2b4   : > { %v9237_v40 = vadd.f32 %v2512_v34, %v9022_v36 }
 0x2b6   : > { %11213 = vst [vmem:[#allocation39_spill] sm:$0xff] %v9237_v40  ;;  %7196 = vmatmul.msk.bf16.gmra.mxu0 %vm1554_vm8, %v8632_v61  ;;  %v9256_v61 = vpop.f32.mrf.mxu3  ;;  %v9272_v59 = vpop.f32.mrf.mxu1 }
 0x2bb   : > { %v2514_v29 = vpop.f32.mrf.mxu0 }
 0x2bc   : > { %v9242_v42 = vadd.f32 %v2514_v29, %v11214_v46 }
 0x2be   : > { %11215 = vst [vmem:[#allocation36_spill] sm:$0xff] %v9242_v42  ;;  %v9267_v43 = vpop.f32.mrf.mxu3  ;;  %v9292_v7 = vpop.f32.mrf.mxu1 }
 0x2c3   : > { %v2517_v44 = vpop.f32.mrf.mxu0 }
 0x2c4   : > { %v9245_v39 = vadd.f32 %v2517_v44, %v9033_v52  ;;  %v9263_v52 = vpop.f32.mrf.mxu2 }
 0x2c6   : > { %11216 = vst [vmem:[#allocation40_spill] sm:$0xff] %v9245_v39  ;;  %7197 = vmatmul.msk.bf16.gmra.mxu0 %vm1554_vm8, %v8661_v20  ;;  %v11219_v20 = vld [vmem:[#allocation19_spill] sm:$0xff]  ;;  %v9276_v45 = vpop.f32.mrf.mxu3 }
 0x2cb   : > { %v2519_v36 = vpop.f32.mrf.mxu0 }
 0x2cc   : > { %v9254_v10 = vadd.f32 %v2519_v36, %v9036_v58  ;;  %v9274_v49 = vpop.f32.mrf.mxu2  ;;  %v11224_v36 = vld [vmem:[#allocation22_spill] sm:$0xff] }
 0x2ce   : > { %11217 = vst [vmem:[#allocation41_spill] sm:$0xff] %v9254_v10  ;;  %v9303_v29 = vpop.f32.mrf.mxu3 }
 0x2d3   : > { %v2522_v38 = vpop.f32.mrf.mxu0 }
 0x2d4   : > { %v9261_v54 = vadd.f32 %v2522_v38, %v9044_v28  ;;  %v9281_v28 = vld [vmem:[%s11221_s6] ss:$0 sm:$0xff] }
 0x2d6   : > { %11218 = vst [vmem:[#allocation42_spill] sm:$0xff] %v9261_v54  ;;  %7198 = vmatmul.msk.bf16.gmra.mxu0 %vm1554_vm8, %v11219_v20 }
 0x2db   : > { %v2524_v57 = vpop.f32.mrf.mxu0 }
 0x2dc   : > { %v9270_v58 = vadd.f32 %v2524_v57, %v9050_v21  ;;  %v9288_v21 = vld [vmem:[%s11221_s6 + $0x1] ss:$0 sm:$0xff]  ;;  %v11225_v57 = vmov 0  }
 0x2dd   : > { %3684 = vst.msk [vmem:[#allocation3 + $0x8] sm:$0xf] %vm3680_vm3, %v11225_v57 }
 0x2de   : > { %11220 = vst [vmem:[#allocation19_spill] sm:$0xff] %v9270_v58 }
 0x2df   : > { %3685 = vst.msk [vmem:[#allocation3 + $0xc] sm:$0x1] %vm3682_vm4, %v11225_v57 }
 0x2e0   : > { %3681 = vst.msk [vmem:[#allocation3] sm:$0xf] %vm3680_vm3, %v11225_v57 }
 0x2e1   : > { %3683 = vst.msk [vmem:[#allocation3 + $0x4] sm:$0x1] %vm3682_vm4, %v11225_v57 }
 0x2e2   : > { %3686 = vst.msk [vmem:[#allocation3 + $0x10] sm:$0xf] %vm3680_vm3, %v11225_v57 }
 0x2e3   : > { %v3017_v4 = vpop.f32.mrf.mxu0  ;;  %3687 = vst.msk [vmem:[#allocation3 + $0x14] sm:$0x1] %vm3682_vm4, %v11225_v57 }
 0x2e4   : > { %v3097_v55 = vadd.f32 %v3017_v4, %v9060_v2  ;;  %v9300_v2 = vpop.f32.mrf.mxu2  ;;  %3688 = vst.msk [vmem:[#allocation3 + $0x18] sm:$0xf] %vm3680_vm3, %v11225_v57 }
 0x2e5   : > { %3689 = vst.msk [vmem:[#allocation3 + $0x1c] sm:$0x1] %vm3682_vm4, %v11225_v57 }
 0x2e6   : > { %v3133_v14 = vadd.f32 %v9281_v28, %v3097_v55  ;;  %7199 = vmatmul.msk.bf16.gmra.mxu0 %vm1554_vm8, %v11222_v50  ;;  %v9321_v55 = vpop.f32.mrf.mxu1  ;;  %3690 = vst.msk [vmem:[#allocation3 + $0x20] sm:$0xf] %vm3680_vm3, %v11225_v57 }
 0x2e7   : > { %3691 = vst.msk [vmem:[#allocation3 + $0x24] sm:$0x1] %vm3682_vm4, %v11225_v57 }
 0x2e8   : > { %v3165_v13 = vmax.f32 %v3133_v14, 0.0  ;;  %3692 = vst.msk [vmem:[#allocation3 + $0x28] sm:$0xf] %vm3680_vm3, %v11225_v57 }
 0x2e9   : > { %5616 = vst.msk [vmem:[#allocation5] sm:$0x3] %vm11124_vm5, %v11225_v57 }
 0x2ea   : > { %v3198_v34 = vmul.f32 %v9288_v21, %v3165_v13  ;;  %3693 = vst.msk [vmem:[#allocation3 + $0x2c] sm:$0x1] %vm3682_vm4, %v11225_v57 }
 0x2eb   : > { %v3019_v46 = vpop.f32.mrf.mxu0  ;;  %3694 = vst.msk [vmem:[#allocation3 + $0x30] sm:$0xf] %vm3680_vm3, %v11225_v57 }
 0x2ec   : > { %v3231_v44 = vadd.f32 %v9298_v48, %v3198_v34  ;;  %v3098_v38 = vadd.f32 %v3019_v46, %v11224_v36  ;;  %v9326_v50 = vpop.f32.mrf.mxu2  ;;  %v9334_v36 = vpop.f32.mrf.mxu3  ;;  %3695 = vst.msk [vmem:[#allocation3 + $0x34] sm:$0x1] %vm3682_vm4, %v11225_v57 }
 0x2ed   : > { %3696 = vst.msk [vmem:[#allocation3 + $0x38] sm:$0xf] %vm3680_vm3, %v11225_v57 }
 0x2ee   : > { %3264 = vst.msk [vmem:[%s9308_s23] sm:$0xff] %vm3263_vm2, %v3231_v44  ;;  %v3134_v20 = vadd.f32 %v9281_v28, %v3098_v38 }
 0x2ef   : > { %3697 = vst.msk [vmem:[#allocation3 + $0x3c] sm:$0x1] %vm3682_vm4, %v11225_v57 }
 0x2f0   : > { %v3166_v4 = vmax.f32 %v3134_v20, 0.0  ;;  %v11226_v20 = vld [vmem:[#allocation25_spill] sm:$0xff]  ;;  %3698 = vst.msk [vmem:[#allocation3 + $0x40] sm:$0xf] %vm3680_vm3, %v11225_v57 }
 0x2f1   : > { %3699 = vst.msk [vmem:[#allocation3 + $0x44] sm:$0x1] %vm3682_vm4, %v11225_v57 }
 0x2f2   : > { %v3199_v14 = vmul.f32 %v9288_v21, %v3166_v4  ;;  %3700 = vst.msk [vmem:[#allocation3 + $0x48] sm:$0xf] %vm3680_vm3, %v11225_v57 }
 0x2f3   : > { %v3022_v13 = vpop.f32.mrf.mxu0  ;;  %3701 = vst.msk [vmem:[#allocation3 + $0x4c] sm:$0x1] %vm3682_vm4, %v11225_v57  ;;  %vm9435_vm4 = vmand %vm3680_vm3, %vm11135_vm12  ;;  %vm5103_vm3 = vsmask.f32 5392 }
 0x2f4   : > { %v3232_v34 = vadd.f32 %v9298_v48, %v3199_v14  ;;  %v3099_v46 = vadd.f32 %v3022_v13, %v9074_v37  ;;  %v9354_v13 = vpop.f32.mrf.mxu1  ;;  %v9365_v54 = vpop.f32.mrf.mxu3  ;;  %5617 = vst.msk [vmem:[#allocation5 + $0x2] sm:$0x3] %vm11124_vm5, %v11225_v57 }
 0x2f5   : > { %11227 = vst [vmem:[#allocation20_spill] sm:$0xff] %v9365_v54 }
 0x2f6   : > { %3265 = vst.msk [vmem:[%s9308_s23 + $0x8] sm:$0xff] %vm3263_vm2, %v3232_v34  ;;  %v3135_v38 = vadd.f32 %v9281_v28, %v3099_v46  ;;  %7200 = vmatmul.msk.bf16.gmra.mxu0 %vm1554_vm8, %v11226_v20  ;;  %v9360_v20 = vpop.f32.mrf.mxu2 }
 0x2f7   : > { %5618 = vst.msk [vmem:[#allocation5 + $0x4] sm:$0x3] %vm11124_vm5, %v11225_v57 }
 0x2f8   : > { %v3167_v37 = vmax.f32 %v3135_v38, 0.0  ;;  %5619 = vst.msk [vmem:[#allocation5 + $0x6] sm:$0x3] %vm11124_vm5, %v11225_v57  ;;  %vm3908_vm5 = vcmask 1046534  }
 0x2fa   : > { %v3200_v4 = vmul.f32 %v9288_v21, %v3167_v37 }
 0x2fb   : > { %v3024_v14 = vpop.f32.mrf.mxu0 }
 0x2fc   : > { %v3233_v46 = vadd.f32 %v9298_v48, %v3200_v4  ;;  %v3100_v38 = vadd.f32 %v3024_v14, %v9079_v23 }
 0x2fe   : > { %3266 = vst.msk [vmem:[%s9308_s23 + $0x10] sm:$0xff] %vm3263_vm2, %v3233_v46  ;;  %v3296_v37 = vmax.f32 %v3231_v44, %v3233_v46  ;;  %v3136_v58 = vadd.f32 %v9281_v28, %v3100_v38 }
 0x300   : > { %v3328_v10 = vrot.slane %v3296_v37, 2  ;;  %v3329_v39 = vrot.slane %v3296_v37, 4  ;;  %v3330_v4 = vrot.slane %v3296_v37, 6  ;;  %v7207_v42 = vrot.slane %v3296_v37, 9 }
 0x301   : > { %v3168_v23 = vmax.f32 %v3136_v58, 0.0 }
 0x302   : > { %v7208_v14 = vrot.slane %v3328_v10, 9  ;;  %v7209_v44 = vrot.slane %v3329_v39, 9  ;;  %v7210_v46 = vrot.slane %v3330_v4, 9  ;;  %v3616_v38 = vmax.f32 %v3296_v37, %v7207_v42  ;;  %v9381_v42 = vpop.f32.mrf.mxu1 }
 0x303   : > { %v3201_v40 = vmul.f32 %v9288_v21, %v3168_v23  ;;  %v3027_v56 = vpop.f32.mrf.mxu0 }
 0x304   : > { %v3617_v22 = vmax.f32 %v3328_v10, %v7208_v14  ;;  %v3618_v60 = vmax.f32 %v3329_v39, %v7209_v44  ;;  %v3619_v17 = vmax.f32 %v3330_v4, %v7210_v46  ;;  %v3702_v47 = vpack.c.bf16 %v3616_v38, %v3616_v38  ;;  %v11228_v10 = vld [vmem:[#allocation31_spill] sm:$0xff]  ;;  %v9387_v39 = vpop.f32.mrf.mxu2 }
 0x305   : > { %v3234_v58 = vadd.f32 %v9298_v48, %v3201_v40 }
 0x306   : > { %v3703_v37 = vpack.c.bf16 %v3617_v22, %v3617_v22  ;;  %v3704_v23 = vpack.c.bf16 %v3618_v60, %v3618_v60  ;;  %v3830_v41 = vunpack.c.l.b16 %v3702_v47  ;;  %7201 = vmatmul.msk.bf16.gmra.mxu0 %vm1554_vm8, %v11228_v10  ;;  %v3705_v4 = vpack.c.bf16 %v3619_v17, %v3619_v17  ;;  %v9394_v60 = vpop.f32.mrf.mxu3 }
 0x307   : > { %3267 = vst.msk [vmem:[%s9308_s23 + $0x18] sm:$0xff] %vm3263_vm2, %v3234_v58  ;;  %v3297_v40 = vmax.f32 %v3232_v34, %v3234_v58  ;;  %v3101_v47 = vadd.f32 %v3027_v56, %v9088_v62 }
 0x308   : > { %v3831_v14 = vunpack.c.l.b16 %v3703_v37  ;;  %v3832_v44 = vunpack.c.l.b16 %v3704_v23  ;;  %11229 = vst [vmem:[#allocation22_spill] sm:$0xff] %v9394_v60  ;;  %v3894_v31 = vrot.slane %v3830_v41, 7  ;;  %v3833_v23 = vunpack.c.l.b16 %v3705_v4 }
 0x309   : > { %v3331_v22 = vrot.slane %v3297_v40, 2  ;;  %v3332_v46 = vrot.slane %v3297_v40, 4  ;;  %v3333_v38 = vrot.slane %v3297_v40, 6  ;;  %v7211_v10 = vrot.slane %v3297_v40, 9 }
 0x30a   : > { %v3895_v53 = vrot.slane %v3831_v14, 6  ;;  %v3898_v34 = vrot.slane %v3832_v44, 5  ;;  %v3137_v63 = vadd.f32 %v9281_v28, %v3101_v47  ;;  %v9406_v54 = vpop.f32.mrf.mxu1  ;;  %v3901_v4 = vrot.slane %v3833_v23, 4 }
 0x30b   : > { %v7212_v17 = vrot.slane %v3331_v22, 9  ;;  %v7213_v58 = vrot.slane %v3332_v46, 9  ;;  %v7214_v37 = vrot.slane %v3333_v38, 9  ;;  %v3620_v62 = vmax.f32 %v3297_v40, %v7211_v10  ;;  %v3029_v56 = vpop.f32.mrf.mxu0 }
 0x30c   : > { %v3897_v9 = vsel %vm3896_vm6, %v3895_v53, %v3894_v31  ;;  %v3169_v19 = vmax.f32 %v3137_v63, 0.0  ;;  %v3102_v57 = vadd.f32 %v3029_v56, %v9094_v26  ;;  %v9409_v47 = vpop.f32.mrf.mxu2 }
 0x30d   : > { %v3621_v41 = vmax.f32 %v3331_v22, %v7212_v17  ;;  %v3622_v14 = vmax.f32 %v3332_v46, %v7213_v58  ;;  %v3623_v44 = vmax.f32 %v3333_v38, %v7214_v37  ;;  %v3900_v15 = vsel %vm3899_vm13, %v3898_v34, %v3897_v9 }
 0x30e   : > { %v3706_v8 = vpack.c.bf16 %v3620_v62, %v3620_v62  ;;  %v3202_v31 = vmul.f32 %v9288_v21, %v3169_v19  ;;  %v3138_v63 = vadd.f32 %v9281_v28, %v3102_v57  ;;  %v3903_v38 = vsel %vm3902_vm14, %v3901_v4, %v3900_v15  ;;  %v9420_v17 = vpop.f32.mrf.mxu3 }
 0x30f   : > { %v3707_v60 = vpack.c.bf16 %v3621_v41, %v3621_v41  ;;  %v3708_v40 = vpack.c.bf16 %v3622_v14, %v3622_v14  ;;  %v3709_v10 = vpack.c.bf16 %v3623_v44, %v3623_v44  ;;  %v2675_v44 = vadd.f32 %v9249_v0, %v9110_v5 }
 0x310   : > { %v3834_v53 = vunpack.c.l.b16 %v3706_v8  ;;  %v4044_v8 = vld [vmem:[#allocation3 + $0xc] sm:$0x1]  ;;  %v3235_v19 = vadd.f32 %v9298_v48, %v3202_v31  ;;  %v3170_v62 = vmax.f32 %v3138_v63, 0.0  ;;  %v2676_v5 = vadd.f32 %v9258_v1, %v9121_v12 }
 0x311   : > { %v3835_v22 = vunpack.c.l.b16 %v3707_v60  ;;  %v3836_v46 = vunpack.c.l.b16 %v3708_v40  ;;  %v3837_v9 = vunpack.c.l.b16 %v3709_v10  ;;  %v2677_v0 = vadd.f32 %v9272_v59, %v9126_v30 }
 0x312   : > { %v3904_v34 = vrot.slane %v3834_v53, 3  ;;  %3268 = vst.msk [vmem:[%s9308_s23 + $0x20] sm:$0xff] %vm3263_vm2, %v3235_v19  ;;  %v3203_v14 = vmul.f32 %v9288_v21, %v3170_v62  ;;  %v9442_v53 = vld [vmem:[#allocation3] sm:$0xf]  ;;  %v2809_v12 = vadd.f32 %v9251_v27, %v2675_v44  ;;  %v9459_v1 = vpop.f32.mrf.mxu1 }
 0x313   : > { %v3907_v60 = vrot.slane %v3835_v22, 2  ;;  %v3910_v58 = vrot.slane %v3836_v46, 1  ;;  %v4005_v37 = vpack.c.b16 %v3837_v9, %v3837_v9  ;;  %v3032_v57 = vpop.f32.mrf.mxu0  ;;  %v4090_v46 = vld [vmem:[#allocation3 + $0x4] sm:$0x1]  ;;  %v7280_v59 = vrot.slane %v9442_v53, 9 }
 0x314   : > { %v3906_v15 = vsel %vm3905_vm15, %v3904_v34, %v3903_v38  ;;  %v3103_v56 = vadd.f32 %v3032_v57, %v9105_v25  ;;  %v4039_v25 = vld [vmem:[#allocation3 + $0x8] sm:$0xf]  ;;  %v9449_v22 = vadd.f32 %v9298_v48, %v3203_v14  ;;  %v4114_v38 = vshll.u32 %v9442_v53, 16 }
 0x315   : > { %v3909_v23 = vsel %vm3908_vm5, %v3907_v60, %v3906_v15  ;;  %v4045_v41 = vsel %vm9415_vm0, %v4005_v37, %v4044_v8  ;;  %v4355_v34 = vrot.slane %v4090_v46, 5  ;;  %v2810_v8 = vadd.f32 %v9263_v52, %v2676_v5  ;;  %v9467_v37 = vpop.f32.mrf.mxu2 }
 0x316   : > { %v3912_v40 = vsel %vm3911_vm11, %v3910_v58, %v3909_v23  ;;  %4046 = vst [vmem:[#allocation3 + $0xc] sm:$0x1] %v4045_v41  ;;  %v3139_v4 = vadd.f32 %v9281_v28, %v3103_v56  ;;  %7202 = vmatmul.msk.bf16.gmra.mxu0 %vm1554_vm8, %v8861_v16  ;;  %v4111_v16 = vshrl.u32 %v9442_v53, 16  ;;  %v2811_v60 = vadd.f32 %v9274_v49, %v2677_v0  ;;  %v9471_v15 = vpop.f32.mrf.mxu3 }
 0x317   : > { %v4004_v31 = vpack.c.b16 %v3912_v40, %v3912_v40  ;;  %3269 = vst.msk [vmem:[%s9308_s23 + $0x28] sm:$0xff] %vm3263_vm2, %v9449_v22  ;;  %v2678_v58 = vadd.f32 %v9292_v7, %v9137_v51  ;;  %v4116_v23 = vrot.slane %v4114_v38, 5  ;;  %v4120_v41 = vshll.u32 %v4090_v46, 16 }
 0x318   : > { %v3171_v9 = vmax.f32 %v3139_v4, 0.0  ;;  %v4113_v56 = vrot.slane %v4111_v16, 4  ;;  %v2965_v14 = vadd.f32 %v9256_v61, %v2809_v12  ;;  %v9479_v51 = vsel %vm8254_vm7, %v7280_v59, %v4355_v34 }
 0x319   : > { %v4040_v63 = vsel %vm9435_vm4, %v4004_v31, %v4039_v25  ;;  %v9482_v7 = vadd.f32 %v9267_v43, %v2810_v8  ;;  %v9488_v44 = vadd.f32 %v9300_v2, %v2678_v58  ;;  %v4289_v61 = vunpack.c.l.b16 %v9442_v53 }
 0x31a   : > { %4041 = vst [vmem:[#allocation3 + $0x8] sm:$0xf] %v4040_v63  ;;  %v3204_v30 = vmul.f32 %v9288_v21, %v3171_v9  ;;  %v4387_v43 = vunpack.c.l.b16 %v9479_v51  ;;  %v4117_v46 = vor.u32 %v4116_v23, %v4113_v56  ;;  %v9496_v9 = vrot.slane %v4120_v41, 5  ;;  %v9502_v34 = vpop.f32.mrf.mxu1 }
 0x31b   : > { %v3034_v62 = vpop.f32.mrf.mxu0 }
 0x31c   : > { %v3237_v27 = vadd.f32 %v9298_v48, %v3204_v30  ;;  %v3104_v57 = vadd.f32 %v3034_v62, %v9112_v6  ;;  %v9485_v6 = vadd.f32 %v9276_v45, %v2811_v60 }
 0x31d   : > { %v9491_v5 = vld [vmem:[#allocation3 + $0xc] sm:$0x1] }
 0x31e   : > { %3270 = vst.msk [vmem:[%s9308_s23 + $0x30] sm:$0xff] %vm3263_vm2, %v3237_v27  ;;  %v3298_v52 = vmax.f32 %v3235_v19, %v3237_v27  ;;  %v3140_v49 = vadd.f32 %v9281_v28, %v3104_v57  ;;  %v4359_v59 = vrot.slane %v9491_v5, 5  ;;  %v9504_v27 = vpop.f32.mrf.mxu2 }
 0x320   : > { %v3334_v40 = vrot.slane %v3298_v52, 2  ;;  %v3335_v25 = vrot.slane %v3298_v52, 4  ;;  %v3336_v19 = vrot.slane %v3298_v52, 6  ;;  %v7215_v4 = vrot.slane %v3298_v52, 9 }
 0x321   : > { %v3172_v0 = vmax.f32 %v3140_v49, 0.0  ;;  %v9493_v31 = vld [vmem:[#allocation3 + $0x8] sm:$0xf] }
 0x322   : > { %v7216_v45 = vrot.slane %v3334_v40, 9  ;;  %v7217_v63 = vrot.slane %v3335_v25, 9  ;;  %v7218_v2 = vrot.slane %v3336_v19, 9  ;;  %v3624_v16 = vmax.f32 %v3298_v52, %v7215_v4 }
 0x323   : > { %v3205_v53 = vmul.f32 %v9288_v21, %v3172_v0  ;;  %v3037_v38 = vpop.f32.mrf.mxu0  ;;  %v11127_v12 = vunpack.c.l.b16 %v9493_v31  ;;  %v7281_v30 = vrot.slane %v9493_v31, 9 }
 0x324   : > { %v3625_v8 = vmax.f32 %v3334_v40, %v7216_v45  ;;  %v3626_v60 = vmax.f32 %v3335_v25, %v7217_v63  ;;  %v3627_v58 = vmax.f32 %v3336_v19, %v7218_v2  ;;  %v3710_v62 = vpack.c.bf16 %v3624_v16, %v3624_v16  ;;  %v9515_v40 = vpop.f32.mrf.mxu3 }
 0x325   : > { %v3238_v57 = vadd.f32 %v9298_v48, %v3205_v53  ;;  %v3105_v56 = vadd.f32 %v3037_v38, %v2965_v14  ;;  %v4297_v23 = vpack.c.b16 %v11127_v12, %v4289_v61  ;;  %v9511_v41 = vsel %vm8254_vm7, %v7281_v30, %v4359_v59 }
 0x326   : > { %v3711_v52 = vpack.c.bf16 %v3625_v8, %v3625_v8  ;;  %v3712_v49 = vpack.c.bf16 %v3626_v60, %v3626_v60  ;;  %v3713_v51 = vpack.c.bf16 %v3627_v58, %v3627_v58  ;;  %v3838_v4 = vunpack.c.l.b16 %v3710_v62  ;;  %7203 = vmatmul.msk.bf16.gmra.mxu0 %vm1554_vm8, %v8898_v35 }
 0x327   : > { %3271 = vst.msk [vmem:[%s9308_s23 + $0x38] sm:$0xff] %vm3263_vm2, %v3238_v57  ;;  %v3299_v14 = vmax.f32 %v9449_v22, %v3238_v57  ;;  %v3141_v25 = vadd.f32 %v9281_v28, %v3105_v56  ;;  %7276 = vmatmul.msk.bf16.vlgmr.msra.gmra.mxu2 %vm3263_vm2, %v4297_v23  ;;  %v9522_v61 = vrot.slane %v4117_v46, 4  ;;  %v4125_v19 = vshrl.u32 %v9493_v31, 16 }
 0x328   : > { %v3839_v0 = vunpack.c.l.b16 %v3711_v52  ;;  %v3840_v45 = vunpack.c.l.b16 %v3712_v49  ;;  %v3841_v63 = vunpack.c.l.b16 %v3713_v51  ;;  %v4388_v2 = vunpack.c.l.b16 %v9511_v41 }
 0x329   : > { %v3337_v35 = vrot.slane %v3299_v14, 2  ;;  %v3338_v16 = vrot.slane %v3299_v14, 4  ;;  %v3339_v53 = vrot.slane %v3299_v14, 6  ;;  %v7219_v38 = vrot.slane %v3299_v14, 9 }
 0x32a   : > { %v3913_v30 = vrot.slane %v3838_v4, 7  ;;  %v3914_v59 = vrot.slane %v3839_v0, 6  ;;  %v3916_v22 = vrot.slane %v3840_v45, 5  ;;  %v3173_v8 = vmax.f32 %v3141_v25, 0.0  ;;  %v9531_v25 = vpop.f32.mrf.mxu1 }
 0x32b   : > { %v7220_v60 = vrot.slane %v3337_v35, 9  ;;  %v7221_v58 = vrot.slane %v3338_v16, 9  ;;  %v7222_v62 = vrot.slane %v3339_v53, 9  ;;  %v3628_v46 = vmax.f32 %v3299_v14, %v7219_v38  ;;  %v3039_v57 = vpop.f32.mrf.mxu0 }
 0x32c   : > { %v3915_v56 = vsel %vm3896_vm6, %v3914_v59, %v3913_v30  ;;  %v3206_v23 = vmul.f32 %v9288_v21, %v3173_v8  ;;  %v4395_v52 = vpack.c.b16 %v4388_v2, %v4387_v43  ;;  %v3106_v49 = vadd.f32 %v3039_v57, %v9482_v7  ;;  %v9539_v43 = vpop.f32.mrf.mxu2 }
 0x32d   : > { %v3629_v51 = vmax.f32 %v3337_v35, %v7220_v60  ;;  %v3630_v12 = vmax.f32 %v3338_v16, %v7221_v58  ;;  %v3631_v4 = vmax.f32 %v3339_v53, %v7222_v62  ;;  %v4127_v0 = vrot.slane %v4125_v19, 4  ;;  %v9546_v60 = vpop.f32.mrf.mxu3 }
 0x32e   : > { %v3917_v45 = vsel %vm3899_vm13, %v3916_v22, %v3915_v56  ;;  %v3714_v14 = vpack.c.bf16 %v3628_v46, %v3628_v46  ;;  %v9535_v38 = vadd.f32 %v9298_v48, %v3206_v23  ;;  %7289 = vmatmul.msk.bf16.vlgmr.msra.gmra.mxu3 %vm3263_vm2, %v4395_v52  ;;  %v3142_v30 = vadd.f32 %v9281_v28, %v3106_v49  ;;  %v4050_v23 = vld [vmem:[#allocation3 + $0x14] sm:$0x1] }
 0x32f   : > { %v3715_v7 = vpack.c.bf16 %v3629_v51, %v3629_v51  ;;  %v3716_v35 = vpack.c.bf16 %v3630_v12, %v3630_v12  ;;  %v3717_v16 = vpack.c.bf16 %v3631_v4, %v3631_v4  ;;  %v4128_v53 = vshll.u32 %v9493_v31, 16 }
 0x330   : > { %v3918_v19 = vrot.slane %v3841_v63, 4  ;;  %v3842_v59 = vunpack.c.l.b16 %v3714_v14  ;;  %3272 = vst.msk [vmem:[%s9308_s23 + $0x40] sm:$0xff] %vm3263_vm2, %v9535_v38  ;;  %v3174_v22 = vmax.f32 %v3142_v30, 0.0  ;;  %v4134_v8 = vshll.u32 %v9491_v5, 16 }
 0x331   : > { %v3843_v58 = vunpack.c.l.b16 %v3715_v7  ;;  %v3844_v62 = vunpack.c.l.b16 %v3716_v35  ;;  %v3845_v46 = vunpack.c.l.b16 %v3717_v16  ;;  %v4130_v57 = vrot.slane %v4128_v53, 5 }
 0x332   : > { %v3919_v56 = vsel %vm3902_vm14, %v3918_v19, %v3917_v45  ;;  %v3920_v12 = vrot.slane %v3842_v59, 3  ;;  %v3207_v52 = vmul.f32 %v9288_v21, %v3174_v22  ;;  %v4123_v63 = vsel %vm8279_vm9, %v9522_v61, %v9496_v9  ;;  %v11234_v22 = vld [vmem:[#allocation34_spill] sm:$0xff] }
 0x333   : > { %v3922_v49 = vrot.slane %v3843_v58, 2  ;;  %v3924_v51 = vrot.slane %v3844_v62, 1  ;;  %v4007_v5 = vpack.c.b16 %v3845_v46, %v3845_v46  ;;  %v4131_v4 = vor.u32 %v4130_v57, %v4127_v0  ;;  %v3042_v14 = vpop.f32.mrf.mxu0 }
 0x334   : > { %v2679_v30 = vadd.f32 %v9321_v55, %v9156_v33  ;;  %v3921_v7 = vsel %vm3905_vm15, %v3920_v12, %v3919_v56  ;;  %v9558_v45 = vadd.f32 %v9298_v48, %v3207_v52  ;;  %v3107_v35 = vadd.f32 %v3042_v14, %v9485_v6  ;;  %v4047_v55 = vld [vmem:[#allocation3 + $0x10] sm:$0xf]  ;;  %v9583_v57 = vpop.f32.mrf.mxu2 }
 0x335   : > { %v3923_v16 = vsel %vm3908_vm5, %v3922_v49, %v3921_v7  ;;  %v4051_v9 = vsel %vm9415_vm0, %v4007_v5, %v4050_v23  ;;  %v4132_v61 = vrot.slane %v4131_v4, 4  ;;  %v4136_v53 = vrot.slane %v4134_v8, 5  ;;  %v11237_v7 = vld [vmem:[#allocation23_spill] sm:$0xff] }
 0x336   : > { %v2680_v0 = vadd.f32 %v9354_v13, %v9169_v18  ;;  %v3925_v33 = vsel %vm3911_vm11, %v3924_v51, %v3923_v16  ;;  %4052 = vst [vmem:[#allocation3 + $0x14] sm:$0x1] %v4051_v9  ;;  %v4224_v19 = vunpack.c.l.b16 %v4123_v63  ;;  %v3143_v59 = vadd.f32 %v9281_v28, %v3107_v35  ;;  %7204 = vmatmul.msk.bf16.gmra.mxu0 %vm1554_vm8, %v11234_v22  ;;  %v9577_v13 = vpop.f32.mrf.mxu1  ;;  %v9592_v63 = vpop.f32.mrf.mxu3  ;;  %v11238_v16 = vld [vmem:[#allocation24_spill] sm:$0xff] }
 0x337   : > { %v2681_v6 = vadd.f32 %v9381_v42, %v9177_v24  ;;  %v4006_v58 = vpack.c.b16 %v3925_v33, %v3925_v33  ;;  %3273 = vst.msk [vmem:[%s9308_s23 + $0x48] sm:$0xff] %vm3263_vm2, %v9558_v45  ;;  %v4137_v18 = vsel %vm8279_vm9, %v4132_v61, %v4136_v53  ;;  %v2968_v46 = vadd.f32 %v9303_v29, %v9488_v44 }
 0x338   : > { %v9579_v8 = vunpack.c.l.b16 %v4137_v18  ;;  %v3175_v62 = vmax.f32 %v3143_v59, 0.0  ;;  %v2813_v42 = vadd.f32 %v9326_v50, %v2679_v30  ;;  %v2814_v56 = vadd.f32 %v9360_v20, %v2680_v0  ;;  %v11235_v20 = vld [vmem:[#allocation20_spill] sm:$0xff]  ;;  %v11236_v30 = vld [vmem:[#allocation22_spill] sm:$0xff] }
 0x339   : > { %v4048_v24 = vsel %vm9435_vm4, %v4006_v58, %v4047_v55  ;;  %v2815_v52 = vadd.f32 %v9387_v39, %v2681_v6  ;;  %v2992_v44 = vrot.slane %v9139_v3, 5  ;;  %v9612_v35 = vadd.f32 %v9406_v54, %v11237_v7 }
 0x33a   : > { %4049 = vst [vmem:[#allocation3 + $0x10] sm:$0xf] %v4048_v24  ;;  %v4232_v12 = vpack.c.b16 %v9579_v8, %v4224_v19  ;;  %v3208_v23 = vmul.f32 %v9288_v21, %v3175_v62  ;;  %v2969_v50 = vadd.f32 %v9334_v36, %v2813_v42  ;;  %v9599_v5 = vadd.f32 %v11235_v20, %v2814_v56 }
 0x33b   : > { %v3044_v29 = vpop.f32.mrf.mxu0  ;;  %v9608_v3 = vadd.f32 %v11236_v30, %v2815_v52  ;;  %v7189_v36 = vrot.slane %v11238_v16, 9  ;;  %v2994_v9 = vrot.slane %v2992_v44, 4  ;;  %v11240_v7 = vunpack.c.l.b16 %v9493_v31 }
 0x33c   : > { %7272 = vmatmul.msk.bf16.vlgmr.msra.gmra.mxu1 %vm3263_vm2, %v4232_v12  ;;  %v3241_v49 = vadd.f32 %v9298_v48, %v3208_v23  ;;  %v3108_v51 = vadd.f32 %v3044_v29, %v2968_v46  ;;  %v9622_v24 = vpop.f32.mrf.mxu2 }
 0x33d   : > { %v9605_v14 = vld [vmem:[#allocation3 + $0x14] sm:$0x1]  ;;  %v9627_v12 = vsel %vm8254_vm7, %v7189_v36, %v2992_v44 }
 0x33e   : > { %3274 = vst.msk [vmem:[%s9308_s23 + $0x50] sm:$0xff] %vm3263_vm2, %v3241_v49  ;;  %v3300_v4 = vmax.f32 %v9535_v38, %v3241_v49  ;;  %v3144_v39 = vadd.f32 %v9281_v28, %v3108_v51  ;;  %v11239_v38 = vld [vmem:[#allocation21_spill] sm:$0xff]  ;;  %v4363_v22 = vrot.slane %v9605_v14, 5  ;;  %v4148_v6 = vshll.u32 %v9605_v14, 16  ;;  %v9620_v58 = vpop.f32.mrf.mxu1 }
 0x33f   : > { %v2995_v19 = vrot.slane %v11239_v38, 5  ;;  %v2999_v38 = vunpack.c.l.b16 %v9627_v12 }
 0x340   : > { %v3340_v61 = vrot.slane %v3300_v4, 2  ;;  %v3341_v53 = vrot.slane %v3300_v4, 4  ;;  %v3342_v0 = vrot.slane %v3300_v4, 6  ;;  %v7223_v33 = vrot.slane %v3300_v4, 9 }
 0x341   : > { %v3176_v55 = vmax.f32 %v3144_v39, 0.0  ;;  %v9616_v59 = vld [vmem:[#allocation3 + $0x10] sm:$0xf]  ;;  %v9631_v39 = vpop.f32.mrf.mxu3 }
 0x342   : > { %v7224_v54 = vrot.slane %v3340_v61, 9  ;;  %v7225_v18 = vrot.slane %v3341_v53, 9  ;;  %v7226_v62 = vrot.slane %v3342_v0, 9  ;;  %v3632_v46 = vmax.f32 %v3300_v4, %v7223_v33 }
 0x343   : > { %v3209_v42 = vmul.f32 %v9288_v21, %v3176_v55  ;;  %v3047_v56 = vpop.f32.mrf.mxu0  ;;  %v11129_v23 = vunpack.c.l.b16 %v9616_v59  ;;  %v7282_v52 = vrot.slane %v9616_v59, 9  ;;  %v2996_v33 = vsel %vm8254_vm7, %v2994_v9, %v2995_v19 }
 0x344   : > { %v3633_v29 = vmax.f32 %v3340_v61, %v7224_v54  ;;  %v3634_v49 = vmax.f32 %v3341_v53, %v7225_v18  ;;  %v3635_v51 = vmax.f32 %v3342_v0, %v7226_v62  ;;  %v3718_v20 = vpack.c.bf16 %v3632_v46, %v3632_v46  ;;  %v11241_v0 = vld [vmem:[#allocation27_spill] sm:$0xff] }
 0x345   : > { %v3242_v4 = vadd.f32 %v9298_v48, %v3209_v42  ;;  %v3109_v30 = vadd.f32 %v3047_v56, %v2969_v50  ;;  %v9638_v44 = vpack.c.b16 %v11129_v23, %v11240_v7  ;;  %v9642_v16 = vsel %vm8254_vm7, %v7282_v52, %v4363_v22 }
 0x346   : > { %v3719_v36 = vpack.c.bf16 %v3633_v29, %v3633_v29  ;;  %v3720_v61 = vpack.c.bf16 %v3634_v49, %v3634_v49  ;;  %v3846_v53 = vunpack.c.l.b16 %v3718_v20  ;;  %7205 = vmatmul.msk.bf16.gmra.mxu0 %vm1554_vm8, %v11241_v0  ;;  %v3721_v50 = vpack.c.bf16 %v3635_v51, %v3635_v51  ;;  %v9655_v12 = vpop.f32.mrf.mxu1  ;;  %v9666_v0 = vpop.f32.mrf.mxu2 }
 0x347   : > { %3275 = vst.msk [vmem:[%s9308_s23 + $0x58] sm:$0xff] %vm3263_vm2, %v3242_v4  ;;  %v3301_v31 = vmax.f32 %v9558_v45, %v3242_v4  ;;  %v3145_v55 = vadd.f32 %v9281_v28, %v3109_v30  ;;  %v11128_v18 = vunpack.c.l.b16 %v9642_v16  ;;  %v4139_v62 = vshrl.u32 %v9616_v59, 16 }
 0x348   : > { %v3847_v22 = vunpack.c.l.b16 %v3719_v36  ;;  %v3848_v54 = vunpack.c.l.b16 %v3720_v61  ;;  %v3926_v9 = vrot.slane %v3846_v53, 7 }
 0x349   : > { %v3343_v46 = vrot.slane %v3301_v31, 2  ;;  %v3344_v42 = vrot.slane %v3301_v31, 4  ;;  %v3345_v56 = vrot.slane %v3301_v31, 6  ;;  %v7227_v52 = vrot.slane %v3301_v31, 9 }
 0x34a   : > { %v3927_v19 = vrot.slane %v3847_v22, 6  ;;  %v3929_v29 = vrot.slane %v3848_v54, 5  ;;  %v3177_v49 = vmax.f32 %v3145_v55, 0.0  ;;  %v9664_v53 = vpack.c.b16 %v11128_v18, %v4388_v2 }
 0x34b   : > { %v7228_v51 = vrot.slane %v3343_v46, 9  ;;  %v7229_v45 = vrot.slane %v3344_v42, 9  ;;  %v7230_v20 = vrot.slane %v3345_v56, 9  ;;  %v3636_v4 = vmax.f32 %v3301_v31, %v7227_v52  ;;  %v3049_v30 = vpop.f32.mrf.mxu0 }
 0x34c   : > { %v3928_v7 = vsel %vm3896_vm6, %v3927_v19, %v3926_v9  ;;  %v3210_v36 = vmul.f32 %v9288_v21, %v3177_v49  ;;  %v3110_v61 = vadd.f32 %v3049_v30, %v9599_v5  ;;  %v3849_v55 = vunpack.c.l.b16 %v3721_v50  ;;  %v9672_v49 = vpop.f32.mrf.mxu3 }
 0x34d   : > { %v3637_v31 = vmax.f32 %v3343_v46, %v7228_v51  ;;  %v3638_v22 = vmax.f32 %v3344_v42, %v7229_v45  ;;  %v3639_v54 = vmax.f32 %v3345_v56, %v7230_v20  ;;  %v3722_v52 = vpack.c.bf16 %v3636_v4, %v3636_v4  ;;  %v4056_v4 = vld [vmem:[#allocation3 + $0x1c] sm:$0x1] }
 0x34e   : > { %v9669_v9 = vadd.f32 %v9298_v48, %v3210_v36  ;;  %v3146_v19 = vadd.f32 %v9281_v28, %v3110_v61  ;;  %v3000_v5 = vunpack.c.l.b16 %v2996_v33  ;;  %v3930_v41 = vsel %vm3899_vm13, %v3929_v29, %v3928_v7 }
 0x34f   : > { %v3723_v2 = vpack.c.bf16 %v3637_v31, %v3637_v31  ;;  %v3724_v30 = vpack.c.bf16 %v3638_v22, %v3638_v22  ;;  %v3725_v18 = vpack.c.bf16 %v3639_v54, %v3639_v54  ;;  %v3850_v23 = vunpack.c.l.b16 %v3722_v52 }
 0x350   : > { %3276 = vst.msk [vmem:[%s9308_s23 + $0x60] sm:$0xff] %vm3263_vm2, %v9669_v9  ;;  %v3178_v50 = vmax.f32 %v3146_v19, 0.0  ;;  %v4141_v46 = vrot.slane %v4139_v62, 4  ;;  %v4142_v42 = vshll.u32 %v9616_v59, 16  ;;  %v3931_v56 = vrot.slane %v3849_v55, 4 }
 0x351   : > { %v3851_v51 = vunpack.c.l.b16 %v3723_v2  ;;  %v3852_v45 = vunpack.c.l.b16 %v3724_v30  ;;  %v3853_v20 = vunpack.c.l.b16 %v3725_v18  ;;  %v3933_v33 = vrot.slane %v3850_v23, 3  ;;  %v4053_v30 = vld [vmem:[#allocation3 + $0x18] sm:$0xf] }
 0x352   : > { %v3211_v36 = vmul.f32 %v9288_v21, %v3178_v50  ;;  %v3001_v29 = vpack.c.b16 %v3000_v5, %v2999_v38  ;;  %v4144_v7 = vrot.slane %v4142_v42, 5  ;;  %v3932_v61 = vsel %vm3902_vm14, %v3931_v56, %v3930_v41  ;;  %v9691_v41 = vpop.f32.mrf.mxu1 }
 0x353   : > { %v3935_v31 = vrot.slane %v3851_v51, 2  ;;  %v3937_v22 = vrot.slane %v3852_v45, 1  ;;  %v4009_v54 = vpack.c.b16 %v3853_v20, %v3853_v20  ;;  %v3052_v52 = vpop.f32.mrf.mxu0  ;;  %v3934_v62 = vsel %vm3905_vm15, %v3933_v33, %v3932_v61  ;;  %v11242_v51 = vld [vmem:[#allocation29_spill] sm:$0xff]  ;;  %v11243_v20 = vld [vmem:[#allocation26_spill] sm:$0xff] }
 0x354   : > { %v9683_v19 = vadd.f32 %v9298_v48, %v3211_v36  ;;  %v3111_v18 = vadd.f32 %v3052_v52, %v9608_v3  ;;  %v4145_v23 = vor.u32 %v4144_v7, %v4141_v46  ;;  %v2816_v55 = vadd.f32 %v9409_v47, %v9612_v35  ;;  %v9698_v47 = vpop.f32.mrf.mxu2 }
 0x355   : > { %v3936_v38 = vsel %vm3908_vm5, %v3935_v31, %v3934_v62  ;;  %v4057_v5 = vsel %vm9415_vm0, %v4009_v54, %v4056_v4  ;;  %v4150_v46 = vrot.slane %v4148_v6, 5  ;;  %v2683_v45 = vadd.f32 %v9459_v1, %v11242_v51  ;;  %v9709_v4 = vpop.f32.mrf.mxu3  ;;  %v11244_v54 = vld [vmem:[#allocation28_spill] sm:$0xff] }
 0x356   : > { %v3938_v2 = vsel %vm3911_vm11, %v3937_v22, %v3936_v38  ;;  %4058 = vst [vmem:[#allocation3 + $0x1c] sm:$0x1] %v4057_v5  ;;  %v3147_v50 = vadd.f32 %v9281_v28, %v3111_v18  ;;  %7206 = vmatmul.msk.bf16.gmra.mxu0 %vm1554_vm8, %v3001_v29  ;;  %v4146_v3 = vrot.slane %v4145_v23, 4  ;;  %v2684_v33 = vadd.f32 %v9502_v34, %v11243_v20 }
 0x357   : > { %v4008_v35 = vpack.c.b16 %v3938_v2, %v3938_v2  ;;  %3277 = vst.msk [vmem:[%s9308_s23 + $0x68] sm:$0xff] %vm3263_vm2, %v9683_v19  ;;  %v2972_v36 = vadd.f32 %v9420_v17, %v2816_v55  ;;  %v2817_v34 = vadd.f32 %v9467_v37, %v2683_v45  ;;  %v2685_v52 = vadd.f32 %v9531_v25, %v11244_v54 }
 0x358   : > { %v3179_v42 = vmax.f32 %v3147_v50, 0.0  ;;  %v4151_v56 = vsel %vm8279_vm9, %v4146_v3, %v4150_v46  ;;  %v2818_v22 = vadd.f32 %v9504_v27, %v2684_v33  ;;  %vm5078_vm8 = vcmask 1043458  }
 0x359   : > { %v4054_v14 = vsel %vm9435_vm4, %v4008_v35, %v4053_v30  ;;  %v9713_v6 = vunpack.c.l.b16 %v4151_v56  ;;  %v2973_v37 = vadd.f32 %v9471_v15, %v2817_v34  ;;  %v2819_v25 = vadd.f32 %v9539_v43, %v2685_v52 }
 0x35a   : > { %4055 = vst [vmem:[#allocation3 + $0x18] sm:$0xf] %v4054_v14  ;;  %v3212_v29 = vmul.f32 %v9288_v21, %v3179_v42  ;;  %v9728_v18 = vpop.f32.mrf.mxu1  ;;  %v2974_v27 = vadd.f32 %v9515_v40, %v2818_v22 }
 0x35b   : > { %v3054_v7 = vpop.f32.mrf.mxu0  ;;  %v9757_v52 = vadd.f32 %v9546_v60, %v2819_v25 }
 0x35c   : > { %v3245_v1 = vadd.f32 %v9298_v48, %v3212_v29  ;;  %v3112_v31 = vadd.f32 %v3054_v7, %v2972_v36  ;;  %v9735_v30 = vpop.f32.mrf.mxu2  ;;  %v11245_v7 = vunpack.c.l.b16 %v9616_v59  ;;  %v9765_v59 = vld [vmem:[%s11221_s6] ss:$0 sm:$0xff] }
 0x35d   : > { %v9730_v2 = vld [vmem:[#allocation3 + $0x1c] sm:$0x1]  ;;  %v9739_v42 = vpop.f32.mrf.mxu3 }
 0x35e   : > { %3278 = vst.msk [vmem:[%s9308_s23 + $0x70] sm:$0xff] %vm3263_vm2, %v3245_v1  ;;  %v3302_v17 = vmax.f32 %v9669_v9, %v3245_v1  ;;  %v3148_v62 = vadd.f32 %v9281_v28, %v3112_v31  ;;  %v4367_v43 = vrot.slane %v9730_v2, 5 }
 0x360   : > { %v3346_v23 = vrot.slane %v3302_v17, 2  ;;  %v3347_v55 = vrot.slane %v3302_v17, 4  ;;  %v3348_v38 = vrot.slane %v3302_v17, 6  ;;  %v7231_v5 = vrot.slane %v3302_v17, 9 }
 0x361   : > { %v3180_v50 = vmax.f32 %v3148_v62, 0.0  ;;  %v9737_v9 = vld [vmem:[#allocation3 + $0x18] sm:$0xf] }
 0x362   : > { %v7232_v28 = vrot.slane %v3346_v23, 9  ;;  %v7233_v3 = vrot.slane %v3347_v55, 9  ;;  %v7234_v46 = vrot.slane %v3348_v38, 9  ;;  %v3640_v35 = vmax.f32 %v3302_v17, %v7231_v5 }
 0x363   : > { %v3213_v56 = vmul.f32 %v9288_v21, %v3180_v50  ;;  %v3057_v51 = vpop.f32.mrf.mxu0  ;;  %v11130_v15 = vunpack.c.l.b16 %v9737_v9  ;;  %v7283_v40 = vrot.slane %v9737_v9, 9  ;;  %v4153_v62 = vshrl.u32 %v9737_v9, 16  ;;  %v9772_v50 = vpop.f32.mrf.mxu1 }
 0x364   : > { %v3641_v45 = vmax.f32 %v3346_v23, %v7232_v28  ;;  %v3642_v20 = vmax.f32 %v3347_v55, %v7233_v3  ;;  %v3643_v33 = vmax.f32 %v3348_v38, %v7234_v46  ;;  %v3726_v14 = vpack.c.bf16 %v3640_v35, %v3640_v35 }
 0x365   : > { %v3246_v36 = vadd.f32 %v9298_v48, %v3213_v56  ;;  %v3113_v29 = vadd.f32 %v3057_v51, %v2973_v37  ;;  %v9750_v21 = vpack.c.b16 %v11130_v15, %v11245_v7  ;;  %v9754_v1 = vsel %vm8254_vm7, %v7283_v40, %v4367_v43  ;;  %v9774_v56 = vpop.f32.mrf.mxu2 }
 0x366   : > { %v3727_v31 = vpack.c.bf16 %v3641_v45, %v3641_v45  ;;  %v3728_v34 = vpack.c.bf16 %v3642_v20, %v3642_v20  ;;  %v3729_v22 = vpack.c.bf16 %v3643_v33, %v3643_v33  ;;  %v3854_v54 = vunpack.c.l.b16 %v3726_v14  ;;  %v9780_v14 = vld [vmem:[%s11221_s6 + $0x1] ss:$0 sm:$0xff] }
 0x367   : > { %11246 = vst [vmem:[#allocation25_spill] sm:$0xff] %v9750_v21  ;;  %v3303_v48 = vmax.f32 %v9683_v19, %v3246_v36  ;;  %v3149_v17 = vadd.f32 %v9765_v59, %v3113_v29  ;;  %7277 = vmatmul.msk.bf16.gmra.mxu2 %vm3263_vm2, %v9750_v21  ;;  %v11131_v38 = vunpack.c.l.b16 %v9754_v1  ;;  %v11247_v29 = vunpack.c.l.b16 %v9642_v16 }
 0x368   : > { %3279 = vst.msk [vmem:[%s9308_s23 + $0x78] sm:$0xff] %vm3263_vm2, %v3246_v36  ;;  %v3855_v23 = vunpack.c.l.b16 %v3727_v31  ;;  %v3856_v55 = vunpack.c.l.b16 %v3728_v34  ;;  %v3857_v60 = vunpack.c.l.b16 %v3729_v22  ;;  %v3939_v28 = vrot.slane %v3854_v54, 7  ;;  %v9789_v34 = vpop.f32.mrf.mxu3 }
 0x369   : > { %v3349_v5 = vrot.slane %v3303_v48, 2  ;;  %v3350_v37 = vrot.slane %v3303_v48, 4  ;;  %v3351_v19 = vrot.slane %v3303_v48, 6  ;;  %v7235_v25 = vrot.slane %v3303_v48, 9 }
 0x36a   : > { %v3940_v3 = vrot.slane %v3855_v23, 6  ;;  %v3942_v46 = vrot.slane %v3856_v55, 5  ;;  %v3181_v35 = vmax.f32 %v3149_v17, 0.0  ;;  %v9787_v7 = vpack.c.b16 %v11131_v38, %v11247_v29 }
 0x36b   : > { %v7236_v51 = vrot.slane %v3349_v5, 9  ;;  %v7237_v40 = vrot.slane %v3350_v37, 9  ;;  %v7238_v43 = vrot.slane %v3351_v19, 9  ;;  %v3644_v45 = vmax.f32 %v3303_v48, %v7235_v25  ;;  %v3059_v20 = vpop.f32.mrf.mxu0  ;;  %v9795_v25 = vld [vmem:[%s11221_s6 + $0x2] ss:$0 sm:$0xff]  ;;  %v9812_v61 = vpop.f32.mrf.mxu1 }
 0x36c   : > { %v3941_v33 = vsel %vm3896_vm6, %v3940_v3, %v3939_v28  ;;  %v3214_v36 = vmul.f32 %v9780_v14, %v3181_v35  ;;  %11248 = vst [vmem:[#allocation31_spill] sm:$0xff] %v9787_v7  ;;  %v3114_v31 = vadd.f32 %v3059_v20, %v2974_v27  ;;  %v4155_v17 = vrot.slane %v4153_v62, 4  ;;  %7290 = vmatmul.msk.bf16.gmra.mxu3 %vm3263_vm2, %v9787_v7  ;;  %v11249_v20 = vld [vmem:[#allocation33_spill] sm:$0xff] }
 0x36d   : > { %v3645_v22 = vmax.f32 %v3349_v5, %v7236_v51  ;;  %v3646_v54 = vmax.f32 %v3350_v37, %v7237_v40  ;;  %v3647_v48 = vmax.f32 %v3351_v19, %v7238_v43  ;;  %v3943_v23 = vsel %vm3899_vm13, %v3942_v46, %v3941_v33 }
 0x36e   : > { %v3730_v55 = vpack.c.bf16 %v3644_v45, %v3644_v45  ;;  %v9798_v16 = vadd.f32 %v9795_v25, %v3214_v36  ;;  %v3150_v27 = vadd.f32 %v9765_v59, %v3114_v31  ;;  %v4156_v62 = vshll.u32 %v9737_v9, 16  ;;  %v4062_v31 = vld [vmem:[#allocation3 + $0x24] sm:$0x1] }
 0x36f   : > { %v3731_v5 = vpack.c.bf16 %v3645_v22, %v3645_v22  ;;  %v3732_v37 = vpack.c.bf16 %v3646_v54, %v3646_v54  ;;  %v3733_v19 = vpack.c.bf16 %v3647_v48, %v3647_v48  ;;  %v3944_v28 = vrot.slane %v3857_v60, 4 }
 0x370   : > { %v3858_v3 = vunpack.c.l.b16 %v3730_v55  ;;  %3280 = vst.msk [vmem:[%s9308_s23 + $0x80] sm:$0xff] %vm3263_vm2, %v9798_v16  ;;  %v3182_v46 = vmax.f32 %v3150_v27, 0.0  ;;  %v4162_v35 = vshll.u32 %v9730_v2, 16  ;;  %v4158_v45 = vrot.slane %v4156_v62, 5 }
 0x371   : > { %v3859_v51 = vunpack.c.l.b16 %v3731_v5  ;;  %v3860_v40 = vunpack.c.l.b16 %v3732_v37  ;;  %v3861_v43 = vunpack.c.l.b16 %v3733_v19  ;;  %v2686_v33 = vadd.f32 %v9577_v13, %v11249_v20 }
 0x372   : > { %v3945_v36 = vsel %vm3902_vm14, %v3944_v28, %v3943_v23  ;;  %v3946_v29 = vrot.slane %v3858_v3, 3  ;;  %v3215_v60 = vmul.f32 %v9780_v14, %v3182_v46  ;;  %v4159_v55 = vor.u32 %v4158_v45, %v4155_v17  ;;  %v9819_v23 = vpop.f32.mrf.mxu2  ;;  %v4059_v46 = vld [vmem:[#allocation3 + $0x20] sm:$0xf] }
 0x373   : > { %v3948_v22 = vrot.slane %v3859_v51, 2  ;;  %v3950_v54 = vrot.slane %v3860_v40, 1  ;;  %v4011_v48 = vpack.c.b16 %v3861_v43, %v3861_v43  ;;  %v3062_v27 = vpop.f32.mrf.mxu0  ;;  %v4164_v17 = vrot.slane %v4162_v35, 5  ;;  %v11250_v40 = vld [vmem:[#allocation30_spill] sm:$0xff]  ;;  %v9829_v43 = vpop.f32.mrf.mxu3 }
 0x374   : > { %v3947_v2 = vsel %vm3905_vm15, %v3946_v29, %v3945_v36  ;;  %v9816_v5 = vadd.f32 %v9795_v25, %v3215_v60  ;;  %v3115_v13 = vadd.f32 %v3062_v27, %v9757_v52  ;;  %v4160_v62 = vrot.slane %v4159_v55, 4  ;;  %v11252_v29 = vld [vmem:[#allocation32_spill] sm:$0xff] }
 0x375   : > { %v3949_v37 = vsel %vm3908_vm5, %v3948_v22, %v3947_v2  ;;  %v4063_v19 = vsel %vm9415_vm0, %v4011_v48, %v4062_v31  ;;  %v2820_v28 = vadd.f32 %v9583_v57, %v2686_v33  ;;  %v2687_v52 = vadd.f32 %v9620_v58, %v11250_v40  ;;  %v11251_v33 = vld [vmem:[#allocation18_spill] sm:$0xff] }
 0x376   : > { %v3951_v3 = vsel %vm3911_vm11, %v3950_v54, %v3949_v37  ;;  %4064 = vst [vmem:[#allocation3 + $0x24] sm:$0x1] %v4063_v19  ;;  %v3151_v51 = vadd.f32 %v9765_v59, %v3115_v13  ;;  %v4165_v35 = vsel %vm8279_vm9, %v4160_v62, %v4164_v17  ;;  %v2688_v36 = vadd.f32 %v9655_v12, %v11251_v33  ;;  %v9856_v13 = vpop.f32.mrf.mxu1 }
 0x377   : > { %v4010_v45 = vpack.c.b16 %v3951_v3, %v3951_v3  ;;  %3281 = vst.msk [vmem:[%s9308_s23 + $0x88] sm:$0xff] %vm3263_vm2, %v9816_v5  ;;  %v9836_v20 = vunpack.c.l.b16 %v4165_v35  ;;  %v2689_v31 = vadd.f32 %v9691_v41, %v11252_v29  ;;  %v2976_v60 = vadd.f32 %v9592_v63, %v2820_v28 }
 0x378   : > { %v3183_v57 = vmax.f32 %v3151_v51, 0.0  ;;  %v2821_v48 = vadd.f32 %v9622_v24, %v2687_v52  ;;  %v2822_v27 = vadd.f32 %v9666_v0, %v2688_v36 }
 0x379   : > { %v4060_v58 = vsel %vm9435_vm4, %v4010_v45, %v4059_v46  ;;  %v9847_v22 = vpack.c.b16 %v9836_v20, %v9713_v6  ;;  %v2823_v63 = vadd.f32 %v9698_v47, %v2689_v31 }
 0x37a   : > { %4061 = vst [vmem:[#allocation3 + $0x20] sm:$0xf] %v4060_v58  ;;  %v3216_v54 = vmul.f32 %v9780_v14, %v3183_v57  ;;  %v2977_v19 = vadd.f32 %v9631_v39, %v2821_v48  ;;  %v9863_v62 = vpop.f32.mrf.mxu2  ;;  %v2978_v47 = vadd.f32 %v9672_v49, %v2822_v27 }
 0x37b   : > { %11253 = vst [vmem:[#allocation34_spill] sm:$0xff] %v9847_v22  ;;  %v3064_v55 = vpop.f32.mrf.mxu0  ;;  %7273 = vmatmul.msk.bf16.gmra.mxu1 %vm3263_vm2, %v9847_v22  ;;  %v9867_v51 = vadd.f32 %v9709_v4, %v2823_v63  ;;  %v9869_v40 = vpop.f32.mrf.mxu3 }
 0x37c   : > { %v3249_v12 = vadd.f32 %v9795_v25, %v3216_v54  ;;  %v3116_v41 = vadd.f32 %v3064_v55, %v2976_v60 }
 0x37d   : > { %v4098_v2 = vld [vmem:[#allocation3 + $0x24] sm:$0x1] }
 0x37e   : > { %3282 = vst.msk [vmem:[%s9308_s23 + $0x90] sm:$0xff] %vm3263_vm2, %v3249_v12  ;;  %v3304_v37 = vmax.f32 %v9798_v16, %v3249_v12  ;;  %v3152_v24 = vadd.f32 %v9765_v59, %v3116_v41  ;;  %v4176_v17 = vshll.u32 %v4098_v2, 16  ;;  %v4371_v45 = vrot.slane %v4098_v2, 5 }
 0x380   : > { %v3352_v28 = vrot.slane %v3304_v37, 2  ;;  %v3353_v3 = vrot.slane %v3304_v37, 4  ;;  %v3354_v46 = vrot.slane %v3304_v37, 6  ;;  %v7239_v0 = vrot.slane %v3304_v37, 9 }
 0x381   : > { %v3184_v52 = vmax.f32 %v3152_v24, 0.0  ;;  %v9871_v16 = vld [vmem:[#allocation3 + $0x20] sm:$0xf]  ;;  %v9876_v4 = vrot.slane %v4176_v17, 5 }
 0x382   : > { %v7240_v35 = vrot.slane %v3352_v28, 9  ;;  %v7241_v39 = vrot.slane %v3353_v3, 9  ;;  %v7242_v57 = vrot.slane %v3354_v46, 9  ;;  %v3648_v33 = vmax.f32 %v3304_v37, %v7239_v0 }
 0x383   : > { %v3217_v36 = vmul.f32 %v9780_v14, %v3184_v52  ;;  %v3067_v29 = vpop.f32.mrf.mxu0  ;;  %v7284_v31 = vrot.slane %v9871_v16, 9  ;;  %v4167_v49 = vshrl.u32 %v9871_v16, 16 }
 0x384   : > { %v3649_v58 = vmax.f32 %v3352_v28, %v7240_v35  ;;  %v3650_v60 = vmax.f32 %v3353_v3, %v7241_v39  ;;  %v3651_v54 = vmax.f32 %v3354_v46, %v7242_v57  ;;  %v3734_v48 = vpack.c.bf16 %v3648_v33, %v3648_v33  ;;  %v9892_v39 = vpop.f32.mrf.mxu2 }
 0x385   : > { %v3250_v55 = vadd.f32 %v9795_v25, %v3217_v36  ;;  %v3117_v12 = vadd.f32 %v3067_v29, %v2977_v19  ;;  %v9882_v27 = vsel %vm8254_vm7, %v7284_v31, %v4371_v45  ;;  %v4169_v46 = vrot.slane %v4167_v49, 4  ;;  %v9889_v19 = vpop.f32.mrf.mxu1 }
 0x386   : > { %v3735_v63 = vpack.c.bf16 %v3649_v58, %v3649_v58  ;;  %v3736_v2 = vpack.c.bf16 %v3650_v60, %v3650_v60  ;;  %v3737_v37 = vpack.c.bf16 %v3651_v54, %v3651_v54  ;;  %v3862_v24 = vunpack.c.l.b16 %v3734_v48  ;;  %v9894_v54 = vpop.f32.mrf.mxu3 }
 0x387   : > { %3283 = vst.msk [vmem:[%s9308_s23 + $0x98] sm:$0xff] %vm3263_vm2, %v3250_v55  ;;  %v3305_v17 = vmax.f32 %v9816_v5, %v3250_v55  ;;  %v3153_v28 = vadd.f32 %v9765_v59, %v3117_v12  ;;  %v4170_v45 = vshll.u32 %v9871_v16, 16 }
 0x388   : > { %v3863_v0 = vunpack.c.l.b16 %v3735_v63  ;;  %v3864_v52 = vunpack.c.l.b16 %v3736_v2  ;;  %v3865_v35 = vunpack.c.l.b16 %v3737_v37  ;;  %v3952_v31 = vrot.slane %v3862_v24, 7 }
 0x389   : > { %v3355_v57 = vrot.slane %v3305_v17, 2  ;;  %v3356_v33 = vrot.slane %v3305_v17, 4  ;;  %v3357_v36 = vrot.slane %v3305_v17, 6  ;;  %v7243_v29 = vrot.slane %v3305_v17, 9 }
 0x38a   : > { %v3953_v5 = vrot.slane %v3863_v0, 6  ;;  %v3955_v58 = vrot.slane %v3864_v52, 5  ;;  %v3185_v60 = vmax.f32 %v3153_v28, 0.0  ;;  %v4172_v15 = vrot.slane %v4170_v45, 5 }
 0x38b   : > { %v7244_v49 = vrot.slane %v3355_v57, 9  ;;  %v7245_v48 = vrot.slane %v3356_v33, 9  ;;  %v7246_v55 = vrot.slane %v3357_v36, 9  ;;  %v3652_v12 = vmax.f32 %v3305_v17, %v7243_v29  ;;  %v3069_v63 = vpop.f32.mrf.mxu0 }
 0x38c   : > { %v3954_v2 = vsel %vm3896_vm6, %v3953_v5, %v3952_v31  ;;  %v3218_v37 = vmul.f32 %v9780_v14, %v3185_v60  ;;  %v3118_v41 = vadd.f32 %v3069_v63, %v2978_v47  ;;  %v3957_v3 = vrot.slane %v3865_v35, 4 }
 0x38d   : > { %v3653_v38 = vmax.f32 %v3355_v57, %v7244_v49  ;;  %v3654_v24 = vmax.f32 %v3356_v33, %v7245_v48  ;;  %v3655_v0 = vmax.f32 %v3357_v36, %v7246_v55  ;;  %v3956_v28 = vsel %vm3899_vm13, %v3955_v58, %v3954_v2  ;;  %v4068_v55 = vld [vmem:[#allocation3 + $0x2c] sm:$0x1] }
 0x38e   : > { %v3738_v52 = vpack.c.bf16 %v3652_v12, %v3652_v12  ;;  %v3251_v21 = vadd.f32 %v9795_v25, %v3218_v37  ;;  %v3154_v7 = vadd.f32 %v9765_v59, %v3118_v41  ;;  %v4173_v31 = vor.u32 %v4172_v15, %v4169_v46  ;;  %v11258_v46 = vld [vmem:[#allocation37_spill] sm:$0xff] }
 0x38f   : > { %v3739_v17 = vpack.c.bf16 %v3653_v38, %v3653_v38  ;;  %v3740_v29 = vpack.c.bf16 %v3654_v24, %v3654_v24  ;;  %v3741_v22 = vpack.c.bf16 %v3655_v0, %v3655_v0  ;;  %v11254_v35 = vunpack.c.l.b16 %v9754_v1 }
 0x390   : > { %v3866_v5 = vunpack.c.l.b16 %v3738_v52  ;;  %3284 = vst.msk [vmem:[%s9308_s23 + $0xa0] sm:$0xff] %vm3263_vm2, %v3251_v21  ;;  %v3186_v47 = vmax.f32 %v3154_v7, 0.0  ;;  %v11255_v45 = vunpack.c.l.b16 %v9882_v27  ;;  %v11256_v33 = vunpack.c.l.b16 %v9737_v9  ;;  %v9917_v7 = vpop.f32.mrf.mxu1  ;;  %v9921_v9 = vpop.f32.mrf.mxu2 }
 0x391   : > { %v11257_v36 = vunpack.c.l.b16 %v9871_v16  ;;  %v3867_v38 = vunpack.c.l.b16 %v3739_v17  ;;  %v3868_v41 = vunpack.c.l.b16 %v3740_v29  ;;  %v3869_v60 = vunpack.c.l.b16 %v3741_v22  ;;  %v9933_v52 = vpop.f32.mrf.mxu3 }
 0x392   : > { %v9907_v57 = vpack.c.b16 %v11255_v45, %v11254_v35  ;;  %v4174_v15 = vrot.slane %v4173_v31, 4  ;;  %v2690_v49 = vadd.f32 %v9728_v18, %v11258_v46  ;;  %v3958_v1 = vsel %vm3902_vm14, %v3957_v3, %v3956_v28 }
 0x393   : > { %v9913_v58 = vpack.c.b16 %v11257_v36, %v11256_v33  ;;  %v3959_v48 = vrot.slane %v3866_v5, 3  ;;  %v3219_v12 = vmul.f32 %v9780_v14, %v3186_v47  ;;  %v3961_v63 = vrot.slane %v3867_v38, 2  ;;  %v3072_v24 = vpop.f32.mrf.mxu0  ;;  %v4065_v5 = vld [vmem:[#allocation3 + $0x28] sm:$0xf]  ;;  %v11259_v33 = vld [vmem:[#allocation38_spill] sm:$0xff] }
 0x394   : > { %v3963_v2 = vrot.slane %v3868_v41, 1  ;;  %v4013_v37 = vpack.c.b16 %v3869_v60, %v3869_v60  ;;  %v4179_v22 = vsel %vm8279_vm9, %v4174_v15, %v9876_v4  ;;  %v3119_v3 = vadd.f32 %v3072_v24, %v9867_v51  ;;  %v11260_v38 = vld [vmem:[#allocation35_spill] sm:$0xff] }
 0x395   : > { %v3960_v18 = vsel %vm3905_vm15, %v3959_v48, %v3958_v1  ;;  %v9928_v0 = vadd.f32 %v9795_v25, %v3219_v12  ;;  %v9931_v28 = vunpack.c.l.b16 %v4179_v22  ;;  %v2824_v31 = vadd.f32 %v9735_v30, %v2690_v49  ;;  %v11261_v41 = vld [vmem:[#allocation39_spill] sm:$0xff] }
 0x396   : > { %v3962_v17 = vsel %vm3908_vm5, %v3961_v63, %v3960_v18  ;;  %v4069_v29 = vsel %vm9415_vm0, %v4013_v37, %v4068_v55  ;;  %v3155_v47 = vadd.f32 %v9765_v59, %v3119_v3  ;;  %v2691_v36 = vadd.f32 %v9772_v50, %v11259_v33 }
 0x397   : > { %v3964_v4 = vsel %vm3911_vm11, %v3963_v2, %v3962_v17  ;;  %4070 = vst [vmem:[#allocation3 + $0x2c] sm:$0x1] %v4069_v29  ;;  %v4529_v51 = vpack.c.b16 %v9931_v28, %v9836_v20  ;;  %v2692_v30 = vadd.f32 %v9812_v61, %v11260_v38  ;;  %v2693_v60 = vadd.f32 %v9856_v13, %v11261_v41 }
 0x398   : > { %v4012_v35 = vpack.c.b16 %v3964_v4, %v3964_v4  ;;  %3285 = vst.msk [vmem:[%s9308_s23 + $0xa8] sm:$0xff] %vm3263_vm2, %v9928_v0  ;;  %v3187_v45 = vmax.f32 %v3155_v47, 0.0  ;;  %v2980_v46 = vadd.f32 %v9739_v42, %v2824_v31  ;;  %v2825_v50 = vadd.f32 %v9774_v56, %v2691_v36  ;;  %v9960_v63 = vpop.f32.mrf.mxu1  ;;  %v9962_v13 = vpop.f32.mrf.mxu2 }
 0x399   : > { %v2826_v12 = vadd.f32 %v9819_v23, %v2692_v30  ;;  %v2827_v61 = vadd.f32 %v9863_v62, %v2693_v60  ;;  %v9967_v37 = vpop.f32.mrf.mxu3 }
 0x39a   : > { %v4066_v15 = vsel %vm9435_vm4, %v4012_v35, %v4065_v5  ;;  %v3220_v49 = vmul.f32 %v9780_v14, %v3187_v45  ;;  %v2981_v23 = vadd.f32 %v9789_v34, %v2825_v50 }
 0x39b   : > { %4067 = vst [vmem:[#allocation3 + $0x28] sm:$0xf] %v4066_v15  ;;  %v3074_v1 = vpop.f32.mrf.mxu0  ;;  %v2982_v62 = vadd.f32 %v9829_v43, %v2826_v12  ;;  %v9974_v17 = vadd.f32 %v9869_v40, %v2827_v61  ;;  %v11262_v15 = vunpack.c.l.b16 %v9871_v16 }
 0x39c   : > { %v3253_v48 = vadd.f32 %v9795_v25, %v3220_v49  ;;  %v3120_v55 = vadd.f32 %v3074_v1, %v2980_v46 }
 0x39e   : > { %3286 = vst.msk [vmem:[%s9308_s23 + $0xb0] sm:$0xff] %vm3263_vm2, %v3253_v48  ;;  %v3306_v42 = vmax.f32 %v3251_v21, %v3253_v48  ;;  %v3156_v2 = vadd.f32 %v9765_v59, %v3120_v55  ;;  %v9969_v56 = vld [vmem:[#allocation3 + $0x2c] sm:$0x1] }
 0x39f   : > { %v4375_v34 = vrot.slane %v9969_v56, 5 }
 0x3a0   : > { %v3358_v24 = vrot.slane %v3306_v42, 2  ;;  %v3359_v22 = vrot.slane %v3306_v42, 4  ;;  %v3360_v18 = vrot.slane %v3306_v42, 6  ;;  %v7247_v3 = vrot.slane %v3306_v42, 9  ;;  %v9993_v12 = vpop.f32.mrf.mxu1  ;;  %v9995_v61 = vpop.f32.mrf.mxu2 }
 0x3a1   : > { %v3188_v29 = vmax.f32 %v3156_v2, 0.0 }
 0x3a2   : > { %v9976_v31 = vld [vmem:[#allocation3 + $0x28] sm:$0xf]  ;;  %v7248_v21 = vrot.slane %v3358_v24, 9  ;;  %v7249_v4 = vrot.slane %v3359_v22, 9  ;;  %v7250_v5 = vrot.slane %v3360_v18, 9  ;;  %v3656_v47 = vmax.f32 %v3306_v42, %v7247_v3 }
 0x3a3   : > { %v3221_v35 = vmul.f32 %v9780_v14, %v3188_v29  ;;  %v3077_v45 = vpop.f32.mrf.mxu0  ;;  %v4294_v33 = vunpack.c.l.b16 %v9976_v31  ;;  %v7285_v36 = vrot.slane %v9976_v31, 9  ;;  %v4181_v2 = vshrl.u32 %v9976_v31, 16  ;;  %v10006_v29 = vpop.f32.mrf.mxu3 }
 0x3a4   : > { %v3657_v43 = vmax.f32 %v3358_v24, %v7248_v21  ;;  %v3658_v40 = vmax.f32 %v3359_v22, %v7249_v4  ;;  %v3659_v38 = vmax.f32 %v3360_v18, %v7250_v5  ;;  %v3742_v30 = vpack.c.bf16 %v3656_v47, %v3656_v47 }
 0x3a5   : > { %v3254_v41 = vadd.f32 %v9795_v25, %v3221_v35  ;;  %v3121_v60 = vadd.f32 %v3077_v45, %v2981_v23  ;;  %v9987_v46 = vpack.c.b16 %v4294_v33, %v11262_v15  ;;  %v9991_v49 = vsel %vm8254_vm7, %v7285_v36, %v4375_v34 }
 0x3a6   : > { %v3743_v1 = vpack.c.bf16 %v3657_v43, %v3657_v43  ;;  %v3744_v48 = vpack.c.bf16 %v3658_v40, %v3658_v40  ;;  %v3745_v55 = vpack.c.bf16 %v3659_v38, %v3659_v38  ;;  %v3870_v50 = vunpack.c.l.b16 %v3742_v30 }
 0x3a7   : > { %3287 = vst.msk [vmem:[%s9308_s23 + $0xb8] sm:$0xff] %vm3263_vm2, %v3254_v41  ;;  %v3307_v16 = vmax.f32 %v9928_v0, %v3254_v41  ;;  %v3157_v42 = vadd.f32 %v9765_v59, %v3121_v60  ;;  %7278 = vmatmul.msk.bf16.gmra.mxu2 %vm3263_vm2, %v9987_v46  ;;  %v4190_v24 = vshll.u32 %v9969_v56, 16  ;;  %v4392_v23 = vunpack.c.l.b16 %v9991_v49 }
 0x3a8   : > { %v3871_v22 = vunpack.c.l.b16 %v3743_v1  ;;  %v3872_v18 = vunpack.c.l.b16 %v3744_v48  ;;  %v3873_v3 = vunpack.c.l.b16 %v3745_v55  ;;  %v3965_v47 = vrot.slane %v3870_v50, 7 }
 0x3a9   : > { %v3361_v21 = vrot.slane %v3307_v16, 2  ;;  %v3362_v4 = vrot.slane %v3307_v16, 4  ;;  %v3363_v5 = vrot.slane %v3307_v16, 6  ;;  %v7251_v0 = vrot.slane %v3307_v16, 9 }
 0x3aa   : > { %v3966_v35 = vrot.slane %v3871_v22, 6  ;;  %v3968_v45 = vrot.slane %v3872_v18, 5  ;;  %v3189_v36 = vmax.f32 %v3157_v42, 0.0  ;;  %v11263_v15 = vunpack.c.l.b16 %v9882_v27 }
 0x3ab   : > { %v7252_v34 = vrot.slane %v3361_v21, 9  ;;  %v7253_v43 = vrot.slane %v3362_v4, 9  ;;  %v7254_v40 = vrot.slane %v3363_v5, 9  ;;  %v3660_v38 = vmax.f32 %v3307_v16, %v7251_v0  ;;  %v3079_v30 = vpop.f32.mrf.mxu0 }
 0x3ac   : > { %v3967_v41 = vsel %vm3896_vm6, %v3966_v35, %v3965_v47  ;;  %v3222_v60 = vmul.f32 %v9780_v14, %v3189_v36  ;;  %v10014_v1 = vpack.c.b16 %v4392_v23, %v11263_v15  ;;  %v3122_v48 = vadd.f32 %v3079_v30, %v2982_v62  ;;  %v7298_v62 = vld [vmem:[%s11208_s2 + $0x10] sm:$0xf] }
 0x3ad   : > { %v3661_v55 = vmax.f32 %v3361_v21, %v7252_v34  ;;  %v3662_v50 = vmax.f32 %v3362_v4, %v7253_v43  ;;  %v3663_v42 = vmax.f32 %v3363_v5, %v7254_v40  ;;  %v4183_v22 = vrot.slane %v4181_v2, 4  ;;  %v10031_v34 = vpop.f32.mrf.mxu1  ;;  %v10033_v43 = vpop.f32.mrf.mxu2 }
 0x3ae   : > { %v3969_v18 = vsel %vm3899_vm13, %v3968_v45, %v3967_v41  ;;  %v3746_v16 = vpack.c.bf16 %v3660_v38, %v3660_v38  ;;  %v10018_v0 = vadd.f32 %v9795_v25, %v3222_v60  ;;  %7291 = vmatmul.msk.bf16.gmra.mxu3 %vm3263_vm2, %v10014_v1  ;;  %v3158_v27 = vadd.f32 %v9765_v59, %v3122_v48  ;;  %v11264_v60 = vld [vmem:[#allocation36_spill] sm:$0xff] }
 0x3af   : > { %v3747_v21 = vpack.c.bf16 %v3661_v55, %v3661_v55  ;;  %v3748_v47 = vpack.c.bf16 %v3662_v50, %v3662_v50  ;;  %v3749_v4 = vpack.c.bf16 %v3663_v42, %v3663_v42  ;;  %v4184_v2 = vshll.u32 %v9976_v31, 16  ;;  %v4074_v55 = vld [vmem:[#allocation3 + $0x34] sm:$0x1]  ;;  %v10039_v42 = vpop.f32.mrf.mxu3 }
 0x3b0   : > { %v3970_v5 = vrot.slane %v3873_v3, 4  ;;  %v3874_v35 = vunpack.c.l.b16 %v3746_v16  ;;  %3288 = vst.msk [vmem:[%s9308_s23 + $0xc0] sm:$0xff] %vm3263_vm2, %v10018_v0  ;;  %v3190_v45 = vmax.f32 %v3158_v27, 0.0  ;;  %v4545_v36 = vsel %vm4248_vm1, %v7298_v62, 0 }
 0x3b1   : > { %v3875_v40 = vunpack.c.l.b16 %v3747_v21  ;;  %v3876_v38 = vunpack.c.l.b16 %v3748_v47  ;;  %v3877_v30 = vunpack.c.l.b16 %v3749_v4  ;;  %v4186_v41 = vrot.slane %v4184_v2, 5  ;;  %4554 = vmatpush.bf16.msrb.mxu2 %v4545_v36 }
 0x3b2   : > { %v2694_v15 = vadd.f32 %v9889_v19, %v11264_v60  ;;  %v3971_v3 = vsel %vm3902_vm14, %v3970_v5, %v3969_v18  ;;  %v3972_v48 = vrot.slane %v3874_v35, 3  ;;  %v3223_v50 = vmul.f32 %v9780_v14, %v3190_v45 }
 0x3b3   : > { %v3974_v16 = vrot.slane %v3875_v40, 2  ;;  %v3976_v27 = vrot.slane %v3876_v38, 1  ;;  %v4015_v62 = vpack.c.b16 %v3877_v30, %v3877_v30  ;;  %v4187_v21 = vor.u32 %v4186_v41, %v4183_v22  ;;  %v3082_v47 = vpop.f32.mrf.mxu0  ;;  %v4071_v40 = vld [vmem:[#allocation3 + $0x30] sm:$0xf] }
 0x3b4   : > { %v3973_v4 = vsel %vm3905_vm15, %v3972_v48, %v3971_v3  ;;  %v10043_v2 = vadd.f32 %v9795_v25, %v3223_v50  ;;  %v3123_v19 = vadd.f32 %v3082_v47, %v9974_v17  ;;  %v4192_v45 = vrot.slane %v4190_v24, 5  ;;  %v7304_v50 = vld [vmem:[%s11208_s2 + $0x14] sm:$0xf]  ;;  %v7293_v47 = vld [vmem:[%s11208_s2 + $0xc] sm:$0xf] }
 0x3b5   : > { %v3975_v18 = vsel %vm3908_vm5, %v3974_v16, %v3973_v4  ;;  %v4075_v5 = vsel %vm9415_vm0, %v4015_v62, %v4074_v55  ;;  %v4188_v35 = vrot.slane %v4187_v21, 4  ;;  %v2828_v36 = vadd.f32 %v9892_v39, %v2694_v15  ;;  %v4325_v39 = vpop.f32.mrf.mxu2  ;;  %v11265_v16 = vld [vmem:[#allocation40_spill] sm:$0xff] }
 0x3b6   : > { %v3977_v22 = vsel %vm3911_vm11, %v3976_v27, %v3975_v18  ;;  %4076 = vst [vmem:[#allocation3 + $0x34] sm:$0x1] %v4075_v5  ;;  %v3159_v38 = vadd.f32 %v9765_v59, %v3123_v19  ;;  %v2695_v27 = vadd.f32 %v9917_v7, %v11265_v16  ;;  %v4472_v5 = vsel %vm4248_vm1, %v7293_v47, 0 }
 0x3b7   : > { %v4014_v30 = vpack.c.b16 %v3977_v22, %v3977_v22  ;;  %3289 = vst.msk [vmem:[%s9308_s23 + $0xc8] sm:$0xff] %vm3263_vm2, %v10043_v2  ;;  %v4193_v17 = vsel %vm8279_vm9, %v4188_v35, %v4192_v45  ;;  %v2984_v15 = vadd.f32 %v9894_v54, %v2828_v36  ;;  %v4423_v62 = vpop.f32.mrf.mxu3  ;;  %v4609_v54 = vsel %vm4248_vm1, %v7304_v50, 0  ;;  %4481 = vmatpush.bf16.msrb.mxu1 %v4472_v5  ;;  %v11266_v36 = vld [vmem:[#allocation41_spill] sm:$0xff] }
 0x3b8   : > { %v10059_v41 = vunpack.c.l.b16 %v4193_v17  ;;  %v3191_v60 = vmax.f32 %v3159_v38, 0.0  ;;  %4618 = vmatpush.bf16.msrb.mxu3 %v4609_v54  ;;  %v2829_v45 = vadd.f32 %v9921_v9, %v2695_v27  ;;  %v2696_v22 = vadd.f32 %v9960_v63, %v11266_v36 }
 0x3b9   : > { %v4072_v56 = vsel %vm9435_vm4, %v4014_v30, %v4071_v40  ;;  %v4261_v24 = vpop.f32.mrf.mxu1 }
 0x3ba   : > { %4073 = vst [vmem:[#allocation3 + $0x30] sm:$0xf] %v4072_v56  ;;  %v4326_v3 = vadd.f32 %v4325_v39, %v4261_v24  ;;  %v10066_v48 = vpack.c.b16 %v10059_v41, %v9931_v28  ;;  %v3224_v55 = vmul.f32 %v9780_v14, %v3191_v60 }
 0x3bb   : > { %v3084_v21 = vpop.f32.mrf.mxu0 }
 0x3bc   : > { %v10078_v4 = vadd.f32 %v4423_v62, %v4326_v3  ;;  %7274 = vmatmul.msk.bf16.gmra.mxu1 %vm3263_vm2, %v10066_v48  ;;  %v3257_v19 = vadd.f32 %v9795_v25, %v3224_v55  ;;  %v3124_v18 = vadd.f32 %v3084_v21, %v2984_v15  ;;  %v2985_v3 = vadd.f32 %v9933_v52, %v2829_v45 }
 0x3be   : > { %3290 = vst.msk [vmem:[%s9308_s23 + $0xd0] sm:$0xff] %vm3263_vm2, %v3257_v19  ;;  %v3308_v7 = vmax.f32 %v10018_v0, %v3257_v19  ;;  %v3160_v35 = vadd.f32 %v9765_v59, %v3124_v18  ;;  %v2830_v0 = vadd.f32 %v9962_v13, %v2696_v22 }
 0x3c0   : > { %v3364_v40 = vrot.slane %v3308_v7, 2  ;;  %v3365_v38 = vrot.slane %v3308_v7, 4  ;;  %v3366_v30 = vrot.slane %v3308_v7, 6  ;;  %v7255_v17 = vrot.slane %v3308_v7, 9 }
 0x3c1   : > { %v3192_v60 = vmax.f32 %v3160_v35, 0.0  ;;  %v2986_v18 = vadd.f32 %v9967_v37, %v2830_v0  ;;  %v10100_v5 = vld [vmem:[#allocation3 + $0x30] sm:$0xf] }
 0x3c2   : > { %v7256_v56 = vrot.slane %v3364_v40, 9  ;;  %v7257_v39 = vrot.slane %v3365_v38, 9  ;;  %v7258_v24 = vrot.slane %v3366_v30, 9  ;;  %v3664_v15 = vmax.f32 %v3308_v7, %v7255_v17  ;;  %v11267_v7 = vld [vmem:[#allocation42_spill] sm:$0xff] }
 0x3c3   : > { %v3225_v55 = vmul.f32 %v9780_v14, %v3192_v60  ;;  %v3087_v9 = vpop.f32.mrf.mxu0  ;;  %v2697_v35 = vadd.f32 %v9993_v12, %v11267_v7 }
 0x3c4   : > { %v3665_v50 = vmax.f32 %v3364_v40, %v7256_v56  ;;  %v3666_v16 = vmax.f32 %v3365_v38, %v7257_v39  ;;  %v3667_v63 = vmax.f32 %v3366_v30, %v7258_v24  ;;  %v3750_v27 = vpack.c.bf16 %v3664_v15, %v3664_v15 }
 0x3c5   : > { %v3258_v62 = vadd.f32 %v9795_v25, %v3225_v55  ;;  %v3125_v21 = vadd.f32 %v3087_v9, %v2985_v3  ;;  %v4295_v39 = vunpack.c.l.b16 %v10100_v5 }
 0x3c6   : > { %v3751_v54 = vpack.c.bf16 %v3665_v50, %v3665_v50  ;;  %v3752_v47 = vpack.c.bf16 %v3666_v16, %v3666_v16  ;;  %v3878_v19 = vunpack.c.l.b16 %v3750_v27  ;;  %v3753_v45 = vpack.c.bf16 %v3667_v63, %v3667_v63 }
 0x3c7   : > { %3291 = vst.msk [vmem:[%s9308_s23 + $0xd8] sm:$0xff] %vm3263_vm2, %v3258_v62  ;;  %v3309_v52 = vmax.f32 %v10043_v2, %v3258_v62  ;;  %v3161_v13 = vadd.f32 %v9765_v59, %v3125_v21  ;;  %v2831_v21 = vadd.f32 %v9995_v61, %v2697_v35 }
 0x3c8   : > { %v3879_v36 = vunpack.c.l.b16 %v3751_v54  ;;  %v3880_v22 = vunpack.c.l.b16 %v3752_v47  ;;  %v3978_v60 = vrot.slane %v3878_v19, 7  ;;  %v3881_v55 = vunpack.c.l.b16 %v3753_v45 }
 0x3c9   : > { %v3367_v40 = vrot.slane %v3309_v52, 2  ;;  %v3368_v38 = vrot.slane %v3309_v52, 4  ;;  %v3369_v30 = vrot.slane %v3309_v52, 6  ;;  %v7259_v17 = vrot.slane %v3309_v52, 9 }
 0x3ca   : > { %v3979_v37 = vrot.slane %v3879_v36, 6  ;;  %v3193_v56 = vmax.f32 %v3161_v13, 0.0  ;;  %v3981_v9 = vrot.slane %v3880_v22, 5  ;;  %v10117_v22 = vpack.c.b16 %v4295_v39, %v4294_v33 }
 0x3cb   : > { %v7260_v2 = vrot.slane %v3367_v40, 9  ;;  %v7261_v24 = vrot.slane %v3368_v38, 9  ;;  %v7262_v15 = vrot.slane %v3369_v30, 9  ;;  %v3668_v3 = vmax.f32 %v3309_v52, %v7259_v17  ;;  %v3089_v0 = vpop.f32.mrf.mxu0  ;;  %v11268_v17 = vld [vmem:[#allocation19_spill] sm:$0xff] }
 0x3cc   : > { %v3226_v12 = vmul.f32 %v9780_v14, %v3193_v56  ;;  %v3126_v50 = vadd.f32 %v3089_v0, %v2986_v18  ;;  %v3980_v16 = vsel %vm3896_vm6, %v3979_v37, %v3978_v60  ;;  %v3983_v61 = vrot.slane %v3881_v55, 4  ;;  %v4080_v56 = vld [vmem:[#allocation3 + $0x3c] sm:$0x1] }
 0x3cd   : > { %v3669_v63 = vmax.f32 %v3367_v40, %v7260_v2  ;;  %v3670_v27 = vmax.f32 %v3368_v38, %v7261_v24  ;;  %v3671_v62 = vmax.f32 %v3369_v30, %v7262_v15  ;;  %v3754_v54 = vpack.c.bf16 %v3668_v3, %v3668_v3 }
 0x3ce   : > { %v3259_v47 = vadd.f32 %v9795_v25, %v3226_v12  ;;  %v3162_v19 = vadd.f32 %v9765_v59, %v3126_v50  ;;  %v3982_v45 = vsel %vm3899_vm13, %v3981_v9, %v3980_v16  ;;  %v2987_v30 = vadd.f32 %v10006_v29, %v2831_v21 }
 0x3cf   : > { %v3755_v52 = vpack.c.bf16 %v3669_v63, %v3669_v63  ;;  %v3756_v13 = vpack.c.bf16 %v3670_v27, %v3670_v27  ;;  %v3757_v7 = vpack.c.bf16 %v3671_v62, %v3671_v62  ;;  %v3882_v36 = vunpack.c.l.b16 %v3754_v54  ;;  %v4077_v27 = vld [vmem:[#allocation3 + $0x38] sm:$0xf] }
 0x3d0   : > { %3292 = vst.msk [vmem:[%s9308_s23 + $0xe0] sm:$0xff] %vm3263_vm2, %v3259_v47  ;;  %v3194_v18 = vmax.f32 %v3162_v19, 0.0  ;;  %v2698_v60 = vadd.f32 %v10031_v34, %v11268_v17  ;;  %v3984_v24 = vsel %vm3902_vm14, %v3983_v61, %v3982_v45  ;;  %v4195_v12 = vshrl.u32 %v10100_v5, 16  ;;  %v4102_v19 = vld [vmem:[#allocation3 + $0x34] sm:$0x1] }
 0x3d1   : > { %v3883_v35 = vunpack.c.l.b16 %v3755_v52  ;;  %v3884_v40 = vunpack.c.l.b16 %v3756_v13  ;;  %v3885_v38 = vunpack.c.l.b16 %v3757_v7  ;;  %v3985_v37 = vrot.slane %v3882_v36, 3 }
 0x3d2   : > { %v3227_v2 = vmul.f32 %v9780_v14, %v3194_v18  ;;  %v4198_v50 = vshll.u32 %v10100_v5, 16  ;;  %v2832_v16 = vadd.f32 %v10033_v43, %v2698_v60  ;;  %v4197_v13 = vrot.slane %v4195_v12, 4 }
 0x3d3   : > { %v3987_v31 = vrot.slane %v3883_v35, 2  ;;  %v3989_v15 = vrot.slane %v3884_v40, 1  ;;  %v4017_v33 = vpack.c.b16 %v3885_v38, %v3885_v38  ;;  %v3092_v3 = vpop.f32.mrf.mxu0  ;;  %v3986_v0 = vsel %vm3905_vm15, %v3985_v37, %v3984_v24 }
 0x3d4   : > { %v10126_v55 = vadd.f32 %v9795_v25, %v3227_v2  ;;  %v3127_v29 = vadd.f32 %v3092_v3, %v2987_v30  ;;  %v4200_v7 = vrot.slane %v4198_v50, 5  ;;  %v2988_v43 = vadd.f32 %v10039_v42, %v2832_v16 }
 0x3d5   : > { %v3988_v9 = vsel %vm3908_vm5, %v3987_v31, %v3986_v0  ;;  %v4081_v34 = vsel %vm9415_vm0, %v4017_v33, %v4080_v56  ;;  %v7286_v36 = vrot.slane %v10100_v5, 9  ;;  %v4204_v61 = vshll.u32 %v4102_v19, 16 }
 0x3d6   : > { %v3990_v63 = vsel %vm3911_vm11, %v3989_v15, %v3988_v9  ;;  %4082 = vst [vmem:[#allocation3 + $0x3c] sm:$0x1] %v4081_v34  ;;  %v3163_v62 = vadd.f32 %v9765_v59, %v3127_v29  ;;  %v4379_v38 = vrot.slane %v4102_v19, 5  ;;  %v4201_v30 = vor.u32 %v4200_v7, %v4197_v13 }
 0x3d7   : > { %v4016_v21 = vpack.c.b16 %v3990_v63, %v3990_v63  ;;  %3293 = vst.msk [vmem:[%s9308_s23 + $0xe8] sm:$0xff] %vm3263_vm2, %v10126_v55  ;;  %v10154_v56 = vrot.slane %v4204_v61, 5 }
 0x3d8   : > { %v3195_v54 = vmax.f32 %v3163_v62, 0.0  ;;  %v10152_v42 = vsel %vm8254_vm7, %v7286_v36, %v4379_v38 }
 0x3d9   : > { %v4078_v52 = vsel %vm9435_vm4, %v4016_v21, %v4077_v27 }
 0x3da   : > { %4079 = vst [vmem:[#allocation3 + $0x38] sm:$0xf] %v4078_v52  ;;  %v3228_v45 = vmul.f32 %v9780_v14, %v3195_v54  ;;  %v7314_v52 = vld [vmem:[%s11208_s2 + $0x1c] sm:$0xf] }
 0x3db   : > { %v3094_v18 = vpop.f32.mrf.mxu0 }
 0x3dc   : > { %v3261_v35 = vadd.f32 %v9795_v25, %v3228_v45  ;;  %v3128_v40 = vadd.f32 %v3094_v18, %v2988_v43 }
 0x3dd   : > { %v10148_v37 = vld [vmem:[#allocation3 + $0x3c] sm:$0x1] }
 0x3de   : > { %3294 = vst.msk [vmem:[%s9308_s23 + $0xf0] sm:$0xff] %vm3263_vm2, %v3261_v35  ;;  %v3310_v17 = vmax.f32 %v3259_v47, %v3261_v35  ;;  %v3164_v60 = vadd.f32 %v9765_v59, %v3128_v40  ;;  %v4383_v0 = vrot.slane %v10148_v37, 5  ;;  %v4393_v47 = vunpack.c.l.b16 %v10152_v42 }
 0x3df   : > { %v10160_v59 = vrot.slane %v4201_v30, 4  ;;  %v4218_v43 = vshll.u32 %v10148_v37, 16  ;;  %v4718_v35 = vsel %vm4248_vm1, %v7314_v52, 0 }
 0x3e0   : > { %v3370_v2 = vrot.slane %v3310_v17, 2  ;;  %v3371_v24 = vrot.slane %v3310_v17, 4  ;;  %v3372_v31 = vrot.slane %v3310_v17, 6  ;;  %v7263_v15 = vrot.slane %v3310_v17, 9  ;;  %4727 = vmatpush.bf16.msra.mxu2 %v4718_v35 }
 0x3e1   : > { %v3196_v33 = vmax.f32 %v3164_v60, 0.0  ;;  %v10156_v3 = vld [vmem:[#allocation3 + $0x38] sm:$0xf]  ;;  %v7320_v60 = vld [vmem:[%s11208_s2 + $0x20] sm:$0xf] }
 0x3e2   : > { %v7264_v29 = vrot.slane %v3370_v2, 9  ;;  %v7265_v9 = vrot.slane %v3371_v24, 9  ;;  %v7266_v34 = vrot.slane %v3372_v31, 9  ;;  %v3672_v12 = vmax.f32 %v3310_v17, %v7263_v15 }
 0x3e3   : > { %v3229_v50 = vmul.f32 %v9780_v14, %v3196_v33  ;;  %v4296_v16 = vunpack.c.l.b16 %v10156_v3  ;;  %v7287_v63 = vrot.slane %v10156_v3, 9  ;;  %v4209_v27 = vshrl.u32 %v10156_v3, 16 }
 0x3e4   : > { %v3673_v62 = vmax.f32 %v3370_v2, %v7264_v29  ;;  %v3674_v21 = vmax.f32 %v3371_v24, %v7265_v9  ;;  %v3675_v54 = vmax.f32 %v3372_v31, %v7266_v34  ;;  %v3758_v19 = vpack.c.bf16 %v3672_v12, %v3672_v12  ;;  %v7309_v31 = vld [vmem:[%s11208_s2 + $0x18] sm:$0xf]  ;;  %s6742_s2 = scalar_lea.hbm %s11316_s13, %s7842_s30 }
 0x3e5   : > { %v3262_v13 = vadd.f32 %v9795_v25, %v3229_v50  ;;  %v10174_v14 = vpack.c.b16 %v4296_v16, %v4295_v39  ;;  %v10178_v7 = vsel %vm8254_vm7, %v7287_v63, %v4383_v0  ;;  %v4211_v39 = vrot.slane %v4209_v27, 4 }
 0x3e6   : > { %v3759_v45 = vpack.c.bf16 %v3673_v62, %v3673_v62  ;;  %v3760_v36 = vpack.c.bf16 %v3674_v21, %v3674_v21  ;;  %v3761_v18 = vpack.c.bf16 %v3675_v54, %v3675_v54  ;;  %v3886_v61 = vunpack.c.l.b16 %v3758_v19 }
 0x3e7   : > { %3295 = vst.msk [vmem:[%s9308_s23 + $0xf8] sm:$0xff] %vm3263_vm2, %v3262_v13  ;;  %v3311_v25 = vmax.f32 %v10126_v55, %v3262_v13  ;;  %7279 = vmatmul.msk.bf16.gmra.mxu2 %vm3263_vm2, %v10174_v14  ;;  %v4394_v5 = vunpack.c.l.b16 %v10178_v7  ;;  %v4212_v17 = vshll.u32 %v10156_v3, 16  ;;  %v4770_v62 = vsel %vm4248_vm1, %v7320_v60, 0  ;;  %v4107_v3 = vld [vmem:[#allocation3 + $0x48] sm:$0xf]  ;;  %s6958_s23 = sshll.u32 %s10370_s0, 6 }
 0x3e8   : > { %v3887_v40 = vunpack.c.l.b16 %v3759_v45  ;;  %v3888_v38 = vunpack.c.l.b16 %v3760_v36  ;;  %v3889_v30 = vunpack.c.l.b16 %v3761_v18  ;;  %v3991_v15 = vrot.slane %v3886_v61, 7  ;;  %4779 = vmatpush.bf16.msra.mxu3 %v4770_v62  ;;  %s10390_s25 = scalar_lea.vmem [#allocation7], %s6958_s23 }
 0x3e9   : > { %v3373_v37 = vrot.slane %v3311_v25, 2  ;;  %v3374_v55 = vrot.slane %v3311_v25, 4  ;;  %v3375_v2 = vrot.slane %v3311_v25, 6  ;;  %v7267_v24 = vrot.slane %v3311_v25, 9 }
 0x3ea   : > { %v3992_v33 = vrot.slane %v3887_v40, 6  ;;  %v3994_v0 = vrot.slane %v3888_v38, 5  ;;  %v10199_v29 = vpack.c.b16 %v4394_v5, %v4393_v47  ;;  %v4214_v27 = vrot.slane %v4212_v17, 5 }
 0x3eb   : > { %v7268_v9 = vrot.slane %v3373_v37, 9  ;;  %v7269_v34 = vrot.slane %v3374_v55, 9  ;;  %v7270_v12 = vrot.slane %v3375_v2, 9  ;;  %v3676_v50 = vmax.f32 %v3311_v25, %v7267_v24 }
 0x3ec   : > { %v3993_v63 = vsel %vm3896_vm6, %v3992_v33, %v3991_v15  ;;  %7292 = vmatmul.msk.bf16.gmra.mxu3 %vm3263_vm2, %v10199_v29  ;;  %v4657_v21 = vsel %vm4248_vm1, %v7309_v31, 0  ;;  %v4207_v45 = vsel %vm8279_vm9, %v10160_v59, %v10154_v56  ;;  %v4215_v36 = vor.u32 %v4214_v27, %v4211_v39  ;;  %v4086_v39 = vld [vmem:[#allocation3 + $0x44] sm:$0x1] }
 0x3ed   : > { %v3677_v54 = vmax.f32 %v3373_v37, %v7268_v9  ;;  %v3678_v19 = vmax.f32 %v3374_v55, %v7269_v34  ;;  %v3679_v52 = vmax.f32 %v3375_v2, %v7270_v12  ;;  %v3762_v13 = vpack.c.bf16 %v3676_v50, %v3676_v50  ;;  %4666 = vmatpush.bf16.msra.mxu1 %v4657_v21  ;;  %v10211_v37 = vpop.f32.mrf.mxu2  ;;  %v10213_v55 = vpop.f32.mrf.mxu1  ;;  %v4083_v21 = vld [vmem:[#allocation3 + $0x40] sm:$0xf] }
 0x3ee   : > { %v3995_v18 = vsel %vm3899_vm13, %v3994_v0, %v3993_v63  ;;  %v3996_v40 = vrot.slane %v3889_v30, 4  ;;  %v4216_v17 = vrot.slane %v4215_v36, 4  ;;  %v4220_v60 = vrot.slane %v4218_v43, 5  ;;  %v10218_v0 = vpop.f32.mrf.mxu3 }
 0x3ef   : > { %v3763_v61 = vpack.c.bf16 %v3677_v54, %v3677_v54  ;;  %v3764_v25 = vpack.c.bf16 %v3678_v19, %v3678_v19  ;;  %v3765_v35 = vpack.c.bf16 %v3679_v52, %v3679_v52  ;;  %v3890_v38 = vunpack.c.l.b16 %v3762_v13 }
 0x3f0   : > { %v3997_v56 = vsel %vm3902_vm14, %v3996_v40, %v3995_v18  ;;  %v4221_v15 = vsel %vm8279_vm9, %v4216_v17, %v4220_v60  ;;  %v4230_v33 = vunpack.c.l.b16 %v4207_v45  ;;  %v11269_v19 = vpack.c.b16 %v9713_v6, %v9579_v8 }
 0x3f1   : > { %v3891_v2 = vunpack.c.l.b16 %v3763_v61  ;;  %v3892_v24 = vunpack.c.l.b16 %v3764_v25  ;;  %v3893_v31 = vunpack.c.l.b16 %v3765_v35  ;;  %v3998_v59 = vrot.slane %v3890_v38, 3 }
 0x3f2   : > { %v4231_v34 = vunpack.c.l.b16 %v4221_v15  ;;  %v11271_v15 = vld [vmem:[#allocation31_spill] sm:$0xff]  ;;  %vm5100_vm1 = vsmask.f32 1280 }
 0x3f3   : > { %v4000_v30 = vrot.slane %v3891_v2, 2  ;;  %v4002_v9 = vrot.slane %v3892_v24, 1  ;;  %v4019_v43 = vpack.c.b16 %v3893_v31, %v3893_v31  ;;  %v3999_v12 = vsel %vm3905_vm15, %v3998_v59, %v3997_v56 }
 0x3f4   : > { %v10224_v27 = vpack.c.b16 %v4231_v34, %v4230_v33 }
 0x3f5   : > { %v4001_v50 = vsel %vm3908_vm5, %v4000_v30, %v3999_v12  ;;  %v4087_v63 = vsel %vm9415_vm0, %v4019_v43, %v4086_v39  ;;  %v4330_v26 = vpop.f32.mrf.mxu2  ;;  %v4700_v30 = vshll.u32 %v4107_v3, 16  ;;  %vm4952_vm0 = vcmask 124928  }
 0x3f6   : > { %v4003_v62 = vsel %vm3911_vm11, %v4002_v9, %v4001_v50  ;;  %4088 = vst [vmem:[#allocation3 + $0x44] sm:$0x1] %v4087_v63  ;;  %7275 = vmatmul.msk.bf16.gmra.mxu1 %vm3263_vm2, %v10224_v27  ;;  %v4428_v36 = vpop.f32.mrf.mxu3  ;;  %vm5230_vm11 = vcmask 1040384  }
 0x3f7   : > { %v4018_v54 = vpack.c.b16 %v4003_v62, %v4003_v62  ;;  %7299 = vmatmul.msk.bf16.vlgmr.msrb.gmra.mxu2 %vm3263_vm2, %v11269_v19  ;;  %v4702_v43 = vrot.slane %v4700_v30, 5  ;;  %v4328_v30 = vadd.f32 %v10211_v37, %v10213_v55 }
 0x3f8   : > { %v4266_v13 = vpop.f32.mrf.mxu1 }
 0x3f9   : > { %v4084_v52 = vsel %vm9435_vm4, %v4018_v54, %v4083_v21  ;;  %v4331_v45 = vadd.f32 %v4330_v26, %v4266_v13  ;;  %vm5105_vm4 = vsmask.f32 7448 }
 0x3fa   : > { %4085 = vst [vmem:[#allocation3 + $0x40] sm:$0xf] %v4084_v52 }
 0x3fb   : > { %v10235_v18 = vadd.f32 %v4428_v36, %v4331_v45  ;;  %v4651_v36 = vunpack.c.l.b16 %v4107_v3 }
 0x3fc   : > { %7305 = vmatmul.msk.bf16.vlgmr.msrb.gmra.mxu3 %vm3263_vm2, %v9664_v53  ;;  %v4530_v53 = vpack.c.b16 %v4230_v33, %v10059_v41  ;;  %v11272_v33 = vld [vmem:[#allocation25_spill] sm:$0xff] }
 0x3fd   : > { %v4106_v35 = vld [vmem:[#allocation3 + $0x44] sm:$0x1] }
 0x3fe   : > { %v4521_v20 = vshll.u32 %v4106_v35, 16  ;;  %v4587_v17 = vrot.slane %v4106_v35, 5  ;;  %v10276_v24 = vpop.f32.mrf.mxu3 }
 0x400   : > { %v10273_v42 = vpop.f32.mrf.mxu1 }
 0x401   : > { %v10245_v10 = vld [vmem:[#allocation3 + $0x40] sm:$0xf] }
 0x402   : > { %v4512_v8 = vshrl.u32 %v10245_v10, 16  ;;  %v4515_v6 = vshll.u32 %v10245_v10, 16  ;;  %v7303_v40 = vrot.slane %v10245_v10, 9 }
 0x404   : > { %v4514_v61 = vrot.slane %v4512_v8, 4  ;;  %v4517_v25 = vrot.slane %v4515_v6, 5 }
 0x406   : > { %7294 = vmatmul.msk.bf16.vlgmr.msrb.gmra.mxu1 %vm3263_vm2, %v9638_v44  ;;  %v4518_v44 = vor.u32 %v4517_v25, %v4514_v61 }
 0x407   : > { %7300 = vmatmul.msk.bf16.gmra.mxu2 %vm3263_vm2, %v4529_v51  ;;  %v4523_v51 = vrot.slane %v4521_v20, 5 }
 0x408   : > { %v4519_v28 = vrot.slane %v4518_v44, 4 }
 0x40a   : > { %v4524_v41 = vsel %vm8279_vm9, %v4519_v28, %v4523_v51 }
 0x40b   : > { %v4527_v38 = vunpack.c.l.b16 %v4524_v41 }
 0x40c   : > { %7306 = vmatmul.msk.bf16.gmra.mxu3 %vm3263_vm2, %v9907_v57  ;;  %v4594_v57 = vpack.c.b16 %v4393_v47, %v4392_v23  ;;  %v10271_v23 = vpop.f32.mrf.mxu2  ;;  %v4454_v47 = vunpack.c.l.b16 %v10245_v10 }
 0x40d   : > { %v4531_v60 = vpack.c.b16 %v4527_v38, %v4231_v34  ;;  %v4108_v34 = vld [vmem:[#allocation3 + $0x4c] sm:$0x1] }
 0x40e   : > { %v4458_v31 = vpack.c.b16 %v4454_v47, %v4296_v16  ;;  %v4697_v16 = vshrl.u32 %v4107_v3, 16  ;;  %v4706_v50 = vshll.u32 %v4108_v34, 16  ;;  %v4760_v21 = vrot.slane %v4108_v34, 5 }
 0x40f   : > { %v4652_v6 = vpack.c.b16 %v4651_v36, %v4454_v47  ;;  %v4444_v34 = vadd.f32 %v10218_v0, %v4328_v30  ;;  %v10385_v36 = vld [vmem:[%s11274_s7 + $0x2] ss:$0 sm:$0xff] }
 0x410   : > { %v4699_v9 = vrot.slane %v4697_v16, 4  ;;  %v4708_v62 = vrot.slane %v4706_v50, 5 }
 0x412   : > { %v4703_v12 = vor.u32 %v4702_v43, %v4699_v9 }
 0x414   : > { %v4704_v63 = vrot.slane %v4703_v12, 4  ;;  %v11273_v12 = vmov 0  }
 0x415   : > { %4953 = vst.msk [vmem:[#allocation4] sm:$0x7] %vm4952_vm0, %v11273_v12 }
 0x416   : > { %7295 = vmatmul.msk.bf16.gmra.mxu1 %vm3263_vm2, %v9913_v58  ;;  %v4588_v58 = vsel %vm8254_vm7, %v7303_v40, %v4587_v17  ;;  %4954 = vst.msk [vmem:[#allocation4 + $0x4] sm:$0x7] %vm4952_vm0, %v11273_v12 }
 0x417   : > { %7301 = vmatmul.msk.bf16.gmra.mxu2 %vm3263_vm2, %v4530_v53  ;;  %v4591_v2 = vunpack.c.l.b16 %v4588_v58  ;;  %4958 = vst.msk [vmem:[#allocation4 + $0x14] sm:$0x7] %vm4952_vm0, %v11273_v12 }
 0x418   : > { %4955 = vst.msk [vmem:[#allocation4 + $0x8] sm:$0x7] %vm4952_vm0, %v11273_v12 }
 0x419   : > { %v4595_v49 = vpack.c.b16 %v4591_v2, %v4394_v5  ;;  %4956 = vst.msk [vmem:[#allocation4 + $0xc] sm:$0x7] %vm4952_vm0, %v11273_v12 }
 0x41a   : > { %4957 = vst.msk [vmem:[#allocation4 + $0x10] sm:$0x7] %vm4952_vm0, %v11273_v12 }
 0x41c   : > { %7307 = vmatmul.msk.bf16.gmra.mxu3 %vm3263_vm2, %v4594_v57 }
 0x426   : > { %7296 = vmatmul.msk.bf16.gmra.mxu1 %vm3263_vm2, %v10117_v22  ;;  %v11270_v22 = vld [vmem:[#allocation34_spill] sm:$0xff] }
 0x427   : > { %7302 = vmatmul.msk.bf16.gmra.mxu2 %vm3263_vm2, %v4531_v60 }
 0x42a   : > { %v4335_v7 = vpop.f32.mrf.mxu2 }
 0x42c   : > { %7308 = vmatmul.msk.bf16.gmra.mxu3 %vm3263_vm2, %v4595_v49 }
 0x431   : > { %v4433_v59 = vpop.f32.mrf.mxu3 }
 0x432   : > { %v10301_v19 = vpop.f32.mrf.mxu2 }
 0x436   : > { %7297 = vmatmul.msk.bf16.gmra.mxu1 %vm3263_vm2, %v4458_v31 }
 0x437   : > { %7315 = vmatmul.msk.bf16.vlgmr.msra.gmra.mxu2 %vm3263_vm2, %v11270_v22 }
 0x439   : > { %v4271_v5 = vpop.f32.mrf.mxu1  ;;  %v10305_v13 = vpop.f32.mrf.mxu3 }
 0x43a   : > { %v4336_v56 = vadd.f32 %v4335_v7, %v4271_v5 }
 0x43c   : > { %v10283_v39 = vadd.f32 %v4433_v59, %v4336_v56  ;;  %7321 = vmatmul.msk.bf16.vlgmr.msra.gmra.mxu3 %vm3263_vm2, %v11271_v15 }
 0x446   : > { %7310 = vmatmul.msk.bf16.vlgmr.msra.gmra.mxu1 %vm3263_vm2, %v11272_v33 }
 0x447   : > { %7316 = vmatmul.msk.bf16.gmra.mxu2 %vm3263_vm2, %v10066_v48  ;;  %v7319_v48 = vrot.slane %v4107_v3, 9 }
 0x449   : > { %v4761_v52 = vsel %vm8254_vm7, %v7319_v48, %v4760_v21  ;;  %vm4847_vm7 = vcmask 130048  }
 0x44a   : > { %v4764_v26 = vunpack.c.l.b16 %v4761_v52 }
 0x44c   : > { %7322 = vmatmul.msk.bf16.gmra.mxu3 %vm3263_vm2, %v10014_v1  ;;  %v4709_v1 = vsel %vm8279_vm9, %v4704_v63, %v4708_v62  ;;  %v4765_v32 = vpack.c.b16 %v4764_v26, %v4591_v2  ;;  %v10377_v26 = vld [vmem:[%s11274_s7 + $0x1] ss:$0 sm:$0xff]  ;;  %vm11275_vm9 = vcmask 1041408  }
 0x44d   : > { %v4712_v54 = vunpack.c.l.b16 %v4709_v1  ;;  %v10365_v1 = vld [vmem:[%s11274_s7] ss:$0 sm:$0xff]  ;;  %s6745_s7 = sshll.u32 %s6742_s2, 4  ;;  %s6746_s7 = int_to_ptr.hbm [resolvable:$true] %s6745_s7 }
 0x456   : > { %7311 = vmatmul.msk.bf16.gmra.mxu1 %vm3263_vm2, %v9987_v46  ;;  %v4713_v46 = vpack.c.b16 %v4712_v54, %v4527_v38 }
 0x457   : > { %7317 = vmatmul.msk.bf16.gmra.mxu2 %vm3263_vm2, %v10224_v27  ;;  %v10310_v27 = vpop.f32.mrf.mxu1 }
 0x458   : > { %v4338_v30 = vadd.f32 %v10301_v19, %v10310_v27 }
 0x45c   : > { %7323 = vmatmul.msk.bf16.gmra.mxu3 %vm3263_vm2, %v10199_v29 }
 0x466   : > { %7312 = vmatmul.msk.bf16.gmra.mxu1 %vm3263_vm2, %v10174_v14 }
 0x467   : > { %7318 = vmatmul.msk.bf16.gmra.mxu2 %vm3263_vm2, %v4713_v46 }
 0x46a   : > { %v4340_v29 = vpop.f32.mrf.mxu2 }
 0x46c   : > { %7324 = vmatmul.msk.bf16.gmra.mxu3 %vm3263_vm2, %v4765_v32  ;;  %v4333_v32 = vadd.f32 %v10271_v23, %v10273_v42 }
 0x46f   : > { %v4438_v45 = vpop.f32.mrf.mxu3 }
 0x472   : > { %v10313_v10 = vpop.f32.mrf.mxu2 }
 0x473   : > { %v4276_v11 = vpop.f32.mrf.mxu1 }
 0x474   : > { %v4341_v8 = vadd.f32 %v4340_v29, %v4276_v11 }
 0x476   : > { %v10315_v61 = vadd.f32 %v4438_v45, %v4341_v8  ;;  %7313 = vmatmul.msk.bf16.gmra.mxu1 %vm3263_vm2, %v4652_v6  ;;  %vm5101_vm2 = vsmask.f32 3336 }
 0x477   : > { %v10318_v14 = vpop.f32.mrf.mxu3  ;;  %vm5102_vm15 = vmor %vm5100_vm1, %vm5101_vm2 }
 0x478   : > { %vm10424_vm12 = vmor %vm5102_vm15, %vm5103_vm3 }
 0x479   : > { %vm10439_vm3 = vmor %vm10424_vm12, %vm5105_vm4  ;;  %vm5045_vm12 = vsmask.f32 2306 }
 0x47a   : > { %v4556_v25 = vpop.f32.mrf.mxu2 }
 0x47b   : > { %v10320_v53 = vpop.f32.mrf.mxu1 }
 0x47f   : > { %v4620_v35 = vpop.f32.mrf.mxu3 }
 0x482   : > { %v4558_v44 = vpop.f32.mrf.mxu2 }
 0x483   : > { %v4483_v20 = vpop.f32.mrf.mxu1 }
 0x484   : > { %v4503_v3 = vadd.f32 %v4483_v20, %v10078_v4 }
 0x486   : > { %v4576_v9 = vadd.f32 %v4556_v25, %v4503_v3 }
 0x487   : > { %v4622_v57 = vpop.f32.mrf.mxu3 }
 0x488   : > { %v4640_v50 = vadd.f32 %v4620_v35, %v4576_v9  ;;  %v4446_v35 = vadd.f32 %v10276_v24, %v4333_v32 }
 0x48a   : > { %v4561_v28 = vpop.f32.mrf.mxu2 }
 0x48b   : > { %v4485_v51 = vpop.f32.mrf.mxu1 }
 0x48c   : > { %v4504_v63 = vadd.f32 %v4485_v51, %v4444_v34 }
 0x48e   : > { %v4577_v55 = vadd.f32 %v4558_v44, %v4504_v63 }
 0x48f   : > { %v4625_v41 = vpop.f32.mrf.mxu3 }
 0x490   : > { %v4641_v54 = vadd.f32 %v4622_v57, %v4577_v55 }
 0x492   : > { %v10322_v40 = vpop.f32.mrf.mxu2 }
 0x493   : > { %v4488_v38 = vpop.f32.mrf.mxu1 }
 0x494   : > { %v4505_v52 = vadd.f32 %v4488_v38, %v10235_v18 }
 0x496   : > { %v4578_v8 = vadd.f32 %v4561_v28, %v4505_v52  ;;  %v10395_v28 = vld [vmem:[#allocation4] sm:$0x7] }
 0x497   : > { %v10324_v17 = vpop.f32.mrf.mxu3 }
 0x498   : > { %v4642_v42 = vadd.f32 %v4625_v41, %v4578_v8  ;;  %v5071_v41 = vrot.slane %v10395_v28, 2 }
 0x49a   : > { %v10326_v58 = vpop.f32.mrf.mxu2 }
 0x49b   : > { %v4490_v60 = vpop.f32.mrf.mxu1 }
 0x49c   : > { %v4506_v57 = vadd.f32 %v4490_v60, %v4446_v35 }
 0x49e   : > { %v4579_v60 = vadd.f32 %v10322_v40, %v4506_v57  ;;  %v4448_v40 = vadd.f32 %v10305_v13, %v4338_v30 }
 0x49f   : > { %v10328_v2 = vpop.f32.mrf.mxu3 }
 0x4a0   : > { %v4643_v63 = vadd.f32 %v10324_v17, %v4579_v60 }
 0x4a2   : > { %v10330_v49 = vpop.f32.mrf.mxu2 }
 0x4a3   : > { %v4493_v47 = vpop.f32.mrf.mxu1 }
 0x4a4   : > { %v4507_v38 = vadd.f32 %v4493_v47, %v10283_v39  ;;  %v10406_v39 = vsel %vm11275_vm9, %v10395_v28, %v5071_v41  ;;  %v5079_v47 = vsel %vm5078_vm8, %v10395_v28, %v5071_v41  ;;  %vm5232_vm9 = vmor %vm5230_vm11, %vm3896_vm6 }
 0x4a5   : > { %v5081_v27 = vrot.slane %v5079_v47, 2  ;;  %vm10430_vm2 = vmor %vm5232_vm9, %vm3902_vm14 }
 0x4a6   : > { %v4580_v34 = vadd.f32 %v10326_v58, %v4507_v38  ;;  %vm10451_vm15 = vmor %vm10430_vm2, %vm3908_vm5 }
 0x4a7   : > { %v10332_v31 = vpop.f32.mrf.mxu3  ;;  %v5116_v55 = vshll.u32 %v5081_v27, 16  ;;  %vm10469_vm5 = vmand %vm4952_vm0, %vm5045_vm12  ;;  %vm11286_vm0 = vcmask 1041408  }
 0x4a8   : > { %vm11287_vm4 = vmmov %vm11286_vm0 }
 0x4a9   : > { %vm11289_vm9 = vmmov %vm11286_vm0 }
 0x4aa   : > { %v10334_v22 = vpop.f32.mrf.mxu2  ;;  %vm11291_vm2 = vmmov %vm11286_vm0 }
 0x4ab   : > { %v10336_v7 = vpop.f32.mrf.mxu1 }
 0x4ac   : > { %v4508_v38 = vadd.f32 %v10336_v7, %v4448_v40  ;;  %v7353_v7 = vrot.slane %v10406_v39, 9 }
 0x4af   : > { %v10338_v5 = vpop.f32.mrf.mxu3 }
 0x4b2   : > { %v10340_v56 = vpop.f32.mrf.mxu2 }
 0x4b3   : > { %v10342_v59 = vpop.f32.mrf.mxu1 }
 0x4b7   : > { %v10344_v15 = vpop.f32.mrf.mxu3 }
 0x4ba   : > { %v4729_v33 = vpop.f32.mrf.mxu2 }
 0x4bb   : > { %v10347_v16 = vpop.f32.mrf.mxu1 }
 0x4bf   : > { %v4781_v43 = vpop.f32.mrf.mxu3 }
 0x4c2   : > { %v4731_v62 = vpop.f32.mrf.mxu2 }
 0x4c3   : > { %v4668_v4 = vpop.f32.mrf.mxu1 }
 0x4c4   : > { %v4688_v37 = vadd.f32 %v4668_v4, %v4640_v50  ;;  %v5107_v4 = vshrl.u32 %v10406_v39, 16 }
 0x4c6   : > { %v4749_v0 = vadd.f32 %v4729_v33, %v4688_v37  ;;  %v4644_v37 = vadd.f32 %v10328_v2, %v4580_v34  ;;  %v5109_v17 = vrot.slane %v5107_v4, 6 }
 0x4c7   : > { %v4783_v48 = vpop.f32.mrf.mxu3 }
 0x4c8   : > { %v4801_v21 = vadd.f32 %v4781_v43, %v4749_v0 }
 0x4ca   : > { %v4813_v46 = vadd.f32 %v10365_v1, %v4801_v21  ;;  %v4734_v18 = vpop.f32.mrf.mxu2 }
 0x4cb   : > { %v4670_v29 = vpop.f32.mrf.mxu1 }
 0x4cc   : > { %v4821_v45 = vmax.f32 %v4813_v46, 0.0  ;;  %v4689_v11 = vadd.f32 %v4670_v29, %v4641_v54 }
 0x4ce   : > { %v4830_v6 = vmul.f32 %v10377_v26, %v4821_v45  ;;  %v4750_v25 = vadd.f32 %v4731_v62, %v4689_v11  ;;  %v5110_v62 = vshll.u32 %v10406_v39, 16 }
 0x4cf   : > { %v4786_v23 = vpop.f32.mrf.mxu3 }
 0x4d0   : > { %v4839_v44 = vadd.f32 %v10385_v36, %v4830_v6  ;;  %v4802_v20 = vadd.f32 %v4783_v48, %v4750_v25  ;;  %v5112_v29 = vrot.slane %v5110_v62, 7  ;;  %v5118_v25 = vrot.slane %v5116_v55, 7 }
 0x4d2   : > { %4848 = vst.msk [vmem:[%s10390_s25] sm:$0xff] %vm4847_vm7, %v4839_v44  ;;  %v4814_v51 = vadd.f32 %v10365_v1, %v4802_v20  ;;  %v4736_v12 = vpop.f32.mrf.mxu2  ;;  %v5113_v6 = vor.u32 %v5112_v29, %v5109_v17 }
 0x4d3   : > { %v4673_v33 = vpop.f32.mrf.mxu1 }
 0x4d4   : > { %v4822_v3 = vmax.f32 %v4814_v51, 0.0  ;;  %v4690_v24 = vadd.f32 %v4673_v33, %v4642_v42  ;;  %v5114_v33 = vrot.slane %v5113_v6, 2 }
 0x4d6   : > { %v4831_v9 = vmul.f32 %v10377_v26, %v4822_v3  ;;  %v4751_v43 = vadd.f32 %v4734_v18, %v4690_v24  ;;  %v5119_v47 = vsel %vm10439_vm3, %v5114_v33, %v5118_v25 }
 0x4d7   : > { %v4788_v21 = vpop.f32.mrf.mxu3  ;;  %5163 = vst [vmem:[#allocation1] ss:$4 sm:$0xff] %v5119_v47 }
 0x4d8   : > { %v4840_v19 = vadd.f32 %v10385_v36, %v4831_v9  ;;  %v4803_v50 = vadd.f32 %v4786_v23, %v4751_v43 }
 0x4da   : > { %4849 = vst.msk [vmem:[%s10390_s25 + $0x8] sm:$0xff] %vm4847_vm7, %v4840_v19  ;;  %v4856_v58 = vmax.f32 %v4839_v44, %v4840_v19  ;;  %v4815_v0 = vadd.f32 %v10365_v1, %v4803_v50  ;;  %v4739_v30 = vpop.f32.mrf.mxu2  ;;  %v5239_v19 = vrot.slane %v5081_v27, 7 }
 0x4db   : > { %v4675_v48 = vpop.f32.mrf.mxu1 }
 0x4dc   : > { %v4864_v13 = vrot.slane %v4856_v58, 2  ;;  %v4865_v54 = vrot.slane %v4856_v58, 4  ;;  %v4866_v52 = vrot.slane %v4856_v58, 6  ;;  %v7325_v46 = vrot.slane %v4856_v58, 9 }
 0x4dd   : > { %v4823_v32 = vmax.f32 %v4815_v0, 0.0  ;;  %v4691_v44 = vadd.f32 %v4675_v48, %v4643_v63  ;;  %v10457_v62 = vsel %vm10451_vm15, %v7353_v7, %v5239_v19  ;;  %v4581_v0 = vadd.f32 %v10330_v49, %v4508_v38 }
 0x4de   : > { %v7326_v2 = vrot.slane %v4864_v13, 9  ;;  %v7327_v45 = vrot.slane %v4865_v54, 9  ;;  %v7328_v11 = vrot.slane %v4866_v52, 9  ;;  %v4936_v18 = vmax.f32 %v4856_v58, %v7325_v46 }
 0x4df   : > { %v4832_v35 = vmul.f32 %v10377_v26, %v4823_v32  ;;  %v4752_v24 = vadd.f32 %v4736_v12, %v4691_v44  ;;  %v4791_v55 = vpop.f32.mrf.mxu3  ;;  %v4509_v49 = vadd.f32 %v10342_v59, %v10315_v61 }
 0x4e0   : > { %v4937_v20 = vmax.f32 %v4864_v13, %v7326_v2  ;;  %v4938_v23 = vmax.f32 %v4865_v54, %v7327_v45  ;;  %v4939_v42 = vmax.f32 %v4866_v52, %v7328_v11  ;;  %v4959_v57 = vpack.c.bf16 %v4936_v18, %v4936_v18  ;;  %v5047_v18 = vld [vmem:[#allocation4 + $0x4] sm:$0x7]  ;;  %v7781_v11 = vld [vmem:[%s11288_s3 + $0x18] sm:$0xff] }
 0x4e1   : > { %v4841_v3 = vadd.f32 %v10385_v36, %v4832_v35  ;;  %v4804_v12 = vadd.f32 %v4788_v21, %v4752_v24 }
 0x4e2   : > { %v4960_v41 = vpack.c.bf16 %v4937_v20, %v4937_v20  ;;  %v4961_v60 = vpack.c.bf16 %v4938_v23, %v4938_v23  ;;  %v4962_v9 = vpack.c.bf16 %v4939_v42, %v4939_v42  ;;  %v4991_v43 = vunpack.c.l.b16 %v4959_v57  ;;  %v4741_v35 = vpop.f32.mrf.mxu2 }
 0x4e3   : > { %4850 = vst.msk [vmem:[%s10390_s25 + $0x10] sm:$0xff] %vm4847_vm7, %v4841_v3  ;;  %v4678_v50 = vpop.f32.mrf.mxu1  ;;  %v4816_v39 = vadd.f32 %v10365_v1, %v4804_v12  ;;  %v4343_v23 = vadd.f32 %v10313_v10, %v10320_v53  ;;  %v4582_v42 = vadd.f32 %v10334_v22, %v4509_v49 }
 0x4e4   : > { %v4992_v63 = vunpack.c.l.b16 %v4960_v41  ;;  %v4993_v58 = vunpack.c.l.b16 %v4961_v60  ;;  %v4994_v4 = vunpack.c.l.b16 %v4962_v9  ;;  %v4692_v27 = vadd.f32 %v4678_v50, %v4644_v37 }
 0x4e5   : > { %v5007_v48 = vrot.slane %v4991_v43, 7  ;;  %v4824_v54 = vmax.f32 %v4816_v39, 0.0  ;;  %v4645_v37 = vadd.f32 %v10332_v31, %v4581_v0  ;;  %v4450_v7 = vadd.f32 %v10318_v14, %v4343_v23 }
 0x4e6   : > { %v5008_v21 = vrot.slane %v4992_v63, 6  ;;  %v5010_v13 = vrot.slane %v4993_v58, 5  ;;  %v4753_v52 = vadd.f32 %v4739_v30, %v4692_v27  ;;  %v5012_v17 = vrot.slane %v4994_v4, 4 }
 0x4e7   : > { %v4833_v32 = vmul.f32 %v10377_v26, %v4824_v54  ;;  %v4793_v30 = vpop.f32.mrf.mxu3  ;;  %v4646_v10 = vadd.f32 %v10338_v5, %v4582_v42  ;;  %v4510_v4 = vadd.f32 %v10347_v16, %v4450_v7 }
 0x4e8   : > { %v5009_v46 = vsel %vm3896_vm6, %v5008_v21, %v5007_v48  ;;  %v4805_v2 = vadd.f32 %v4791_v55, %v4753_v52 }
 0x4e9   : > { %v5011_v29 = vsel %vm3899_vm13, %v5010_v13, %v5009_v46  ;;  %v4842_v6 = vadd.f32 %v10385_v36, %v4833_v32 }
 0x4ea   : > { %v5013_v45 = vsel %vm3902_vm14, %v5012_v17, %v5011_v29  ;;  %v4817_v25 = vadd.f32 %v10365_v1, %v4805_v2  ;;  %v4744_v21 = vpop.f32.mrf.mxu2  ;;  %v4583_v29 = vadd.f32 %v10340_v56, %v4510_v4 }
 0x4eb   : > { %v5035_v8 = vpack.c.b16 %v5013_v45, %v5013_v45  ;;  %v4680_v44 = vpop.f32.mrf.mxu1  ;;  %4851 = vst.msk [vmem:[%s10390_s25 + $0x18] sm:$0xff] %vm4847_vm7, %v4842_v6  ;;  %v4857_v61 = vmax.f32 %v4841_v3, %v4842_v6 }
 0x4ec   : > { %v4693_v20 = vadd.f32 %v4680_v44, %v4645_v37  ;;  %v4825_v59 = vmax.f32 %v4817_v25, 0.0 }
 0x4ed   : > { %v5048_v31 = vsel %vm10469_vm5, %v5035_v8, %v5047_v18  ;;  %v4867_v51 = vrot.slane %v4857_v61, 2  ;;  %v4868_v38 = vrot.slane %v4857_v61, 4  ;;  %v4869_v33 = vrot.slane %v4857_v61, 6 }
 0x4ee   : > { %5049 = vst [vmem:[#allocation4 + $0x4] sm:$0x7] %v5048_v31  ;;  %v4754_v57 = vadd.f32 %v4741_v35, %v4693_v20  ;;  %v7329_v24 = vrot.slane %v4857_v61, 9  ;;  %v4834_v41 = vmul.f32 %v10377_v26, %v4825_v59 }
 0x4ef   : > { %v7330_v9 = vrot.slane %v4867_v51, 9  ;;  %v7331_v43 = vrot.slane %v4868_v38, 9  ;;  %v7332_v3 = vrot.slane %v4869_v33, 9  ;;  %v4796_v6 = vpop.f32.mrf.mxu3 }
 0x4f0   : > { %v4806_v60 = vadd.f32 %v4793_v30, %v4754_v57  ;;  %v4940_v47 = vmax.f32 %v4857_v61, %v7329_v24  ;;  %v4843_v53 = vadd.f32 %v10385_v36, %v4834_v41 }
 0x4f1   : > { %v4941_v19 = vmax.f32 %v4867_v51, %v7330_v9  ;;  %v4942_v12 = vmax.f32 %v4868_v38, %v7331_v43  ;;  %v4943_v50 = vmax.f32 %v4869_v33, %v7332_v3  ;;  %v4647_v38 = vadd.f32 %v10344_v15, %v4583_v29  ;;  %v5050_v9 = vld [vmem:[#allocation4 + $0x8] sm:$0x7] }
 0x4f2   : > { %v4818_v22 = vadd.f32 %v10365_v1, %v4806_v60  ;;  %v4963_v63 = vpack.c.bf16 %v4940_v47, %v4940_v47  ;;  %4852 = vst.msk [vmem:[%s10390_s25 + $0x20] sm:$0xff] %vm4847_vm7, %v4843_v53 }
 0x4f3   : > { %v4683_v58 = vpop.f32.mrf.mxu1  ;;  %v4964_v14 = vpack.c.bf16 %v4941_v19, %v4941_v19  ;;  %v4965_v0 = vpack.c.bf16 %v4942_v12, %v4942_v12  ;;  %v4966_v5 = vpack.c.bf16 %v4943_v50, %v4943_v50 }
 0x4f4   : > { %v4826_v39 = vmax.f32 %v4818_v22, 0.0  ;;  %v4694_v27 = vadd.f32 %v4683_v58, %v4646_v10  ;;  %v4995_v48 = vunpack.c.l.b16 %v4963_v63 }
 0x4f5   : > { %v10490_v55 = vld [vmem:[#allocation4 + $0x4] sm:$0x7]  ;;  %v4996_v46 = vunpack.c.l.b16 %v4964_v14  ;;  %v4997_v17 = vunpack.c.l.b16 %v4965_v0  ;;  %v4998_v16 = vunpack.c.l.b16 %v4966_v5 }
 0x4f6   : > { %v5072_v13 = vrot.slane %v10490_v55, 2  ;;  %v4835_v54 = vmul.f32 %v10377_v26, %v4826_v39  ;;  %v4755_v52 = vadd.f32 %v4744_v21, %v4694_v27  ;;  %v5014_v8 = vrot.slane %v4995_v48, 7  ;;  %v4746_v27 = vpop.f32.mrf.mxu2 }
 0x4f7   : > { %v5015_v25 = vrot.slane %v4996_v46, 6  ;;  %v5017_v56 = vrot.slane %v4997_v17, 5  ;;  %v5019_v59 = vrot.slane %v4998_v16, 4 }
 0x4f8   : > { %v10497_v32 = vsel %vm11286_vm0, %v10490_v55, %v5072_v13  ;;  %v10501_v2 = vsel %vm5078_vm8, %v10490_v55, %v5072_v13  ;;  %v4844_v37 = vadd.f32 %v10385_v36, %v4835_v54  ;;  %v4807_v44 = vadd.f32 %v4796_v6, %v4755_v52  ;;  %v4798_v54 = vpop.f32.mrf.mxu3 }
 0x4f9   : > { %v5087_v49 = vrot.slane %v10501_v2, 2  ;;  %v5120_v45 = vshrl.u32 %v10497_v32, 16  ;;  %v5123_v18 = vshll.u32 %v10497_v32, 16  ;;  %v5016_v23 = vsel %vm3896_vm6, %v5015_v25, %v5014_v8 }
 0x4fa   : > { %4853 = vst.msk [vmem:[%s10390_s25 + $0x28] sm:$0xff] %vm4847_vm7, %v4844_v37  ;;  %v4858_v35 = vmax.f32 %v4843_v53, %v4844_v37  ;;  %v5018_v30 = vsel %vm3899_vm13, %v5017_v56, %v5016_v23  ;;  %v4819_v22 = vadd.f32 %v10365_v1, %v4807_v44 }
 0x4fb   : > { %v5122_v20 = vrot.slane %v5120_v45, 6  ;;  %v5125_v31 = vrot.slane %v5123_v18, 7  ;;  %v5129_v61 = vshll.u32 %v5087_v49, 16  ;;  %v4685_v41 = vpop.f32.mrf.mxu1  ;;  %v5020_v60 = vsel %vm3902_vm14, %v5019_v59, %v5018_v30 }
 0x4fc   : > { %v4870_v42 = vrot.slane %v4858_v35, 2  ;;  %v4871_v57 = vrot.slane %v4858_v35, 4  ;;  %v4872_v51 = vrot.slane %v4858_v35, 6  ;;  %v7333_v43 = vrot.slane %v4858_v35, 9 }
 0x4fd   : > { %v5126_v33 = vor.u32 %v5125_v31, %v5122_v20  ;;  %v5131_v24 = vrot.slane %v5129_v61, 7  ;;  %v5036_v10 = vpack.c.b16 %v5020_v60, %v5020_v60  ;;  %v4695_v15 = vadd.f32 %v4685_v41, %v4647_v38  ;;  %v5053_v61 = vld [vmem:[#allocation4 + $0xc] sm:$0x7] }
 0x4fe   : > { %v7334_v3 = vrot.slane %v4870_v42, 9  ;;  %v7335_v47 = vrot.slane %v4871_v57, 9  ;;  %v7336_v53 = vrot.slane %v4872_v51, 9  ;;  %v4944_v19 = vmax.f32 %v4858_v35, %v7333_v43 }
 0x4ff   : > { %v5127_v7 = vrot.slane %v5126_v33, 2  ;;  %v5051_v58 = vsel %vm10469_vm5, %v5036_v10, %v5050_v9  ;;  %v4827_v39 = vmax.f32 %v4819_v22, 0.0  ;;  %v4756_v48 = vadd.f32 %v4746_v27, %v4695_v15 }
 0x500   : > { %v4945_v12 = vmax.f32 %v4870_v42, %v7334_v3  ;;  %v4946_v50 = vmax.f32 %v4871_v57, %v7335_v47  ;;  %v4947_v4 = vmax.f32 %v4872_v51, %v7336_v53  ;;  %v4967_v14 = vpack.c.bf16 %v4944_v19, %v4944_v19  ;;  %5052 = vst [vmem:[#allocation4 + $0x8] sm:$0x7] %v5051_v58 }
 0x501   : > { %v10518_v63 = vsel %vm10439_vm3, %v5127_v7, %v5131_v24  ;;  %v4836_v13 = vmul.f32 %v10377_v26, %v4827_v39  ;;  %v4808_v16 = vadd.f32 %v4798_v54, %v4756_v48 }
 0x502   : > { %5166 = vst [vmem:[#allocation1 + $0x1] ss:$4 sm:$0xff] %v10518_v63  ;;  %v4968_v0 = vpack.c.bf16 %v4945_v12, %v4945_v12  ;;  %v4969_v5 = vpack.c.bf16 %v4946_v50, %v4946_v50  ;;  %v4970_v21 = vpack.c.bf16 %v4947_v4, %v4947_v4  ;;  %v4999_v52 = vunpack.c.l.b16 %v4967_v14 }
 0x503   : > { %v4845_v37 = vadd.f32 %v10385_v36, %v4836_v13  ;;  %v4820_v6 = vadd.f32 %v10365_v1, %v4808_v16  ;;  %v7779_v13 = vld [vmem:[%s11288_s3 + $0x8] sm:$0xff] }
 0x504   : > { %v5000_v46 = vunpack.c.l.b16 %v4968_v0  ;;  %v5001_v17 = vunpack.c.l.b16 %v4969_v5  ;;  %v5002_v29 = vunpack.c.l.b16 %v4970_v21  ;;  %v5021_v45 = vrot.slane %v4999_v52, 7  ;;  %5189 = vmatpush.bf16.msrb.mxu1 %v7779_v13 }
 0x505   : > { %4854 = vst.msk [vmem:[%s10390_s25 + $0x30] sm:$0xff] %vm4847_vm7, %v4845_v37  ;;  %v4828_v35 = vmax.f32 %v4820_v6, 0.0 }
 0x506   : > { %v5022_v18 = vrot.slane %v5000_v46, 6  ;;  %v5024_v8 = vrot.slane %v5001_v17, 5  ;;  %v5026_v56 = vrot.slane %v5002_v29, 4 }
 0x507   : > { %v10530_v20 = vld [vmem:[#allocation4 + $0x8] sm:$0x7]  ;;  %v4837_v59 = vmul.f32 %v10377_v26, %v4828_v35 }
 0x508   : > { %v5023_v25 = vsel %vm3896_vm6, %v5022_v18, %v5021_v45  ;;  %v5073_v23 = vrot.slane %v10530_v20, 2  ;;  %5319 = vmatpush.bf16.msra.mxu1 %v7781_v11 }
 0x509   : > { %v5025_v44 = vsel %vm3899_vm13, %v5024_v8, %v5023_v25  ;;  %v4846_v1 = vadd.f32 %v10385_v36, %v4837_v59 }
 0x50a   : > { %v5027_v31 = vsel %vm3902_vm14, %v5026_v56, %v5025_v44  ;;  %v10538_v57 = vsel %vm11287_vm4, %v10530_v20, %v5073_v23  ;;  %v10542_v51 = vsel %vm5078_vm8, %v10530_v20, %v5073_v23  ;;  %vm5738_vm4 = vsmask.f32 3340 }
 0x50b   : > { %v5037_v42 = vpack.c.b16 %v5027_v31, %v5027_v31  ;;  %v5093_v33 = vrot.slane %v10542_v51, 2  ;;  %v5133_v26 = vshrl.u32 %v10538_v57, 16  ;;  %v5136_v24 = vshll.u32 %v10538_v57, 16  ;;  %4855 = vst.msk [vmem:[%s10390_s25 + $0x38] sm:$0xff] %vm4847_vm7, %v4846_v1 }
 0x50c   : > { %v4859_v36 = vmax.f32 %v4845_v37, %v4846_v1 }
 0x50d   : > { %v5054_v38 = vsel %vm10469_vm5, %v5037_v42, %v5053_v61  ;;  %v5135_v30 = vrot.slane %v5133_v26, 6  ;;  %v5138_v41 = vrot.slane %v5136_v24, 7  ;;  %v5142_v60 = vshll.u32 %v5093_v33, 16  ;;  %v5056_v24 = vld [vmem:[#allocation4 + $0x10] sm:$0x7] }
 0x50e   : > { %5055 = vst [vmem:[#allocation4 + $0xc] sm:$0x7] %v5054_v38  ;;  %v4873_v9 = vrot.slane %v4859_v36, 2  ;;  %v4874_v43 = vrot.slane %v4859_v36, 4  ;;  %v4875_v3 = vrot.slane %v4859_v36, 6  ;;  %v7337_v47 = vrot.slane %v4859_v36, 9 }
 0x50f   : > { %v5139_v7 = vor.u32 %v5138_v41, %v5135_v30  ;;  %v5144_v50 = vrot.slane %v5142_v60, 7  ;;  %v7778_v38 = vld [vmem:[%s11288_s3] sm:$0xff]  ;;  %v7780_v60 = vld [vmem:[%s11288_s3 + $0x10] sm:$0xff] }
 0x510   : > { %v7338_v10 = vrot.slane %v4873_v9, 9  ;;  %v7339_v53 = vrot.slane %v4874_v43, 9  ;;  %v7340_v22 = vrot.slane %v4875_v3, 9  ;;  %v4948_v19 = vmax.f32 %v4859_v36, %v7337_v47  ;;  %5219 = vmatpush.bf16.msrb.mxu2 %v7778_v38  ;;  %5283 = vmatpush.bf16.msrb.mxu3 %v7780_v60 }
 0x511   : > { %v5140_v12 = vrot.slane %v5139_v7, 2 }
 0x512   : > { %v4949_v58 = vmax.f32 %v4873_v9, %v7338_v10  ;;  %v4950_v4 = vmax.f32 %v4874_v43, %v7339_v53  ;;  %v4951_v39 = vmax.f32 %v4875_v3, %v7340_v22  ;;  %v4971_v27 = vpack.c.bf16 %v4948_v19, %v4948_v19 }
 0x513   : > { %v10557_v14 = vsel %vm10439_vm3, %v5140_v12, %v5144_v50  ;;  %v5243_v43 = vrot.slane %v5087_v49, 7  ;;  %v5247_v3 = vrot.slane %v5093_v33, 7  ;;  %v7355_v10 = vrot.slane %v10538_v57, 9  ;;  %v7782_v57 = vld [vmem:[%s11288_s3 + $0x20] sm:$0xff]  ;;  %v7783_v50 = vld [vmem:[%s11288_s3 + $0x28] sm:$0xff] }
 0x514   : > { %5169 = vst [vmem:[#allocation1 + $0x2] ss:$4 sm:$0xff] %v10557_v14  ;;  %v4972_v5 = vpack.c.bf16 %v4949_v58, %v4949_v58  ;;  %v4973_v48 = vpack.c.bf16 %v4950_v4, %v4950_v4  ;;  %v4974_v21 = vpack.c.bf16 %v4951_v39, %v4951_v39  ;;  %v5003_v46 = vunpack.c.l.b16 %v4971_v27  ;;  %5375 = vmatpush.bf16.msra.mxu2 %v7782_v57 }
 0x515   : > { %v10553_v15 = vld [vmem:[#allocation4 + $0xc] sm:$0x7]  ;;  %v10606_v2 = vsel %vm10451_vm15, %v7355_v10, %v5247_v3  ;;  %5416 = vmatpush.bf16.msra.mxu3 %v7783_v50 }
 0x516   : > { %v5074_v0 = vrot.slane %v10553_v15, 2  ;;  %v5004_v37 = vunpack.c.l.b16 %v4972_v5  ;;  %v5005_v45 = vunpack.c.l.b16 %v4973_v48  ;;  %v5006_v18 = vunpack.c.l.b16 %v4974_v21  ;;  %v7785_v5 = vld [vmem:[%s11288_s3 + $0x38] sm:$0xff] }
 0x517   : > { %v5028_v56 = vrot.slane %v5003_v46, 7  ;;  %v7786_v46 = vld [vmem:[%s11288_s3 + $0x40] sm:$0xff] }
 0x518   : > { %v5096_v54 = vsel %vm11289_vm9, %v10553_v15, %v5074_v0  ;;  %v5097_v52 = vsel %vm5078_vm8, %v10553_v15, %v5074_v0  ;;  %v5029_v35 = vrot.slane %v5004_v37, 6  ;;  %v5031_v44 = vrot.slane %v5005_v45, 5  ;;  %v7784_v0 = vld [vmem:[%s11288_s3 + $0x30] sm:$0xff]  ;;  %s6743_s3 = sshll.u32 %s10680_s17, 4  ;;  %s6744_s3 = int_to_ptr.vmem [resolvable:$true] %s6743_s3 }
 0x519   : > { %v5099_v17 = vrot.slane %v5097_v52, 2  ;;  %v5146_v16 = vshrl.u32 %v5096_v54, 16  ;;  %v5149_v29 = vshll.u32 %v5096_v54, 16  ;;  %v5033_v59 = vrot.slane %v5006_v18, 4 }
 0x51a   : > { %v5030_v61 = vsel %vm3896_vm6, %v5029_v35, %v5028_v56  ;;  %v7356_v19 = vrot.slane %v5096_v54, 9 }
 0x51b   : > { %v5148_v8 = vrot.slane %v5146_v16, 6  ;;  %v5151_v6 = vrot.slane %v5149_v29, 7  ;;  %v5155_v25 = vshll.u32 %v5099_v17, 16  ;;  %v5032_v1 = vsel %vm3899_vm13, %v5031_v44, %v5030_v61  ;;  %v7794_v61 = vld [vmem:[%s11292_s4 + $0x38] sm:$0xff] }
 0x51c   : > { %v5034_v26 = vsel %vm3902_vm14, %v5033_v59, %v5032_v1  ;;  %v5251_v47 = vrot.slane %v5099_v17, 7  ;;  %vm11290_vm14 = vmmov %vm11286_vm0  ;;  %v5064_v17 = vld [vmem:[#allocation4 + $0x14] sm:$0x7]  ;;  %5906 = vmatpush.bf16.msrb.mxu0 %v7794_v61 }
 0x51d   : > { %v5152_v31 = vor.u32 %v5151_v6, %v5148_v8  ;;  %v5157_v42 = vrot.slane %v5155_v25, 7  ;;  %v5038_v30 = vpack.c.b16 %v5034_v26, %v5034_v26  ;;  %v5462_v37 = vrot.slane %v5064_v17, 2 }
 0x51e   : > { %v10611_v49 = vsel %vm10451_vm15, %v7356_v19, %v5251_v47 }
 0x51f   : > { %v5153_v23 = vrot.slane %v5152_v31, 2  ;;  %v5057_v41 = vsel %vm10469_vm5, %v5038_v30, %v5056_v24  ;;  %v5464_v18 = vsel %vm11291_vm2, %v5064_v17, %v5462_v37  ;;  %v5465_v25 = vsel %vm5078_vm8, %v5064_v17, %v5462_v37 }
 0x520   : > { %5058 = vst [vmem:[#allocation4 + $0x10] sm:$0x7] %v5057_v41  ;;  %v5468_v8 = vshrl.u32 %v5464_v18, 16  ;;  %v5471_v6 = vshll.u32 %v5464_v18, 16  ;;  %v5467_v35 = vrot.slane %v5465_v25, 2  ;;  %v7400_v26 = vrot.slane %v5464_v18, 9 }
 0x521   : > { %v10576_v36 = vsel %vm10439_vm3, %v5153_v23, %v5157_v42  ;;  %v7790_v18 = vld [vmem:[%s11292_s4 + $0x18] sm:$0xff]  ;;  %v7789_v25 = vld [vmem:[%s11292_s4 + $0x10] sm:$0xff]  ;;  %vm5736_vm5 = vsmask.f32 2312 }
 0x522   : > { %5172 = vst [vmem:[#allocation1 + $0x3] ss:$4 sm:$0xff] %v10576_v36  ;;  %v5470_v44 = vrot.slane %v5468_v8, 6  ;;  %v5473_v31 = vrot.slane %v5471_v6, 7  ;;  %v5477_v23 = vshll.u32 %v5467_v35, 16 }
 0x524   : > { %v5474_v59 = vor.u32 %v5473_v31, %v5470_v44  ;;  %v5479_v1 = vrot.slane %v5477_v23, 7 }
 0x526   : > { %v5475_v42 = vrot.slane %v5474_v59, 2 }
 0x527   : > { %v10597_v7 = vld [vmem:[#allocation4 + $0x10] sm:$0x7] }
 0x529   : > { %v5173_v9 = vld.sshfl [vmem:[#allocation1] sm:$0xff pattern:$0x73625140] }
 0x52a   : > { %5196 = vst [vmem:[#allocation1] ss:$4 sm:$0xff] %v10395_v28  ;;  %7347 = vmatmul.msk.bf16.vlgmr.msrb.gmra.mxu1 %vm4847_vm7, %v5173_v9  ;;  %v7354_v28 = vrot.slane %v10497_v32, 9  ;;  %v5329_v32 = vrot.slane %v10597_v7, 2 }
 0x52b   : > { %5198 = vst [vmem:[#allocation1 + $0x1] ss:$4 sm:$0xff] %v10490_v55  ;;  %5452 = vmatpush.bf16.msrb.mxu1 %v7784_v0 }
 0x52c   : > { %5200 = vst [vmem:[#allocation1 + $0x2] ss:$4 sm:$0xff] %v10530_v20  ;;  %v5244_v22 = vsel %vm10451_vm15, %v7354_v28, %v5243_v43  ;;  %v5332_v58 = vsel %vm5078_vm8, %v10597_v7, %v5329_v32 }
 0x52d   : > { %5202 = vst [vmem:[#allocation1 + $0x3] ss:$4 sm:$0xff] %v10553_v15  ;;  %v5334_v27 = vrot.slane %v5332_v58, 2  ;;  %v7911_v58 = vld [vmem:[%s11293_s8] ss:$0 sm:$0xff] }
 0x52f   : > { %v5387_v16 = vrot.slane %v5334_v27, 7 }
 0x534   : > { %v5203_v53 = vld.sshfl [vmem:[#allocation1] sm:$0xff pattern:$0x73625140] }
 0x535   : > { %5257 = vst [vmem:[#allocation1] ss:$4 sm:$0xff] %v10457_v62  ;;  %7352 = vmatmul.msk.bf16.vlgmr.msrb.gmra.mxu2 %vm4847_vm7, %v5203_v53  ;;  %v5331_v62 = vsel %vm11290_vm14, %v10597_v7, %v5329_v32  ;;  %vm11295_vm14 = vmmov %vm11291_vm2 }
 0x536   : > { %5260 = vst [vmem:[#allocation1 + $0x1] ss:$4 sm:$0xff] %v5244_v22  ;;  %v5335_v51 = vshrl.u32 %v5331_v62, 16  ;;  %v5338_v33 = vshll.u32 %v5331_v62, 16  ;;  %5508 = vmatpush.bf16.msrb.mxu2 %v7785_v5 }
 0x537   : > { %5263 = vst [vmem:[#allocation1 + $0x2] ss:$4 sm:$0xff] %v10606_v2 }
 0x538   : > { %5266 = vst [vmem:[#allocation1 + $0x3] ss:$4 sm:$0xff] %v10611_v49  ;;  %v5337_v4 = vrot.slane %v5335_v51, 6  ;;  %v5340_v39 = vrot.slane %v5338_v33, 7 }
 0x53a   : > { %v5341_v48 = vor.u32 %v5340_v39, %v5337_v4 }
 0x53c   : > { %v5342_v21 = vrot.slane %v5341_v48, 2  ;;  %v7912_v48 = vld [vmem:[%s11293_s8 + $0x1] ss:$0 sm:$0xff] }
 0x53f   : > { %v5267_v12 = vld.sshfl [vmem:[#allocation1] sm:$0xff pattern:$0x73625140] }
 0x540   : > { %5299 = vst [vmem:[#allocation1 + $0x2] ss:$4 sm:$0xff] %v10553_v15  ;;  %7363 = vmatmul.msk.bf16.vlgmr.msrb.gmra.mxu3 %vm4847_vm7, %v5267_v12 }
 0x541   : > { %5295 = vst [vmem:[#allocation1] ss:$4 sm:$0xff] %v10490_v55  ;;  %v5344_v55 = vshll.u32 %v5334_v27, 16  ;;  %5549 = vmatpush.bf16.msrb.mxu3 %v7786_v46 }
 0x542   : > { %5297 = vst [vmem:[#allocation1 + $0x1] ss:$4 sm:$0xff] %v10530_v20 }
 0x543   : > { %5302 = vst [vmem:[#allocation1 + $0x3] ss:$4 sm:$0xff] %v10597_v7  ;;  %v5346_v54 = vrot.slane %v5344_v55, 7 }
 0x545   : > { %v5347_v52 = vsel %vm10439_vm3, %v5342_v21, %v5346_v54  ;;  %v7913_v54 = vld [vmem:[%s11293_s8 + $0x2] ss:$0 sm:$0xff]  ;;  %s10996_s8 = scalar_lea.sflag [#allocation10], %s6701_s16 }
 0x54a   : > { %v5303_v13 = vld.sshfl [vmem:[#allocation1] sm:$0xff pattern:$0x73625140] }
 0x54b   : > { %5351 = vst [vmem:[#allocation1] ss:$4 sm:$0xff] %v10518_v63  ;;  %7370 = vmatmul.msk.bf16.vlgmr.msra.gmra.mxu1 %vm4847_vm7, %v5303_v13  ;;  %v7378_v63 = vrot.slane %v5331_v62, 9 }
 0x54c   : > { %5353 = vst [vmem:[#allocation1 + $0x1] ss:$4 sm:$0xff] %v10557_v14  ;;  %5795 = vmatpush.bf16.msra.mxu1 %v7790_v18 }
 0x54d   : > { %5355 = vst [vmem:[#allocation1 + $0x2] ss:$4 sm:$0xff] %v10576_v36  ;;  %v5388_v45 = vsel %vm10451_vm15, %v7378_v63, %v5387_v16 }
 0x54e   : > { %5358 = vst [vmem:[#allocation1 + $0x3] ss:$4 sm:$0xff] %v5347_v52 }
 0x550   : > { %5796 = vmatpush.bf16.msra.mxu1 %v7789_v25 }
 0x555   : > { %v5359_v29 = vld.sshfl [vmem:[#allocation1] sm:$0xff pattern:$0x73625140] }
 0x556   : > { %5392 = vst [vmem:[#allocation1] ss:$4 sm:$0xff] %v5244_v22  ;;  %7377 = vmatmul.msk.bf16.vlgmr.msra.gmra.mxu2 %vm4847_vm7, %v5359_v29 }
 0x557   : > { %5394 = vst [vmem:[#allocation1 + $0x1] ss:$4 sm:$0xff] %v10606_v2 }
 0x558   : > { %5396 = vst [vmem:[#allocation1 + $0x2] ss:$4 sm:$0xff] %v10611_v49 }
 0x559   : > { %5399 = vst [vmem:[#allocation1 + $0x3] ss:$4 sm:$0xff] %v5388_v45 }
 0x560   : > { %v5400_v56 = vld.sshfl [vmem:[#allocation1] sm:$0xff pattern:$0x73625140] }
 0x561   : > { %5432 = vst [vmem:[#allocation1 + $0x2] ss:$4 sm:$0xff] %v10597_v7  ;;  %7385 = vmatmul.msk.bf16.vlgmr.msra.gmra.mxu3 %vm4847_vm7, %v5400_v56 }
 0x562   : > { %5428 = vst [vmem:[#allocation1] ss:$4 sm:$0xff] %v10530_v20  ;;  %v5480_v20 = vsel %vm10439_vm3, %v5475_v42, %v5479_v1  ;;  %vm11294_vm3 = vmmov %vm11286_vm0  ;;  %v10699_v1 = vld [vmem:[#allocation5] sm:$0x3]  ;;  %vm5715_vm0 = vcmask 1041409  }
 0x563   : > { %5430 = vst [vmem:[#allocation1 + $0x1] ss:$4 sm:$0xff] %v10553_v15  ;;  %v5520_v15 = vrot.slane %v5467_v35, 7 }
 0x564   : > { %5435 = vst [vmem:[#allocation1 + $0x3] ss:$4 sm:$0xff] %v5064_v17 }
 0x565   : > { %v5521_v30 = vsel %vm10451_vm15, %v7400_v26, %v5520_v15  ;;  %vm5734_vm15 = vsmask.f32 1284 }
 0x566   : > { %vm5735_vm12 = vmor %vm621_vm10, %vm5734_vm15 }
 0x567   : > { %vm5737_vm9 = vmor %vm5735_vm12, %vm5736_vm5  ;;  %vm5741_vm12 = vsmask.f32 5396 }
 0x568   : > { %vm11296_vm10 = vmmov %vm11291_vm2  ;;  %vm5718_vm2 = vcmask 1042433  }
 0x56b   : > { %v5436_v38 = vld.sshfl [vmem:[#allocation1] sm:$0xff pattern:$0x73625140] }
 0x56c   : > { %7392 = vmatmul.msk.bf16.vlgmr.msrb.gmra.mxu1 %vm4847_vm7, %v5436_v38  ;;  %5484 = vst [vmem:[#allocation1] ss:$4 sm:$0xff] %v10557_v14 }
 0x56d   : > { %5486 = vst [vmem:[#allocation1 + $0x1] ss:$4 sm:$0xff] %v10576_v36 }
 0x56e   : > { %5488 = vst [vmem:[#allocation1 + $0x2] ss:$4 sm:$0xff] %v5347_v52 }
 0x56f   : > { %5491 = vst [vmem:[#allocation1 + $0x3] ss:$4 sm:$0xff] %v5480_v20 }
 0x576   : > { %v5492_v24 = vld.sshfl [vmem:[#allocation1] sm:$0xff pattern:$0x73625140] }
 0x577   : > { %7399 = vmatmul.msk.bf16.vlgmr.msrb.gmra.mxu2 %vm4847_vm7, %v5492_v24  ;;  %5525 = vst [vmem:[#allocation1] ss:$4 sm:$0xff] %v10606_v2 }
 0x578   : > { %5527 = vst [vmem:[#allocation1 + $0x1] ss:$4 sm:$0xff] %v10611_v49 }
 0x579   : > { %5529 = vst [vmem:[#allocation1 + $0x2] ss:$4 sm:$0xff] %v5388_v45  ;;  %v7793_v45 = vld [vmem:[%s11292_s4 + $0x30] sm:$0xff] }
 0x57a   : > { %5532 = vst [vmem:[#allocation1 + $0x3] ss:$4 sm:$0xff] %v5521_v30  ;;  %5907 = vmatpush.bf16.msrb.mxu0 %v7793_v45  ;;  %v5701_v30 = vrot.slane %v10699_v1, 1 }
 0x581   : > { %v5533_v34 = vld.sshfl [vmem:[#allocation1] sm:$0xff pattern:$0x73625140] }
 0x582   : > { %7407 = vmatmul.msk.bf16.vlgmr.msrb.gmra.mxu3 %vm4847_vm7, %v5533_v34  ;;  %vm5578_vm7 = vcmask 257024  }
 0x5a7   : > { %v5191_v14 = vpop.f32.mrf.mxu1 }
 0x5af   : > { %v5193_v60 = vpop.f32.mrf.mxu1 }
 0x5b8   : > { %v5221_v36 = vpop.f32.mrf.mxu2 }
 0x5b9   : > { %v5222_v47 = vadd.f32 %v5221_v36, %v5191_v14  ;;  %v5702_v14 = vrot.slane %v10699_v1, 2  ;;  %v5703_v36 = vrot.slane %v10699_v1, 3 }
 0x5c0   : > { %v5223_v9 = vpop.f32.mrf.mxu2 }
 0x5c1   : > { %v5224_v22 = vadd.f32 %v5223_v9, %v5193_v60 }
 0x5c3   : > { %v5285_v41 = vpop.f32.mrf.mxu3 }
 0x5c4   : > { %v5290_v40 = vadd.f32 %v5285_v41, %v5222_v47 }
 0x5c8   : > { %v5321_v11 = vpop.f32.mrf.mxu1 }
 0x5c9   : > { %v5326_v53 = vadd.f32 %v5321_v11, %v5290_v40  ;;  %v5717_v40 = vsel %vm3899_vm13, %v5702_v14, %v5703_v36 }
 0x5cb   : > { %v5287_v43 = vpop.f32.mrf.mxu3 }
 0x5cc   : > { %v5291_v49 = vadd.f32 %v5287_v43, %v5224_v22 }
 0x5d0   : > { %v5323_v7 = vpop.f32.mrf.mxu1 }
 0x5d1   : > { %v5327_v51 = vadd.f32 %v5323_v7, %v5291_v49  ;;  %v5716_v7 = vsel %vm5715_vm0, %v10699_v1, %v5701_v30  ;;  %v5710_v49 = vsel %vm5230_vm11, %v10699_v1, %v5701_v30 }
 0x5d9   : > { %v5377_v3 = vpop.f32.mrf.mxu2 }
 0x5da   : > { %v5382_v19 = vadd.f32 %v5377_v3, %v5326_v53 }
 0x5e1   : > { %v5379_v10 = vpop.f32.mrf.mxu2 }
 0x5e2   : > { %v5383_v12 = vadd.f32 %v5379_v10, %v5327_v51 }
 0x5e4   : > { %v5418_v28 = vpop.f32.mrf.mxu3 }
 0x5e5   : > { %v5423_v57 = vadd.f32 %v5418_v28, %v5382_v19 }
 0x5e9   : > { %v5454_v2 = vpop.f32.mrf.mxu1 }
 0x5ea   : > { %v5459_v33 = vadd.f32 %v5454_v2, %v5423_v57  ;;  %v5713_v57 = vsel %vm3896_vm6, %v5702_v14, %v5703_v36 }
 0x5ec   : > { %v5420_v32 = vpop.f32.mrf.mxu3 }
 0x5ed   : > { %v5424_v39 = vadd.f32 %v5420_v32, %v5383_v12  ;;  %v5719_v32 = vsel %vm5718_vm2, %v5716_v7, %v5717_v40 }
 0x5f1   : > { %v5456_v0 = vpop.f32.mrf.mxu1 }
 0x5f2   : > { %v5460_v21 = vadd.f32 %v5456_v0, %v5424_v39 }
 0x5fa   : > { %v5510_v62 = vpop.f32.mrf.mxu2 }
 0x5fb   : > { %v5515_v50 = vadd.f32 %v5510_v62, %v5459_v33  ;;  %v5721_v33 = vrot.slane %v5719_v32, 1  ;;  %v7797_v32 = vld [vmem:[%s11292_s4 + $0x50] sm:$0xff] }
 0x602   : > { %v5512_v55 = vpop.f32.mrf.mxu2 }
 0x603   : > { %v5516_v52 = vadd.f32 %v5512_v55, %v5460_v21  ;;  %v5752_v55 = vshll.u32 %v5721_v33, 16  ;;  %v7814_v21 = vld [vmem:[%s11311_s5 + $0x48] sm:$0xff] }
 0x605   : > { %v5551_v4 = vpop.f32.mrf.mxu3 }
 0x606   : > { %v5556_v27 = vadd.f32 %v5551_v4, %v5515_v50 }
 0x608   : > { %v5562_v5 = vadd.f32 %v7911_v58, %v5556_v27 }
 0x60a   : > { %v5564_v13 = vmax.f32 %v5562_v5, 0.0 }
 0x60c   : > { %v5567_v46 = vmul.f32 %v7912_v48, %v5564_v13 }
 0x60d   : > { %v5553_v17 = vpop.f32.mrf.mxu3 }
 0x60e   : > { %v5570_v16 = vadd.f32 %v7913_v54, %v5567_v46  ;;  %v5557_v29 = vadd.f32 %v5553_v17, %v5516_v52  ;;  %v7788_v46 = vld [vmem:[%s11292_s4 + $0x8] sm:$0xff] }
 0x60f   : > { %5826 = vmatpush.bf16.msra.mxu2 %v7788_v46  ;;  %v7802_v46 = vld [vmem:[%s11292_s4 + $0x78] sm:$0xff] }
 0x610   : > { %v5574_v37 = vrot.slane %v5570_v16, 4  ;;  %5579 = vst.msk [vmem:[%s10680_s17] sm:$0xf] %vm5578_vm7, %v5570_v16  ;;  %v5563_v63 = vadd.f32 %v7911_v58, %v5557_v29  ;;  %6109 = vmatpush.bf16.msra.mxu0 %v7802_v46 }
 0x612   : > { %5580 = vst.msk [vmem:[%s10680_s17 + $0x4] sm:$0xf] %vm5578_vm7, %v5574_v37  ;;  %v5583_v8 = vmax.f32 %v5570_v16, %v5574_v37  ;;  %v5565_v6 = vmax.f32 %v5563_v63, 0.0  ;;  %v7787_v37 = vld [vmem:[%s11292_s4] sm:$0xff] }
 0x613   : > { %5827 = vmatpush.bf16.msra.mxu2 %v7787_v37 }
 0x614   : > { %v5587_v56 = vrot.slane %v5583_v8, 2  ;;  %v5568_v35 = vmul.f32 %v7912_v48, %v5565_v6  ;;  %v5685_v6 = vld [vmem:[#allocation5 + $0x2] sm:$0x3] }
 0x616   : > { %v5589_v44 = vsel %vm11294_vm3, %v5583_v8, %v5587_v56  ;;  %v5590_v31 = vsel %vm5078_vm8, %v5583_v8, %v5587_v56  ;;  %v5571_v61 = vadd.f32 %v7913_v54, %v5568_v35 }
 0x617   : > { %v5591_v59 = vrot.slane %v5590_v31, 2  ;;  %v7408_v23 = vrot.slane %v5589_v44, 9 }
 0x618   : > { %v5575_v42 = vrot.slane %v5571_v61, 4  ;;  %5581 = vst.msk [vmem:[%s10680_s17 + $0x8] sm:$0xf] %vm5578_vm7, %v5571_v61 }
 0x619   : > { %v7409_v38 = vrot.slane %v5591_v59, 9  ;;  %v5611_v20 = vmax.f32 %v5589_v44, %v7408_v23 }
 0x61a   : > { %5582 = vst.msk [vmem:[%s10680_s17 + $0xc] sm:$0xf] %vm5578_vm7, %v5575_v42  ;;  %v5584_v26 = vmax.f32 %v5571_v61, %v5575_v42  ;;  %vm5739_vm7 = vmor %vm5737_vm9, %vm5738_vm4  ;;  %vm5743_vm4 = vsmask.f32 6424  ;;  %v5688_v42 = vld [vmem:[#allocation5 + $0x4] sm:$0x3] }
 0x61b   : > { %v5612_v15 = vmax.f32 %v5591_v59, %v7409_v38  ;;  %v5620_v24 = vpack.c.bf16 %v5611_v20, %v5611_v20  ;;  %vm11298_vm9 = vmmov %vm11294_vm3 }
 0x61c   : > { %v5588_v34 = vrot.slane %v5584_v26, 2 }
 0x61d   : > { %v5621_v41 = vpack.c.bf16 %v5612_v15, %v5612_v15  ;;  %v5628_v60 = vrot.slane %v5620_v24, 2 }
 0x61e   : > { %v5592_v9 = vsel %vm11295_vm14, %v5584_v26, %v5588_v34  ;;  %v5593_v11 = vsel %vm5078_vm8, %v5584_v26, %v5588_v34  ;;  %vm11297_vm8 = vsmask.f32 4368  ;;  %vm11299_vm14 = vmmov %vm11294_vm3  ;;  %v7792_v34 = vld [vmem:[%s11292_s4 + $0x28] sm:$0xff] }
 0x61f   : > { %v5629_v43 = vrot.slane %v5621_v41, 2  ;;  %v5634_v3 = vsel %vm11296_vm10, %v5620_v24, %v5628_v60  ;;  %v5594_v28 = vrot.slane %v5593_v11, 2  ;;  %v7410_v47 = vrot.slane %v5592_v9, 9  ;;  %vm5740_vm15 = vmor %vm5739_vm7, %vm11297_vm8  ;;  %5868 = vmatpush.bf16.msra.mxu3 %v7792_v34 }
 0x620   : > { %5644 = vst [vmem:[#allocation1] ss:$2 sm:$0xff] %v5634_v3  ;;  %vm5742_vm5 = vmor %vm5740_vm15, %vm5741_vm12  ;;  %v5714_v4 = vsel %vm11299_vm14, %v5710_v49, %v5713_v57  ;;  %vm5745_vm7 = vsmask.f32 7452  ;;  %vm5683_vm15 = vsmask.f32 1282 }
 0x621   : > { %v5637_v10 = vsel %vm11294_vm3, %v5621_v41, %v5629_v43  ;;  %v7411_v53 = vrot.slane %v5594_v28, 9  ;;  %v5613_v22 = vmax.f32 %v5592_v9, %v7410_v47  ;;  %vm5744_vm10 = vmor %vm5742_vm5, %vm5743_vm4  ;;  %v5747_v48 = vshrl.u32 %v5714_v4, 16  ;;  %v7791_v43 = vld [vmem:[%s11292_s4 + $0x20] sm:$0xff] }
 0x622   : > { %5648 = vst [vmem:[#allocation1 + $0x10] ss:$2 sm:$0xff] %v5637_v10  ;;  %vm10723_vm8 = vmor %vm5744_vm10, %vm5745_vm7  ;;  %vm11302_vm12 = vcmask 254976   ;;  %vm5786_vm10 = vcmask 261120   ;;  %v7796_v10 = vld [vmem:[%s11292_s4 + $0x48] sm:$0xff] }
 0x623   : > { %v5614_v19 = vmax.f32 %v5594_v28, %v7411_v53  ;;  %v5622_v2 = vpack.c.bf16 %v5613_v22, %v5613_v22  ;;  %v5754_v17 = vsel %vm10723_vm8, %v5747_v48, %v5752_v55  ;;  %vm10737_vm5 = vmand %vm11302_vm12, %vm5683_vm15  ;;  %5869 = vmatpush.bf16.msra.mxu3 %v7791_v43  ;;  %5967 = vmatpush.bf16.msrb.mxu1 %v7796_v10  ;;  %v7795_v53 = vld [vmem:[%s11292_s4 + $0x40] sm:$0xff] }
 0x624   : > { %vm11305_vm4 = vmmov %vm11294_vm3  ;;  %v7799_v55 = vld [vmem:[%s11292_s4 + $0x60] sm:$0xff] }
 0x625   : > { %v5623_v62 = vpack.c.bf16 %v5614_v19, %v5614_v19  ;;  %v5630_v51 = vrot.slane %v5622_v2, 2  ;;  %vm11307_vm14 = vmmov %vm11294_vm3  ;;  %v7798_v19 = vld [vmem:[%s11292_s4 + $0x58] sm:$0xff] }
 0x626   : > { %6010 = vmatpush.bf16.msrb.mxu2 %v7798_v19  ;;  %vm11308_vm7 = vmmov %vm11294_vm3 }
 0x627   : > { %v5631_v12 = vrot.slane %v5623_v62, 2  ;;  %v5640_v50 = vsel %vm11298_vm9, %v5622_v2, %v5630_v51  ;;  %v5645_v58 = vld.sshfl [vmem:[#allocation1] sm:$0xff pattern:$0x75643120]  ;;  %vm11306_vm9 = vmmov %vm11294_vm3  ;;  %5968 = vmatpush.bf16.msrb.mxu1 %v7795_v53 }
 0x628   : > { %5652 = vst [vmem:[#allocation1 + $0x20] ss:$2 sm:$0xff] %v5640_v50  ;;  %v5659_v39 = vunpack.c.l.b16 %v5645_v58 }
 0x629   : > { %v5649_v27 = vld.sshfl [vmem:[#allocation1 + $0x10] sm:$0xff pattern:$0x75643120]  ;;  %v5643_v0 = vsel %vm11294_vm3, %v5623_v62, %v5631_v12  ;;  %vm6173_vm3 = vcmask 517120  }
 0x62a   : > { %v5660_v5 = vunpack.c.l.b16 %v5649_v27  ;;  %5656 = vst [vmem:[#allocation1 + $0x30] ss:$2 sm:$0xff] %v5643_v0  ;;  %v5663_v54 = vrot.slane %v5659_v39, 7  ;;  %6011 = vmatpush.bf16.msrb.mxu2 %v7797_v32  ;;  %v7800_v0 = vld [vmem:[%s11292_s4 + $0x68] sm:$0xff]  ;;  %vm10825_vm15 = vmand %vm6173_vm3, %vm5100_vm1 }
 0x62b   : > { %6048 = vmatpush.bf16.msrb.mxu3 %v7800_v0  ;;  %vm11314_vm1 = vmmov %vm11305_vm4 }
 0x62c   : > { %v5664_v13 = vrot.slane %v5660_v5, 6 }
 0x62e   : > { %v5665_v52 = vsel %vm3896_vm6, %v5664_v13, %v5663_v54 }
 0x62f   : > { %v5653_v16 = vld.sshfl [vmem:[#allocation1 + $0x20] sm:$0xff pattern:$0x75643120]  ;;  %v5669_v29 = vpack.c.b16 %v5665_v52, %v5665_v52  ;;  %6049 = vmatpush.bf16.msrb.mxu3 %v7799_v55 }
 0x630   : > { %v5661_v63 = vunpack.c.l.b16 %v5653_v16 }
 0x631   : > { %v5657_v45 = vld.sshfl [vmem:[#allocation1 + $0x30] sm:$0xff pattern:$0x75643120]  ;;  %v5671_v18 = vrot.slane %v5669_v29, 2 }
 0x632   : > { %5769 = vst [vmem:[#allocation1] ss:$9 sm:$0xff] %v5754_v17  ;;  %v5662_v25 = vunpack.c.l.b16 %v5657_v45  ;;  %v5666_v44 = vrot.slane %v5661_v63, 7  ;;  %v7801_v17 = vld [vmem:[%s11292_s4 + $0x70] sm:$0xff] }
 0x633   : > { %v5675_v56 = vsel %vm11305_vm4, %v5669_v29, %v5671_v18  ;;  %6110 = vmatpush.bf16.msra.mxu0 %v7801_v17  ;;  %v5694_v29 = vld [vmem:[#allocation5 + $0x6] sm:$0x3]  ;;  %v7820_v17 = vld [vmem:[%s11311_s5 + $0x78] sm:$0xff] }
 0x634   : > { %v5686_v35 = vsel %vm10737_vm5, %v5675_v56, %v5685_v6  ;;  %v5667_v31 = vrot.slane %v5662_v25, 6  ;;  %v6057_v37 = vrot.slane %v5694_v29, 1  ;;  %v6058_v63 = vrot.slane %v5694_v29, 2  ;;  %v7836_v56 = vld [vmem:[%s11311_s5 + $0xf8] sm:$0xff] }
 0x635   : > { %5687 = vst [vmem:[#allocation5 + $0x2] sm:$0x3] %v5686_v35  ;;  %v6059_v45 = vrot.slane %v5694_v29, 3  ;;  %v6184_v35 = vld [vmem:[#allocation6] sm:$0x3] }
 0x636   : > { %v5668_v61 = vsel %vm3896_vm6, %v5667_v31, %v5666_v44  ;;  %v6066_v6 = vsel %vm5715_vm0, %v5694_v29, %v6057_v37  ;;  %v7804_v44 = vld [vmem:[%s11292_s4 + $0x88] sm:$0xff]  ;;  %v6185_v31 = vsel %vm10825_vm15, 0, %v6184_v35 }
 0x637   : > { %v5670_v59 = vpack.c.b16 %v5668_v61, %v5668_v61  ;;  %v6067_v25 = vsel %vm3899_vm13, %v6058_v63, %v6059_v45  ;;  %v7812_v61 = vld [vmem:[%s11311_s5 + $0x38] sm:$0xff]  ;;  %6186 = vst [vmem:[#allocation6] sm:$0x3] %v6185_v31  ;;  %v7823_v31 = vld [vmem:[%s11311_s5 + $0x90] sm:$0xff] }
 0x639   : > { %v5672_v23 = vrot.slane %v5670_v59, 2 }
 0x63b   : > { %v5678_v38 = vsel %vm11306_vm9, %v5670_v59, %v5672_v23  ;;  %v7808_v59 = vld [vmem:[%s11311_s5 + $0x18] sm:$0xff]  ;;  %v6068_v23 = vsel %vm5718_vm2, %v6066_v6, %v6067_v25 }
 0x63c   : > { %v10746_v20 = vld [vmem:[#allocation5 + $0x2] sm:$0x3]  ;;  %v5689_v26 = vsel %vm10737_vm5, %v5678_v38, %v5688_v42  ;;  %v7803_v42 = vld [vmem:[%s11292_s4 + $0x80] sm:$0xff]  ;;  %v6061_v38 = vsel %vm5230_vm11, %v5694_v29, %v6057_v37  ;;  %v7819_v37 = vld [vmem:[%s11311_s5 + $0x70] sm:$0xff]  ;;  %s10932_s4 = scalar_lea.vmem [#allocation11], %s6960_s26  ;;  %s7943_s26 = sshra.s32 %s6746_s7, 4  ;;  %s7944_s26 = int_to_ptr.hbm [resolvable:$true] %s7943_s26 }
 0x63d   : > { %v5704_v15 = vrot.slane %v10746_v20, 1  ;;  %v5705_v24 = vrot.slane %v10746_v20, 2  ;;  %v5706_v30 = vrot.slane %v10746_v20, 3  ;;  %5690 = vst [vmem:[#allocation5 + $0x4] sm:$0x3] %v5689_v26  ;;  %v7811_v26 = vld [vmem:[%s11311_s5 + $0x30] sm:$0xff]  ;;  %p7950_p0 = scmp.lt.s32.totalorder %s7944_s26, %s11316_s13 }
 0x63e   : > { %v6208_v10 = vld [vmem:[#allocation6] sm:$0x3]  ;;  %v7824_v25 = vld [vmem:[%s11311_s5 + $0x98] sm:$0xff]  ;;  %s7945_s6 = scalar_lea.hbm %s7944_s26, 16 }
 0x63f   : > { %v5724_v14 = vsel %vm5230_vm11, %v10746_v20, %v5704_v15  ;;  %v5727_v36 = vsel %vm3896_vm6, %v5705_v24, %v5706_v30  ;;  %v5729_v41 = vsel %vm5715_vm0, %v10746_v20, %v5704_v15  ;;  %v5730_v60 = vsel %vm3899_vm13, %v5705_v24, %v5706_v30  ;;  %v7807_v15 = vld [vmem:[%s11311_s5 + $0x10] sm:$0xff]  ;;  %p7946_p11 = scmp.ne.s32.totalorder %s7944_s26, %s7945_s6  ;;  %p7951_p1 = scmp.lt.s32.totalorder %s7949_s11, %s7945_s6 }
 0x640   : > { %v5728_v9 = vsel %vm11307_vm14, %v5724_v14, %v5727_v36  ;;  %v5731_v11 = vsel %vm5718_vm2, %v5729_v41, %v5730_v60  ;;  %v6070_v30 = vrot.slane %v6068_v23, 1  ;;  %v7810_v41 = vld [vmem:[%s11311_s5 + $0x28] sm:$0xff] }
 0x641   : > { %v5733_v3 = vrot.slane %v5731_v11, 1  ;;  %v5755_v28 = vshrl.u32 %v5728_v9, 16  ;;  %v7806_v60 = vld [vmem:[%s11311_s5 + $0x8] sm:$0xff]  ;;  %v7816_v9 = vld [vmem:[%s11311_s5 + $0x58] sm:$0xff]  ;;  %p7947_p12 = pnand %p7946_p11, %p8212_p5  ;;  %p7952_p2 = por %p7951_p1, %p7950_p0 }
 0x642   : > { %v6076_v36 = vshll.u32 %v6070_v30, 16 }
 0x643   : > { %v5760_v47 = vshll.u32 %v5733_v3, 16  ;;  %v7809_v3 = vld [vmem:[%s11311_s5 + $0x20] sm:$0xff]  ;;  %p7948_p13 = pneg %p7947_p12 }
 0x644   : > { %v10784_v2 = vld [vmem:[#allocation5 + $0x4] sm:$0x3] }
 0x645   : > { %v5762_v7 = vsel %vm10723_vm8, %v5755_v28, %v5760_v47  ;;  %v5915_v62 = vrot.slane %v10784_v2, 1  ;;  %v5916_v51 = vrot.slane %v10784_v2, 2  ;;  %v7805_v28 = vld [vmem:[%s11311_s5] sm:$0xff]  ;;  %v7815_v47 = vld [vmem:[%s11311_s5 + $0x50] sm:$0xff]  ;;  %p7953_p3 = pnand %p7952_p2, %p7948_p13 }
 0x646   : > { %5772 = vst [vmem:[#allocation1 + $0x1] ss:$9 sm:$0xff] %v5762_v7 }
 0x647   : > { %v5924_v33 = vsel %vm5715_vm0, %v10784_v2, %v5915_v62  ;;  %v5919_v4 = vsel %vm5230_vm11, %v10784_v2, %v5915_v62  ;;  %vm6203_vm11 = vcmask 516096   ;;  %vm11315_vm0 = vsmask.f32 7938 }
 0x64d   : > { %v5773_v40 = vld [vmem:[#allocation1] sm:$0xff] }
 0x64e   : > { %7426 = vmatmul.msk.bf16.vlgmr.msra.gmra.mxu1 %vm5786_vm10, %v5773_v40  ;;  %5802 = vst [vmem:[#allocation1] ss:$9 sm:$0xff] %v10699_v1 }
 0x64f   : > { %5804 = vst [vmem:[#allocation1 + $0x1] ss:$9 sm:$0xff] %v10746_v20  ;;  %6152 = vmatpush.bf16.msra.mxu1 %v7804_v44  ;;  %v7817_v44 = vld [vmem:[%s11311_s5 + $0x60] sm:$0xff] }
 0x650   : > { %5836 = vst [vmem:[#allocation1 + $0x10] sm:$0xff] %v10746_v20 }
 0x653   : > { %6153 = vmatpush.bf16.msra.mxu1 %v7803_v42 }
 0x656   : > { %v5805_v22 = vld [vmem:[#allocation1] sm:$0xff] }
 0x657   : > { %7435 = vmatmul.msk.bf16.vlgmr.msra.gmra.mxu2 %vm5786_vm10, %v5805_v22  ;;  %5833 = vst [vmem:[#allocation1] sm:$0xff] %v10699_v1  ;;  %v5838_v57 = vld [vmem:[#allocation1 + $0x11] ss:$2 sm:$0xff]  ;;  %v5917_v1 = vrot.slane %v10784_v2, 3 }
 0x658   : > { %6265 = vmatpush.bf16.msra.mxu2 %v7812_v61 }
 0x659   : > { %v5925_v12 = vsel %vm3899_vm13, %v5916_v51, %v5917_v1  ;;  %v5922_v39 = vsel %vm3896_vm6, %v5916_v51, %v5917_v1  ;;  %vm11312_vm13 = vmmov %vm11305_vm4 }
 0x65a   : > { %v5926_v50 = vsel %vm5718_vm2, %v5924_v33, %v5925_v12  ;;  %v5923_v5 = vsel %vm11308_vm7, %v5919_v4, %v5922_v39  ;;  %vm6204_vm2 = vmand %vm6203_vm11, %vm11315_vm0 }
 0x65b   : > { %v5928_v27 = vrot.slane %v5926_v50, 1  ;;  %v5929_v13 = vshrl.u32 %v5923_v5, 16 }
 0x65c   : > { %6266 = vmatpush.bf16.msra.mxu2 %v7811_v26  ;;  %v7822_v26 = vld [vmem:[%s11311_s5 + $0x88] sm:$0xff] }
 0x65d   : > { %v5934_v48 = vshll.u32 %v5928_v27, 16 }
 0x65e   : > { %v5835_v49 = vld [vmem:[#allocation1 + $0x1] ss:$2 sm:$0xff] }
 0x65f   : > { %5844 = vst [vmem:[#allocation1] ss:$9 sm:$0xff] %v5835_v49  ;;  %v5936_v52 = vsel %vm10723_vm8, %v5929_v13, %v5934_v48 }
 0x660   : > { %5846 = vst [vmem:[#allocation1 + $0x1] ss:$9 sm:$0xff] %v5838_v57  ;;  %6267 = vmatpush.bf16.msra.mxu2 %v7810_v41  ;;  %v7821_v41 = vld [vmem:[%s11311_s5 + $0x80] sm:$0xff] }
 0x664   : > { %6268 = vmatpush.bf16.msra.mxu2 %v7809_v3 }
 0x667   : > { %v5847_v58 = vld [vmem:[#allocation1] sm:$0xff] }
 0x668   : > { %7448 = vmatmul.msk.bf16.vlgmr.msra.gmra.mxu3 %vm5786_vm10, %v5847_v58  ;;  %5881 = vst [vmem:[#allocation1] ss:$9 sm:$0xff] %v10746_v20 }
 0x669   : > { %5884 = vst [vmem:[#allocation1 + $0x1] ss:$9 sm:$0xff] %v10784_v2  ;;  %6304 = vmatpush.bf16.msra.mxu3 %v7808_v59  ;;  %v7914_v59 = vld [vmem:[%s11313_s9] ss:$0 sm:$0xff] }
 0x66d   : > { %6305 = vmatpush.bf16.msra.mxu3 %v7807_v15  ;;  %v7828_v15 = vld [vmem:[%s11311_s5 + $0xb8] sm:$0xff] }
 0x670   : > { %v5885_v54 = vld [vmem:[#allocation1] sm:$0xff] }
 0x671   : > { %7461 = vmatmul.msk.bf16.vlgmr.msrb.gmra.mxu0 %vm5786_vm10, %v5885_v54  ;;  %5942 = vst [vmem:[#allocation1] ss:$9 sm:$0xff] %v5762_v7  ;;  %6306 = vmatpush.bf16.msra.mxu3 %v7806_v60  ;;  %v7813_v7 = vld [vmem:[%s11311_s5 + $0x40] sm:$0xff]  ;;  %v6187_v54 = vld [vmem:[#allocation6 + $0x2] sm:$0x3] }
 0x672   : > { %5945 = vst [vmem:[#allocation1 + $0x1] ss:$9 sm:$0xff] %v5936_v52  ;;  %6357 = vmatpush.bf16.msrb.mxu0 %v7816_v9  ;;  %v6188_v46 = vsel %vm10825_vm15, 0, %v6187_v54  ;;  %v7827_v60 = vld [vmem:[%s11311_s5 + $0xb0] sm:$0xff]  ;;  %v7837_v54 = vld [vmem:[%s11311_s5 + $0x100] sm:$0xff] }
 0x673   : > { %5978 = vst [vmem:[#allocation1 + $0x10] sm:$0xff] %v10784_v2 }
 0x674   : > { %6189 = vst [vmem:[#allocation6 + $0x2] sm:$0x3] %v6188_v46 }
 0x675   : > { %6307 = vmatpush.bf16.msra.mxu3 %v7805_v28  ;;  %v7826_v28 = vld [vmem:[%s11311_s5 + $0xa8] sm:$0xff] }
 0x676   : > { %6358 = vmatpush.bf16.msrb.mxu0 %v7815_v47  ;;  %v7832_v47 = vld [vmem:[%s11311_s5 + $0xd8] sm:$0xff] }
 0x679   : > { %v5946_v16 = vld [vmem:[#allocation1] sm:$0xff] }
 0x67a   : > { %7475 = vmatmul.msk.bf16.vlgmr.msrb.gmra.mxu1 %vm5786_vm10, %v5946_v16  ;;  %5975 = vst [vmem:[#allocation1] sm:$0xff] %v10746_v20  ;;  %v5980_v8 = vld [vmem:[#allocation1 + $0x11] ss:$2 sm:$0xff]  ;;  %v6064_v20 = vsel %vm3896_vm6, %v6058_v63, %v6059_v45  ;;  %6359 = vmatpush.bf16.msrb.mxu0 %v7814_v21  ;;  %vm6257_vm6 = vcmask 523264  }
 0x67b   : > { %v6065_v34 = vsel %vm11312_vm13, %v6061_v38, %v6064_v20  ;;  %6407 = vmatpush.bf16.msrb.mxu1 %v7820_v17  ;;  %v7915_v20 = vld [vmem:[%s11313_s9 + $0x1] ss:$0 sm:$0xff] }
 0x67c   : > { %v6071_v14 = vshrl.u32 %v6065_v34, 16  ;;  %v7916_v34 = vld [vmem:[%s11313_s9 + $0x2] ss:$0 sm:$0xff] }
 0x67e   : > { %v6078_v11 = vsel %vm10723_vm8, %v6071_v14, %v6076_v36  ;;  %6360 = vmatpush.bf16.msrb.mxu0 %v7813_v7  ;;  %v7825_v7 = vld [vmem:[%s11311_s5 + $0xa0] sm:$0xff] }
 0x67f   : > { %6408 = vmatpush.bf16.msrb.mxu1 %v7819_v37 }
 0x681   : > { %v5977_v18 = vld [vmem:[#allocation1 + $0x1] ss:$2 sm:$0xff] }
 0x682   : > { %5986 = vst [vmem:[#allocation1] ss:$9 sm:$0xff] %v5977_v18 }
 0x683   : > { %5988 = vst [vmem:[#allocation1 + $0x1] ss:$9 sm:$0xff] %v5980_v8  ;;  %v7818_v8 = vld [vmem:[%s11311_s5 + $0x68] sm:$0xff] }
 0x684   : > { %6409 = vmatpush.bf16.msrb.mxu1 %v7818_v8 }
 0x688   : > { %6410 = vmatpush.bf16.msrb.mxu1 %v7817_v44 }
 0x68a   : > { %v5989_v24 = vld [vmem:[#allocation1] sm:$0xff] }
 0x68b   : > { %7488 = vmatmul.msk.bf16.vlgmr.msrb.gmra.mxu2 %vm5786_vm10, %v5989_v24  ;;  %6023 = vst [vmem:[#allocation1] ss:$9 sm:$0xff] %v10784_v2 }
 0x68c   : > { %6026 = vst [vmem:[#allocation1 + $0x1] ss:$9 sm:$0xff] %v5694_v29  ;;  %6461 = vmatpush.bf16.msrb.mxu2 %v7824_v25 }
 0x690   : > { %6462 = vmatpush.bf16.msrb.mxu2 %v7823_v31 }
 0x693   : > { %v6027_v43 = vld [vmem:[#allocation1] sm:$0xff] }
 0x694   : > { %7501 = vmatmul.msk.bf16.vlgmr.msrb.gmra.mxu3 %vm5786_vm10, %v6027_v43  ;;  %6084 = vst [vmem:[#allocation1] ss:$9 sm:$0xff] %v5936_v52  ;;  %6463 = vmatpush.bf16.msrb.mxu2 %v7822_v26 }
 0x695   : > { %6087 = vst [vmem:[#allocation1 + $0x1] ss:$9 sm:$0xff] %v6078_v11  ;;  %6515 = vmatpush.bf16.msrb.mxu3 %v7828_v15  ;;  %v6190_v11 = vld [vmem:[#allocation6 + $0x4] sm:$0x3] }
 0x696   : > { %6120 = vst [vmem:[#allocation1 + $0x10] sm:$0xff] %v5694_v29  ;;  %v6191_v43 = vsel %vm10825_vm15, 0, %v6190_v11 }
 0x697   : > { %6192 = vst [vmem:[#allocation6 + $0x4] sm:$0x3] %v6191_v43 }
 0x698   : > { %6464 = vmatpush.bf16.msrb.mxu2 %v7821_v41 }
 0x699   : > { %6516 = vmatpush.bf16.msrb.mxu3 %v7827_v60 }
 0x69c   : > { %v6088_v40 = vld [vmem:[#allocation1] sm:$0xff] }
 0x69d   : > { %7515 = vmatmul.msk.bf16.vlgmr.msra.gmra.mxu0 %vm5786_vm10, %v6088_v40  ;;  %6117 = vst [vmem:[#allocation1] sm:$0xff] %v10784_v2  ;;  %v6122_v53 = vld [vmem:[#allocation1 + $0x11] ss:$2 sm:$0xff]  ;;  %6517 = vmatpush.bf16.msrb.mxu3 %v7826_v28 }
 0x69e   : > { %6565 = vmatpush.bf16.msra.mxu0 %v7832_v47  ;;  %v7831_v40 = vld [vmem:[%s11311_s5 + $0xd0] sm:$0xff] }
 0x6a1   : > { %6518 = vmatpush.bf16.msrb.mxu3 %v7825_v7 }
 0x6a2   : > { %6566 = vmatpush.bf16.msra.mxu0 %v7831_v40 }
 0x6a4   : > { %v6119_v22 = vld [vmem:[#allocation1 + $0x1] ss:$2 sm:$0xff]  ;;  %7571 = vmatmul.msk.bf16.vlgmr.msra.gmra.mxu3 %vm6257_vm6, %v6208_v10 }
 0x6a5   : > { %6128 = vst [vmem:[#allocation1] ss:$9 sm:$0xff] %v6119_v22 }
 0x6a6   : > { %6130 = vst [vmem:[#allocation1 + $0x1] ss:$9 sm:$0xff] %v6122_v53  ;;  %v7835_v53 = vld [vmem:[%s11311_s5 + $0xf0] sm:$0xff] }
 0x6ad   : > { %v6131_v19 = vld [vmem:[#allocation1] sm:$0xff] }
 0x6ae   : > { %7528 = vmatmul.msk.bf16.vlgmr.msra.gmra.mxu1 %vm5786_vm10, %v6131_v19  ;;  %6229 = vst [vmem:[#allocation1] ss:$4 sm:$0xff] %v6208_v10 }
 0x6af   : > { %6619 = vmatpush.bf16.msra.mxu1 %v7836_v56 }
 0x6b3   : > { %6620 = vmatpush.bf16.msra.mxu1 %v7835_v53 }
 0x6b5   : > { %v6230_v32 = vld.sshfl [vmem:[#allocation1] sm:$0xff pattern:$0x73625140] }
 0x6b6   : > { %6322 = vst [vmem:[#allocation1] ss:$4 sm:$0xff] %v6208_v10  ;;  %v6231_v49 = vshrl.u32 %v6230_v32, 16 }
 0x6b8   : > { %7554 = vmatmul.msk.bf16.vlgmr.msra.gmra.mxu2 %vm6257_vm6, %v6231_v49 }
 0x6bd   : > { %v6323_v57 = vld.sshfl [vmem:[#allocation1] sm:$0xff pattern:$0x73625140] }
 0x6be   : > { %v6325_v2 = vrot.slane %v6323_v57, 1 }
 0x6c0   : > { %7596 = vmatmul.msk.bf16.vlgmr.msrb.gmra.mxu0 %vm6257_vm6, %v6325_v2 }
 0x6cb   : > { %v5798_v62 = vpop.f32.mrf.mxu1 }
 0x6d3   : > { %v5800_v51 = vpop.f32.mrf.mxu1 }
 0x6d4   : > { %v7830_v51 = vld [vmem:[%s11311_s5 + $0xc8] sm:$0xff] }
 0x6d5   : > { %6567 = vmatpush.bf16.msra.mxu0 %v7830_v51 }
 0x6da   : > { %v5829_v1 = vpop.f32.mrf.mxu2 }
 0x6db   : > { %v5830_v33 = vadd.f32 %v5829_v1, %v5798_v62  ;;  %v7840_v62 = vld [vmem:[%s11311_s5 + $0x118] sm:$0xff]  ;;  %v7834_v1 = vld [vmem:[%s11311_s5 + $0xe8] sm:$0xff] }
 0x6dc   : > { %6673 = vmatpush.bf16.msra.mxu2 %v7840_v62  ;;  %6621 = vmatpush.bf16.msra.mxu1 %v7834_v1 }
 0x6e2   : > { %v5831_v12 = vpop.f32.mrf.mxu2 }
 0x6e3   : > { %v7839_v12 = vld [vmem:[%s11311_s5 + $0x110] sm:$0xff] }
 0x6e4   : > { %6674 = vmatpush.bf16.msra.mxu2 %v7839_v12 }
 0x6eb   : > { %v5871_v50 = vpop.f32.mrf.mxu3 }
 0x6ec   : > { %v5875_v52 = vadd.f32 %v5871_v50, %v5830_v33  ;;  %v7829_v50 = vld [vmem:[%s11311_s5 + $0xc0] sm:$0xff] }
 0x6ed   : > { %6568 = vmatpush.bf16.msra.mxu0 %v7829_v50 }
 0x6ee   : > { %v5909_v58 = vpop.f32.mrf.mxu0 }
 0x6ef   : > { %v5913_v29 = vadd.f32 %v5909_v58, %v5875_v52 }
 0x6f3   : > { %v5873_v4 = vpop.f32.mrf.mxu3 }
 0x6f4   : > { %v6205_v4 = vld [vmem:[#allocation6 + $0x2] sm:$0x1] }
 0x6f6   : > { %v5911_v39 = vpop.f32.mrf.mxu0 }
 0x6f7   : > { %v5970_v27 = vpop.f32.mrf.mxu1  ;;  %v7833_v39 = vld [vmem:[%s11311_s5 + $0xe0] sm:$0xff] }
 0x6f8   : > { %v5974_v63 = vadd.f32 %v5970_v27, %v5913_v29  ;;  %6622 = vmatpush.bf16.msra.mxu1 %v7833_v39 }
 0x6ff   : > { %v5972_v0 = vpop.f32.mrf.mxu1 }
 0x70e   : > { %v6013_v5 = vpop.f32.mrf.mxu2 }
 0x70f   : > { %v6017_v18 = vadd.f32 %v6013_v5, %v5974_v63 }
 0x716   : > { %v6015_v48 = vpop.f32.mrf.mxu2 }
 0x717   : > { %v6051_v55 = vpop.f32.mrf.mxu3 }
 0x718   : > { %v6055_v6 = vadd.f32 %v6051_v55, %v6017_v18  ;;  %v6210_v55 = vld [vmem:[#allocation6 + $0x4] sm:$0x3] }
 0x719   : > { %7696 = vmatmul.msk.bf16.vlgmr.msra.gmra.mxu0 %vm6257_vm6, %v6210_v55 }
 0x71a   : > { %v6112_v13 = vpop.f32.mrf.mxu0 }
 0x71b   : > { %v6116_v61 = vadd.f32 %v6112_v13, %v6055_v6  ;;  %v7838_v13 = vld [vmem:[%s11311_s5 + $0x108] sm:$0xff] }
 0x71c   : > { %6675 = vmatpush.bf16.msra.mxu2 %v7838_v13 }
 0x71f   : > { %v6053_v16 = vpop.f32.mrf.mxu3 }
 0x720   : > { %6676 = vmatpush.bf16.msra.mxu2 %v7837_v54 }
 0x722   : > { %v6114_v45 = vpop.f32.mrf.mxu0 }
 0x727   : > { %v6309_v35 = vpop.f32.mrf.mxu3 }
 0x72b   : > { %v6155_v23 = vpop.f32.mrf.mxu1 }
 0x72c   : > { %v6159_v42 = vadd.f32 %v6155_v23, %v6116_v61 }
 0x72e   : > { %v6164_v38 = vadd.f32 %v7914_v59, %v6159_v42 }
 0x72f   : > { %v6311_v24 = vpop.f32.mrf.mxu3 }
 0x730   : > { %v6165_v30 = vmax.f32 %v6164_v38, 0.0 }
 0x732   : > { %v6167_v14 = vmul.f32 %v7915_v20, %v6165_v30 }
 0x733   : > { %v6157_v36 = vpop.f32.mrf.mxu1 }
 0x734   : > { %v6169_v9 = vadd.f32 %v7916_v34, %v6167_v14 }
 0x736   : > { %v6171_v3 = vrot.slane %v6169_v9, 2  ;;  %6174 = vst.msk [vmem:[%s10932_s4] sm:$0x3] %vm6173_vm3, %v6169_v9 }
 0x738   : > { %v6176_v21 = vmax.f32 %v6169_v9, %v6171_v3  ;;  %6175 = vst.msk [vmem:[%s10932_s4 + $0x2] sm:$0x3] %vm6173_vm3, %v6171_v3 }
 0x73a   : > { %v7529_v10 = vrot.slane %v6176_v21, 9 }
 0x73b   : > { %v6270_v22 = vpop.f32.mrf.mxu2 }
 0x73c   : > { %v6181_v19 = vmax.f32 %v6176_v21, %v7529_v10  ;;  %v6310_v32 = vadd.f32 %v6309_v35, %v6270_v22 }
 0x73d   : > { %v6362_v49 = vpop.f32.mrf.mxu0 }
 0x73e   : > { %v6193_v57 = vpack.c.bf16 %v6181_v19, %v6181_v19  ;;  %v10956_v2 = vadd.f32 %v6362_v49, %v6310_v32 }
 0x740   : > { %v6195_v33 = vrot.slane %v6193_v57, 2 }
 0x742   : > { %v6198_v58 = vsel %vm11314_vm1, %v6193_v57, %v6195_v33 }
 0x743   : > { %v6199_v27 = vshll.u32 %v6198_v58, 16  ;;  %v6272_v0 = vpop.f32.mrf.mxu2 }
 0x745   : > { %v6206_v5 = vsel %vm6204_vm2, %v6199_v27, %v6205_v4  ;;  %v6364_v48 = vpop.f32.mrf.mxu0 }
 0x746   : > { %6207 = vst [vmem:[#allocation6 + $0x2] sm:$0x1] %v6206_v5 }
 0x74d   : > { %v6209_v52 = vld [vmem:[#allocation6 + $0x2] sm:$0x3] }
 0x74e   : > { %7621 = vmatmul.msk.bf16.vlgmr.msrb.gmra.mxu1 %vm6257_vm6, %v6209_v52  ;;  %6426 = vst [vmem:[#allocation1] ss:$4 sm:$0xff] %v6209_v52 }
 0x755   : > { %v6427_v46 = vld.sshfl [vmem:[#allocation1] sm:$0xff pattern:$0x73625140] }
 0x756   : > { %6480 = vst [vmem:[#allocation1] ss:$4 sm:$0xff] %v6209_v52  ;;  %v6428_v17 = vshrl.u32 %v6427_v46, 16 }
 0x758   : > { %7646 = vmatmul.msk.bf16.vlgmr.msrb.gmra.mxu2 %vm6257_vm6, %v6428_v17 }
 0x75d   : > { %v6481_v16 = vld.sshfl [vmem:[#allocation1] sm:$0xff pattern:$0x73625140] }
 0x75e   : > { %v6483_v29 = vrot.slane %v6481_v16, 1  ;;  %6584 = vst [vmem:[#allocation1] ss:$4 sm:$0xff] %v6210_v55 }
 0x760   : > { %7671 = vmatmul.msk.bf16.vlgmr.msrb.gmra.mxu3 %vm6257_vm6, %v6483_v29 }
 0x765   : > { %v6585_v37 = vld.sshfl [vmem:[#allocation1] sm:$0xff pattern:$0x73625140] }
 0x766   : > { %v6586_v63 = vshrl.u32 %v6585_v37, 16  ;;  %6638 = vst [vmem:[#allocation1] ss:$4 sm:$0xff] %v6210_v55 }
 0x768   : > { %7721 = vmatmul.msk.bf16.vlgmr.msra.gmra.mxu1 %vm6257_vm6, %v6586_v63 }
 0x76d   : > { %v6639_v45 = vld.sshfl [vmem:[#allocation1] sm:$0xff pattern:$0x73625140] }
 0x76e   : > { %v6641_v18 = vrot.slane %v6639_v45, 1 }
 0x770   : > { %7746 = vmatmul.msk.bf16.vlgmr.msra.gmra.mxu2 %vm6257_vm6, %v6641_v18 }
 0x771   : > { %7956 = shalt.err (!%p7953_p3)
}
 0x772   : > { %s8086_s17 = smov 64   ;;  %s8087_s30 = smov 4  }
 0x773   : > { %7845 = dma.vmem_to_hbm [thread:$0]  (%p8212_p5), %s6744_s3, 256, %s6746_s7, %s10996_s8, %s8086_s17, %s8086_s17, %s8087_s30  }
 0x774   : > { %s7841_s5 = sshll.u32 %s8193_s22, 6  ;;  %s6726_s9 = sshll.u32 %s10390_s25, 4  ;;  %s6727_s9 = int_to_ptr.vmem [resolvable:$true] %s6726_s9 }
 0x775   : > { %s6725_s27 = scalar_lea.hbm %s11098_s12, %s7841_s5  ;;  %s6697_s2 = scalar_lea.sflag [#allocation8], %s10370_s0 }
 0x776   : > { %s6728_s11 = sshll.u32 %s6725_s27, 4  ;;  %s7977_s3 = scalar_lea.hbm %s11098_s12, 128  ;;  %s6729_s11 = int_to_ptr.hbm [resolvable:$true] %s6728_s11 }
 0x777   : > { %s7971_s26 = sshra.s32 %s6729_s11, 4  ;;  %s7972_s26 = int_to_ptr.hbm [resolvable:$true] %s7971_s26 }
 0x778   : > { %s7973_s6 = scalar_lea.hbm %s7972_s26, 64  ;;  %p7978_p9 = scmp.lt.s32.totalorder %s7972_s26, %s11098_s12 }
 0x779   : > { %p7974_p4 = scmp.ne.s32.totalorder %s7972_s26, %s7973_s6  ;;  %p7979_p10 = scmp.lt.s32.totalorder %s7977_s3, %s7973_s6 }
 0x77b   : > { %p7975_p7 = pnand %p7974_p4, %p8212_p5  ;;  %p7980_p11 = por %p7979_p10, %p7978_p9 }
 0x77d   : > { %p7976_p8 = pneg %p7975_p7 }
 0x77f   : > { %p7981_p12 = pnand %p7980_p11, %p7976_p8 }
 0x781   : > { %7984 = shalt.err (!%p7981_p12)
}
 0x782   : > { %s8088_s17 = smov 128   ;;  %s8089_s30 = smov 8  }
 0x783   : > { %7844 = dma.vmem_to_hbm [thread:$0]  (%p8212_p5), %s6727_s9, 1024, %s6729_s11, %s6697_s2, %s8088_s17, %s8088_s17, %s8089_s30  }
 0x784   : > { %s7843_s5 = sshll.u32 %s8193_s22, 2  ;;  %s6760_s16 = sshll.u32 %s10932_s4, 4  ;;  %s6761_s16 = int_to_ptr.vmem [resolvable:$true] %s6760_s16 }
 0x785   : > { %s6759_s27 = scalar_lea.hbm %s11100_s14, %s7843_s5  ;;  %s8005_s9 = scalar_lea.hbm %s11100_s14, 8 }
 0x786   : > { %s6762_s26 = sshll.u32 %s6759_s27, 4  ;;  %s6763_s26 = int_to_ptr.hbm [resolvable:$true] %s6762_s26 }
 0x787   : > { %s7999_s6 = sshra.s32 %s6763_s26, 4  ;;  %s8000_s6 = int_to_ptr.hbm [resolvable:$true] %s7999_s6 }
 0x788   : > { %s8001_s23 = scalar_lea.hbm %s8000_s6, 4  ;;  %p8006_p2 = scmp.lt.s32.totalorder %s8000_s6, %s11100_s14 }
 0x789   : > { %p8002_p13 = scmp.ne.s32.totalorder %s8000_s6, %s8001_s23  ;;  %p8007_p3 = scmp.lt.s32.totalorder %s8005_s9, %s8001_s23 }
 0x78b   : > { %p8003_p0 = pnand %p8002_p13, %p8212_p5  ;;  %p8008_p4 = por %p8007_p3, %p8006_p2 }
 0x78d   : > { %p8004_p1 = pneg %p8003_p0 }
 0x78f   : > { %p8009_p7 = pnand %p8008_p4, %p8004_p1 }
 0x791   : > { %8012 = shalt.err (!%p8009_p7)
}
 0x792   : > { %s8090_s2 = smov 32   ;;  %s8091_s7 = smov 2   ;;  %v6683_v34 = vld [vmem:[%s11096_s10] sm:$0x1]  ;;  %v6684_v41 = vld [vmem:[%s11096_s10 + $0x1] sm:$0x1] }
 0x793   : > { %7846 = dma.vmem_to_hbm [thread:$0]  (%p8212_p5), %s6761_s16, 64, %s6763_s26, %s10996_s8, %s8090_s2, %s8090_s2, %s8091_s7  }
 0x794   : > { %s6774_s16 = scalar_lea.hbm %s11101_s15, %s8193_s22  ;;  %v6685_v9 = vld [vmem:[%s11096_s10 + $0x2] sm:$0x1]  ;;  %s521_s6 = scalar_lea.vmem [#allocation12], %s10370_s0 }
 0x795   : > { %s6776_s23 = sshll.u32 %s521_s6, 4  ;;  %s6778_s3 = sshll.u32 %s6774_s16, 4  ;;  %s6777_s23 = int_to_ptr.vmem [resolvable:$true] %s6776_s23  ;;  %s6779_s3 = int_to_ptr.hbm [resolvable:$true] %s6778_s3 }
 0x796   : > { %v6570_v8 = vpop.f32.mrf.mxu0  ;;  %s6712_s22 = scalar_lea.sflag [#allocation13], %s10370_s0  ;;  %s8027_s25 = sshra.s32 %s6779_s3, 4  ;;  %s8028_s25 = int_to_ptr.hbm [resolvable:$true] %s8027_s25 }
 0x797   : > { %s8029_s9 = scalar_lea.hbm %s8028_s25, 1  ;;  %s8033_s2 = scalar_lea.hbm %s11101_s15, 2 }
 0x798   : > { %p8030_p8 = scmp.ne.s32.totalorder %s8028_s25, %s8029_s9  ;;  %p8034_p11 = scmp.lt.s32.totalorder %s8028_s25, %s11101_s15 }
 0x799   : > { %p8035_p12 = scmp.lt.s32.totalorder %s8033_s2, %s8029_s9 }
 0x79a   : > { %p8031_p9 = pnand %p8030_p8, %p8212_p5 }
 0x79b   : > { %p8036_p13 = por %p8035_p12, %p8034_p11 }
 0x79c   : > { %p8032_p10 = pneg %p8031_p9 }
 0x79e   : > { %v6572_v25 = vpop.f32.mrf.mxu0  ;;  %p8037_p0 = pnand %p8036_p13, %p8032_p10 }
 0x7cb   : > { %v6412_v6 = vpop.f32.mrf.mxu1 }
 0x7cc   : > { %v6416_v23 = vadd.f32 %v6412_v6, %v10956_v2 }
 0x7d3   : > { %v6414_v35 = vpop.f32.mrf.mxu1 }
 0x7db   : > { %v6466_v44 = vpop.f32.mrf.mxu2 }
 0x7dc   : > { %v6470_v42 = vadd.f32 %v6466_v44, %v6416_v23 }
 0x7e3   : > { %v6468_v31 = vpop.f32.mrf.mxu2  ;;  %v6520_v61 = vpop.f32.mrf.mxu3 }
 0x7e4   : > { %v6524_v38 = vadd.f32 %v6520_v61, %v6470_v42 }
 0x7e5   : > { %v6624_v59 = vpop.f32.mrf.mxu1 }
 0x7e6   : > { %v6574_v15 = vadd.f32 %v6570_v8, %v6524_v38 }
 0x7e8   : > { %v6628_v24 = vadd.f32 %v6624_v59, %v6574_v15 }
 0x7eb   : > { %v6522_v20 = vpop.f32.mrf.mxu3 }
 0x7ed   : > { %v6626_v26 = vpop.f32.mrf.mxu1 }
 0x7f3   : > { %v6678_v30 = vpop.f32.mrf.mxu2 }
 0x7f4   : > { %v6682_v14 = vadd.f32 %v6678_v30, %v6628_v24 }
 0x7f6   : > { %v6686_v36 = vadd.f32 %v6683_v34, %v6682_v14 }
 0x7f8   : > { %v6687_v60 = vmax.f32 %v6686_v36, 0.0 }
 0x7fa   : > { %v6688_v11 = vmul.f32 %v6687_v60, %v6684_v41 }
 0x7fb   : > { %v6680_v43 = vpop.f32.mrf.mxu2 }
 0x7fc   : > { %v6689_v3 = vadd.f32 %v6688_v11, %v6685_v9 }
 0x7fe   : > { %6690 = vst [vmem:[%s521_s6] sm:$0x1] %v6689_v3 }
 0x7ff   : > { %8040 = shalt.err (!%p8037_p0)
}
 0x800   : > { %7847 = dma.vmem_to_hbm [thread:$0]  (%p8212_p5), %s6777_s23, 16, %s6779_s3, %s6712_s22  }
 0x801 PF: > { %p7865_p1 = scmp.ge.s32.totalorder %s8083_s21, 2  ;;  %s6798_s0 = sand.u32 1, %s8071_s18  }
 0x802   : > { %s6799_s17 = scalar_lea.sflag [#allocation8], %s6798_s0 }
 0x803   : > { %p7853_p2 = pnand %p7865_p1, %p8216_p6 }
 0x805   : > { %p7854_p3 = pneg %p7853_p2 }
 0x807   : > { %8058 = dma.done.wait (%p7854_p3), %s6799_s17, 1024  }
 0x808   : > { %8060 = vsyncadd (%p7854_p3), %s6799_s17, 4294966272  ;;  %s11317_s30 = sadd.s32 4294967294, %s8083_s21  }
 0x809   : > { %s6808_s5 = sand.u32 1, %s11317_s30  }
 0x80a   : > { %s6809_s16 = scalar_lea.sflag [#allocation10], %s6808_s5 }
 0x80b   : > { %8062 = dma.done.wait (%p7854_p3), %s6809_s16, 320  }
 0x80c   : > { %8064 = vsyncadd (%p7854_p3), %s6809_s16, 4294966976  ;;  %s6829_s28 = scalar_lea.sflag [#allocation13], %s6798_s0 }
 0x80d   : > { %8066 = dma.done.wait (%p7854_p3), %s6829_s28, 16  }
 0x80e   : > { %8068 = vsyncadd (%p7854_p3), %s6829_s28, 4294967280  ;;  %s11318_s13 = sld [smem:[#allocation17_spill]]  ;;  %p32_p5 = scmp.ge.s32.totalorder %s8197_s24, 4  }
 0x80f   : > { %s11319_s18 = smov %s8075_s19  ;;  %s11320_s19 = smov %s8079_s20 }
 0x810   : > { %s11322_s21 = smov %s8197_s24  ;;  %34 = sbr.rel (!%p32_p5) target bundleno = 20 (0x14), region = 250 }
 0x814   : > { %s11321_s20 = smov %s11318_s13 }
 0x815   :  { %6834 = vsyncpa [#allocation8], 1 }
 0x816   :  { %6836 = vsyncpa [#allocation8 + $0x1], 1 }
 0x817   :  { %6837 = vsyncpa [#allocation10], 1 }
 0x818   :  { %6839 = vsyncpa [#allocation10 + $0x1], 1 }
 0x819   :  { %6840 = vsyncpa [#allocation13], 1 }
 0x81a   :  { %6842 = vsyncpa [#allocation13 + $0x1], 1 }

</bundles_post_ra>
